<compile_context>
chip_gen: v7x
topology: tpu7x:2x2x1
jax: 0.10.0
libtpu: 0.0.40
codegen_flags: <defaults>
</compile_context>

<pallas_src>
import jax
import jax.numpy as jnp
from jax import lax
from jax.experimental import pallas as pl
from jax.experimental.pallas import tpu as pltpu

_BN_EPS = 1e-5  # nn.BatchNorm2d default


# ----------------------------------------------------------------------------
# BN folding / RepConv re-parameterization (tiny, done once in the wrapper).
# ----------------------------------------------------------------------------
def _fold_bn(w, bn):
    """Fold eval-mode BatchNorm into conv weight/bias.  w: (Co, Ci, kh, kw)."""
    gamma, beta, mean, var = bn
    s = gamma / jnp.sqrt(var + _BN_EPS)
    return w * s[:, None, None, None], beta - mean * s


def _fuse_repconv(w3, bn3, w1, bn1):
    """RepConv branches (3x3 conv+BN) + (1x1 conv+BN) -> single 3x3 conv+bias."""
    w3e, b3e = _fold_bn(w3, bn3)
    w1e, b1e = _fold_bn(w1, bn1)
    w1e = jnp.pad(w1e, ((0, 0), (0, 0), (1, 1), (1, 1)))  # 1x1 -> center tap
    return w3e + w1e, b3e + b1e


# ----------------------------------------------------------------------------
# Pallas kernel (one grid step == one batch element, fully resident in VMEM).
# ----------------------------------------------------------------------------
def _make_repc3_kernel(H, W, n_rep, c2, cdtype):
    HW = H * W
    f32 = jnp.float32

    def kernel(x_ref, m1_ref, b1_ref, m2_ref, b2_ref, wr_ref, br_ref,
               o_ref, pad_ref):
        def silu(v):
            return v * jax.nn.sigmoid(v)

        # W-boundary masks for the dx = -1 / +1 rolled copies (built once;
        # reused by every RepConv layer).
        col = lax.broadcasted_iota(jnp.int32, (HW, 1), 0) % W
        ok_l = col > 0            # reading column (w-1) is in-bounds
        ok_r = col < (W - 1)      # reading column (w+1) is in-bounds

        x = x_ref[0]                                       # (HW, C1) compute dtype

        # cv2 branch: compute and park it in o_ref immediately so it is not
        # held live (f32 registers / VMEM temporaries) across the RepConv loop.
        y2 = silu(jnp.dot(x, m2_ref[...], preferred_element_type=f32)
                  + b2_ref[...])
        o_ref[0] = y2.astype(o_ref.dtype)

        # cv1 branch feeds the RepConv stack (bias + SiLU kept in f32).
        y1 = silu(jnp.dot(x, m1_ref[...], preferred_element_type=f32)
                  + b1_ref[...])

        # Zero only the H-border rows (top W rows, bottom W rows) once; the
        # interior [W, W+HW) is fully rewritten by every layer.
        zero_rows = jnp.zeros((W, 3 * c2), cdtype)
        pad_ref[0:W, :] = zero_rows
        pad_ref[W + HW:2 * W + HW, :] = zero_rows

        for li in range(n_rep):                            # static unroll (n small)
            # dx shifts ONCE per layer: XLU sublane rolls with the W-boundary
            # mask baked in (row wrap-around only lands on masked columns).
            left = jnp.where(ok_l, pltpu.roll(y1, 1, 0), 0.0)       # in[.., w-1]
            right = jnp.where(ok_r, pltpu.roll(y1, HW - 1, 0), 0.0)  # in[.., w+1]
            # Lay [left | center | right] side by side on the lane axis.  At
            # real channel counts (C2 % 128 == 0) these are unmasked full-tile
            # stores; cast to compute dtype here (matmul operands).
            pad_ref[W:W + HW, 0:c2] = left.astype(cdtype)
            pad_ref[W:W + HW, c2:2 * c2] = y1.astype(cdtype)
            pad_ref[W:W + HW, 2 * c2:3 * c2] = right.astype(cdtype)

            acc = jnp.zeros((HW, c2), f32)
            for ky in range(3):
                # Offsets ky*W are multiples of 8 (W % 8 == 0): aligned views.
                slab = pad_ref[ky * W:ky * W + HW, :]      # (HW, 3*C2) cdtype
                acc = acc + jnp.dot(slab, wr_ref[li * 3 + ky],
                                    preferred_element_type=f32)
            y1 = silu(acc + br_ref[li])

        # cv3 == Identity (e = 1.0): residual add with the parked cv2 branch.
        o_ref[0] = (y1 + o_ref[0].astype(f32)).astype(o_ref.dtype)

    return kernel


# ----------------------------------------------------------------------------
# Wrapper
# ----------------------------------------------------------------------------
def repc3_forward(x, params, n=3, compute_dtype=jnp.bfloat16):
    """RepC3 forward (e=1.0 -> cv3 = Identity).  x: (B, C1, H, W) NCHW."""
    B, C1, H, W = x.shape
    HW = H * W
    C2 = params["cv1_w"].shape[0]
    assert W % 8 == 0, "flattened conv scratch needs sublane-aligned W"
    # TODO(synk): cv3 (extra 1x1 Conv+BN+SiLU) for the e != 1.0 (c_ != c2) config.
    # TODO(synk): HW row-tiling with a 1-row halo as a second parallel grid axis
    #   (v7x 64 MiB VMEM / 2nd TensorCore) and 128-padding of C1/C2 when needed.

    cdtype = jnp.dtype(compute_dtype) if compute_dtype is not None else x.dtype
    out_dtype = x.dtype

    # --- fold BN / fuse RepConv branches into matmul-friendly weights --------
    w1e, b1 = _fold_bn(params["cv1_w"], params["cv1_bn"])
    w2e, b2 = _fold_bn(params["cv2_w"], params["cv2_bn"])
    m1 = w1e[:, :, 0, 0].T.astype(cdtype)                      # (C1, C2)
    m2 = w2e[:, :, 0, 0].T.astype(cdtype)
    b1 = b1.reshape(1, C2).astype(jnp.float32)
    b2 = b2.reshape(1, C2).astype(jnp.float32)

    taps, biases = [], []
    for i in range(n):
        kmat, bvec = _fuse_repconv(params["rep3_w"][i], params["rep3_bn"][i],
                                   params["rep1_w"][i], params["rep1_bn"][i])
        # (Co, Ci, 3, 3) -> (ky, kx, Ci, Co) -> per ky one (3*Ci, Co) matrix
        # whose rows follow the kernel's [left | center | right] channel order,
        # so each ky tap is a single K = 3*C2 contraction.
        t = jnp.transpose(kmat, (2, 3, 1, 0))
        taps.append(t.reshape(3, 3 * C2, C2))
        biases.append(bvec)
    wr = jnp.concatenate(taps, axis=0).astype(cdtype)          # (n*3, 3C2, C2)
    br = jnp.stack(biases, axis=0).reshape(n, 1, C2).astype(jnp.float32)

    # --- layout plumbing: NCHW -> (B, HW, C); channels on lanes ---------------
    x3 = x.reshape(B, C1, HW).transpose(0, 2, 1).astype(cdtype)

    csize = jnp.dtype(cdtype).itemsize
    osize = jnp.dtype(out_dtype).itemsize

    cost = pl.CostEstimate(
        flops=B * HW * (2 * 2 * C1 * C2 + n * 3 * 2 * 3 * C2 * C2),
        transcendentals=B * HW * C2 * (2 + n),
        bytes_accessed=(x3.size + m1.size + m2.size + wr.size) * csize
        + B * HW * C2 * osize + (b1.size + b2.size + br.size) * 4,
    )

    # Explicit VMEM budget: double-buffered in/out blocks + weights + scratch
    # + an allowance for the f32 live temporaries, with 2x headroom.
    blk_bytes = 2 * (HW * C1 * csize + HW * C2 * osize)
    wt_bytes = 2 * ((m1.size + m2.size + wr.size) * csize
                    + (b1.size + b2.size + br.size) * 4)
    scratch_bytes = (H + 2) * W * 3 * C2 * csize
    live_bytes = 8 * HW * C2 * 4
    vmem_limit = int(min(max(2 * (blk_bytes + wt_bytes + scratch_bytes
                                  + live_bytes),
                             32 * 1024 * 1024), 96 * 1024 * 1024))

    out = pl.pallas_call(
        _make_repc3_kernel(H, W, n, C2, cdtype),
        out_shape=jax.ShapeDtypeStruct((B, HW, C2), out_dtype),
        grid_spec=pltpu.PrefetchScalarGridSpec(
            num_scalar_prefetch=0,
            grid=(B,),
            in_specs=[
                pl.BlockSpec((1, HW, C1), lambda bi: (bi, 0, 0)),
                pl.BlockSpec((C1, C2), lambda bi: (0, 0)),
                pl.BlockSpec((1, C2), lambda bi: (0, 0)),
                pl.BlockSpec((C1, C2), lambda bi: (0, 0)),
                pl.BlockSpec((1, C2), lambda bi: (0, 0)),
                pl.BlockSpec((n * 3, 3 * C2, C2), lambda bi: (0, 0, 0)),
                pl.BlockSpec((n, 1, C2), lambda bi: (0, 0, 0)),
            ],
            out_specs=pl.BlockSpec((1, HW, C2), lambda bi: (bi, 0, 0)),
            scratch_shapes=[pltpu.VMEM(((H + 2) * W, 3 * C2), cdtype)],
        ),
        compiler_params=pltpu.CompilerParams(
            dimension_semantics=("parallel",),
            vmem_limit_bytes=vmem_limit),
        cost_estimate=cost,
    )(x3, m1, b1, m2, b2, wr, br)

    return out.transpose(0, 2, 1).reshape(B, C2, H, W)


# ----------------------------------------------------------------------------
# Pure-JAX reference (mirrors the PyTorch module, eval-mode BN, no fusion).
# ----------------------------------------------------------------------------
def _conv2d(x, w, pad):
    return lax.conv_general_dilated(
        x, w, window_strides=(1, 1),
        padding=((pad, pad), (pad, pad)),
        dimension_numbers=("NCHW", "OIHW", "NCHW"))


def _bn_eval(x, bn):
    gamma, beta, mean, var = bn
    s = gamma / jnp.sqrt(var + _BN_EPS)
    return x * s[None, :, None, None] + (beta - mean * s)[None, :, None, None]


def _silu(x):
    return x * jax.nn.sigmoid(x)


def repc3_reference(x, params, n=3):
    y1 = _silu(_bn_eval(_conv2d(x, params["cv1_w"], 0), params["cv1_bn"]))
    y2 = _silu(_bn_eval(_conv2d(x, params["cv2_w"], 0), params["cv2_bn"]))
    for i in range(n):
        a = _bn_eval(_conv2d(y1, params["rep3_w"][i], 1), params["rep3_bn"][i])
        c = _bn_eval(_conv2d(y1, params["rep1_w"][i], 0), params["rep1_bn"][i])
        y1 = _silu(a + c)
    return y1 + y2                      # cv3 = Identity (c_ == c2)


def make_params(key, c1, c2, n):
    def conv_w(k, co, ci, ks):
        return jax.random.normal(k, (co, ci, ks, ks), jnp.float32) / jnp.sqrt(
            float(ci * ks * ks))

    def bn(k, c):
        k1, k2, k3, k4 = jax.random.split(k, 4)
        return (1.0 + 0.1 * jax.random.normal(k1, (c,), jnp.float32),
                0.1 * jax.random.normal(k2, (c,), jnp.float32),
                0.1 * jax.random.normal(k3, (c,), jnp.float32),
                jax.random.uniform(k4, (c,), jnp.float32, 0.5, 1.5))

    keys = jax.random.split(key, 4 + 4 * n)
    p = {
        "cv1_w": conv_w(keys[0], c2, c1, 1), "cv1_bn": bn(keys[1], c2),
        "cv2_w": conv_w(keys[2], c2, c1, 1), "cv2_bn": bn(keys[3], c2),
        "rep3_w": [], "rep3_bn": [], "rep1_w": [], "rep1_bn": [],
    }
    for i in range(n):
        k0, k1_, k2_, k3_ = keys[4 + 4 * i: 8 + 4 * i]
        p["rep3_w"].append(conv_w(k0, c2, c2, 3))
        p["rep3_bn"].append(bn(k1_, c2))
        p["rep1_w"].append(conv_w(k2_, c2, c2, 1))
        p["rep1_bn"].append(bn(k3_, c2))
    return p


if __name__ == "__main__":
    B, C1, C2, H, W, N = 2, 8, 8, 16, 16, 3
    key = jax.random.PRNGKey(0)
    kp, kx = jax.random.split(key)

    params = make_params(kp, C1, C2, N)
    x = jax.random.normal(kx, (B, C1, H, W), dtype=jnp.float32)

    y_ref = repc3_reference(x, params, n=N)

    # 1) Structural correctness: f32-matmul path vs. the unfused reference.
    y32 = repc3_forward(x, params, n=N, compute_dtype=jnp.float32)
    jax.block_until_ready(y32)
    assert y32.shape == y_ref.shape
    assert jnp.allclose(y32, y_ref, atol=1e-3, rtol=1e-3), float(
        jnp.max(jnp.abs(y32 - y_ref)))

    # 2) Fast path: bf16 MXU matmuls with f32 accumulation (inference-grade
    #    accuracy -> validated against the f32 reference at a looser tolerance).
    ybf = repc3_forward(x, params, n=N)  # compute_dtype = bf16 (default)
    jax.block_until_ready(ybf)
    assert ybf.shape == y_ref.shape
    assert jnp.allclose(ybf, y_ref, atol=1e-1, rtol=1e-1), float(
        jnp.max(jnp.abs(ybf - y_ref)))

    print("KERNEL_OK")
</pallas_src>

<mosaic_0001>
module attributes {stable_mosaic.version = 11 : i64} {
  func.func @kernel(%arg0: i32, %arg1: memref<1x256x8xf32, #tpu.memory_space<vmem>>, %arg2: memref<8x8xf32, #tpu.memory_space<vmem>>, %arg3: memref<1x8xf32, #tpu.memory_space<vmem>>, %arg4: memref<8x8xf32, #tpu.memory_space<vmem>>, %arg5: memref<1x8xf32, #tpu.memory_space<vmem>>, %arg6: memref<9x24x8xf32, #tpu.memory_space<vmem>>, %arg7: memref<3x1x8xf32, #tpu.memory_space<vmem>>, %arg8: memref<1x256x8xf32, #tpu.memory_space<vmem>>, %arg9: memref<288x24xf32, #tpu.memory_space<vmem>>) attributes {dimension_semantics = [#tpu.dimension_semantics<parallel>], iteration_bounds = array<i64: 2>, scalar_prefetch = 0 : i64, scratch_operands = 1 : i64, tpu.core_type = #tpu.core_type<tc>, window_params = [{transform_indices = @transform_0, window_bounds = array<i64: 1, 256, 8>}, {pipeline_mode = #tpu.pipeline_mode<synchronous>, transform_indices = @transform_1, window_bounds = array<i64: 8, 8>}, {pipeline_mode = #tpu.pipeline_mode<synchronous>, transform_indices = @transform_2, window_bounds = array<i64: 1, 8>}, {pipeline_mode = #tpu.pipeline_mode<synchronous>, transform_indices = @transform_3, window_bounds = array<i64: 8, 8>}, {pipeline_mode = #tpu.pipeline_mode<synchronous>, transform_indices = @transform_4, window_bounds = array<i64: 1, 8>}, {pipeline_mode = #tpu.pipeline_mode<synchronous>, transform_indices = @transform_5, window_bounds = array<i64: 9, 24, 8>}, {pipeline_mode = #tpu.pipeline_mode<synchronous>, transform_indices = @transform_6, window_bounds = array<i64: 3, 1, 8>}, {transform_indices = @transform_7, window_bounds = array<i64: 1, 256, 8>}]} {
    %0 = tpu.iota {dimensions = array<i32: 0>} : vector<256x1xi32>
    %c16_i32 = arith.constant 16 : i32
    %c0_i32 = arith.constant 0 : i32
    %1 = arith.cmpi eq, %c16_i32, %c0_i32 : i32
    %c1_i32 = arith.constant 1 : i32
    %2 = arith.select %1, %c1_i32, %c16_i32 : i32
    %3 = vector.broadcast %2 : i32 to vector<256x1xi32>
    %4 = arith.remsi %0, %3 : vector<256x1xi32>
    %c0_i32_0 = arith.constant 0 : i32
    %5 = vector.broadcast %c0_i32_0 : i32 to vector<256x1xi32>
    %6 = arith.cmpi ne, %4, %5 : vector<256x1xi32>
    %c0_i32_1 = arith.constant 0 : i32
    %7 = vector.broadcast %c0_i32_1 : i32 to vector<256x1xi32>
    %8 = arith.cmpi slt, %4, %7 : vector<256x1xi32>
    %c0_i32_2 = arith.constant 0 : i32
    %9 = arith.cmpi slt, %2, %c0_i32_2 : i32
    %10 = vector.broadcast %9 : i1 to vector<256x1xi1>
    %11 = vector.broadcast %10 : vector<256x1xi1> to vector<256x1xi1>
    %12 = arith.xori %8, %11 : vector<256x1xi1>
    %13 = arith.andi %12, %6 : vector<256x1xi1>
    %14 = vector.broadcast %2 : i32 to vector<256x1xi32>
    %15 = arith.addi %4, %14 : vector<256x1xi32>
    %16 = arith.select %13, %15, %4 : vector<256x1xi1>, vector<256x1xi32>
    %c0_i32_3 = arith.constant 0 : i32
    %17 = vector.broadcast %c0_i32_3 : i32 to vector<256x1xi32>
    %18 = arith.cmpi sgt, %16, %17 : vector<256x1xi32>
    %c15_i32 = arith.constant 15 : i32
    %19 = vector.broadcast %c15_i32 : i32 to vector<256x1xi32>
    %20 = arith.cmpi slt, %16, %19 : vector<256x1xi32>
    %c0 = arith.constant 0 : index
    %c0_4 = arith.constant 0 : index
    %c0_5 = arith.constant 0 : index
    %21 = vector.load %arg1[%c0, %c0_4, %c0_5] : memref<1x256x8xf32, #tpu.memory_space<vmem>>, vector<1x256x8xf32>
    %22 = vector.shape_cast %21 : vector<1x256x8xf32> to vector<256x8xf32>
    %c0_6 = arith.constant 0 : index
    %c0_7 = arith.constant 0 : index
    %23 = vector.load %arg4[%c0_6, %c0_7] : memref<8x8xf32, #tpu.memory_space<vmem>>, vector<8x8xf32>
    %cst = arith.constant dense<0.000000e+00> : vector<256x8xf32>
    %24 = tpu.matmul %22, %23, %cst {dimension_numbers = #tpu.dot_dimension_numbers<[1], [0], [0], [1], [0, 0, 1, 1], [], []>} : vector<256x8xf32>, vector<8x8xf32>, vector<256x8xf32> -> vector<256x8xf32>
    %c0_8 = arith.constant 0 : index
    %c0_9 = arith.constant 0 : index
    %25 = vector.load %arg5[%c0_8, %c0_9] : memref<1x8xf32, #tpu.memory_space<vmem>>, vector<1x8xf32>
    %26 = vector.broadcast %25 : vector<1x8xf32> to vector<256x8xf32>
    %27 = arith.addf %24, %26 : vector<256x8xf32>
    %28 = arith.negf %27 : vector<256x8xf32>
    %29 = math.exp %28 : vector<256x8xf32>
    %cst_10 = arith.constant 1.000000e+00 : f32
    %30 = vector.broadcast %cst_10 : f32 to vector<256x8xf32>
    %31 = arith.addf %30, %29 : vector<256x8xf32>
    %32 = arith.divf %30, %31 : vector<256x8xf32>
    %33 = arith.mulf %27, %32 : vector<256x8xf32>
    %c0_11 = arith.constant 0 : index
    %c0_12 = arith.constant 0 : index
    %c0_13 = arith.constant 0 : index
    %34 = vector.load %arg8[%c0_11, %c0_12, %c0_13] : memref<1x256x8xf32, #tpu.memory_space<vmem>>, vector<1x256x8xf32>
    %35 = vector.shape_cast %34 : vector<1x256x8xf32> to vector<256x8xf32>
    %36 = vector.shape_cast %33 : vector<256x8xf32> to vector<1x256x8xf32>
    tpu.vector_store %arg8[%c0_11, %c0_12, %c0_13], %36 {strides = array<i32>} : memref<1x256x8xf32, #tpu.memory_space<vmem>>, vector<1x256x8xf32>,
    %c0_14 = arith.constant 0 : index
    %c0_15 = arith.constant 0 : index
    %37 = vector.load %arg2[%c0_14, %c0_15] : memref<8x8xf32, #tpu.memory_space<vmem>>, vector<8x8xf32>
    %cst_16 = arith.constant dense<0.000000e+00> : vector<256x8xf32>
    %38 = tpu.matmul %22, %37, %cst_16 {dimension_numbers = #tpu.dot_dimension_numbers<[1], [0], [0], [1], [0, 0, 1, 1], [], []>} : vector<256x8xf32>, vector<8x8xf32>, vector<256x8xf32> -> vector<256x8xf32>
    %c0_17 = arith.constant 0 : index
    %c0_18 = arith.constant 0 : index
    %39 = vector.load %arg3[%c0_17, %c0_18] : memref<1x8xf32, #tpu.memory_space<vmem>>, vector<1x8xf32>
    %40 = vector.broadcast %39 : vector<1x8xf32> to vector<256x8xf32>
    %41 = arith.addf %38, %40 : vector<256x8xf32>
    %42 = arith.negf %41 : vector<256x8xf32>
    %43 = math.exp %42 : vector<256x8xf32>
    %cst_19 = arith.constant 1.000000e+00 : f32
    %44 = vector.broadcast %cst_19 : f32 to vector<256x8xf32>
    %45 = arith.addf %44, %43 : vector<256x8xf32>
    %46 = arith.divf %44, %45 : vector<256x8xf32>
    %47 = arith.mulf %41, %46 : vector<256x8xf32>
    %cst_20 = arith.constant 0.000000e+00 : f32
    %48 = vector.broadcast %cst_20 : f32 to vector<16x24xf32>
    %c0_21 = arith.constant 0 : index
    %c0_22 = arith.constant 0 : index
    %49 = vector.load %arg9[%c0_21, %c0_22] : memref<288x24xf32, #tpu.memory_space<vmem>>, vector<16x24xf32>
    tpu.vector_store %arg9[%c0_21, %c0_22], %48 {strides = array<i32>} : memref<288x24xf32, #tpu.memory_space<vmem>>, vector<16x24xf32>,
    %c272 = arith.constant 272 : index
    %c0_23 = arith.constant 0 : index
    %50 = vector.load %arg9[%c272, %c0_23] : memref<288x24xf32, #tpu.memory_space<vmem>>, vector<16x24xf32>
    tpu.vector_store %arg9[%c272, %c0_23], %48 {strides = array<i32>} : memref<288x24xf32, #tpu.memory_space<vmem>>, vector<16x24xf32>,
    %c1_i32_24 = arith.constant 1 : i32
    %51 = tpu.dynamic_rotate %47 by %c1_i32_24 dim 0 : vector<256x8xf32>, i32 -> vector<256x8xf32>
    %cst_25 = arith.constant 0.000000e+00 : f32
    %52 = vector.shape_cast %18 : vector<256x1xi1> to vector<256x1xi1>
    %53 = vector.broadcast %52 : vector<256x1xi1> to vector<256x8xi1>
    %54 = vector.broadcast %cst_25 : f32 to vector<256x8xf32>
    %55 = arith.select %53, %51, %54 : vector<256x8xi1>, vector<256x8xf32>
    %c255_i32 = arith.constant 255 : i32
    %56 = tpu.dynamic_rotate %47 by %c255_i32 dim 0 : vector<256x8xf32>, i32 -> vector<256x8xf32>
    %cst_26 = arith.constant 0.000000e+00 : f32
    %57 = vector.shape_cast %20 : vector<256x1xi1> to vector<256x1xi1>
    %58 = vector.broadcast %57 : vector<256x1xi1> to vector<256x8xi1>
    %59 = vector.broadcast %cst_26 : f32 to vector<256x8xf32>
    %60 = arith.select %58, %56, %59 : vector<256x8xi1>, vector<256x8xf32>
    %c16 = arith.constant 16 : index
    %c0_27 = arith.constant 0 : index
    %61 = vector.load %arg9[%c16, %c0_27] : memref<288x24xf32, #tpu.memory_space<vmem>>, vector<256x8xf32>
    tpu.vector_store %arg9[%c16, %c0_27], %55 {strides = array<i32>} : memref<288x24xf32, #tpu.memory_space<vmem>>, vector<256x8xf32>,
    %c16_28 = arith.constant 16 : index
    %c8 = arith.constant 8 : index
    %62 = vector.load %arg9[%c16_28, %c8] : memref<288x24xf32, #tpu.memory_space<vmem>>, vector<256x8xf32>
    tpu.vector_store %arg9[%c16_28, %c8], %47 {strides = array<i32>} : memref<288x24xf32, #tpu.memory_space<vmem>>, vector<256x8xf32>,
    %c16_29 = arith.constant 16 : index
    %c16_30 = arith.constant 16 : index
    %63 = vector.load %arg9[%c16_29, %c16_30] : memref<288x24xf32, #tpu.memory_space<vmem>>, vector<256x8xf32>
    tpu.vector_store %arg9[%c16_29, %c16_30], %60 {strides = array<i32>} : memref<288x24xf32, #tpu.memory_space<vmem>>, vector<256x8xf32>,
    %cst_31 = arith.constant 0.000000e+00 : f32
    %64 = vector.broadcast %cst_31 : f32 to vector<256x8xf32>
    %c0_32 = arith.constant 0 : index
    %c0_33 = arith.constant 0 : index
    %65 = vector.load %arg9[%c0_32, %c0_33] : memref<288x24xf32, #tpu.memory_space<vmem>>, vector<256x24xf32>
    %c0_34 = arith.constant 0 : index
    %c0_35 = arith.constant 0 : index
    %c0_36 = arith.constant 0 : index
    %66 = vector.load %arg6[%c0_34, %c0_35, %c0_36] : memref<9x24x8xf32, #tpu.memory_space<vmem>>, vector<1x24x8xf32>
    %67 = vector.shape_cast %66 : vector<1x24x8xf32> to vector<24x8xf32>
    %cst_37 = arith.constant dense<0.000000e+00> : vector<256x8xf32>
    %68 = tpu.matmul %65, %67, %cst_37 {dimension_numbers = #tpu.dot_dimension_numbers<[1], [0], [0], [1], [0, 0, 1, 1], [], []>} : vector<256x24xf32>, vector<24x8xf32>, vector<256x8xf32> -> vector<256x8xf32>
    %69 = arith.addf %64, %68 : vector<256x8xf32>
    %c16_38 = arith.constant 16 : index
    %c0_39 = arith.constant 0 : index
    %70 = vector.load %arg9[%c16_38, %c0_39] : memref<288x24xf32, #tpu.memory_space<vmem>>, vector<256x24xf32>
    %c1 = arith.constant 1 : index
    %c0_40 = arith.constant 0 : index
    %c0_41 = arith.constant 0 : index
    %71 = vector.load %arg6[%c1, %c0_40, %c0_41] : memref<9x24x8xf32, #tpu.memory_space<vmem>>, vector<1x24x8xf32>
    %72 = vector.shape_cast %71 : vector<1x24x8xf32> to vector<24x8xf32>
    %cst_42 = arith.constant dense<0.000000e+00> : vector<256x8xf32>
    %73 = tpu.matmul %70, %72, %cst_42 {dimension_numbers = #tpu.dot_dimension_numbers<[1], [0], [0], [1], [0, 0, 1, 1], [], []>} : vector<256x24xf32>, vector<24x8xf32>, vector<256x8xf32> -> vector<256x8xf32>
    %74 = arith.addf %69, %73 : vector<256x8xf32>
    %c32 = arith.constant 32 : index
    %c0_43 = arith.constant 0 : index
    %75 = vector.load %arg9[%c32, %c0_43] : memref<288x24xf32, #tpu.memory_space<vmem>>, vector<256x24xf32>
    %c2 = arith.constant 2 : index
    %c0_44 = arith.constant 0 : index
    %c0_45 = arith.constant 0 : index
    %76 = vector.load %arg6[%c2, %c0_44, %c0_45] : memref<9x24x8xf32, #tpu.memory_space<vmem>>, vector<1x24x8xf32>
    %77 = vector.shape_cast %76 : vector<1x24x8xf32> to vector<24x8xf32>
    %cst_46 = arith.constant dense<0.000000e+00> : vector<256x8xf32>
    %78 = tpu.matmul %75, %77, %cst_46 {dimension_numbers = #tpu.dot_dimension_numbers<[1], [0], [0], [1], [0, 0, 1, 1], [], []>} : vector<256x24xf32>, vector<24x8xf32>, vector<256x8xf32> -> vector<256x8xf32>
    %79 = arith.addf %74, %78 : vector<256x8xf32>
    %c0_47 = arith.constant 0 : index
    %c0_48 = arith.constant 0 : index
    %c0_49 = arith.constant 0 : index
    %80 = vector.load %arg7[%c0_47, %c0_48, %c0_49] : memref<3x1x8xf32, #tpu.memory_space<vmem>>, vector<1x1x8xf32>
    %81 = vector.shape_cast %80 : vector<1x1x8xf32> to vector<1x8xf32>
    %82 = vector.broadcast %81 : vector<1x8xf32> to vector<256x8xf32>
    %83 = arith.addf %79, %82 : vector<256x8xf32>
    %84 = arith.negf %83 : vector<256x8xf32>
    %85 = math.exp %84 : vector<256x8xf32>
    %cst_50 = arith.constant 1.000000e+00 : f32
    %86 = vector.broadcast %cst_50 : f32 to vector<256x8xf32>
    %87 = arith.addf %86, %85 : vector<256x8xf32>
    %88 = arith.divf %86, %87 : vector<256x8xf32>
    %89 = arith.mulf %83, %88 : vector<256x8xf32>
    %c1_i32_51 = arith.constant 1 : i32
    %90 = tpu.dynamic_rotate %89 by %c1_i32_51 dim 0 : vector<256x8xf32>, i32 -> vector<256x8xf32>
    %cst_52 = arith.constant 0.000000e+00 : f32
    %91 = vector.shape_cast %18 : vector<256x1xi1> to vector<256x1xi1>
    %92 = vector.broadcast %91 : vector<256x1xi1> to vector<256x8xi1>
    %93 = vector.broadcast %cst_52 : f32 to vector<256x8xf32>
    %94 = arith.select %92, %90, %93 : vector<256x8xi1>, vector<256x8xf32>
    %c255_i32_53 = arith.constant 255 : i32
    %95 = tpu.dynamic_rotate %89 by %c255_i32_53 dim 0 : vector<256x8xf32>, i32 -> vector<256x8xf32>
    %cst_54 = arith.constant 0.000000e+00 : f32
    %96 = vector.shape_cast %20 : vector<256x1xi1> to vector<256x1xi1>
    %97 = vector.broadcast %96 : vector<256x1xi1> to vector<256x8xi1>
    %98 = vector.broadcast %cst_54 : f32 to vector<256x8xf32>
    %99 = arith.select %97, %95, %98 : vector<256x8xi1>, vector<256x8xf32>
    %c16_55 = arith.constant 16 : index
    %c0_56 = arith.constant 0 : index
    %100 = vector.load %arg9[%c16_55, %c0_56] : memref<288x24xf32, #tpu.memory_space<vmem>>, vector<256x8xf32>
    tpu.vector_store %arg9[%c16_55, %c0_56], %94 {strides = array<i32>} : memref<288x24xf32, #tpu.memory_space<vmem>>, vector<256x8xf32>,
    %c16_57 = arith.constant 16 : index
    %c8_58 = arith.constant 8 : index
    %101 = vector.load %arg9[%c16_57, %c8_58] : memref<288x24xf32, #tpu.memory_space<vmem>>, vector<256x8xf32>
    tpu.vector_store %arg9[%c16_57, %c8_58], %89 {strides = array<i32>} : memref<288x24xf32, #tpu.memory_space<vmem>>, vector<256x8xf32>,
    %c16_59 = arith.constant 16 : index
    %c16_60 = arith.constant 16 : index
    %102 = vector.load %arg9[%c16_59, %c16_60] : memref<288x24xf32, #tpu.memory_space<vmem>>, vector<256x8xf32>
    tpu.vector_store %arg9[%c16_59, %c16_60], %99 {strides = array<i32>} : memref<288x24xf32, #tpu.memory_space<vmem>>, vector<256x8xf32>,
    %cst_61 = arith.constant 0.000000e+00 : f32
    %103 = vector.broadcast %cst_61 : f32 to vector<256x8xf32>
    %c0_62 = arith.constant 0 : index
    %c0_63 = arith.constant 0 : index
    %104 = vector.load %arg9[%c0_62, %c0_63] : memref<288x24xf32, #tpu.memory_space<vmem>>, vector<256x24xf32>
    %c3 = arith.constant 3 : index
    %c0_64 = arith.constant 0 : index
    %c0_65 = arith.constant 0 : index
    %105 = vector.load %arg6[%c3, %c0_64, %c0_65] : memref<9x24x8xf32, #tpu.memory_space<vmem>>, vector<1x24x8xf32>
    %106 = vector.shape_cast %105 : vector<1x24x8xf32> to vector<24x8xf32>
    %cst_66 = arith.constant dense<0.000000e+00> : vector<256x8xf32>
    %107 = tpu.matmul %104, %106, %cst_66 {dimension_numbers = #tpu.dot_dimension_numbers<[1], [0], [0], [1], [0, 0, 1, 1], [], []>} : vector<256x24xf32>, vector<24x8xf32>, vector<256x8xf32> -> vector<256x8xf32>
    %108 = arith.addf %103, %107 : vector<256x8xf32>
    %c16_67 = arith.constant 16 : index
    %c0_68 = arith.constant 0 : index
    %109 = vector.load %arg9[%c16_67, %c0_68] : memref<288x24xf32, #tpu.memory_space<vmem>>, vector<256x24xf32>
    %c4 = arith.constant 4 : index
    %c0_69 = arith.constant 0 : index
    %c0_70 = arith.constant 0 : index
    %110 = vector.load %arg6[%c4, %c0_69, %c0_70] : memref<9x24x8xf32, #tpu.memory_space<vmem>>, vector<1x24x8xf32>
    %111 = vector.shape_cast %110 : vector<1x24x8xf32> to vector<24x8xf32>
    %cst_71 = arith.constant dense<0.000000e+00> : vector<256x8xf32>
    %112 = tpu.matmul %109, %111, %cst_71 {dimension_numbers = #tpu.dot_dimension_numbers<[1], [0], [0], [1], [0, 0, 1, 1], [], []>} : vector<256x24xf32>, vector<24x8xf32>, vector<256x8xf32> -> vector<256x8xf32>
    %113 = arith.addf %108, %112 : vector<256x8xf32>
    %c32_72 = arith.constant 32 : index
    %c0_73 = arith.constant 0 : index
    %114 = vector.load %arg9[%c32_72, %c0_73] : memref<288x24xf32, #tpu.memory_space<vmem>>, vector<256x24xf32>
    %c5 = arith.constant 5 : index
    %c0_74 = arith.constant 0 : index
    %c0_75 = arith.constant 0 : index
    %115 = vector.load %arg6[%c5, %c0_74, %c0_75] : memref<9x24x8xf32, #tpu.memory_space<vmem>>, vector<1x24x8xf32>
    %116 = vector.shape_cast %115 : vector<1x24x8xf32> to vector<24x8xf32>
    %cst_76 = arith.constant dense<0.000000e+00> : vector<256x8xf32>
    %117 = tpu.matmul %114, %116, %cst_76 {dimension_numbers = #tpu.dot_dimension_numbers<[1], [0], [0], [1], [0, 0, 1, 1], [], []>} : vector<256x24xf32>, vector<24x8xf32>, vector<256x8xf32> -> vector<256x8xf32>
    %118 = arith.addf %113, %117 : vector<256x8xf32>
    %c1_77 = arith.constant 1 : index
    %c0_78 = arith.constant 0 : index
    %c0_79 = arith.constant 0 : index
    %119 = vector.load %arg7[%c1_77, %c0_78, %c0_79] : memref<3x1x8xf32, #tpu.memory_space<vmem>>, vector<1x1x8xf32>
    %120 = vector.shape_cast %119 : vector<1x1x8xf32> to vector<1x8xf32>
    %121 = vector.broadcast %120 : vector<1x8xf32> to vector<256x8xf32>
    %122 = arith.addf %118, %121 : vector<256x8xf32>
    %123 = arith.negf %122 : vector<256x8xf32>
    %124 = math.exp %123 : vector<256x8xf32>
    %cst_80 = arith.constant 1.000000e+00 : f32
    %125 = vector.broadcast %cst_80 : f32 to vector<256x8xf32>
    %126 = arith.addf %125, %124 : vector<256x8xf32>
    %127 = arith.divf %125, %126 : vector<256x8xf32>
    %128 = arith.mulf %122, %127 : vector<256x8xf32>
    %c1_i32_81 = arith.constant 1 : i32
    %129 = tpu.dynamic_rotate %128 by %c1_i32_81 dim 0 : vector<256x8xf32>, i32 -> vector<256x8xf32>
    %cst_82 = arith.constant 0.000000e+00 : f32
    %130 = vector.shape_cast %18 : vector<256x1xi1> to vector<256x1xi1>
    %131 = vector.broadcast %130 : vector<256x1xi1> to vector<256x8xi1>
    %132 = vector.broadcast %cst_82 : f32 to vector<256x8xf32>
    %133 = arith.select %131, %129, %132 : vector<256x8xi1>, vector<256x8xf32>
    %c255_i32_83 = arith.constant 255 : i32
    %134 = tpu.dynamic_rotate %128 by %c255_i32_83 dim 0 : vector<256x8xf32>, i32 -> vector<256x8xf32>
    %cst_84 = arith.constant 0.000000e+00 : f32
    %135 = vector.shape_cast %20 : vector<256x1xi1> to vector<256x1xi1>
    %136 = vector.broadcast %135 : vector<256x1xi1> to vector<256x8xi1>
    %137 = vector.broadcast %cst_84 : f32 to vector<256x8xf32>
    %138 = arith.select %136, %134, %137 : vector<256x8xi1>, vector<256x8xf32>
    %c16_85 = arith.constant 16 : index
    %c0_86 = arith.constant 0 : index
    %139 = vector.load %arg9[%c16_85, %c0_86] : memref<288x24xf32, #tpu.memory_space<vmem>>, vector<256x8xf32>
    tpu.vector_store %arg9[%c16_85, %c0_86], %133 {strides = array<i32>} : memref<288x24xf32, #tpu.memory_space<vmem>>, vector<256x8xf32>,
    %c16_87 = arith.constant 16 : index
    %c8_88 = arith.constant 8 : index
    %140 = vector.load %arg9[%c16_87, %c8_88] : memref<288x24xf32, #tpu.memory_space<vmem>>, vector<256x8xf32>
    tpu.vector_store %arg9[%c16_87, %c8_88], %128 {strides = array<i32>} : memref<288x24xf32, #tpu.memory_space<vmem>>, vector<256x8xf32>,
    %c16_89 = arith.constant 16 : index
    %c16_90 = arith.constant 16 : index
    %141 = vector.load %arg9[%c16_89, %c16_90] : memref<288x24xf32, #tpu.memory_space<vmem>>, vector<256x8xf32>
    tpu.vector_store %arg9[%c16_89, %c16_90], %138 {strides = array<i32>} : memref<288x24xf32, #tpu.memory_space<vmem>>, vector<256x8xf32>,
    %cst_91 = arith.constant 0.000000e+00 : f32
    %142 = vector.broadcast %cst_91 : f32 to vector<256x8xf32>
    %c0_92 = arith.constant 0 : index
    %c0_93 = arith.constant 0 : index
    %143 = vector.load %arg9[%c0_92, %c0_93] : memref<288x24xf32, #tpu.memory_space<vmem>>, vector<256x24xf32>
    %c6 = arith.constant 6 : index
    %c0_94 = arith.constant 0 : index
    %c0_95 = arith.constant 0 : index
    %144 = vector.load %arg6[%c6, %c0_94, %c0_95] : memref<9x24x8xf32, #tpu.memory_space<vmem>>, vector<1x24x8xf32>
    %145 = vector.shape_cast %144 : vector<1x24x8xf32> to vector<24x8xf32>
    %cst_96 = arith.constant dense<0.000000e+00> : vector<256x8xf32>
    %146 = tpu.matmul %143, %145, %cst_96 {dimension_numbers = #tpu.dot_dimension_numbers<[1], [0], [0], [1], [0, 0, 1, 1], [], []>} : vector<256x24xf32>, vector<24x8xf32>, vector<256x8xf32> -> vector<256x8xf32>
    %147 = arith.addf %142, %146 : vector<256x8xf32>
    %c16_97 = arith.constant 16 : index
    %c0_98 = arith.constant 0 : index
    %148 = vector.load %arg9[%c16_97, %c0_98] : memref<288x24xf32, #tpu.memory_space<vmem>>, vector<256x24xf32>
    %c7 = arith.constant 7 : index
    %c0_99 = arith.constant 0 : index
    %c0_100 = arith.constant 0 : index
    %149 = vector.load %arg6[%c7, %c0_99, %c0_100] : memref<9x24x8xf32, #tpu.memory_space<vmem>>, vector<1x24x8xf32>
    %150 = vector.shape_cast %149 : vector<1x24x8xf32> to vector<24x8xf32>
    %cst_101 = arith.constant dense<0.000000e+00> : vector<256x8xf32>
    %151 = tpu.matmul %148, %150, %cst_101 {dimension_numbers = #tpu.dot_dimension_numbers<[1], [0], [0], [1], [0, 0, 1, 1], [], []>} : vector<256x24xf32>, vector<24x8xf32>, vector<256x8xf32> -> vector<256x8xf32>
    %152 = arith.addf %147, %151 : vector<256x8xf32>
    %c32_102 = arith.constant 32 : index
    %c0_103 = arith.constant 0 : index
    %153 = vector.load %arg9[%c32_102, %c0_103] : memref<288x24xf32, #tpu.memory_space<vmem>>, vector<256x24xf32>
    %c8_104 = arith.constant 8 : index
    %c0_105 = arith.constant 0 : index
    %c0_106 = arith.constant 0 : index
    %154 = vector.load %arg6[%c8_104, %c0_105, %c0_106] : memref<9x24x8xf32, #tpu.memory_space<vmem>>, vector<1x24x8xf32>
    %155 = vector.shape_cast %154 : vector<1x24x8xf32> to vector<24x8xf32>
    %cst_107 = arith.constant dense<0.000000e+00> : vector<256x8xf32>
    %156 = tpu.matmul %153, %155, %cst_107 {dimension_numbers = #tpu.dot_dimension_numbers<[1], [0], [0], [1], [0, 0, 1, 1], [], []>} : vector<256x24xf32>, vector<24x8xf32>, vector<256x8xf32> -> vector<256x8xf32>
    %157 = arith.addf %152, %156 : vector<256x8xf32>
    %c2_108 = arith.constant 2 : index
    %c0_109 = arith.constant 0 : index
    %c0_110 = arith.constant 0 : index
    %158 = vector.load %arg7[%c2_108, %c0_109, %c0_110] : memref<3x1x8xf32, #tpu.memory_space<vmem>>, vector<1x1x8xf32>
    %159 = vector.shape_cast %158 : vector<1x1x8xf32> to vector<1x8xf32>
    %160 = vector.broadcast %159 : vector<1x8xf32> to vector<256x8xf32>
    %161 = arith.addf %157, %160 : vector<256x8xf32>
    %162 = arith.negf %161 : vector<256x8xf32>
    %163 = math.exp %162 : vector<256x8xf32>
    %cst_111 = arith.constant 1.000000e+00 : f32
    %164 = vector.broadcast %cst_111 : f32 to vector<256x8xf32>
    %165 = arith.addf %164, %163 : vector<256x8xf32>
    %166 = arith.divf %164, %165 : vector<256x8xf32>
    %167 = arith.mulf %161, %166 : vector<256x8xf32>
    %c0_112 = arith.constant 0 : index
    %c0_113 = arith.constant 0 : index
    %c0_114 = arith.constant 0 : index
    %168 = vector.load %arg8[%c0_112, %c0_113, %c0_114] : memref<1x256x8xf32, #tpu.memory_space<vmem>>, vector<1x256x8xf32>
    %169 = vector.shape_cast %168 : vector<1x256x8xf32> to vector<256x8xf32>
    %170 = arith.addf %167, %169 : vector<256x8xf32>
    %c0_115 = arith.constant 0 : index
    %c0_116 = arith.constant 0 : index
    %c0_117 = arith.constant 0 : index
    %171 = vector.load %arg8[%c0_115, %c0_116, %c0_117] : memref<1x256x8xf32, #tpu.memory_space<vmem>>, vector<1x256x8xf32>
    %172 = vector.shape_cast %171 : vector<1x256x8xf32> to vector<256x8xf32>
    %173 = vector.shape_cast %170 : vector<256x8xf32> to vector<1x256x8xf32>
    tpu.vector_store %arg8[%c0_115, %c0_116, %c0_117], %173 {strides = array<i32>} : memref<1x256x8xf32, #tpu.memory_space<vmem>>, vector<1x256x8xf32>,
    return
  }
  func.func @transform_0(%arg0: i32) -> (i32, i32, i32) {
    %c0_i32 = arith.constant 0 : i32
    %c0_i32_0 = arith.constant 0 : i32
    %c0_i32_1 = arith.constant 0 : i32
    return %arg0, %c0_i32, %c0_i32_0 : i32, i32, i32
  }
  func.func @transform_1(%arg0: i32) -> (i32, i32) {
    %c0_i32 = arith.constant 0 : i32
    %c0_i32_0 = arith.constant 0 : i32
    %c0_i32_1 = arith.constant 0 : i32
    return %c0_i32, %c0_i32_0 : i32, i32
  }
  func.func @transform_2(%arg0: i32) -> (i32, i32) {
    %c0_i32 = arith.constant 0 : i32
    %c0_i32_0 = arith.constant 0 : i32
    %c0_i32_1 = arith.constant 0 : i32
    return %c0_i32, %c0_i32_0 : i32, i32
  }
  func.func @transform_3(%arg0: i32) -> (i32, i32) {
    %c0_i32 = arith.constant 0 : i32
    %c0_i32_0 = arith.constant 0 : i32
    %c0_i32_1 = arith.constant 0 : i32
    return %c0_i32, %c0_i32_0 : i32, i32
  }
  func.func @transform_4(%arg0: i32) -> (i32, i32) {
    %c0_i32 = arith.constant 0 : i32
    %c0_i32_0 = arith.constant 0 : i32
    %c0_i32_1 = arith.constant 0 : i32
    return %c0_i32, %c0_i32_0 : i32, i32
  }
  func.func @transform_5(%arg0: i32) -> (i32, i32, i32) {
    %c0_i32 = arith.constant 0 : i32
    %c0_i32_0 = arith.constant 0 : i32
    %c0_i32_1 = arith.constant 0 : i32
    %c0_i32_2 = arith.constant 0 : i32
    return %c0_i32, %c0_i32_0, %c0_i32_1 : i32, i32, i32
  }
  func.func @transform_6(%arg0: i32) -> (i32, i32, i32) {
    %c0_i32 = arith.constant 0 : i32
    %c0_i32_0 = arith.constant 0 : i32
    %c0_i32_1 = arith.constant 0 : i32
    %c0_i32_2 = arith.constant 0 : i32
    return %c0_i32, %c0_i32_0, %c0_i32_1 : i32, i32, i32
  }
  func.func @transform_7(%arg0: i32) -> (i32, i32, i32) {
    %c0_i32 = arith.constant 0 : i32
    %c0_i32_0 = arith.constant 0 : i32
    %c0_i32_1 = arith.constant 0 : i32
    return %arg0, %c0_i32, %c0_i32_0 : i32, i32, i32
  }
}

</mosaic_0001>

<bundles_post_ra>
// kernel: tpu_custom_call.1
= control target key start
LH: loop header
LB: loop body
LE: loop exit
PB: predicated region body
PF: predicated region fallthrough
CT: control target
= control target key end

     0   :  { %s9950_s24 = smov 0   ;;  %s14496_s0 = inlined_call_operand.vmem [shape: f32[2,256,8], index: 0, kind: input, shape index: {}]   ;;  %s14497_s1 = inlined_call_operand.vmem [shape: f32[8,8], index: 1, kind: input, shape index: {}]   ;;  %s14498_s2 = inlined_call_operand.vmem [shape: f32[1,8], index: 2, kind: input, shape index: {}]   ;;  %s14499_s3 = inlined_call_operand.vmem [shape: f32[8,8], index: 3, kind: input, shape index: {}]   ;;  %s14500_s4 = inlined_call_operand.vmem [shape: f32[1,8], index: 4, kind: input, shape index: {}]   ;;  %s14501_s5 = inlined_call_operand.vmem [shape: f32[9,24,8], index: 5, kind: input, shape index: {}]   ;;  %s14502_s6 = inlined_call_operand.vmem [shape: f32[3,1,8], index: 6, kind: input, shape index: {}]   ;;  %s14503_s7 = inlined_call_operand.vmem [shape: f32[2,256,8], index: 7, kind: output, shape index: {}]  }
   0x1 LB: > { %s7494_s25 = sadd.s32 4294967295, %s9905_s24   ;;  %p7498_p0 = scmp.ge.s32.totalorder %s9905_s24, 1  ;;  %s9905_s24 = sphi %s9950_s24, %s17_s24  }
   0x2   : > { %p237_p1 = scmp.lt.s32.totalorder %s9905_s24, 3 }
   0x4   : > { %p238_p2 = pnand %p7498_p0, %p237_p1 }
   0x6   : > { %241 = sbr.rel (%p238_p2) target bundleno = 2063 (0x80f), region = 48 }
   0xd   : > { %v792_v0 = vld [vmem:[%s14499_s3] sm:$0xff]  ;;  %p269_p3 = scmp.lt.s32.totalorder %s7494_s25, 1  ;;  %vm14538_vm0 = vcmask 64512   ;;  %s9908_s26 = smov 16  }
   0xe   : > { %v1378_v1 = vld [vmem:[%s14497_s1] sm:$0xff]  ;;  %9053 = vmatprep.subr.mxu1 %v792_v0  ;;  %8431 = vmatprep.subr.mxu0 %v792_v0 }
   0xf   : > { %9054 = vmatpush3.msra.mxu1 %v792_v0  ;;  %s15714_s25 = smov (!%p269_p3, %s7494_s25), 1  ;;  %8432 = vmatpush3.msra.mxu0 %v792_v0  ;;  %v10109_v34 = vld [vmem:[%s14500_s4] ss:$0 sm:$0xff] }
  0x10   : > { %8481 = vmatprep.subr.mxu1 %v1378_v1  ;;  %s8048_s30 = sshll.u32 %s15714_s25, 8  ;;  %s9907_s25 = smov 8  }
  0x11   : > { %s9972_s10 = scalar_lea.vmem %s14496_s0, %s8048_s30  ;;  %s10173_s15 = scalar_lea.vmem %s14503_s7, %s8048_s30 }
  0x12   : > { %v9975_v2 = vld [vmem:[%s9972_s10 + $0x80] sm:$0xff]  ;;  %v9978_v3 = vld [vmem:[%s9972_s10 + $0x88] sm:$0xff]  ;;  %v9981_v4 = vld [vmem:[%s9972_s10 + $0x90] sm:$0xff] }
  0x13   : > { %8457 = vmatprep.mubr.msk.f32.mxu1 %vm14538_vm0, %v9975_v2  ;;  %v9990_v5 = vld [vmem:[%s9972_s10 + $0x98] sm:$0xff]  ;;  %v9993_v6 = vld [vmem:[%s9972_s10 + $0xa0] sm:$0xff]  ;;  %v761_v8 = vld [vmem:[%s9972_s10 + $0x8] sm:$0xff] }
  0x14   : > { %8458 = vmatmul.mubr.msk.f32.vlgmr.msra.gmra.mrb[0].mxu1 %vm14538_vm0, %v9978_v3  ;;  %v760_v7 = vld [vmem:[%s9972_s10] sm:$0xff]  ;;  %v10003_v9 = vld [vmem:[%s9972_s10 + $0xa8] sm:$0xff]  ;;  %v762_v10 = vld [vmem:[%s9972_s10 + $0x10] sm:$0xff] }
  0x15   : > { %8482 = vmatpush3.msra.mxu1 %v1378_v1  ;;  %8460 = vmatprep.mubr.msk.f32.mxu1 %vm14538_vm0, %v9981_v4  ;;  %v10008_v11 = vld [vmem:[%s9972_s10 + $0xb0] sm:$0xff]  ;;  %v763_v12 = vld [vmem:[%s9972_s10 + $0x18] sm:$0xff]  ;;  %v764_v14 = vld [vmem:[%s9972_s10 + $0x20] sm:$0xff] }
  0x16   : > { %8433 = vmatprep.mubr.msk.f32.mxu0 %vm14538_vm0, %v760_v7  ;;  %v10017_v13 = vld [vmem:[%s9972_s10 + $0xb8] sm:$0xff]  ;;  %v10022_v15 = vld [vmem:[%s9972_s10 + $0xc0] sm:$0xff]  ;;  %v765_v16 = vld [vmem:[%s9972_s10 + $0x28] sm:$0xff] }
  0x17   : > { %8434 = vmatmul.mubr.msk.f32.vlgmr.msra.gmra.mrb[0].mxu0 %vm14538_vm0, %v761_v8  ;;  %v785_v17 = vld [vmem:[%s9972_s10 + $0xc8] sm:$0xff]  ;;  %v766_v18 = vld [vmem:[%s9972_s10 + $0x30] sm:$0xff]  ;;  %v767_v20 = vld [vmem:[%s9972_s10 + $0x38] sm:$0xff] }
  0x18   : > { %8461 = vmatmul.mubr.msk.f32.gmra.mrb[2].mxu1 %vm14538_vm0, %v9990_v5  ;;  %8436 = vmatprep.mubr.msk.f32.mxu0 %vm14538_vm0, %v762_v10  ;;  %v786_v19 = vld [vmem:[%s9972_s10 + $0xd0] sm:$0xff]  ;;  %v787_v21 = vld [vmem:[%s9972_s10 + $0xd8] sm:$0xff]  ;;  %v768_v22 = vld [vmem:[%s9972_s10 + $0x40] sm:$0xff] }
  0x19   : > { %8463 = vmatprep.mubr.msk.f32.mxu1 %vm14538_vm0, %v9993_v6  ;;  %v788_v23 = vld [vmem:[%s9972_s10 + $0xe0] sm:$0xff]  ;;  %v769_v24 = vld [vmem:[%s9972_s10 + $0x48] sm:$0xff]  ;;  %v770_v26 = vld [vmem:[%s9972_s10 + $0x50] sm:$0xff] }
  0x1a   : > { %v789_v25 = vld [vmem:[%s9972_s10 + $0xe8] sm:$0xff]  ;;  %v790_v27 = vld [vmem:[%s9972_s10 + $0xf0] sm:$0xff]  ;;  %v771_v28 = vld [vmem:[%s9972_s10 + $0x58] sm:$0xff] }
  0x1b   : > { %8437 = vmatmul.mubr.msk.f32.gmra.mrb[2].mxu0 %vm14538_vm0, %v763_v12  ;;  %v791_v29 = vld [vmem:[%s9972_s10 + $0xf8] sm:$0xff]  ;;  %v772_v30 = vld [vmem:[%s9972_s10 + $0x60] sm:$0xff]  ;;  %v773_v31 = vld [vmem:[%s9972_s10 + $0x68] sm:$0xff] }
  0x1c   : > { %8464 = vmatmul.mubr.msk.f32.gmra.mrb[4].mxu1 %vm14538_vm0, %v10003_v9  ;;  %8439 = vmatprep.mubr.msk.f32.mxu0 %vm14538_vm0, %v764_v14  ;;  %v774_v32 = vld [vmem:[%s9972_s10 + $0x70] sm:$0xff]  ;;  %v775_v33 = vld [vmem:[%s9972_s10 + $0x78] sm:$0xff] }
  0x1d   : > { %8466 = vmatprep.mubr.msk.f32.mxu1 %vm14538_vm0, %v10008_v11 }
  0x1f   : > { %8440 = vmatmul.mubr.msk.f32.gmra.mrb[4].mxu0 %vm14538_vm0, %v765_v16 }
  0x20   : > { %8467 = vmatmul.mubr.msk.f32.gmra.mrb[6].mxu1 %vm14538_vm0, %v10017_v13  ;;  %8442 = vmatprep.mubr.msk.f32.mxu0 %vm14538_vm0, %v766_v18 }
  0x21   : > { %8469 = vmatprep.mubr.msk.f32.mxu1 %vm14538_vm0, %v10022_v15 }
  0x23   : > { %8443 = vmatmul.mubr.msk.f32.gmra.mrb[6].mxu0 %vm14538_vm0, %v767_v20 }
  0x24   : > { %8470 = vmatmul.mubr.msk.f32.gmra.mrb[8].mxu1 %vm14538_vm0, %v785_v17  ;;  %8445 = vmatprep.mubr.msk.f32.mxu0 %vm14538_vm0, %v768_v22 }
  0x25   : > { %8472 = vmatprep.mubr.msk.f32.mxu1 %vm14538_vm0, %v786_v19 }
  0x27   : > { %8446 = vmatmul.mubr.msk.f32.gmra.mrb[8].mxu0 %vm14538_vm0, %v769_v24 }
  0x28   : > { %8473 = vmatmul.mubr.msk.f32.gmra.mrb[10].mxu1 %vm14538_vm0, %v787_v21  ;;  %8448 = vmatprep.mubr.msk.f32.mxu0 %vm14538_vm0, %v770_v26 }
  0x29   : > { %8475 = vmatprep.mubr.msk.f32.mxu1 %vm14538_vm0, %v788_v23 }
  0x2b   : > { %8449 = vmatmul.mubr.msk.f32.gmra.mrb[10].mxu0 %vm14538_vm0, %v771_v28 }
  0x2c   : > { %8476 = vmatmul.mubr.msk.f32.gmra.mrb[12].mxu1 %vm14538_vm0, %v789_v25  ;;  %8451 = vmatprep.mubr.msk.f32.mxu0 %vm14538_vm0, %v772_v30 }
  0x2d   : > { %8478 = vmatprep.mubr.msk.f32.mxu1 %vm14538_vm0, %v790_v27 }
  0x2f   : > { %8452 = vmatmul.mubr.msk.f32.gmra.mrb[12].mxu0 %vm14538_vm0, %v773_v31 }
  0x30   : > { %8479 = vmatmul.mubr.msk.f32.gmra.mrb[14].mxu1 %vm14538_vm0, %v791_v29  ;;  %8454 = vmatprep.mubr.msk.f32.mxu0 %vm14538_vm0, %v774_v32 }
  0x31   : > { %8483 = vmatprep.mubr.msk.f32.mxu1 %vm14538_vm0, %v760_v7 }
  0x33   : > { %8455 = vmatmul.mubr.msk.f32.gmra.mrb[14].mxu0 %vm14538_vm0, %v775_v33 }
  0x34   : > { %8484 = vmatmul.mubr.msk.f32.vlgmr.msra.gmra.mrb[16].mxu1 %vm14538_vm0, %v761_v8 }
  0x35   : > { %8486 = vmatprep.mubr.msk.f32.mxu1 %vm14538_vm0, %v762_v10 }
  0x38   : > { %8487 = vmatmul.mubr.msk.f32.gmra.mrb[18].mxu1 %vm14538_vm0, %v763_v12  ;;  %v279_v12 = vlaneseq }
  0x39   : > { %8489 = vmatprep.mubr.msk.f32.mxu1 %vm14538_vm0, %v764_v14 }
  0x3c   : > { %8490 = vmatmul.mubr.msk.f32.gmra.mrb[20].mxu1 %vm14538_vm0, %v765_v16 }
  0x3d   : > { %8492 = vmatprep.mubr.msk.f32.mxu1 %vm14538_vm0, %v766_v18 }
  0x40   : > { %8493 = vmatmul.mubr.msk.f32.gmra.mrb[22].mxu1 %vm14538_vm0, %v767_v20 }
  0x41   : > { %8495 = vmatprep.mubr.msk.f32.mxu1 %vm14538_vm0, %v768_v22 }
  0x44   : > { %8496 = vmatmul.mubr.msk.f32.gmra.mrb[24].mxu1 %vm14538_vm0, %v769_v24 }
  0x45   : > { %8498 = vmatprep.mubr.msk.f32.mxu1 %vm14538_vm0, %v770_v26 }
  0x48   : > { %8499 = vmatmul.mubr.msk.f32.gmra.mrb[26].mxu1 %vm14538_vm0, %v771_v28 }
  0x49   : > { %8501 = vmatprep.mubr.msk.f32.mxu1 %vm14538_vm0, %v772_v30 }
  0x4c   : > { %8502 = vmatmul.mubr.msk.f32.gmra.mrb[28].mxu1 %vm14538_vm0, %v773_v31 }
  0x4d   : > { %8504 = vmatprep.mubr.msk.f32.mxu1 %vm14538_vm0, %v774_v32 }
  0x50   : > { %8505 = vmatmul.mubr.msk.f32.gmra.mrb[30].mxu1 %vm14538_vm0, %v775_v33 }
  0x51   : > { %8507 = vmatprep.mubr.msk.f32.mxu1 %vm14538_vm0, %v9975_v2 }
  0x54   : > { %8508 = vmatmul.mubr.msk.f32.gmra.mrb[32].mxu1 %vm14538_vm0, %v9978_v3 }
  0x55   : > { %8510 = vmatprep.mubr.msk.f32.mxu1 %vm14538_vm0, %v9981_v4 }
  0x58   : > { %8511 = vmatmul.mubr.msk.f32.gmra.mrb[34].mxu1 %vm14538_vm0, %v9990_v5 }
  0x59   : > { %8513 = vmatprep.mubr.msk.f32.mxu1 %vm14538_vm0, %v9993_v6 }
  0x5c   : > { %8514 = vmatmul.mubr.msk.f32.gmra.mrb[36].mxu1 %vm14538_vm0, %v10003_v9 }
  0x5d   : > { %8516 = vmatprep.mubr.msk.f32.mxu1 %vm14538_vm0, %v10008_v11 }
  0x60   : > { %8517 = vmatmul.mubr.msk.f32.gmra.mrb[38].mxu1 %vm14538_vm0, %v10017_v13 }
  0x61   : > { %8519 = vmatprep.mubr.msk.f32.mxu1 %vm14538_vm0, %v10022_v15 }
  0x64   : > { %8520 = vmatmul.mubr.msk.f32.gmra.mrb[40].mxu1 %vm14538_vm0, %v785_v17 }
  0x65   : > { %8522 = vmatprep.mubr.msk.f32.mxu1 %vm14538_vm0, %v786_v19 }
  0x68   : > { %8523 = vmatmul.mubr.msk.f32.gmra.mrb[42].mxu1 %vm14538_vm0, %v787_v21 }
  0x69   : > { %8525 = vmatprep.mubr.msk.f32.mxu1 %vm14538_vm0, %v788_v23  ;;  %v10162_v23 = vshrl.u32 %v279_v12, 7 }
  0x6b   : > { %vm14535_vm1 = vcmp.lt.s32.totalorder %v10162_v23, 7  ;;  %vm14532_vm7 = vcmp.lt.s32.totalorder %v10162_v23, 1 }
  0x6c   : > { %8526 = vmatmul.mubr.msk.f32.gmra.mrb[44].mxu1 %vm14538_vm0, %v789_v25 }
  0x6d   : > { %8528 = vmatprep.mubr.msk.f32.mxu1 %vm14538_vm0, %v790_v27 }
  0x70   : > { %8529 = vmatmul.mubr.msk.f32.gmra.mrb[46].mxu1 %vm14538_vm0, %v791_v29 }
  0xe7   : > { %v8459_v35 = vpop.f32.mrb[0].mxu1 }
  0xe8   : > { %v10112_v36 = vadd.f32 %v8459_v35, %v10109_v34  ;;  %v1043_v37 = vpop.f32.mrb[1].mxu1 }
  0xe9   : > { %v10115_v38 = vadd.f32 %v10109_v34, %v1043_v37  ;;  %v10181_v37 = vadd.s32 8, %v10162_v23 }
  0xea   : > { %v7553_v39 = vmul.f32 -1.442695, %v10112_v36 }
  0xeb   : > { %v7552_v40 = vmul.f32 -1.442695, %v10115_v38  ;;  %v8462_v41 = vpop.f32.mrb[2].mxu1 }
  0xec   : > { %9258 = vpow2.f32 %v7553_v39  ;;  %v10120_v42 = vadd.f32 %v8462_v41, %v10109_v34  ;;  %v1053_v43 = vpop.f32.mrb[3].mxu1 }
  0xed   : > { %9260 = vpow2.f32 %v7552_v40  ;;  %v10123_v44 = vadd.f32 %v10109_v34, %v1053_v43  ;;  %v10193_v43 = vadd.s32 24, %v10162_v23 }
  0xee   : > { %v7555_v45 = vmul.f32 -1.442695, %v10120_v42 }
  0xef   : > { %v7554_v46 = vmul.f32 -1.442695, %v10123_v44  ;;  %v8465_v47 = vpop.f32.mrb[4].mxu1 }
  0xf0   : > { %9262 = vpow2.f32 %v7555_v45  ;;  %v10128_v48 = vadd.f32 %v8465_v47, %v10109_v34  ;;  %v1063_v49 = vpop.f32.mrb[5].mxu1 }
  0xf1   : > { %9264 = vpow2.f32 %v7554_v46  ;;  %v10131_v50 = vadd.f32 %v10109_v34, %v1063_v49 }
  0xf2   : > { %v7557_v51 = vmul.f32 -1.442695, %v10128_v48 }
  0xf3   : > { %v7556_v52 = vmul.f32 -1.442695, %v10131_v50  ;;  %v8468_v53 = vpop.f32.mrb[6].mxu1 }
  0xf4   : > { %9266 = vpow2.f32 %v7557_v51  ;;  %v10136_v54 = vadd.f32 %v8468_v53, %v10109_v34  ;;  %v1073_v55 = vpop.f32.mrb[7].mxu1 }
  0xf5   : > { %9268 = vpow2.f32 %v7556_v52  ;;  %v10139_v56 = vadd.f32 %v10109_v34, %v1073_v55 }
  0xf6   : > { %v9259_v57 = vpop.eup %9258  ;;  %v7559_v58 = vmul.f32 -1.442695, %v10136_v54 }
  0xf7   : > { %v9261_v59 = vpop.eup %9260  ;;  %v1235_v60 = vadd.f32 1.0, %v9259_v57  ;;  %v7558_v61 = vmul.f32 -1.442695, %v10139_v56  ;;  %v8471_v62 = vpop.f32.mrb[8].mxu1 }
  0xf8   : > { %v1234_v63 = vadd.f32 1.0, %v9261_v59  ;;  %9270 = vpow2.f32 %v7559_v58  ;;  %v10144_v0 = vadd.f32 %v8471_v62, %v10109_v34  ;;  %v1083_v1 = vpop.f32.mrb[9].mxu1  ;;  %v323_v59 = vand.u32 15, %v10181_v37 }
  0xf9   : > { %9272 = vrcp.f32 %v1235_v60  ;;  %v10147_v2 = vadd.f32 %v10109_v34, %v1083_v1 }
  0xfa   : > { %v9263_v3 = vpop.eup %9262  ;;  %9274 = vrcp.f32 %v1234_v63  ;;  %v7561_v4 = vmul.f32 -1.442695, %v10144_v0  ;;  %vm10433_vm2 = vcmp.lt.s32.totalorder %v323_v59, 15 }
  0xfb   : > { %v9265_v5 = vpop.eup %9264  ;;  %v1237_v6 = vadd.f32 1.0, %v9263_v3  ;;  %9276 = vpow2.f32 %v7558_v61  ;;  %v7560_v7 = vmul.f32 -1.442695, %v10147_v2  ;;  %v8474_v8 = vpop.f32.mrb[10].mxu1 }
  0xfc   : > { %v1236_v9 = vadd.f32 1.0, %v9265_v5  ;;  %9278 = vpow2.f32 %v7561_v4  ;;  %v10152_v10 = vadd.f32 %v8474_v8, %v10109_v34  ;;  %v1093_v11 = vpop.f32.mrb[11].mxu1  ;;  %v10222_v8 = vadd.s32 56, %v10162_v23 }
  0xfd   : > { %9280 = vrcp.f32 %v1237_v6  ;;  %v10155_v13 = vadd.f32 %v10109_v34, %v1093_v11 }
  0xfe   : > { %v9267_v14 = vpop.eup %9266  ;;  %9282 = vrcp.f32 %v1236_v9  ;;  %v7563_v15 = vmul.f32 -1.442695, %v10152_v10 }
  0xff   : > { %v9269_v16 = vpop.eup %9268  ;;  %v1239_v17 = vadd.f32 1.0, %v9267_v14  ;;  %9284 = vpow2.f32 %v7560_v7  ;;  %v7562_v18 = vmul.f32 -1.442695, %v10155_v13  ;;  %v8477_v19 = vpop.f32.mrb[12].mxu1 }
 0x100   : > { %v1238_v20 = vadd.f32 1.0, %v9269_v16  ;;  %9286 = vpow2.f32 %v7563_v15  ;;  %v10160_v21 = vadd.f32 %v8477_v19, %v10109_v34  ;;  %v1103_v22 = vpop.f32.mrb[13].mxu1  ;;  %v10229_v15 = vadd.s32 72, %v10162_v23 }
 0x101   : > { %9288 = vrcp.f32 %v1239_v17  ;;  %v10165_v24 = vadd.f32 %v10109_v34, %v1103_v22  ;;  %v10236_v19 = vadd.s32 88, %v10162_v23 }
 0x102   : > { %v9271_v25 = vpop.eup %9270  ;;  %9290 = vrcp.f32 %v1238_v20  ;;  %v7565_v26 = vmul.f32 -1.442695, %v10160_v21 }
 0x103   : > { %v9273_v27 = vpop.eup %9272  ;;  %v1241_v28 = vadd.f32 1.0, %v9271_v25  ;;  %9292 = vpow2.f32 %v7562_v18  ;;  %v7564_v29 = vmul.f32 -1.442695, %v10165_v24  ;;  %v8480_v30 = vpop.f32.mrb[14].mxu1  ;;  %v10242_v25 = vadd.s32 104, %v10162_v23 }
 0x104   : > { %v9275_v31 = vpop.eup %9274  ;;  %v1331_v32 = vmul.f32 %v9273_v27, %v10112_v36  ;;  %9294 = vpow2.f32 %v7565_v26  ;;  %v10178_v33 = vadd.f32 %v8480_v30, %v10109_v34  ;;  %v1113_v35 = vpop.f32.mrb[15].mxu1  ;;  %v10190_v36 = vld [vmem:[%s14498_s2] ss:$0 sm:$0xff] }
 0x105   : > { %v9277_v39 = vpop.eup %9276  ;;  %v1330_v40 = vmul.f32 %v9275_v31, %v10115_v38  ;;  %9296 = vrcp.f32 %v1241_v28  ;;  %v10185_v41 = vadd.f32 %v10109_v34, %v1113_v35  ;;  %v10199_v38 = vadd.s32 40, %v10162_v23 }
 0x106   : > { %v9279_v45 = vpop.eup %9278  ;;  %1363 = vst.msk [vmem:[%s10173_s15 + $0x88] sm:$0xff] %vm14538_vm0, %v1331_v32  ;;  %v1240_v46 = vadd.f32 1.0, %v9277_v39  ;;  %9298 = vpow2.f32 %v7564_v29  ;;  %v7567_v47 = vmul.f32 -1.442695, %v10178_v33  ;;  %v10248_v29 = vadd.s32 120, %v10162_v23 }
 0x107   : > { %v9281_v34 = vpop.eup %9280  ;;  %1362 = vst.msk [vmem:[%s10173_s15 + $0x80] sm:$0xff] %vm14538_vm0, %v1330_v40  ;;  %v1243_v49 = vadd.f32 1.0, %v9279_v45  ;;  %v7566_v51 = vmul.f32 -1.442695, %v10185_v41  ;;  %v8485_v52 = vpop.f32.mrb[16].mxu1 }
 0x108   : > { %v9283_v53 = vpop.eup %9282  ;;  %v1333_v55 = vmul.f32 %v9281_v34, %v10120_v42  ;;  %9300 = vrcp.f32 %v1240_v46  ;;  %v10206_v57 = vadd.f32 %v8485_v52, %v10190_v36  ;;  %v1452_v58 = vpop.f32.mrb[17].mxu1  ;;  %14636 = vst [vmem:[#allocation3_spill] sm:$0xff] %v10248_v29 }
 0x109   : > { %v9285_v60 = vpop.eup %9284  ;;  %v1332_v61 = vmul.f32 %v9283_v53, %v10123_v44  ;;  %9302 = vrcp.f32 %v1243_v49  ;;  %v10211_v62 = vadd.f32 %v10190_v36, %v1452_v58  ;;  %v10267_v58 = vadd.s32 16, %v10162_v23 }
 0x10a   : > { %v9287_v1 = vpop.eup %9286  ;;  %1365 = vst.msk [vmem:[%s10173_s15 + $0x98] sm:$0xff] %vm14538_vm0, %v1333_v55  ;;  %v1242_v42 = vadd.f32 1.0, %v9285_v60  ;;  %9304 = vpow2.f32 %v7567_v47  ;;  %v7602_v3 = vmul.f32 -1.442695, %v10206_v57 }
 0x10b   : > { %v9289_v5 = vpop.eup %9288  ;;  %1364 = vst.msk [vmem:[%s10173_s15 + $0x90] sm:$0xff] %vm14538_vm0, %v1332_v61  ;;  %v1245_v6 = vadd.f32 1.0, %v9287_v1  ;;  %9306 = vpow2.f32 %v7566_v51  ;;  %v7601_v44 = vmul.f32 -1.442695, %v10211_v62  ;;  %v8488_v7 = vpop.f32.mrb[18].mxu1 }
 0x10c   : > { %v9291_v9 = vpop.eup %9290  ;;  %v1335_v11 = vmul.f32 %v9289_v5, %v10128_v48  ;;  %9308 = vrcp.f32 %v1242_v42  ;;  %v10226_v12 = vadd.f32 %v8488_v7, %v10190_v36  ;;  %v1462_v14 = vpop.f32.mrb[19].mxu1 }
 0x10d   : > { %v9293_v16 = vpop.eup %9292  ;;  %v1334_v17 = vmul.f32 %v9291_v9, %v10131_v50  ;;  %9310 = vrcp.f32 %v1245_v6  ;;  %v10233_v18 = vadd.f32 %v10190_v36, %v1462_v14 }
 0x10e   : > { %v9295_v48 = vpop.eup %9294  ;;  %1367 = vst.msk [vmem:[%s10173_s15 + $0xa8] sm:$0xff] %vm14538_vm0, %v1335_v11  ;;  %v1244_v20 = vadd.f32 1.0, %v9293_v16  ;;  %9312 = vpow2.f32 %v7602_v3  ;;  %v7604_v22 = vmul.f32 -1.442695, %v10226_v12  ;;  %v10286_v11 = vadd.s32 136, %v10162_v23 }
 0x10f   : > { %v9297_v26 = vpop.eup %9296  ;;  %1366 = vst.msk [vmem:[%s10173_s15 + $0xa0] sm:$0xff] %vm14538_vm0, %v1334_v17  ;;  %v1247_v50 = vadd.f32 1.0, %v9295_v48  ;;  %9314 = vpow2.f32 %v7601_v44  ;;  %v8491_v27 = vpop.f32.mrb[20].mxu1  ;;  %v7603_v32 = vmul.f32 -1.442695, %v10233_v18  ;;  %v10280_v44 = vadd.s32 32, %v10162_v23 }
 0x110   : > { %v9299_v30 = vpop.eup %9298  ;;  %v1337_v31 = vmul.f32 %v9297_v26, %v10136_v54  ;;  %9316 = vrcp.f32 %v1244_v20  ;;  %v10253_v35 = vadd.f32 %v8491_v27, %v10190_v36  ;;  %v1472_v39 = vpop.f32.mrb[21].mxu1  ;;  %14637 = vst [vmem:[#allocation4_spill] sm:$0xff] %v10286_v11 }
 0x111   : > { %9318 = vrcp.f32 %v1247_v50  ;;  %v1246_v40 = vadd.f32 1.0, %v9299_v30  ;;  %v10256_v45 = vadd.f32 %v10190_v36, %v1472_v39  ;;  %v10296_v30 = vadd.s32 48, %v10162_v23 }
 0x112   : > { %v9301_v47 = vpop.eup %9300  ;;  %1369 = vst.msk [vmem:[%s10173_s15 + $0xb8] sm:$0xff] %vm14538_vm0, %v1337_v31  ;;  %9320 = vpow2.f32 %v7604_v22  ;;  %v7606_v54 = vmul.f32 -1.442695, %v10253_v35  ;;  %v10417_v39 = vadd.s32 208, %v10162_v23 }
 0x113   : > { %v9303_v51 = vpop.eup %9302  ;;  %v1336_v52 = vmul.f32 %v9301_v47, %v10139_v56  ;;  %9322 = vrcp.f32 %v1246_v40  ;;  %v7605_v53 = vmul.f32 -1.442695, %v10256_v45  ;;  %v8494_v55 = vpop.f32.mrb[22].mxu1 }
 0x114   : > { %v9305_v60 = vpop.eup %9304  ;;  %v1339_v61 = vmul.f32 %v9303_v51, %v10144_v0  ;;  %9324 = vpow2.f32 %v7603_v32  ;;  %v10271_v1 = vadd.f32 %v8494_v55, %v10190_v36  ;;  %v1482_v42 = vpop.f32.mrb[23].mxu1  ;;  %14643 = vst [vmem:[#allocation10_spill] sm:$0xff] %v10417_v39 }
 0x115   : > { %v9307_v5 = vpop.eup %9306  ;;  %1368 = vst.msk [vmem:[%s10173_s15 + $0xb0] sm:$0xff] %vm14538_vm0, %v1336_v52  ;;  %v1249_v56 = vadd.f32 1.0, %v9305_v60  ;;  %9326 = vpow2.f32 %v7606_v54  ;;  %v10277_v6 = vadd.f32 %v10190_v36, %v1482_v42  ;;  %v10308_v54 = vadd.s32 64, %v10162_v23 }
 0x116   : > { %v9309_v7 = vpop.eup %9308  ;;  %1371 = vst.msk [vmem:[%s10173_s15 + $0xc8] sm:$0xff] %vm14538_vm0, %v1339_v61  ;;  %v1248_v0 = vadd.f32 1.0, %v9307_v5  ;;  %9328 = vpow2.f32 %v7605_v53  ;;  %v7608_v9 = vmul.f32 -1.442695, %v10271_v1  ;;  %v10313_v60 = vadd.s32 80, %v10162_v23 }
 0x117   : > { %v9311_v14 = vpop.eup %9310  ;;  %v1338_v16 = vmul.f32 %v9309_v7, %v10147_v2  ;;  %9330 = vrcp.f32 %v1249_v56  ;;  %v7607_v17 = vmul.f32 -1.442695, %v10277_v6  ;;  %v8497_v48 = vpop.f32.mrb[24].mxu1 }
 0x118   : > { %v9313_v22 = vpop.eup %9312  ;;  %v1341_v26 = vmul.f32 %v9311_v14, %v10152_v10  ;;  %9332 = vrcp.f32 %v1248_v0  ;;  %v10293_v50 = vadd.f32 %v8497_v48, %v10190_v36  ;;  %v1492_v27 = vpop.f32.mrb[25].mxu1  ;;  %v10326_v14 = vadd.s32 96, %v10162_v23 }
 0x119   : > { %v9315_v31 = vpop.eup %9314  ;;  %1370 = vst.msk [vmem:[%s10173_s15 + $0xc0] sm:$0xff] %vm14538_vm0, %v1338_v16  ;;  %v1708_v2 = vadd.f32 1.0, %v9313_v22  ;;  %9334 = vpow2.f32 %v7608_v9  ;;  %v10301_v32 = vadd.f32 %v10190_v36, %v1492_v27  ;;  %v10333_v48 = vadd.s32 112, %v10162_v23 }
 0x11a   : > { %v9317_v40 = vpop.eup %9316  ;;  %1373 = vst.msk [vmem:[%s10173_s15 + $0xd8] sm:$0xff] %vm14538_vm0, %v1341_v26  ;;  %v1707_v10 = vadd.f32 1.0, %v9315_v31  ;;  %9336 = vpow2.f32 %v7607_v17  ;;  %v7610_v47 = vmul.f32 -1.442695, %v10293_v50 }
 0x11b   : > { %v9319_v51 = vpop.eup %9318  ;;  %v1340_v52 = vmul.f32 %v9317_v40, %v10155_v13  ;;  %9338 = vrcp.f32 %v1708_v2  ;;  %v7609_v53 = vmul.f32 -1.442695, %v10301_v32  ;;  %v8500_v55 = vpop.f32.mrb[26].mxu1 }
 0x11c   : > { %v9321_v61 = vpop.eup %9320  ;;  %v1343_v42 = vmul.f32 %v9319_v51, %v10160_v21  ;;  %9340 = vrcp.f32 %v1707_v10  ;;  %v10317_v5 = vadd.f32 %v8500_v55, %v10190_v36  ;;  %v1502_v56 = vpop.f32.mrb[27].mxu1 }
 0x11d   : > { %v9323_v0 = vpop.eup %9322  ;;  %1372 = vst.msk [vmem:[%s10173_s15 + $0xd0] sm:$0xff] %vm14538_vm0, %v1340_v52  ;;  %v1710_v13 = vadd.f32 1.0, %v9321_v61  ;;  %9342 = vpow2.f32 %v7610_v47  ;;  %v10323_v9 = vadd.f32 %v10190_v36, %v1502_v56 }
 0x11e   : > { %v9325_v21 = vpop.eup %9324  ;;  %1375 = vst.msk [vmem:[%s10173_s15 + $0xe8] sm:$0xff] %vm14538_vm0, %v1343_v42  ;;  %v1342_v16 = vmul.f32 %v9323_v0, %v10165_v24  ;;  %9344 = vpow2.f32 %v7609_v53  ;;  %v7612_v17 = vmul.f32 -1.442695, %v10317_v5 }
 0x11f   : > { %v9327_v22 = vpop.eup %9326  ;;  %9346 = vrcp.f32 %v1710_v13  ;;  %v1709_v26 = vadd.f32 1.0, %v9325_v21  ;;  %v8503_v27 = vpop.f32.mrb[28].mxu1  ;;  %v7611_v24 = vmul.f32 -1.442695, %v10323_v9  ;;  %v2548_v13 = vld [vmem:[%s14501_s5] sm:$0xff]  ;;  %v2549_v21 = vld [vmem:[%s14501_s5 + $0x8] sm:$0xff] }
 0x120   : > { %v9329_v40 = vpop.eup %9328  ;;  %1374 = vst.msk [vmem:[%s10173_s15 + $0xe0] sm:$0xff] %vm14538_vm0, %v1342_v16  ;;  %v1712_v10 = vadd.f32 1.0, %v9327_v22  ;;  %9348 = vpow2.f32 %v7612_v17  ;;  %v10341_v47 = vadd.f32 %v8503_v27, %v10190_v36  ;;  %v1512_v51 = vpop.f32.mrb[29].mxu1  ;;  %v10360_v27 = vadd.s32 128, %v10162_v23 }
 0x121   : > { %v9331_v52 = vpop.eup %9330  ;;  %9350 = vrcp.f32 %v1709_v26  ;;  %v1711_v53 = vadd.f32 1.0, %v9329_v40  ;;  %v10344_v55 = vadd.f32 %v10190_v36, %v1512_v51  ;;  %v9021_v3 = vpack.c.bf16 %v2549_v21, %v2548_v13  ;;  %v2550_v13 = vld [vmem:[%s14501_s5 + $0x10] sm:$0xff] }
 0x122   : > { %v9333_v42 = vpop.eup %9332  ;;  %v1345_v56 = vmul.f32 %v9331_v52, %v10178_v33  ;;  %9352 = vrcp.f32 %v1712_v10  ;;  %v7614_v0 = vmul.f32 -1.442695, %v10341_v47  ;;  %14638 = vst [vmem:[#allocation5_spill] sm:$0xff] %v10360_v27 }
 0x123   : > { %v9335_v17 = vpop.eup %9334  ;;  %v1344_v22 = vmul.f32 %v9333_v42, %v10185_v41  ;;  %9354 = vrcp.f32 %v1711_v53  ;;  %v7613_v33 = vmul.f32 -1.442695, %v10344_v55  ;;  %v8506_v26 = vpop.f32.mrb[30].mxu1  ;;  %v10373_v42 = vadd.s32 144, %v10162_v23  ;;  %9022 = vmatprep.subr.bf16.mxu0 %v9021_v3 }
 0x124   : > { %v9337_v40 = vpop.eup %9336  ;;  %1377 = vst.msk [vmem:[%s10173_s15 + $0xf8] sm:$0xff] %vm14538_vm0, %v1345_v56  ;;  %v1714_v10 = vadd.f32 1.0, %v9335_v17  ;;  %9356 = vpow2.f32 %v7611_v24  ;;  %v10365_v51 = vadd.f32 %v8506_v26, %v10190_v36  ;;  %v1522_v52 = vpop.f32.mrb[31].mxu1  ;;  %9024 = vmatpush3.bf16.msra.mxu0 %v9021_v3 }
 0x125   : > { %v9339_v16 = vpop.eup %9338  ;;  %1376 = vst.msk [vmem:[%s10173_s15 + $0xf0] sm:$0xff] %vm14538_vm0, %v1344_v22  ;;  %v1713_v41 = vadd.f32 1.0, %v9337_v40  ;;  %9358 = vpow2.f32 %v7614_v0  ;;  %v10370_v53 = vadd.f32 %v10190_v36, %v1522_v52  ;;  %14639 = vst [vmem:[#allocation6_spill] sm:$0xff] %v10373_v42  ;;  %v10383_v0 = vadd.s32 160, %v10162_v23  ;;  %8589 = vmatprep.subr.mxu0 %v2550_v13 }
 0x126   : > { %v9341_v61 = vpop.eup %9340  ;;  %v10376_v56 = vmul.f32 %v9339_v16, %v10206_v57  ;;  %9360 = vrcp.f32 %v1714_v10  ;;  %v7616_v24 = vmul.f32 -1.442695, %v10365_v51  ;;  %v10390_v16 = vadd.s32 176, %v10162_v23 }
 0x127   : > { %14640 = vst [vmem:[#allocation7_spill] sm:$0xff] %v10383_v0  ;;  %v9343_v21 = vpop.eup %9342  ;;  %v10386_v17 = vmul.f32 %v9341_v61, %v10211_v62  ;;  %9362 = vrcp.f32 %v1713_v41  ;;  %v8509_v22 = vpop.f32.mrb[32].mxu1  ;;  %v7615_v10 = vmul.f32 -1.442695, %v10370_v53 }
 0x128   : > { %14641 = vst [vmem:[#allocation8_spill] sm:$0xff] %v10390_v16  ;;  %v9345_v26 = vpop.eup %9344  ;;  %v1716_v40 = vadd.f32 1.0, %v9343_v21  ;;  %9364 = vpow2.f32 %v7613_v33  ;;  %2228 = vrot.lane.b32.xlu0 %v10376_v56, %s9907_s25  ;;  %v10396_v62 = vadd.f32 %v8509_v22, %v10190_v36  ;;  %v1532_v61 = vpop.f32.mrb[33].mxu1  ;;  %8590 = vmatpush3.msra.mxu0 %v2550_v13 }
 0x129   : > { %v9347_v3 = vpop.eup %9346  ;;  %v1715_v52 = vadd.f32 1.0, %v9345_v26  ;;  %9366 = vpow2.f32 %v7616_v24  ;;  %v10399_v41 = vadd.f32 %v10190_v36, %v1532_v61  ;;  %v14504_v2 = vrot.slane %v10386_v17, 1 }
 0x12a   : > { %v9349_v33 = vpop.eup %9348  ;;  %9368 = vrcp.f32 %v1716_v40  ;;  %v7618_v57 = vmul.f32 -1.442695, %v10396_v62  ;;  %v14505_v26 = vrot.slane %v10376_v56, 1  ;;  %v10408_v61 = vadd.s32 192, %v10162_v23 }
 0x12b   : > { %v9351_v22 = vpop.eup %9350  ;;  %9370 = vrcp.f32 %v1715_v52  ;;  %v7617_v7 = vmul.f32 -1.442695, %v10399_v41  ;;  %v8512_v24 = vpop.f32.mrb[34].mxu1  ;;  %v1718_v34 = vadd.f32 1.0, %v9349_v33  ;;  %v14644_v52 = vmov 0 }
 0x12c   : > { %14642 = vst [vmem:[#allocation9_spill] sm:$0xff] %v10408_v61  ;;  %v9353_v21 = vpop.eup %9352  ;;  %9372 = vpow2.f32 %v7615_v10  ;;  %2226 = vrot.lane.b32.xlu0 %v10386_v17, %s9907_s25  ;;  %v10413_v40 = vadd.f32 %v8512_v24, %v10190_v36  ;;  %v1542_v31 = vpop.f32.mrb[35].mxu1  ;;  %v10420_v13 = vmul.f32 %v9351_v22, %v10233_v18  ;;  %v2064_v10 = vsel %vm14535_vm1, %v14504_v2, %v14505_v26 }
 0x12d   : > { %v9355_v49 = vpop.eup %9354  ;;  %v10429_v24 = vadd.f32 %v10190_v36, %v1542_v31  ;;  %v14645_v52 = vsel %vm10433_vm2, 4294967295, %v14644_v52  ;;  %v10438_v18 = vmul.f32 %v9347_v3, %v10226_v12  ;;  %9374 = vpow2.f32 %v7618_v57  ;;  %2387 = vrot.lane.b32.xlu1 %v2064_v10, %s9908_s26 }
 0x12e   : > { %14646 = vst [vmem:[#allocation11_spill] sm:$0xff] %v14645_v52  ;;  %v9357_v20 = vpop.eup %9356  ;;  %v7620_v33 = vmul.f32 -1.442695, %v10413_v40  ;;  %v10443_v22 = vadd.s32 224, %v10162_v23  ;;  %9376 = vpow2.f32 %v7617_v7 }
 0x12f   : > { %v9359_v31 = vpop.eup %9358  ;;  %v1717_v2 = vadd.f32 1.0, %v9357_v20  ;;  %v7619_v37 = vmul.f32 -1.442695, %v10429_v24  ;;  %v8515_v59 = vpop.f32.mrb[36].mxu1  ;;  %v2004_v3 = vrot.slane %v10438_v18, 1 }
 0x130   : > { %14647 = vst [vmem:[#allocation12_spill] sm:$0xff] %v10443_v22  ;;  %v9361_v28 = vpop.eup %9360  ;;  %9378 = vpow2.f32 %v7620_v33  ;;  %2230 = vrot.lane.b32.xlu0 %v10420_v13, %s9907_s25  ;;  %v10450_v12 = vadd.f32 %v8515_v59, %v10190_v36  ;;  %v1552_v57 = vpop.f32.mrb[37].mxu1  ;;  %v1720_v7 = vadd.f32 1.0, %v9359_v31  ;;  %v2003_v33 = vrot.slane %v10420_v13, 1 }
 0x131   : > { %v10454_v20 = vpop.eup %9362  ;;  %9380 = vrcp.f32 %v1718_v34  ;;  %v10457_v4 = vadd.f32 %v10190_v36, %v1552_v57  ;;  %2232 = vrot.lane.b32.xlu1 %v10438_v18, %s9907_s25  ;;  %v10466_v34 = vmul.f32 %v9353_v21, %v10253_v35  ;;  %v10503_v35 = vmul.f32 %v9361_v28, %v10271_v1 }
 0x132   : > { %v9365_v46 = vpop.eup %9364  ;;  %9382 = vrcp.f32 %v1717_v2  ;;  %v7622_v59 = vmul.f32 -1.442695, %v10450_v12  ;;  %v10472_v2 = vmul.f32 %v9355_v49, %v10256_v45  ;;  %v2062_v29 = vsel %vm14535_vm1, %v2003_v33, %v2004_v3 }
 0x133   : > { %v9367_v63 = vpop.eup %9366  ;;  %v1719_v31 = vadd.f32 1.0, %v9365_v46  ;;  %9384 = vpow2.f32 %v7619_v37  ;;  %v7621_v57 = vmul.f32 -1.442695, %v10457_v4  ;;  %v8518_v26 = vpop.f32.mrb[38].mxu1  ;;  %v14648_v46 = vrot.slane %v10376_v56, 1  ;;  %14653 = vst [vmem:[#allocation14_spill] sm:$0xff] %v10503_v35 }
 0x134   : > { %v10469_v11 = vpop.eup %9368  ;;  %v1722_v39 = vadd.f32 1.0, %v9367_v63  ;;  %9386 = vpow2.f32 %v7622_v59  ;;  %v1562_v10 = vpop.f32.mrb[39].mxu1  ;;  %2391 = vrot.lane.b32.xlu0 %v2062_v29, %s9908_s26  ;;  %v10485_v45 = vadd.f32 %v8518_v26, %v10190_v36  ;;  %v14649_v63 = vand.u32 15, %v10193_v43 }
 0x135   : > { %v10476_v22 = vpop.eup %9370  ;;  %9388 = vrcp.f32 %v1720_v7  ;;  %v2063_v21 = vsel %vm14535_vm1, %v14648_v46, %v2003_v33  ;;  %v14650_v49 = vmov 0  ;;  %2236 = vrot.lane.b32.xlu1 %v10466_v34, %s9907_s25  ;;  %v10498_v29 = vadd.f32 %v10190_v36, %v1562_v10 }
 0x136   : > { %vm10489_vm3 = vcmp.lt.s32.totalorder %v14649_v63, 15  ;;  %v9373_v37 = vpop.eup %9372  ;;  %9390 = vrcp.f32 %v1719_v31  ;;  %v7624_v43 = vmul.f32 -1.442695, %v10485_v45  ;;  %v2131_v31 = vsel %vm10433_vm2, %v2063_v21, 0.0 }
 0x137   : > { %v14651_v49 = vsel %vm10489_vm3, 4294967295, %v14650_v49  ;;  %v1721_v33 = vadd.f32 1.0, %v9373_v37  ;;  %9392 = vpow2.f32 %v7621_v57  ;;  %v8521_v46 = vpop.f32.mrb[40].mxu1  ;;  %v9375_v63 = vpop.eup %9374  ;;  %v2005_v7 = vrot.slane %v10472_v2, 1 }
 0x138   : > { %14652 = vst [vmem:[#allocation13_spill] sm:$0xff] %v14651_v49  ;;  %9394 = vrcp.f32 %v1722_v39  ;;  %v1572_v59 = vpop.f32.mrb[41].mxu1  ;;  %v9377_v10 = vpop.eup %9376  ;;  %v1724_v61 = vadd.f32 1.0, %v9375_v63  ;;  %2234 = vrot.lane.b32.xlu0 %v10472_v2, %s9907_s25  ;;  %v14514_v57 = vrot.slane %v10466_v34, 1  ;;  %v10512_v37 = vadd.f32 %v8521_v46, %v10190_v36 }
 0x139   : > { %9396 = vrcp.f32 %v1721_v33  ;;  %v1723_v1 = vadd.f32 1.0, %v9377_v10  ;;  %2389 = vrot.lane.b32.xlu1 %v2131_v31, %s9908_s26  ;;  %v7623_v39 = vmul.f32 -1.442695, %v10498_v29  ;;  %v10517_v21 = vadd.f32 %v10190_v36, %v1572_v59 }
 0x13a   : > { %v9379_v28 = vpop.eup %9378  ;;  %9398 = vpow2.f32 %v7624_v43  ;;  %v2060_v26 = vsel %vm14535_vm1, %v2005_v7, %v14514_v57  ;;  %v7626_v46 = vmul.f32 -1.442695, %v10512_v37  ;;  %v2061_v59 = vsel %vm14535_vm1, %v2004_v3, %v2005_v7 }
 0x13b   : > { %v9381_v33 = vpop.eup %9380  ;;  %9400 = vrcp.f32 %v1724_v61  ;;  %v1726_v63 = vadd.f32 1.0, %v9379_v28  ;;  %v8524_v52 = vpop.f32.mrb[42].mxu1  ;;  %v10531_v0 = vmul.f32 %v10454_v20, %v10277_v6  ;;  %v7625_v3 = vmul.f32 -1.442695, %v10517_v21 }
 0x13c   : > { %v9383_v10 = vpop.eup %9382  ;;  %9402 = vrcp.f32 %v1723_v1  ;;  %v1582_v16 = vpop.f32.mrb[43].mxu1  ;;  %2395 = vrot.lane.b32.xlu0 %v2060_v26, %s9908_s26  ;;  %v10535_v57 = vadd.f32 %v8524_v52, %v10190_v36  ;;  %v14655_v6 = vand.u32 15, %v10199_v38  ;;  %v14656_v20 = vmov 0 }
 0x13d   : > { %v9385_v61 = vpop.eup %9384  ;;  %14654 = vst [vmem:[#allocation15_spill] sm:$0xff] %v10531_v0  ;;  %9404 = vrcp.f32 %v1726_v63  ;;  %2240 = vrot.lane.b32.xlu1 %v10503_v35, %s9907_s25  ;;  %v10541_v7 = vadd.f32 %v10190_v36, %v1582_v16  ;;  %v10551_v52 = vmul.f32 %v10469_v11, %v10293_v50  ;;  %v10556_v16 = vmul.f32 %v10476_v22, %v10301_v32 }
 0x13e   : > { %v9387_v31 = vpop.eup %9386  ;;  %v1725_v43 = vadd.f32 1.0, %v9385_v61  ;;  %9406 = vpow2.f32 %v7623_v39  ;;  %vm10545_vm4 = vcmp.lt.s32.totalorder %v14655_v6, 15  ;;  %v7628_v39 = vmul.f32 -1.442695, %v10535_v57 }
 0x13f   : > { %v14657_v20 = vsel %vm10545_vm4, 4294967295, %v14656_v20  ;;  %v9389_v26 = vpop.eup %9388  ;;  %14659 = vst [vmem:[#allocation17_spill] sm:$0xff] %v10551_v52  ;;  %v1728_v1 = vadd.f32 1.0, %v9387_v31  ;;  %9408 = vpow2.f32 %v7626_v46  ;;  %v8527_v63 = vpop.f32.mrb[44].mxu1  ;;  %v2133_v38 = vsel %vm10489_vm3, %v2061_v59, 0.0 }
 0x140   : > { %14658 = vst [vmem:[#allocation16_spill] sm:$0xff] %v14657_v20  ;;  %v9391_v61 = vpop.eup %9390  ;;  %9410 = vrcp.f32 %v1725_v43  ;;  %v10561_v6 = vadd.f32 %v8527_v63, %v10190_v36  ;;  %v1592_v28 = vpop.f32.mrb[45].mxu1  ;;  %2238 = vrot.lane.b32.xlu0 %v10531_v0, %s9907_s25  ;;  %v7627_v50 = vmul.f32 -1.442695, %v10541_v7  ;;  %v2007_v32 = vrot.slane %v10531_v0, 1 }
 0x141   : > { %v9393_v11 = vpop.eup %9392  ;;  %9412 = vrcp.f32 %v1728_v1  ;;  %v10567_v46 = vadd.f32 %v10190_v36, %v1592_v28  ;;  %v10571_v31 = vmul.f32 %v9381_v33, %v10317_v5  ;;  %2393 = vrot.lane.b32.xlu1 %v2133_v38, %s9908_s26  ;;  %v10577_v49 = vmul.f32 %v9383_v10, %v10323_v9 }
 0x142   : > { %v9395_v22 = vpop.eup %9394  ;;  %v1727_v43 = vadd.f32 1.0, %v9393_v11  ;;  %9414 = vpow2.f32 %v7625_v3  ;;  %v7630_v59 = vmul.f32 -1.442695, %v10561_v6  ;;  %v2008_v28 = vrot.slane %v10503_v35, 1 }
 0x143   : > { %v9397_v1 = vpop.eup %9396  ;;  %9416 = vpow2.f32 %v7628_v39  ;;  %v8530_v42 = vpop.f32.mrb[46].mxu1  ;;  %v7629_v5 = vmul.f32 -1.442695, %v10567_v46  ;;  %v14661_v3 = vrot.slane %v10466_v34, 1  ;;  %v14662_v9 = vand.u32 15, %v10222_v8 }
 0x144   : > { %v9399_v27 = vpop.eup %9398  ;;  %9418 = vrcp.f32 %v1727_v43  ;;  %v10582_v33 = vadd.f32 %v8530_v42, %v10190_v36  ;;  %v1602_v11 = vpop.f32.mrb[47].mxu1  ;;  %v2058_v39 = vsel %vm14535_vm1, %v2007_v32, %v2008_v28  ;;  %v10609_v0 = vmul.f32 %v9391_v61, %v10344_v55 }
 0x145   : > { %v2059_v38 = vsel %vm14535_vm1, %v14661_v3, %v2007_v32  ;;  %v9401_v63 = vpop.eup %9400  ;;  %v1730_v10 = vadd.f32 1.0, %v9399_v27  ;;  %9420 = vpow2.f32 %v7627_v50  ;;  %2399 = vrot.lane.b32.xlu0 %v2058_v39, %s9908_s26  ;;  %2244 = vrot.lane.b32.xlu1 %v10551_v52, %s9907_s25  ;;  %vm10599_vm5 = vcmp.lt.s32.totalorder %v14662_v9, 15 }
 0x146   : > { %14660 = vst [vmem:[#allocation18_spill] sm:$0xff] %v10582_v33  ;;  %v9403_v43 = vpop.eup %9402  ;;  %9422 = vpow2.f32 %v7630_v59  ;;  %v7632_v3 = vmul.f32 -1.442695, %v10582_v33  ;;  %v14663_v27 = vmov 0  ;;  %v10604_v32 = vmul.f32 %v9389_v26, %v10341_v47 }
 0x147   : > { %v14664_v27 = vsel %vm10599_vm5, 4294967295, %v14663_v27  ;;  %v9405_v50 = vpop.eup %9404  ;;  %9424 = vrcp.f32 %v1730_v10  ;;  %v2009_v59 = vrot.slane %v10556_v16, 1  ;;  %v2010_v39 = vrot.slane %v10551_v52, 1 }
 0x148   : > { %14665 = vst [vmem:[#allocation19_spill] sm:$0xff] %v14664_v27  ;;  %v9407_v42 = vpop.eup %9406  ;;  %v10612_v35 = vmul.f32 %v9395_v22, %v10365_v51  ;;  %9426 = vpow2.f32 %v7629_v5  ;;  %v2011_v8 = vrot.slane %v10577_v49, 1  ;;  %v2135_v47 = vsel %vm10545_vm4, %v2059_v38, 0.0 }
 0x149   : > { %v9409_v9 = vpop.eup %9408  ;;  %v1729_v33 = vadd.f32 1.0, %v9407_v42  ;;  %9428 = vpow2.f32 %v7632_v3  ;;  %v2056_v26 = vsel %vm14535_vm1, %v2009_v59, %v2010_v39  ;;  %v10620_v52 = vmul.f32 %v9397_v1, %v10370_v53  ;;  %2242 = vrot.lane.b32.xlu0 %v10556_v16, %s9907_s25  ;;  %2397 = vrot.lane.b32.xlu1 %v2135_v47, %s9908_s26 }
 0x14a   : > { %v9411_v10 = vpop.eup %9410  ;;  %v1732_v55 = vadd.f32 1.0, %v9409_v9  ;;  %v2057_v51 = vsel %vm14535_vm1, %v2008_v28, %v2009_v59  ;;  %v2012_v61 = vrot.slane %v10571_v31, 1  ;;  %v10632_v53 = vsel %vm14535_vm1, %v2010_v39, %v2011_v8 }
 0x14b   : > { %v9413_v22 = vpop.eup %9412  ;;  %9430 = vrcp.f32 %v1729_v33  ;;  %v10639_v9 = vmul.f32 %v9401_v63, %v10396_v62  ;;  %v10642_v33 = vadd.f32 %v10190_v36, %v1602_v11  ;;  %v2013_v39 = vrot.slane %v10609_v0, 1 }
 0x14c   : > { %v9415_v1 = vpop.eup %9414  ;;  %9432 = vrcp.f32 %v1732_v55  ;;  %v2054_v28 = vsel %vm14535_vm1, %v2011_v8, %v2012_v61  ;;  %v10646_v5 = vmul.f32 %v9403_v43, %v10399_v41  ;;  %v14666_v8 = vand.u32 15, %v10229_v15 }
 0x14d   : > { %v9417_v59 = vpop.eup %9416  ;;  %v1731_v47 = vadd.f32 1.0, %v9415_v1  ;;  %2403 = vrot.lane.b32.xlu0 %v2056_v26, %s9908_s26  ;;  %2248 = vrot.lane.b32.xlu1 %v10571_v31, %s9907_s25  ;;  %v14667_v62 = vmov 0  ;;  %v2014_v36 = vrot.slane %v10604_v32, 1  ;;  %v2015_v63 = vrot.slane %v10620_v52, 1 }
 0x14e   : > { %v9419_v38 = vpop.eup %9418  ;;  %v1734_v42 = vadd.f32 1.0, %v9417_v59  ;;  %vm10653_vm6 = vcmp.lt.s32.totalorder %v14666_v8, 15  ;;  %v10660_v41 = vmul.f32 %v9405_v50, %v10413_v40  ;;  %v7631_v43 = vmul.f32 -1.442695, %v10642_v33 }
 0x14f   : > { %v14668_v62 = vsel %vm10653_vm6, 4294967295, %v14667_v62  ;;  %v9421_v11 = vpop.eup %9420  ;;  %9434 = vrcp.f32 %v1731_v47  ;;  %v10665_v26 = vsel %vm14535_vm1, %v2012_v61, %v2013_v39  ;;  %v10669_v55 = vmul.f32 %v9411_v10, %v10429_v24 }
 0x150   : > { %14669 = vst [vmem:[#allocation20_spill] sm:$0xff] %v14668_v62  ;;  %v9423_v15 = vpop.eup %9422  ;;  %9436 = vrcp.f32 %v1734_v42  ;;  %v1733_v1 = vadd.f32 1.0, %v9421_v11  ;;  %v10673_v59 = vsel %vm14535_vm1, %v2013_v39, %v2014_v36  ;;  %v2137_v47 = vsel %vm10599_vm5, %v2057_v51, 0.0 }
 0x151   : > { %v9425_v40 = vpop.eup %9424  ;;  %v1736_v50 = vadd.f32 1.0, %v9423_v15  ;;  %9438 = vpow2.f32 %v7631_v43  ;;  %v2016_v61 = vrot.slane %v10612_v35, 1  ;;  %v14670_v8 = vand.u32 15, %v10267_v58  ;;  %2246 = vrot.lane.b32.xlu0 %v10577_v49, %s9907_s25  ;;  %2401 = vrot.lane.b32.xlu1 %v2137_v47, %s9908_s26 }
 0x152   : > { %v14671_v3 = vmov 0  ;;  %v9427_v24 = vpop.eup %9426  ;;  %v10685_v10 = vmul.f32 %v9419_v38, %v10457_v4  ;;  %9440 = vrcp.f32 %v1733_v1  ;;  %v14674_v51 = vand.u32 15, %v10236_v19 }
 0x153   : > { %vm10680_vm8 = vcmp.gt.s32.totalorder %v14670_v8, 0  ;;  %v14675_v42 = vmov 0  ;;  %v10698_v58 = vsel %vm14535_vm1, %v2014_v36, %v2015_v63  ;;  %v2017_v39 = vrot.slane %v10646_v5, 1  ;;  %v9429_v4 = vpop.eup %9428 }
 0x154   : > { %v14672_v3 = vsel %vm10680_vm8, 4294967295, %v14671_v3  ;;  %vm10692_vm9 = vcmp.lt.s32.totalorder %v14674_v51, 15  ;;  %v10702_v38 = vmul.f32 %v9413_v22, %v10450_v12  ;;  %9442 = vrcp.f32 %v1736_v50 }
 0x155   : > { %14673 = vst [vmem:[#allocation21_spill] sm:$0xff] %v14672_v3  ;;  %v14676_v42 = vsel %vm10692_vm9, 4294967295, %v14675_v42  ;;  %v1735_v11 = vadd.f32 1.0, %v9427_v24  ;;  %v10706_v43 = vsel %vm14535_vm1, %v2015_v63, %v2016_v61  ;;  %v1738_v15 = vadd.f32 1.0, %v9429_v4  ;;  %v9431_v22 = vpop.eup %9430  ;;  %2407 = vrot.lane.b32.xlu0 %v2054_v28, %s9908_s26  ;;  %2252 = vrot.lane.b32.xlu1 %v10604_v32, %s9907_s25 }
 0x156   : > { %14677 = vst [vmem:[#allocation22_spill] sm:$0xff] %v14676_v42  ;;  %v14678_v1 = vand.u32 15, %v10242_v25  ;;  %v14679_v36 = vmov 0  ;;  %v2018_v47 = vrot.slane %v10639_v9, 1  ;;  %v10718_v12 = vsel %vm14535_vm1, %v2016_v61, %v2017_v39  ;;  %v9433_v25 = vpop.eup %9432  ;;  %v14762_v42 = vld [vmem:[#allocation9_spill] sm:$0xff] }
 0x157   : > { %v10721_v50 = vmul.f32 %v9425_v40, %v10485_v45  ;;  %9444 = vrcp.f32 %v1735_v11  ;;  %v2019_v63 = vrot.slane %v10669_v55, 1  ;;  %v2020_v8 = vrot.slane %v10660_v41, 1 }
 0x158   : > { %vm10711_vm10 = vcmp.lt.s32.totalorder %v14678_v1, 15  ;;  %v10726_v24 = vmul.f32 %v9431_v22, %v10498_v29  ;;  %9446 = vrcp.f32 %v1738_v15  ;;  %v10733_v61 = vsel %vm14535_vm1, %v2017_v39, %v2018_v47 }
 0x159   : > { %v14680_v36 = vsel %vm10711_vm10, 4294967295, %v14679_v36  ;;  %v2021_v45 = vrot.slane %v10685_v10, 1  ;;  %v10737_v40 = vmul.f32 %v9433_v25, %v10512_v37  ;;  %v10741_v51 = vsel %vm14535_vm1, %v2019_v63, %v2020_v8  ;;  %2250 = vrot.lane.b32.xlu0 %v10609_v0, %s9907_s25 }
 0x15a   : > { %14681 = vst [vmem:[#allocation23_spill] sm:$0xff] %v14680_v36  ;;  %v10745_v29 = vsel %vm14535_vm1, %v2018_v47, %v2019_v63  ;;  %v2022_v28 = vrot.slane %v10702_v38, 1  ;;  %v2023_v37 = vrot.slane %v10726_v24, 1  ;;  %v14682_v15 = vand.u32 15, %v10280_v44  ;;  %v9435_v47 = vpop.eup %9434 }
 0x15b   : > { %v10752_v11 = vsel %vm14535_vm1, %v2020_v8, %v2021_v45  ;;  %v14683_v1 = vmov 0  ;;  %v2139_v63 = vsel %vm10653_vm6, %v10632_v53, 0.0  ;;  %v2024_v8 = vrot.slane %v10721_v50, 1  ;;  %v9437_v39 = vpop.eup %9436 }
 0x15c   : > { %vm10757_vm11 = vcmp.gt.s32.totalorder %v14682_v15, 0  ;;  %v10767_v25 = vsel %vm14535_vm1, %v2021_v45, %v2022_v28  ;;  %v10771_v44 = vmul.f32 %v9435_v47, %v10517_v21  ;;  %2405 = vrot.lane.b32.xlu1 %v2139_v63, %s9908_s26  ;;  %v10778_v15 = vsel %vm14535_vm1, %v2022_v28, %v2023_v37  ;;  %v9439_v63 = vpop.eup %9438 }
 0x15d   : > { %v14684_v1 = vsel %vm10757_vm11, 4294967295, %v14683_v1  ;;  %14686 = vst [vmem:[#allocation25_spill] sm:$0xff] %v10778_v15  ;;  %v2026_v53 = vrot.slane %v10737_v40, 1  ;;  %v14687_v45 = vrot.slane %v10376_v56, 7  ;;  %v14688_v22 = vrot.slane %v10386_v17, 7  ;;  %2411 = vrot.lane.b32.xlu0 %v10673_v59, %s9908_s26 }
 0x15e   : > { %14685 = vst [vmem:[#allocation24_spill] sm:$0xff] %v14684_v1  ;;  %v14689_v21 = vand.u32 15, %v10296_v30  ;;  %v14690_v47 = vmov 0  ;;  %v10795_v28 = vmul.f32 %v9437_v39, %v10535_v57  ;;  %v10799_v62 = vsel %vm14535_vm1, %v2023_v37, %v2024_v8  ;;  %v9441_v39 = vpop.eup %9440 }
 0x15f   : > { %v1903_v4 = vsel %vm14532_vm7, %v14688_v22, %v14687_v45  ;;  %v14692_v22 = vand.u32 15, %v10162_v23  ;;  %v14693_v30 = vmov 0  ;;  %v14696_v45 = vrot.slane %v10420_v13, 7  ;;  %v9443_v15 = vpop.eup %9442 }
 0x160   : > { %vm10789_vm12 = vcmp.gt.s32.totalorder %v14689_v21, 0  ;;  %2163 = vst.msk [vmem:[#allocation2 + $0x18] sm:$0xff] %vm14538_vm0, %v1903_v4  ;;  %v14697_v21 = vrot.slane %v10376_v56, 7  ;;  %v1737_v37 = vadd.f32 1.0, %v9439_v63  ;;  %v2025_v27 = vrot.slane %v10771_v44, 1  ;;  %2256 = vrot.lane.b32.xlu1 %v10612_v35, %s9907_s25 }
 0x161   : > { %v14691_v47 = vsel %vm10789_vm12, 4294967295, %v14690_v47  ;;  %vm10804_vm13 = vcmp.gt.s32.totalorder %v14692_v22, 0  ;;  %v14698_v22 = vand.u32 15, %v10308_v54  ;;  %v10825_v56 = vmul.f32 %v9441_v39, %v10541_v7  ;;  %2254 = vrot.lane.b32.xlu0 %v10620_v52, %s9907_s25 }
 0x162   : > { %v14694_v30 = vsel %vm10804_vm13, 4294967295, %v14693_v30  ;;  %v1902_v57 = vsel %vm14532_vm7, %v14697_v21, %v14696_v45  ;;  %v2141_v45 = vsel %vm10692_vm9, %v10665_v26, 0.0  ;;  %v2028_v63 = vrot.slane %v10795_v28, 1 }
 0x163   : > { %14695 = vst [vmem:[#allocation26_spill] sm:$0xff] %v14694_v30  ;;  %v1971_v4 = vsel %vm10680_vm8, %v1902_v57, 0.0  ;;  %vm10820_vm14 = vcmp.gt.s32.totalorder %v14698_v22, 0  ;;  %v14701_v21 = vrot.slane %v10438_v18, 7  ;;  %v14702_v54 = vrot.slane %v10420_v13, 7 }
 0x164   : > { %2164 = vst.msk [vmem:[#allocation2 + $0x20] sm:$0xff] %vm14538_vm0, %v1971_v4  ;;  %v14703_v22 = vand.u32 15, %v10313_v60  ;;  %v10845_v39 = vmul.f32 %v9443_v15, %v10561_v6  ;;  %9448 = vrcp.f32 %v1737_v37  ;;  %v10853_v13 = vsel %vm14535_vm1, %v2025_v27, %v2026_v53  ;;  %v9445_v37 = vpop.eup %9444  ;;  %v7634_v4 = vld [vmem:[%s14501_s5 + $0x20] sm:$0xff]  ;;  %2409 = vrot.lane.b32.xlu1 %v2141_v45, %s9908_s26 }
 0x165   : > { %v1901_v57 = vsel %vm14532_vm7, %v14702_v54, %v14701_v21  ;;  %v10857_v60 = vsel %vm14535_vm1, %v2024_v8, %v2025_v27  ;;  %v14706_v6 = vand.u32 15, %v10326_v14  ;;  %v14707_v26 = vmov 0  ;;  %v9447_v54 = vpop.eup %9446  ;;  %v14727_v27 = vld [vmem:[#allocation6_spill] sm:$0xff]  ;;  %2415 = vrot.lane.b32.xlu0 %v10706_v43, %s9908_s26 }
 0x166   : > { %vm10840_vm15 = vcmp.gt.s32.totalorder %v14703_v22, 0  ;;  %2165 = vst.msk [vmem:[#allocation2 + $0x28] sm:$0xff] %vm14538_vm0, %v1901_v57  ;;  %v14710_v59 = vand.u32 15, %v10333_v48  ;;  %v14711_v15 = vmov 0  ;;  %v2027_v8 = vrot.slane %v10825_v56, 1 }
 0x167   : > { %vm10862_vm7 = vcmp.gt.s32.totalorder %v14706_v6, 0  ;;  %v14714_v14 = vrot.slane %v10466_v34, 7  ;;  %v14715_v21 = vrot.slane %v10472_v2, 7  ;;  %vm14716_vm1 = vcmp.lt.s32.totalorder %v10162_v23, 1 }
 0x168   : > { %v14708_v26 = vsel %vm10862_vm7, 4294967295, %v14707_v26  ;;  %vm10868_vm8 = vcmp.gt.s32.totalorder %v14710_v59, 0  ;;  %v10885_v22 = vmul.f32 %v9445_v37, %v10567_v46  ;;  %v7633_v59 = vld [vmem:[%s14501_s5 + $0x18] sm:$0xff]  ;;  %v14719_v57 = vmov 0  ;;  %2260 = vrot.lane.b32.xlu1 %v10639_v9, %s9907_s25 }
 0x169   : > { %14709 = vst [vmem:[#allocation27_spill] sm:$0xff] %v14708_v26  ;;  %v14712_v15 = vsel %vm10868_vm8, 4294967295, %v14711_v15  ;;  %v1899_v48 = vsel %vm14716_vm1, %v14715_v21, %v14714_v14  ;;  %v14717_v14 = vld [vmem:[#allocation5_spill] sm:$0xff]  ;;  %v14722_v46 = vld [vmem:[#allocation18_spill] sm:$0xff]  ;;  %v14728_v6 = vand.u32 15, %v14727_v27  ;;  %v14729_v3 = vmov 0  ;;  %2258 = vrot.lane.b32.xlu0 %v10646_v5, %s9907_s25 }
 0x16a   : > { %14713 = vst [vmem:[#allocation28_spill] sm:$0xff] %v14712_v15  ;;  %2167 = vst.msk [vmem:[#allocation2 + $0x38] sm:$0xff] %vm14538_vm0, %v1899_v48  ;;  %v14718_v21 = vand.u32 15, %v14717_v14  ;;  %v10902_v37 = vmul.f32 %v9447_v54, %v14722_v46  ;;  %vm14723_vm0 = vcmp.lt.s32.totalorder %v10162_v23, 7  ;;  %v2029_v54 = vrot.slane %v10885_v22, 1 }
 0x16b   : > { %v10906_v48 = vsel %vm14723_vm0, %v2027_v8, %v2028_v63  ;;  %vm14725_vm9 = vmmov %vm14723_vm0  ;;  %vm10914_vm6 = vcmp.gt.s32.totalorder %v14728_v6, 0  ;;  %v9909_v46 = vmov 0.0   ;;  %vm14732_vm0 = vcmask 195584   ;;  %v14739_v6 = vld [vmem:[#allocation7_spill] sm:$0xff] }
 0x16c   : > { %vm10897_vm1 = vcmp.gt.s32.totalorder %v14718_v21, 0  ;;  %14724 = vst [vmem:[#allocation18_spill] sm:$0xff] %v10906_v48  ;;  %v10910_v19 = vsel %vm14725_vm9, %v2026_v53, %v2027_v8  ;;  %v14730_v3 = vsel %vm10914_vm6, 4294967295, %v14729_v3  ;;  %1836 = vst.msk [vmem:[#allocation2] sm:$0xff] %vm14732_vm0, %v9909_v46  ;;  %v14736_v53 = vrot.slane %v10472_v2, 7  ;;  %v14744_v2 = vld [vmem:[#allocation8_spill] sm:$0xff] }
 0x16d   : > { %v14720_v57 = vsel %vm10897_vm1, 4294967295, %v14719_v57  ;;  %14726 = vst [vmem:[#allocation29_spill] sm:$0xff] %v10910_v19  ;;  %14731 = vst [vmem:[#allocation6_spill] sm:$0xff] %v14730_v3  ;;  %v14737_v27 = vrot.slane %v10438_v18, 7  ;;  %vm14738_vm3 = vcmp.lt.s32.totalorder %v10162_v23, 1  ;;  %v14740_v45 = vand.u32 15, %v14739_v6  ;;  %2419 = vrot.lane.b32.xlu0 %v10733_v61, %s9908_s26 }
 0x16e   : > { %14721 = vst [vmem:[#allocation5_spill] sm:$0xff] %v14720_v57  ;;  %vm14733_vm9 = vmmov %vm14732_vm0  ;;  %v14741_v21 = vmov 0  ;;  %v9017_v19 = vpack.c.bf16 %v7634_v4, %v7633_v59  ;;  %v14745_v48 = vand.u32 15, %v14744_v2  ;;  %v14746_v18 = vmov 0  ;;  %v14756_v59 = vld [vmem:[#allocation15_spill] sm:$0xff] }
 0x16f   : > { %1837 = vst.msk [vmem:[#allocation2 + $0x8] sm:$0xff] %vm14733_vm9, %v9909_v46  ;;  %vm14734_vm5 = vmmov %vm14732_vm0  ;;  %v1900_v8 = vsel %vm14738_vm3, %v14737_v27, %v14736_v53  ;;  %vm10936_vm2 = vcmp.gt.s32.totalorder %v14740_v45, 0  ;;  %v14749_v53 = vrot.slane %v10845_v39, 1  ;;  %vm14750_vm3 = vcmp.lt.s32.totalorder %v10162_v23, 7 }
 0x170   : > { %1838 = vst.msk [vmem:[#allocation2 + $0x110] sm:$0xff] %vm14734_vm5, %v9909_v46  ;;  %vm14735_vm4 = vmmov %vm14732_vm0  ;;  %v14742_v21 = vsel %vm10936_vm2, 4294967295, %v14741_v21  ;;  %vm14753_vm0 = vcmask 64512   ;;  %v14757_v45 = vrot.slane %v14756_v59, 7  ;;  %vm14758_vm9 = vcmp.lt.s32.totalorder %v10162_v23, 1  ;;  %9018 = vmatprep.subr.bf16.mxu1 %v9017_v19  ;;  %v14771_v59 = vld [vmem:[#allocation3_spill] sm:$0xff] }
 0x171   : > { %1839 = vst.msk [vmem:[#allocation2 + $0x118] sm:$0xff] %vm14735_vm4, %v9909_v46  ;;  %14743 = vst [vmem:[#allocation7_spill] sm:$0xff] %v14742_v21  ;;  %v1973_v46 = vsel %vm10757_vm11, %v1900_v8, 0.0  ;;  %vm10946_vm4 = vcmp.gt.s32.totalorder %v14745_v48, 0  ;;  %v10954_v27 = vsel %vm14750_vm3, %v2029_v54, %v14749_v53  ;;  %v14754_v8 = vld [vmem:[#allocation14_spill] sm:$0xff]  ;;  %v14760_v14 = vrot.slane %v10466_v34, 7  ;;  %9020 = vmatpush3.bf16.msra.mxu1 %v9017_v19  ;;  %2262 = vrot.lane.b32.xlu0 %v10669_v55, %s9907_s25 }
 0x172   : > { %v14747_v18 = vsel %vm10946_vm4, 4294967295, %v14746_v18  ;;  %14751 = vst [vmem:[#allocation30_spill] sm:$0xff] %v10954_v27  ;;  %vm14752_vm5 = vmmov %vm14750_vm3  ;;  %v14755_v4 = vrot.slane %v14754_v8, 7  ;;  %v14759_v2 = vmov %v14757_v45  ;;  %v14763_v1 = vand.u32 15, %v14762_v42  ;;  %v7635_v42 = vld [vmem:[%s14501_s5 + $0x28] sm:$0xff] }
 0x173   : > { %14748 = vst [vmem:[#allocation8_spill] sm:$0xff] %v14747_v18  ;;  %v10958_v6 = vsel %vm14752_vm5, %v2028_v63, %v2029_v54  ;;  %2166 = vst.msk [vmem:[#allocation2 + $0x30] sm:$0xff] %vm14753_vm0, %v1973_v46  ;;  %v14764_v63 = vmov 0  ;;  %v1867_v54 = vrot.slane %v10795_v28, 7  ;;  %v14767_v27 = vrot.slane %v10386_v17, 7  ;;  %8535 = vmatprep.subr.mxu1 %v7635_v42 }
 0x174   : > { %v1897_v48 = vsel %vm14758_vm9, %v14757_v45, %v14755_v4  ;;  %vm14761_vm3 = vmmov %vm14758_vm9  ;;  %vm10975_vm5 = vcmp.gt.s32.totalorder %v14763_v1, 0  ;;  %v14768_v4 = vrot.slane %v10902_v37, 7  ;;  %vm14770_vm9 = vcmask 64512  }
 0x175   : > { %v1898_v53 = vsel %vm14761_vm3, %v14760_v14, %v14759_v2  ;;  %v14765_v63 = vsel %vm10975_vm5, 4294967295, %v14764_v63  ;;  %vm14769_vm0 = vmmov %vm14761_vm3  ;;  %2169 = vst.msk [vmem:[#allocation2 + $0x48] sm:$0xff] %vm14770_vm9, %v1897_v48  ;;  %v14773_v45 = vmov 0  ;;  %v14777_v2 = vld [vmem:[#allocation17_spill] sm:$0xff]  ;;  %v14787_v46 = vrot.slane %v10577_v49, 7  ;;  %v7701_v49 = vld [vmem:[%s14501_s5 + $0x38] sm:$0xff]  ;;  %8536 = vmatpush3.msra.mxu1 %v7635_v42  ;;  %2423 = vrot.lane.b32.xlu0 %v10741_v51, %s9908_s26 }
 0x176   : > { %14766 = vst [vmem:[#allocation14_spill] sm:$0xff] %v14765_v63  ;;  %v1904_v34 = vsel %vm14769_vm0, %v14768_v4, %v14767_v27  ;;  %v1975_v1 = vsel %vm10789_vm12, %v1898_v53, 0.0  ;;  %v14772_v27 = vand.u32 15, %v14771_v59  ;;  %vm14776_vm0 = vmmov %vm14770_vm9  ;;  %v14778_v53 = vrot.slane %v14777_v2, 7  ;;  %v15040_v63 = vld [vmem:[#allocation11_spill] sm:$0xff] }
 0x177   : > { %v1969_v48 = vsel %vm10804_vm13, %v1904_v34, 0.0  ;;  %2168 = vst.msk [vmem:[#allocation2 + $0x40] sm:$0xff] %vm14776_vm0, %v1975_v1  ;;  %v14779_v4 = vrot.slane %v10556_v16, 7  ;;  %vm14780_vm9 = vcmp.lt.s32.totalorder %v10162_v23, 1  ;;  %v14782_v59 = vrot.slane %v14754_v8, 7  ;;  %vm14784_vm11 = vmmov %vm14776_vm0 }
 0x178   : > { %vm11000_vm3 = vcmp.lt.s32.totalorder %v14772_v27, 15  ;;  %vm14783_vm12 = vmmov %vm14780_vm9  ;;  %2162 = vst.msk [vmem:[#allocation2 + $0x10] sm:$0xff] %vm14784_vm11, %v1969_v48  ;;  %v14786_v1 = vrot.slane %v10571_v31, 7  ;;  %v14789_v8 = vmov %v14787_v46  ;;  %v14791_v19 = vrot.slane %v10604_v32, 7  ;;  %v2516_v31 = vld [vmem:[#allocation2] sm:$0xff] }
 0x179   : > { %v14774_v45 = vsel %vm11000_vm3, 4294967295, %v14773_v45  ;;  %v1895_v43 = vsel %vm14780_vm9, %v14779_v4, %v14778_v53  ;;  %v14781_v14 = vmov %v14779_v4  ;;  %vm14785_vm13 = vmmov %vm14776_vm0  ;;  %v14792_v48 = vrot.slane %v10609_v0, 7  ;;  %2266 = vrot.lane.b32.xlu0 %v10685_v10, %s9907_s25 }
 0x17a   : > { %14775 = vst [vmem:[#allocation15_spill] sm:$0xff] %v14774_v45  ;;  %v1896_v27 = vsel %vm14783_vm12, %v14782_v59, %v14781_v14  ;;  %2171 = vst.msk [vmem:[#allocation2 + $0x58] sm:$0xff] %vm14785_vm13, %v1895_v43  ;;  %v7700_v43 = vld [vmem:[%s14501_s5 + $0x30] sm:$0xff]  ;;  %v14805_v32 = vrot.slane %v10639_v9, 7 }
 0x17b   : > { %v1977_v34 = vsel %vm10820_vm14, %v1896_v27, 0.0  ;;  %vm14788_vm0 = vmmov %vm14780_vm9  ;;  %v14796_v59 = vmov %v14792_v48  ;;  %v14797_v27 = vmov %v14786_v1 }
 0x17c   : > { %v1893_v16 = vsel %vm14788_vm0, %v14787_v46, %v14786_v1  ;;  %vm14790_vm12 = vmmov %vm14788_vm0  ;;  %v9449_v46 = vpop.eup %9448  ;;  %2170 = vst.msk [vmem:[#allocation2 + $0x50] sm:$0xff] %vm14785_vm13, %v1977_v34 }
 0x17d   : > { %v1894_v14 = vsel %vm14790_vm12, %v14778_v53, %v14789_v8  ;;  %vm14793_vm11 = vmmov %vm14788_vm0  ;;  %v14799_v8 = vrot.slane %v10612_v35, 7  ;;  %v14800_v53 = vrot.slane %v10620_v52, 7  ;;  %v11071_v0 = vmul.f32 %v9449_v46, %v10642_v33  ;;  %2427 = vrot.lane.b32.xlu0 %v10767_v25, %s9908_s26 }
 0x17e   : > { %v1891_v4 = vsel %vm14793_vm11, %v14792_v48, %v14791_v19  ;;  %vm14794_vm9 = vmmov %vm14785_vm13  ;;  %v1979_v2 = vsel %vm10840_vm15, %v1894_v14, 0.0  ;;  %v14802_v14 = vmov %v14791_v19  ;;  %v2517_v48 = vld [vmem:[#allocation2 + $0x8] sm:$0xff]  ;;  %v1868_v46 = vrot.slane %v10885_v22, 7 }
 0x17f   : > { %2173 = vst.msk [vmem:[#allocation2 + $0x68] sm:$0xff] %vm14794_vm9, %v1893_v16  ;;  %vm14795_vm0 = vmmov %vm14794_vm9  ;;  %v1889_v34 = vsel %vm14793_vm11, %v14800_v53, %v14799_v8  ;;  %v14801_v16 = vmov %v14800_v53  ;;  %v14815_v53 = vrot.slane %v10660_v41, 7  ;;  %v303_v25 = vadd.s32 184, %v10162_v23 }
 0x180   : > { %2175 = vst.msk [vmem:[#allocation2 + $0x78] sm:$0xff] %vm14795_vm0, %v1891_v4  ;;  %vm14798_vm12 = vmmov %vm14793_vm11 }
 0x181   : > { %v1892_v1 = vsel %vm14798_vm12, %v14797_v27, %v14796_v59  ;;  %vm14803_vm13 = vmmov %vm14793_vm11  ;;  %2177 = vst.msk [vmem:[#allocation2 + $0x88] sm:$0xff] %vm14795_vm0, %v1889_v34  ;;  %v14806_v59 = vrot.slane %v10646_v5, 7  ;;  %v14816_v34 = vrot.slane %v10669_v55, 7  ;;  %v14875_v55 = vmov 0  ;;  %2270 = vrot.lane.b32.xlu0 %v10726_v24, %s9907_s25 }
 0x182   : > { %v1890_v19 = vsel %vm14803_vm13, %v14802_v14, %v14801_v16  ;;  %vm14804_vm9 = vmmov %vm14795_vm0  ;;  %v1981_v4 = vsel %vm10862_vm7, %v1892_v1, 0.0  ;;  %v14813_v1 = vmov %v14799_v8  ;;  %v9025_v16 = vpack.c.bf16 %v7701_v49, %v7700_v43 }
 0x183   : > { %2172 = vst.msk [vmem:[#allocation2 + $0x60] sm:$0xff] %vm14804_vm9, %v1979_v2  ;;  %v1983_v52 = vsel %vm10868_vm8, %v1890_v19, 0.0  ;;  %vm14807_vm12 = vmmov %vm14793_vm11  ;;  %v14808_v2 = vsel %vm10711_vm10, %v10698_v58, 0.0  ;;  %v14812_v27 = vmov %v14806_v59  ;;  %v1870_v14 = vrot.slane %v11071_v0, 7 }
 0x184   : > { %v1887_v33 = vsel %vm14807_vm12, %v14806_v59, %v14805_v32  ;;  %2413 = vrot.lane.b32.xlu1 %v14808_v2, %s9908_s26  ;;  %vm14809_vm11 = vmmov %vm14795_vm0  ;;  %v2031_v19 = vrot.slane %v11071_v0, 1  ;;  %v14820_v5 = vmov %v14816_v34  ;;  %9026 = vmatprep.subr.bf16.mxu0 %v9025_v16  ;;  %v14825_v43 = vrot.slane %v10702_v38, 7 }
 0x185   : > { %2174 = vst.msk [vmem:[#allocation2 + $0x70] sm:$0xff] %vm14809_vm11, %v1981_v4  ;;  %vm14810_vm13 = vmmov %vm14795_vm0  ;;  %vm14818_vm11 = vcmask 195584   ;;  %v14821_v4 = vmov %v14805_v32  ;;  %v14826_v49 = vrot.slane %v10685_v10, 7  ;;  %v14829_v32 = vmov %v14815_v53  ;;  %v7702_v10 = vld [vmem:[%s14501_s5 + $0x40] sm:$0xff]  ;;  %2431 = vrot.lane.b32.xlu0 %v10799_v62, %s9908_s26 }
 0x186   : > { %2176 = vst.msk [vmem:[#allocation2 + $0x80] sm:$0xff] %vm14810_vm13, %v1983_v52  ;;  %vm14811_vm9 = vmmov %vm14795_vm0  ;;  %8591 = vmatprep.mubr.msk.f32.mxu0 %vm14818_vm11, %v2516_v31  ;;  %v14831_v59 = vrot.slane %v10721_v50, 7  ;;  %v14886_v62 = vmov 0 }
 0x187   : > { %2179 = vst.msk [vmem:[#allocation2 + $0x98] sm:$0xff] %vm14811_vm9, %v1887_v33  ;;  %vm14814_vm0 = vmmov %vm14807_vm12  ;;  %v14828_v9 = vmov %v14826_v49  ;;  %v14832_v33 = vrot.slane %v10726_v24, 7 }
 0x188   : > { %v1888_v8 = vsel %vm14814_vm0, %v14813_v1, %v14812_v27  ;;  %vm14817_vm12 = vmmov %vm14814_vm0  ;;  %v14833_v27 = vrot.slane %v10845_v39, 1  ;;  %2264 = vrot.lane.b32.xlu1 %v10660_v41, %s9907_s25  ;;  %v14851_v41 = vld [vmem:[#allocation12_spill] sm:$0xff] }
 0x189   : > { %v1885_v58 = vsel %vm14817_vm12, %v14816_v34, %v14815_v53  ;;  %v1985_v35 = vsel %vm10897_vm1, %v1888_v8, 0.0  ;;  %vm14819_vm13 = vmmov %vm14811_vm9  ;;  %v14837_v53 = vmov %v14832_v33  ;;  %v14838_v34 = vmov %v14825_v43  ;;  %2274 = vrot.lane.b32.xlu0 %v10771_v44, %s9907_s25 }
 0x18a   : > { %2181 = vst.msk [vmem:[#allocation2 + $0xa8] sm:$0xff] %vm14819_vm13, %v1885_v58  ;;  %vm14822_vm9 = vmmov %vm14814_vm0 }
 0x18b   : > { %v1886_v52 = vsel %vm14822_vm9, %v14821_v4, %v14820_v5  ;;  %vm14823_vm0 = vmmov %vm14818_vm11  ;;  %v1881_v2 = vsel %vm14822_vm9, %v14832_v33, %v14831_v59  ;;  %v1882_v58 = vsel %vm14822_vm9, %v14838_v34, %v14837_v53  ;;  %v14861_v53 = vrot.slane %v10845_v39, 7 }
 0x18c   : > { %8592 = vmatmul.mubr.msk.f32.vlgmr.msra.gmra.mrb[16].mxu0 %vm14823_vm0, %v2517_v48  ;;  %vm14824_vm12 = vmmov %vm14819_vm13  ;;  %v1987_v42 = vsel %vm10914_vm6, %v1886_v52, 0.0  ;;  %vm14834_vm0 = vcmp.lt.s32.totalorder %v10162_v23, 7  ;;  %v1991_v4 = vsel %vm10946_vm4, %v1882_v58, 0.0  ;;  %v14845_v52 = vrot.slane %v10737_v40, 7 }
 0x18d   : > { %2178 = vst.msk [vmem:[#allocation2 + $0x90] sm:$0xff] %vm14824_vm12, %v1985_v35  ;;  %vm14827_vm11 = vmmov %vm14822_vm9  ;;  %v11148_v1 = vsel %vm14834_vm0, %v14833_v27, %v2031_v19  ;;  %9028 = vmatpush3.bf16.msra.mxu0 %v9025_v16  ;;  %v14839_v35 = vld [vmem:[#allocation10_spill] sm:$0xff]  ;;  %v14841_v16 = vmov 0  ;;  %2435 = vrot.lane.b32.xlu0 %v10853_v13, %s9908_s26  ;;  %v307_v13 = vadd.s32 216, %v10162_v23 }
 0x18e   : > { %v1883_v31 = vsel %vm14827_vm11, %v14826_v49, %v14825_v43  ;;  %vm14830_vm13 = vmmov %vm14822_vm9  ;;  %2180 = vst.msk [vmem:[#allocation2 + $0xa0] sm:$0xff] %vm14824_vm12, %v1987_v42  ;;  %v14840_v5 = vand.u32 15, %v14839_v35  ;;  %v14846_v42 = vrot.slane %v10771_v44, 7  ;;  %v14859_v27 = vmov %v14845_v52  ;;  %8643 = vmatprep.subr.mxu0 %v7702_v10 }
 0x18f   : > { %v1884_v48 = vsel %vm14830_vm13, %v14829_v32, %v14828_v9  ;;  %vm14835_vm11 = vmmov %vm14824_vm12  ;;  %v14852_v9 = vand.u32 15, %v14851_v41  ;;  %v14853_v32 = vmov 0 }
 0x190   : > { %2183 = vst.msk [vmem:[#allocation2 + $0xb8] sm:$0xff] %vm14835_vm11, %v1883_v31  ;;  %v1989_v8 = vsel %vm10936_vm2, %v1884_v48, 0.0  ;;  %vm14836_vm13 = vmmov %vm14835_vm11  ;;  %vm11163_vm0 = vcmp.gt.s32.totalorder %v14840_v5, 0  ;;  %v14848_v49 = vmov %v14846_v42  ;;  %v14849_v31 = vmov %v14831_v59 }
 0x191   : > { %2185 = vst.msk [vmem:[#allocation2 + $0xc8] sm:$0xff] %vm14836_vm13, %v1881_v2  ;;  %v14842_v16 = vsel %vm11163_vm0, 4294967295, %v14841_v16  ;;  %vm14844_vm12 = vmmov %vm14835_vm11  ;;  %v14857_v59 = vrot.slane %v10825_v56, 7  ;;  %v310_v5 = vadd.s32 240, %v10162_v23  ;;  %8644 = vmatpush3.msra.mxu0 %v7702_v10  ;;  %2278 = vrot.lane.b32.xlu0 %v10825_v56, %s9907_s25  ;;  %v14893_v56 = vld [vmem:[#allocation29_spill] sm:$0xff] }
 0x192   : > { %14843 = vst [vmem:[#allocation9_spill] sm:$0xff] %v14842_v16  ;;  %2182 = vst.msk [vmem:[#allocation2 + $0xb0] sm:$0xff] %vm14844_vm12, %v1989_v8 }
 0x193   : > { %vm14847_vm11 = vmmov %vm14822_vm9  ;;  %2184 = vst.msk [vmem:[#allocation2 + $0xc0] sm:$0xff] %vm14844_vm12, %v1991_v4  ;;  %v14858_v2 = vmov %v14857_v59  ;;  %v14866_v4 = vmov %v14861_v53 }
 0x194   : > { %v1879_v43 = vsel %vm14847_vm11, %v14846_v42, %v14845_v52  ;;  %vm14850_vm13 = vmmov %vm14822_vm9  ;;  %vm11188_vm9 = vcmp.gt.s32.totalorder %v14852_v9, 0  ;;  %v1877_v33 = vsel %vm14847_vm11, %v14857_v59, %v1867_v54  ;;  %v2145_v42 = vsel %vm11000_vm3, %v10718_v12, 0.0  ;;  %v14885_v59 = vld [vmem:[#allocation25_spill] sm:$0xff] }
 0x195   : > { %v1880_v61 = vsel %vm14850_vm13, %v14849_v31, %v14848_v49  ;;  %v14854_v32 = vsel %vm11188_vm9, 4294967295, %v14853_v32  ;;  %vm14856_vm4 = vmmov %vm14844_vm12  ;;  %v14868_v49 = vrot.slane %v10902_v37, 7  ;;  %2417 = vrot.lane.b32.xlu1 %v2145_v42, %s9908_s26  ;;  %v526_v12 = vand.u32 15, %v310_v5  ;;  %v14897_v5 = vld [vmem:[#allocation30_spill] sm:$0xff] }
 0x196   : > { %14855 = vst [vmem:[#allocation3_spill] sm:$0xff] %v14854_v32  ;;  %2187 = vst.msk [vmem:[#allocation2 + $0xd8] sm:$0xff] %vm14856_vm4, %v1879_v43  ;;  %v1993_v48 = vsel %vm10975_vm5, %v1880_v61, 0.0  ;;  %v14872_v61 = vmov 0 }
 0x197   : > { %vm14860_vm13 = vmmov %vm14847_vm11  ;;  %2186 = vst.msk [vmem:[#allocation2 + $0xd0] sm:$0xff] %vm14844_vm12, %v1993_v48  ;;  %v301_v48 = vadd.s32 168, %v10162_v23 }
 0x198   : > { %v1878_v8 = vsel %vm14860_vm13, %v14859_v27, %v14858_v2  ;;  %vm14862_vm4 = vmmov %vm14847_vm11  ;;  %v14890_v27 = vmov 0 }
 0x199   : > { %v1875_v34 = vsel %vm14862_vm4, %v1868_v46, %v14861_v53  ;;  %vm14863_vm5 = vmmov %vm14844_vm12  ;;  %v1995_v58 = vsel %vm11163_vm0, %v1878_v8, 0.0  ;;  %2268 = vrot.lane.b32.xlu1 %v10702_v38, %s9907_s25  ;;  %v14879_v38 = vmov 0  ;;  %v505_v8 = vand.u32 15, %v307_v13 }
 0x19a   : > { %2189 = vst.msk [vmem:[#allocation2 + $0xe8] sm:$0xff] %vm14863_vm5, %v1877_v33  ;;  %vm14864_vm11 = vmmov %vm14863_vm5  ;;  %v477_v33 = vand.u32 15, %v303_v25 }
 0x19b   : > { %2191 = vst.msk [vmem:[#allocation2 + $0xf8] sm:$0xff] %vm14864_vm11, %v1875_v34  ;;  %vm14865_vm2 = vmmov %vm14862_vm4  ;;  %vm11242_vm11 = vcmp.gt.s32.totalorder %v526_v12, 0  ;;  %v2229_v34 = vpop.permute.xlu0 %2228  ;;  %v14905_v12 = vrot.slane %v10386_v17, 1 }
 0x19c   : > { %v1876_v35 = vsel %vm14865_vm2, %v1867_v54, %v1868_v46  ;;  %vm14867_vm13 = vmmov %vm14865_vm2  ;;  %2188 = vst.msk [vmem:[#allocation2 + $0xe0] sm:$0xff] %vm14863_vm5, %v1995_v58  ;;  %v1873_v54 = vsel %vm14865_vm2, %v1870_v14, %v14868_v49  ;;  %v14869_v46 = vld [vmem:[#allocation4_spill] sm:$0xff]  ;;  %v14873_v61 = vsel %vm11242_vm11, 4294967295, %v14872_v61  ;;  %v2032_v49 = vrot.slane %v10902_v37, 1 }
 0x19d   : > { %v1874_v52 = vsel %vm14867_vm13, %v14866_v4, %v1870_v14  ;;  %v1997_v43 = vsel %vm11188_vm9, %v1876_v35, 0.0  ;;  %v435_v31 = vand.u32 15, %v14869_v46  ;;  %vm14870_vm4 = vmmov %vm14863_vm5  ;;  %14874 = vst [vmem:[#allocation17_spill] sm:$0xff] %v14873_v61  ;;  %v299_v14 = vadd.s32 152, %v10162_v23 }
 0x19e   : > { %2190 = vst.msk [vmem:[#allocation2 + $0xf0] sm:$0xff] %vm14870_vm4, %v1997_v43  ;;  %vm14871_vm12 = vmmov %vm14870_vm4  ;;  %v1999_v41 = vsel %vm11242_vm11, %v1874_v52, 0.0  ;;  %v14898_v4 = vmov 0  ;;  %v311_v52 = vadd.s32 248, %v10162_v23 }
 0x19f   : > { %2193 = vst.msk [vmem:[#allocation2 + $0x108] sm:$0xff] %vm14871_vm12, %v1873_v54  ;;  %vm11252_vm13 = vcmp.lt.s32.totalorder %v435_v31, 15  ;;  %vm14878_vm5 = vmmov %vm14870_vm4  ;;  %v449_v51 = vand.u32 15, %v299_v14  ;;  %vm11301_vm12 = vcmp.lt.s32.totalorder %v477_v33, 15  ;;  %v2388_v42 = vpop.permute.xlu1 %2387 }
 0x1a0   : > { %v14876_v55 = vsel %vm11252_vm13, 4294967295, %v14875_v55  ;;  %2192 = vst.msk [vmem:[#allocation2 + $0x100] sm:$0xff] %vm14878_vm5, %v1999_v41  ;;  %v2147_v9 = vsel %vm11252_vm13, %v10745_v29, 0.0  ;;  %v14887_v62 = vsel %vm11301_vm12, 4294967295, %v14886_v62  ;;  %v2153_v2 = vsel %vm11301_vm12, %v10857_v60, 0.0 }
 0x1a1   : > { %14877 = vst [vmem:[#allocation10_spill] sm:$0xff] %v14876_v55  ;;  %2421 = vrot.lane.b32.xlu1 %v2147_v9, %s9908_s26  ;;  %vm11268_vm2 = vcmp.lt.s32.totalorder %v449_v51, 15  ;;  %14888 = vst [vmem:[#allocation25_spill] sm:$0xff] %v14887_v62  ;;  %v309_v60 = vadd.s32 232, %v10162_v23  ;;  %vm14580_vm12 = vcmask 130112   ;;  %v533_v54 = vand.u32 15, %v311_v52 }
 0x1a2   : > { %v14880_v38 = vsel %vm11268_vm2, 4294967295, %v14879_v38  ;;  %v2149_v29 = vsel %vm11268_vm2, %v10752_v11, 0.0  ;;  %v14882_v11 = vmov 0  ;;  %2324 = vst.msk [vmem:[#allocation2 + $0x18] sm:$0xff] %vm14580_vm12, %v2229_v34  ;;  %vm14909_vm13 = vcmask 195584  }
 0x1a3   : > { %14881 = vst [vmem:[#allocation12_spill] sm:$0xff] %v14880_v38  ;;  %v519_v58 = vand.u32 15, %v309_v60  ;;  %v2233_v46 = vpop.permute.xlu1 %2232  ;;  %vm14910_vm11 = vmmov %vm14909_vm13 }
 0x1a4   : > { %2326 = vst.msk [vmem:[#allocation2 + $0x28] sm:$0xff] %vm14580_vm12, %v2233_v46  ;;  %vm14916_vm0 = vmmov %vm14909_vm13 }
 0x1a5   : > { %2272 = vrot.lane.b32.xlu1 %v10721_v50, %s9907_s25  ;;  %v463_v50 = vand.u32 15, %v301_v48  ;;  %vm11339_vm2 = vcmp.lt.s32.totalorder %v519_v58, 15 }
 0x1a6   : > { %v14899_v4 = vsel %vm11339_vm2, 4294967295, %v14898_v4 }
 0x1a7   : > { %vm11286_vm4 = vcmp.lt.s32.totalorder %v463_v50, 15  ;;  %14900 = vst [vmem:[#allocation30_spill] sm:$0xff] %v14899_v4 }
 0x1a8   : > { %v14883_v11 = vsel %vm11286_vm4, 4294967295, %v14882_v11  ;;  %v2151_v24 = vsel %vm11286_vm4, %v14885_v59, 0.0  ;;  %vm11328_vm4 = vcmp.lt.s32.totalorder %v505_v8, 15 }
 0x1a9   : > { %2425 = vrot.lane.b32.xlu1 %v2149_v29, %s9908_s26  ;;  %14884 = vst [vmem:[#allocation4_spill] sm:$0xff] %v14883_v11  ;;  %v2157_v35 = vsel %vm11328_vm4, %v10958_v6, 0.0  ;;  %v2159_v6 = vsel %vm11339_vm2, %v11148_v1, 0.0  ;;  %vm11362_vm2 = vcmp.lt.s32.totalorder %v533_v54, 15  ;;  %v14902_v1 = vmov 0 }
 0x1aa   : > { %v14903_v1 = vsel %vm11362_vm2, 4294967295, %v14902_v1 }
 0x1ab   : > { %14904 = vst [vmem:[#allocation31_spill] sm:$0xff] %v14903_v1 }
 0x1ad   : > { %2276 = vrot.lane.b32.xlu1 %v10737_v40, %s9907_s25  ;;  %v305_v40 = vadd.s32 200, %v10162_v23 }
 0x1af   : > { %v491_v44 = vand.u32 15, %v305_v40 }
 0x1b1   : > { %2429 = vrot.lane.b32.xlu1 %v2151_v24, %s9908_s26  ;;  %vm11317_vm5 = vcmp.lt.s32.totalorder %v491_v44, 15 }
 0x1b2   : > { %v14891_v27 = vsel %vm11317_vm5, 4294967295, %v14890_v27  ;;  %v2155_v53 = vsel %vm11317_vm5, %v14893_v56, 0.0  ;;  %vm14575_vm5 = vcmask 195712  }
 0x1b5   : > { %2280 = vrot.lane.b32.xlu1 %v10795_v28, %s9907_s25  ;;  %v14889_v28 = vld [vmem:[#allocation18_spill] sm:$0xff] }
 0x1b6   : > { %2439 = vrot.lane.b32.xlu0 %v14889_v28, %s9908_s26  ;;  %14892 = vst [vmem:[#allocation18_spill] sm:$0xff] %v14891_v27 }
 0x1b9   : > { %2433 = vrot.lane.b32.xlu1 %v2153_v2, %s9908_s26 }
 0x1ba   : > { %2282 = vrot.lane.b32.xlu0 %v10885_v22, %s9907_s25  ;;  %v2227_v22 = vpop.permute.xlu0 %2226 }
 0x1bb   : > { %2323 = vst.msk [vmem:[#allocation2 + $0x10] sm:$0xff] %vm14580_vm12, %v2227_v22 }
 0x1bc   : > { %2484 = vst.msk [vmem:[#allocation2 + $0x10] sm:$0xff] %vm14575_vm5, %v2388_v42  ;;  %vm14901_vm5 = vcmp.lt.s32.totalorder %v10162_v23, 7 }
 0x1bd   : > { %2284 = vrot.lane.b32.xlu1 %v10845_v39, %s9907_s25  ;;  %v14894_v39 = vmov 0  ;;  %v2034_v31 = vsel %vm14901_vm5, %v2031_v19, %v2032_v49 }
 0x1be   : > { %v14895_v39 = vsel %vm11328_vm4, 4294967295, %v14894_v39  ;;  %2443 = vrot.lane.b32.xlu0 %v14897_v5, %s9908_s26  ;;  %v2231_v43 = vpop.permute.xlu0 %2230  ;;  %vm14906_vm4 = vmmov %vm14901_vm5  ;;  %vm14908_vm5 = vcmask 130112  }
 0x1bf   : > { %14896 = vst [vmem:[#allocation29_spill] sm:$0xff] %v14895_v39  ;;  %2325 = vst.msk [vmem:[#allocation2 + $0x20] sm:$0xff] %vm14580_vm12, %v2231_v43  ;;  %v2065_v41 = vsel %vm14906_vm4, %v2032_v49, %v14905_v12  ;;  %vm14907_vm12 = vcmask 195712  }
 0x1c0   : > { %v2161_v19 = vsel %vm11362_vm2, %v2065_v41, 0.0  ;;  %vm14911_vm9 = vmmov %vm14908_vm5 }
 0x1c1   : > { %2437 = vrot.lane.b32.xlu1 %v2155_v53, %s9908_s26  ;;  %vm14912_vm4 = vmmov %vm14907_vm12 }
 0x1c2   : > { %2286 = vrot.lane.b32.xlu0 %v11071_v0, %s9907_s25  ;;  %v2392_v14 = vpop.permute.xlu0 %2391  ;;  %v2237_v0 = vpop.permute.xlu1 %2236  ;;  %vm14914_vm2 = vmmov %vm14908_vm5 }
 0x1c3   : > { %2486 = vst.msk [vmem:[#allocation2 + $0x20] sm:$0xff] %vm14907_vm12, %v2392_v14  ;;  %v2518_v9 = vld [vmem:[#allocation2 + $0x10] sm:$0xff]  ;;  %vm14913_vm12 = vmmov %vm14912_vm4 }
 0x1c4   : > { %2328 = vst.msk [vmem:[#allocation2 + $0x38] sm:$0xff] %vm14908_vm5, %v2237_v0  ;;  %8537 = vmatprep.mubr.msk.f32.mxu1 %vm14909_vm13, %v2518_v9  ;;  %8594 = vmatprep.mubr.msk.f32.mxu0 %vm14910_vm11, %v2518_v9  ;;  %vm14915_vm11 = vmmov %vm14912_vm4 }
 0x1c5   : > { %2441 = vrot.lane.b32.xlu1 %v2157_v35, %s9908_s26 }
 0x1c6   : > { %2447 = vrot.lane.b32.xlu0 %v2034_v31, %s9908_s26  ;;  %v2235_v17 = vpop.permute.xlu0 %2234 }
 0x1c7   : > { %2327 = vst.msk [vmem:[#allocation2 + $0x30] sm:$0xff] %vm14911_vm9, %v2235_v17  ;;  %vm14917_vm9 = vmmov %vm14916_vm0  ;;  %v11474_v17 = vld [vmem:[%s14500_s4] ss:$0 sm:$0xff] }
 0x1c9   : > { %2445 = vrot.lane.b32.xlu1 %v2159_v6, %s9908_s26 }
 0x1ca   : > { %v2396_v51 = vpop.permute.xlu0 %2395  ;;  %v11385_v25 = vld [vmem:[#allocation2 + $0x20] sm:$0xff] }
 0x1cb   : > { %2488 = vst.msk [vmem:[#allocation2 + $0x30] sm:$0xff] %vm14913_vm12, %v2396_v51  ;;  %vm14919_vm12 = vmmov %vm14915_vm11 }
 0x1cd   : > { %2288 = vrot.lane.b32.xlu1 %v10902_v37, %s9907_s25  ;;  %v2390_v37 = vpop.permute.xlu1 %2389 }
 0x1ce   : > { %2485 = vst.msk [vmem:[#allocation2 + $0x18] sm:$0xff] %vm14912_vm4, %v2390_v37  ;;  %v2239_v29 = vpop.permute.xlu0 %2238  ;;  %vm14918_vm4 = vmmov %vm14916_vm0 }
 0x1cf   : > { %2329 = vst.msk [vmem:[#allocation2 + $0x40] sm:$0xff] %vm14914_vm2, %v2239_v29 }
 0x1d1   : > { %2449 = vrot.lane.b32.xlu1 %v2161_v19, %s9908_s26  ;;  %v2241_v48 = vpop.permute.xlu1 %2240  ;;  %v8435_v19 = vpop.f32.mrb[0].mxu0 }
 0x1d2   : > { %2330 = vst.msk [vmem:[#allocation2 + $0x48] sm:$0xff] %vm14908_vm5, %v2241_v48  ;;  %v2400_v59 = vpop.permute.xlu0 %2399  ;;  %vm14920_vm5 = vmmov %vm14914_vm2  ;;  %v11401_v44 = vld [vmem:[#allocation2 + $0x30] sm:$0xff]  ;;  %v11477_v37 = vadd.f32 %v11474_v17, %v8435_v19  ;;  %v963_v51 = vpop.f32.mrb[1].mxu0 }
 0x1d3   : > { %2490 = vst.msk [vmem:[#allocation2 + $0x40] sm:$0xff] %vm14919_vm12, %v2400_v59  ;;  %v11480_v48 = vadd.f32 %v11474_v17, %v963_v51  ;;  %v8438_v29 = vpop.f32.mrb[2].mxu0 }
 0x1d4   : > { %v7537_v59 = vmul.f32 -1.442695, %v11477_v37 }
 0x1d5   : > { %v2394_v10 = vpop.permute.xlu1 %2393  ;;  %v2519_v50 = vld [vmem:[#allocation2 + $0x18] sm:$0xff] }
 0x1d6   : > { %2487 = vst.msk [vmem:[#allocation2 + $0x28] sm:$0xff] %vm14915_vm11, %v2394_v10  ;;  %8538 = vmatmul.mubr.msk.f32.vlgmr.msra.gmra.mrb[48].mxu1 %vm14909_vm13, %v2519_v50  ;;  %8595 = vmatmul.mubr.msk.f32.gmra.mrb[18].mxu0 %vm14916_vm0, %v2519_v50  ;;  %v2243_v33 = vpop.permute.xlu0 %2242  ;;  %vm14921_vm0 = vmmov %vm14915_vm11  ;;  %9450 = vpow2.f32 %v7537_v59 }
 0x1d7   : > { %8540 = vmatprep.mubr.msk.f32.mxu1 %vm14917_vm9, %v11385_v25  ;;  %8597 = vmatprep.mubr.msk.f32.mxu0 %vm14918_vm4, %v11385_v25  ;;  %2331 = vst.msk [vmem:[#allocation2 + $0x50] sm:$0xff] %vm14920_vm5, %v2243_v33  ;;  %vm14922_vm11 = vmmov %vm14918_vm4  ;;  %v7536_v33 = vmul.f32 -1.442695, %v11480_v48 }
 0x1d8   : > { %vm14923_vm13 = vmmov %vm14918_vm4 }
 0x1d9   : > { %v2245_v24 = vpop.permute.xlu1 %2244  ;;  %vm14924_vm9 = vmmov %vm14918_vm4  ;;  %9452 = vpow2.f32 %v7536_v33 }
 0x1da   : > { %2332 = vst.msk [vmem:[#allocation2 + $0x58] sm:$0xff] %vm14914_vm2, %v2245_v24  ;;  %v2404_v13 = vpop.permute.xlu0 %2403  ;;  %vm14925_vm12 = vmmov %vm14921_vm0  ;;  %v11417_v53 = vld [vmem:[#allocation2 + $0x40] sm:$0xff]  ;;  %v11484_v24 = vadd.f32 %v11474_v17, %v8438_v29 }
 0x1db   : > { %2492 = vst.msk [vmem:[#allocation2 + $0x50] sm:$0xff] %vm14925_vm12, %v2404_v13  ;;  %vm14926_vm5 = vmmov %vm14914_vm2 }
 0x1dc   : > { %vm14930_vm12 = vmmov %vm14921_vm0  ;;  %v7539_v13 = vmul.f32 -1.442695, %v11484_v24 }
 0x1dd   : > { %v2398_v40 = vpop.permute.xlu1 %2397  ;;  %v11393_v2 = vld [vmem:[#allocation2 + $0x28] sm:$0xff] }
 0x1de   : > { %2489 = vst.msk [vmem:[#allocation2 + $0x38] sm:$0xff] %vm14921_vm0, %v2398_v40  ;;  %8541 = vmatmul.mubr.msk.f32.gmra.mrb[50].mxu1 %vm14922_vm11, %v11393_v2  ;;  %8598 = vmatmul.mubr.msk.f32.gmra.mrb[20].mxu0 %vm14923_vm13, %v11393_v2  ;;  %v2247_v8 = vpop.permute.xlu0 %2246  ;;  %vm14927_vm11 = vmmov %vm14918_vm4  ;;  %v973_v40 = vpop.f32.mrb[3].mxu0  ;;  %9454 = vpow2.f32 %v7539_v13 }
 0x1df   : > { %8543 = vmatprep.mubr.msk.f32.mxu1 %vm14924_vm9, %v11401_v44  ;;  %8600 = vmatprep.mubr.msk.f32.mxu0 %vm14918_vm4, %v11401_v44  ;;  %2333 = vst.msk [vmem:[#allocation2 + $0x60] sm:$0xff] %vm14926_vm5, %v2247_v8  ;;  %vm14928_vm13 = vmmov %vm14918_vm4  ;;  %v8441_v8 = vpop.f32.mrb[4].mxu0 }
 0x1e0   : > { %vm14929_vm9 = vmmov %vm14918_vm4  ;;  %v9451_v59 = vpop.eup %9450 }
 0x1e1   : > { %v2249_v28 = vpop.permute.xlu1 %2248  ;;  %vm14931_vm5 = vmmov %vm14914_vm2 }
 0x1e2   : > { %2334 = vst.msk [vmem:[#allocation2 + $0x68] sm:$0xff] %vm14914_vm2, %v2249_v28  ;;  %v2408_v34 = vpop.permute.xlu0 %2407  ;;  %v11433_v52 = vld [vmem:[#allocation2 + $0x50] sm:$0xff]  ;;  %v11491_v28 = vadd.f32 %v11474_v17, %v973_v40 }
 0x1e3   : > { %2494 = vst.msk [vmem:[#allocation2 + $0x60] sm:$0xff] %vm14930_vm12, %v2408_v34  ;;  %vm14935_vm12 = vmmov %vm14921_vm0  ;;  %v983_v34 = vpop.f32.mrb[5].mxu0 }
 0x1e5   : > { %v2402_v60 = vpop.permute.xlu1 %2401  ;;  %v11409_v56 = vld [vmem:[#allocation2 + $0x38] sm:$0xff] }
 0x1e6   : > { %2491 = vst.msk [vmem:[#allocation2 + $0x48] sm:$0xff] %vm14921_vm0, %v2402_v60  ;;  %8544 = vmatmul.mubr.msk.f32.gmra.mrb[52].mxu1 %vm14927_vm11, %v11409_v56  ;;  %8601 = vmatmul.mubr.msk.f32.gmra.mrb[22].mxu0 %vm14928_vm13, %v11409_v56  ;;  %v2251_v35 = vpop.permute.xlu0 %2250  ;;  %vm14932_vm11 = vmmov %vm14918_vm4  ;;  %v11494_v60 = vadd.f32 %v11474_v17, %v8441_v8  ;;  %v9453_v8 = vpop.eup %9452 }
 0x1e7   : > { %8546 = vmatprep.mubr.msk.f32.mxu1 %vm14929_vm9, %v11417_v53  ;;  %8603 = vmatprep.mubr.msk.f32.mxu0 %vm14918_vm4, %v11417_v53  ;;  %2335 = vst.msk [vmem:[#allocation2 + $0x70] sm:$0xff] %vm14931_vm5, %v2251_v35  ;;  %vm14933_vm13 = vmmov %vm14918_vm4 }
 0x1e8   : > { %vm14934_vm9 = vmmov %vm14918_vm4 }
 0x1e9   : > { %v2253_v58 = vpop.permute.xlu1 %2252  ;;  %vm14936_vm5 = vmmov %vm14914_vm2 }
 0x1ea   : > { %2336 = vst.msk [vmem:[#allocation2 + $0x78] sm:$0xff] %vm14914_vm2, %v2253_v58  ;;  %v2412_v42 = vpop.permute.xlu0 %2411  ;;  %v11449_v46 = vld [vmem:[#allocation2 + $0x60] sm:$0xff] }
 0x1eb   : > { %2496 = vst.msk [vmem:[#allocation2 + $0x70] sm:$0xff] %vm14935_vm12, %v2412_v42  ;;  %vm14940_vm12 = vmmov %vm14921_vm0  ;;  %v7538_v42 = vmul.f32 -1.442695, %v11491_v28 }
 0x1ed   : > { %v2406_v5 = vpop.permute.xlu1 %2405  ;;  %v11425_v22 = vld [vmem:[#allocation2 + $0x48] sm:$0xff]  ;;  %9456 = vpow2.f32 %v7538_v42  ;;  %v1218_v42 = vadd.f32 1.0, %v9453_v8 }
 0x1ee   : > { %2493 = vst.msk [vmem:[#allocation2 + $0x58] sm:$0xff] %vm14921_vm0, %v2406_v5  ;;  %8547 = vmatmul.mubr.msk.f32.gmra.mrb[54].mxu1 %vm14932_vm11, %v11425_v22  ;;  %8604 = vmatmul.mubr.msk.f32.gmra.mrb[24].mxu0 %vm14933_vm13, %v11425_v22  ;;  %v2255_v43 = vpop.permute.xlu0 %2254  ;;  %vm14937_vm11 = vmmov %vm14918_vm4 }
 0x1ef   : > { %8549 = vmatprep.mubr.msk.f32.mxu1 %vm14934_vm9, %v11433_v52  ;;  %8606 = vmatprep.mubr.msk.f32.mxu0 %vm14918_vm4, %v11433_v52  ;;  %2337 = vst.msk [vmem:[#allocation2 + $0x80] sm:$0xff] %vm14936_vm5, %v2255_v43  ;;  %vm14938_vm13 = vmmov %vm14918_vm4 }
 0x1f0   : > { %vm14939_vm9 = vmmov %vm14918_vm4 }
 0x1f1   : > { %v2257_v6 = vpop.permute.xlu1 %2256  ;;  %vm14941_vm5 = vmmov %vm14914_vm2 }
 0x1f2   : > { %2338 = vst.msk [vmem:[#allocation2 + $0x88] sm:$0xff] %vm14914_vm2, %v2257_v6  ;;  %v2416_v31 = vpop.permute.xlu0 %2415  ;;  %v11465_v9 = vld [vmem:[#allocation2 + $0x70] sm:$0xff]  ;;  %v11500_v6 = vadd.f32 %v11474_v17, %v983_v34 }
 0x1f3   : > { %2498 = vst.msk [vmem:[#allocation2 + $0x80] sm:$0xff] %vm14940_vm12, %v2416_v31  ;;  %vm14945_vm12 = vmmov %vm14921_vm0  ;;  %v8444_v31 = vpop.f32.mrb[6].mxu0 }
 0x1f5   : > { %v2410_v49 = vpop.permute.xlu1 %2409  ;;  %v11441_v54 = vld [vmem:[#allocation2 + $0x58] sm:$0xff] }
 0x1f6   : > { %2495 = vst.msk [vmem:[#allocation2 + $0x68] sm:$0xff] %vm14921_vm0, %v2410_v49  ;;  %8550 = vmatmul.mubr.msk.f32.gmra.mrb[56].mxu1 %vm14937_vm11, %v11441_v54  ;;  %8607 = vmatmul.mubr.msk.f32.gmra.mrb[26].mxu0 %vm14938_vm13, %v11441_v54  ;;  %v2259_v41 = vpop.permute.xlu0 %2258  ;;  %vm14942_vm11 = vmmov %vm14918_vm4  ;;  %v7541_v49 = vmul.f32 -1.442695, %v11494_v60 }
 0x1f7   : > { %8552 = vmatprep.mubr.msk.f32.mxu1 %vm14939_vm9, %v11449_v46  ;;  %8609 = vmatprep.mubr.msk.f32.mxu0 %vm14918_vm4, %v11449_v46  ;;  %2339 = vst.msk [vmem:[#allocation2 + $0x90] sm:$0xff] %vm14941_vm5, %v2259_v41  ;;  %vm14943_vm13 = vmmov %vm14918_vm4  ;;  %v11517_v41 = vadd.f32 %v11474_v17, %v8444_v31 }
 0x1f8   : > { %vm14944_vm9 = vmmov %vm14918_vm4  ;;  %9458 = vpow2.f32 %v7541_v49 }
 0x1f9   : > { %v2261_v12 = vpop.permute.xlu1 %2260  ;;  %vm14946_vm5 = vmmov %vm14914_vm2 }
 0x1fa   : > { %2340 = vst.msk [vmem:[#allocation2 + $0x98] sm:$0xff] %vm14914_vm2, %v2261_v12  ;;  %v2420_v10 = vpop.permute.xlu0 %2419  ;;  %v11508_v43 = vld [vmem:[#allocation2 + $0x80] sm:$0xff]  ;;  %v7540_v12 = vmul.f32 -1.442695, %v11500_v6 }
 0x1fb   : > { %2500 = vst.msk [vmem:[#allocation2 + $0x90] sm:$0xff] %vm14945_vm12, %v2420_v10  ;;  %v7543_v10 = vmul.f32 -1.442695, %v11517_v41  ;;  %vm14950_vm12 = vmmov %vm14921_vm0 }
 0x1fc   : > { %9460 = vpow2.f32 %v7540_v12 }
 0x1fd   : > { %v2414_v14 = vpop.permute.xlu1 %2413  ;;  %v11457_v0 = vld [vmem:[#allocation2 + $0x68] sm:$0xff]  ;;  %9462 = vpow2.f32 %v7543_v10 }
 0x1fe   : > { %2497 = vst.msk [vmem:[#allocation2 + $0x78] sm:$0xff] %vm14921_vm0, %v2414_v14  ;;  %8553 = vmatmul.mubr.msk.f32.gmra.mrb[58].mxu1 %vm14942_vm11, %v11457_v0  ;;  %8610 = vmatmul.mubr.msk.f32.gmra.mrb[28].mxu0 %vm14943_vm13, %v11457_v0  ;;  %v2263_v58 = vpop.permute.xlu0 %2262  ;;  %vm14947_vm11 = vmmov %vm14918_vm4  ;;  %v993_v14 = vpop.f32.mrb[7].mxu0 }
 0x1ff   : > { %8555 = vmatprep.mubr.msk.f32.mxu1 %vm14944_vm9, %v11465_v9  ;;  %8612 = vmatprep.mubr.msk.f32.mxu0 %vm14918_vm4, %v11465_v9  ;;  %2341 = vst.msk [vmem:[#allocation2 + $0xa0] sm:$0xff] %vm14946_vm5, %v2263_v58  ;;  %vm14948_vm13 = vmmov %vm14918_vm4  ;;  %v11520_v19 = vadd.f32 %v11474_v17, %v993_v14  ;;  %v1219_v58 = vadd.f32 1.0, %v9451_v59 }
 0x200   : > { %vm14949_vm9 = vmmov %vm14918_vm4 }
 0x201   : > { %v2265_v50 = vpop.permute.xlu1 %2264  ;;  %vm14951_vm5 = vmmov %vm14914_vm2 }
 0x202   : > { %2342 = vst.msk [vmem:[#allocation2 + $0xa8] sm:$0xff] %vm14914_vm2, %v2265_v50  ;;  %v2424_v51 = vpop.permute.xlu0 %2423  ;;  %v7542_v50 = vmul.f32 -1.442695, %v11520_v19  ;;  %v11534_v34 = vld [vmem:[#allocation2 + $0x90] sm:$0xff] }
 0x203   : > { %2502 = vst.msk [vmem:[#allocation2 + $0xa0] sm:$0xff] %vm14950_vm12, %v2424_v51  ;;  %vm14955_vm12 = vmmov %vm14921_vm0 }
 0x204   : > { %9464 = vpow2.f32 %v7542_v50 }
 0x205   : > { %v11496_v5 = vld [vmem:[#allocation2 + $0x78] sm:$0xff]  ;;  %9466 = vrcp.f32 %v1219_v58 }
 0x206   : > { %8556 = vmatmul.mubr.msk.f32.gmra.mrb[60].mxu1 %vm14947_vm11, %v11496_v5  ;;  %8613 = vmatmul.mubr.msk.f32.gmra.mrb[30].mxu0 %vm14948_vm13, %v11496_v5  ;;  %v2267_v33 = vpop.permute.xlu0 %2266  ;;  %vm14952_vm11 = vmmov %vm14918_vm4  ;;  %9468 = vrcp.f32 %v1218_v42 }
 0x207   : > { %v2418_v35 = vpop.permute.xlu1 %2417  ;;  %8558 = vmatprep.mubr.msk.f32.mxu1 %vm14949_vm9, %v11508_v43  ;;  %8615 = vmatprep.mubr.msk.f32.mxu0 %vm14918_vm4, %v11508_v43  ;;  %2343 = vst.msk [vmem:[#allocation2 + $0xb0] sm:$0xff] %vm14951_vm5, %v2267_v33  ;;  %vm14953_vm13 = vmmov %vm14918_vm4 }
 0x208   : > { %2499 = vst.msk [vmem:[#allocation2 + $0x88] sm:$0xff] %vm14921_vm0, %v2418_v35  ;;  %v9455_v35 = vpop.eup %9454  ;;  %vm14954_vm9 = vmmov %vm14918_vm4 }
 0x209   : > { %v1221_v49 = vadd.f32 1.0, %v9455_v35  ;;  %v9457_v31 = vpop.eup %9456  ;;  %vm14956_vm5 = vmmov %vm14914_vm2 }
 0x20a   : > { %v2428_v12 = vpop.permute.xlu0 %2427  ;;  %v9459_v51 = vpop.eup %9458  ;;  %v11550_v42 = vld [vmem:[#allocation2 + $0xa0] sm:$0xff] }
 0x20b   : > { %v2269_v29 = vpop.permute.xlu1 %2268  ;;  %2504 = vst.msk [vmem:[#allocation2 + $0xb0] sm:$0xff] %vm14955_vm12, %v2428_v12  ;;  %9470 = vrcp.f32 %v1221_v49  ;;  %v9461_v10 = vpop.eup %9460  ;;  %v1223_v50 = vadd.f32 1.0, %v9459_v51  ;;  %vm14960_vm12 = vmmov %vm14921_vm0 }
 0x20c   : > { %2344 = vst.msk [vmem:[#allocation2 + $0xb8] sm:$0xff] %vm14914_vm2, %v2269_v29  ;;  %v1220_v29 = vadd.f32 1.0, %v9457_v31  ;;  %v1222_v59 = vadd.f32 1.0, %v9461_v10  ;;  %v9463_v33 = vpop.eup %9462 }
 0x20d   : > { %v1225_v49 = vadd.f32 1.0, %v9463_v33 }
 0x20e   : > { %9472 = vrcp.f32 %v1220_v29  ;;  %v9465_v35 = vpop.eup %9464 }
 0x20f   : > { %v11526_v13 = vld [vmem:[#allocation2 + $0x88] sm:$0xff]  ;;  %9474 = vrcp.f32 %v1223_v50  ;;  %v1224_v31 = vadd.f32 1.0, %v9465_v35  ;;  %v9467_v51 = vpop.eup %9466 }
 0x210   : > { %8559 = vmatmul.mubr.msk.f32.gmra.mrb[62].mxu1 %vm14952_vm11, %v11526_v13  ;;  %8616 = vmatmul.mubr.msk.f32.gmra.mrb[32].mxu0 %vm14953_vm13, %v11526_v13  ;;  %vm14957_vm11 = vmmov %vm14918_vm4  ;;  %9476 = vrcp.f32 %v1222_v59  ;;  %v9469_v29 = vpop.eup %9468  ;;  %v1315_v10 = vmul.f32 %v9467_v51, %v11477_v37 }
 0x211   : > { %8561 = vmatprep.mubr.msk.f32.mxu1 %vm14954_vm9, %v11534_v34  ;;  %8618 = vmatprep.mubr.msk.f32.mxu0 %vm14918_vm4, %v11534_v34  ;;  %vm14958_vm13 = vmmov %vm14918_vm4  ;;  %9478 = vrcp.f32 %v1225_v49  ;;  %v1314_v59 = vmul.f32 %v9469_v29, %v11480_v48 }
 0x212   : > { %vm14959_vm9 = vmmov %vm14918_vm4  ;;  %9480 = vrcp.f32 %v1224_v31  ;;  %v11571_v37 = vld [vmem:[#allocation2 + $0xb0] sm:$0xff] }
 0x213   : > { %v2422_v40 = vpop.permute.xlu1 %2421 }
 0x214   : > { %2501 = vst.msk [vmem:[#allocation2 + $0x98] sm:$0xff] %vm14921_vm0, %v2422_v40  ;;  %v2271_v40 = vpop.permute.xlu0 %2270 }
 0x215   : > { %2345 = vst.msk [vmem:[#allocation2 + $0xc0] sm:$0xff] %vm14956_vm5, %v2271_v40  ;;  %v9471_v50 = vpop.eup %9470  ;;  %vm14961_vm5 = vcmask 64512  }
 0x216   : > { %1347 = vst.msk [vmem:[%s10173_s15 + $0x8] sm:$0xff] %vm14961_vm5, %v1315_v10  ;;  %v1317_v35 = vmul.f32 %v9471_v50, %v11484_v24 }
 0x217   : > { %v2273_v14 = vpop.permute.xlu1 %2272 }
 0x218   : > { %2346 = vst.msk [vmem:[#allocation2 + $0xc8] sm:$0xff] %vm14914_vm2, %v2273_v14  ;;  %v2432_v12 = vpop.permute.xlu0 %2431  ;;  %v9473_v49 = vpop.eup %9472 }
 0x219   : > { %2506 = vst.msk [vmem:[#allocation2 + $0xc0] sm:$0xff] %vm14960_vm12, %v2432_v12  ;;  %v9475_v48 = vpop.eup %9474  ;;  %v1316_v24 = vmul.f32 %v9473_v49, %v11491_v28 }
 0x21a   : > { %v9477_v31 = vpop.eup %9476  ;;  %v1319_v12 = vmul.f32 %v9475_v48, %v11494_v60 }
 0x21b   : > { %v2426_v8 = vpop.permute.xlu1 %2425  ;;  %v11542_v58 = vld [vmem:[#allocation2 + $0x98] sm:$0xff]  ;;  %v1318_v29 = vmul.f32 %v9477_v31, %v11500_v6  ;;  %v9479_v10 = vpop.eup %9478 }
 0x21c   : > { %2503 = vst.msk [vmem:[#allocation2 + $0xa8] sm:$0xff] %vm14921_vm0, %v2426_v8  ;;  %8562 = vmatmul.mubr.msk.f32.gmra.mrb[64].mxu1 %vm14957_vm11, %v11542_v58  ;;  %8619 = vmatmul.mubr.msk.f32.gmra.mrb[34].mxu0 %vm14958_vm13, %v11542_v58  ;;  %v2275_v33 = vpop.permute.xlu0 %2274  ;;  %vm14962_vm0 = vmmov %vm14914_vm2  ;;  %v9481_v50 = vpop.eup %9480  ;;  %v1321_v28 = vmul.f32 %v9479_v10, %v11517_v41 }
 0x21d   : > { %8564 = vmatprep.mubr.msk.f32.mxu1 %vm14959_vm9, %v11550_v42  ;;  %8621 = vmatprep.mubr.msk.f32.mxu0 %vm14918_vm4, %v11550_v42  ;;  %2347 = vst.msk [vmem:[#allocation2 + $0xd0] sm:$0xff] %vm14962_vm0, %v2275_v33  ;;  %vm14963_vm11 = vmmov %vm14960_vm12  ;;  %v1320_v60 = vmul.f32 %v9481_v50, %v11520_v19 }
 0x21e   : > { %vm14964_vm13 = vmmov %vm14918_vm4 }
 0x21f   : > { %v2277_v14 = vpop.permute.xlu1 %2276  ;;  %vm14965_vm9 = vmmov %vm14918_vm4 }
 0x220   : > { %2348 = vst.msk [vmem:[#allocation2 + $0xd8] sm:$0xff] %vm14914_vm2, %v2277_v14  ;;  %vm14966_vm4 = vmmov %vm14961_vm5  ;;  %v2436_v14 = vpop.permute.xlu0 %2435  ;;  %v11604_v6 = vld [vmem:[#allocation2 + $0xc0] sm:$0xff] }
 0x221   : > { %1346 = vst.msk [vmem:[%s10173_s15] sm:$0xff] %vm14966_vm4, %v1314_v59  ;;  %vm14967_vm12 = vmmov %vm14965_vm9 }
 0x222   : > { %vm14968_vm2 = vmmov %vm14965_vm9  ;;  %2508 = vst.msk [vmem:[#allocation2 + $0xd0] sm:$0xff] %vm14963_vm11, %v2436_v14 }
 0x223   : > { %v2430_v40 = vpop.permute.xlu1 %2429  ;;  %v11560_v8 = vld [vmem:[#allocation2 + $0xa8] sm:$0xff]  ;;  %vm14969_vm5 = vmmov %vm14966_vm4 }
 0x224   : > { %2505 = vst.msk [vmem:[#allocation2 + $0xb8] sm:$0xff] %vm14963_vm11, %v2430_v40  ;;  %8565 = vmatmul.mubr.msk.f32.gmra.mrb[66].mxu1 %vm14964_vm13, %v11560_v8  ;;  %8622 = vmatmul.mubr.msk.f32.gmra.mrb[36].mxu0 %vm14965_vm9, %v11560_v8  ;;  %vm14970_vm0 = vmmov %vm14966_vm4  ;;  %vm14971_vm13 = vcmask 130112   ;;  %v2279_v59 = vpop.permute.xlu0 %2278 }
 0x225   : > { %8567 = vmatprep.mubr.msk.f32.mxu1 %vm14967_vm12, %v11571_v37  ;;  %8624 = vmatprep.mubr.msk.f32.mxu0 %vm14968_vm2, %v11571_v37  ;;  %1349 = vst.msk [vmem:[%s10173_s15 + $0x18] sm:$0xff] %vm14969_vm5, %v1317_v35  ;;  %vm14972_vm9 = vmmov %vm14970_vm0  ;;  %v8447_v35 = vpop.f32.mrb[8].mxu0 }
 0x226   : > { %1348 = vst.msk [vmem:[%s10173_s15 + $0x10] sm:$0xff] %vm14970_vm0, %v1316_v24  ;;  %vm14973_vm4 = vmmov %vm14970_vm0  ;;  %v11615_v49 = vadd.f32 %v11474_v17, %v8447_v35  ;;  %v1003_v48 = vpop.f32.mrb[9].mxu0 }
 0x227   : > { %v2281_v51 = vpop.permute.xlu1 %2280  ;;  %1351 = vst.msk [vmem:[%s10173_s15 + $0x28] sm:$0xff] %vm14972_vm9, %v1319_v12  ;;  %vm14974_vm12 = vmmov %vm14970_vm0  ;;  %vm14977_vm0 = vcmask 195584   ;;  %v11618_v24 = vadd.f32 %v11474_v17, %v1003_v48  ;;  %v8450_v31 = vpop.f32.mrb[10].mxu0 }
 0x228   : > { %2350 = vst.msk [vmem:[#allocation2 + $0xe8] sm:$0xff] %vm14971_vm13, %v2281_v51  ;;  %vm14975_vm2 = vmmov %vm14971_vm13  ;;  %v2440_v41 = vpop.permute.xlu0 %2439  ;;  %v11624_v10 = vadd.f32 %v11474_v17, %v8450_v31 }
 0x229   : > { %1350 = vst.msk [vmem:[%s10173_s15 + $0x20] sm:$0xff] %vm14973_vm4, %v1318_v29  ;;  %vm14976_vm5 = vmmov %vm14963_vm11  ;;  %v7545_v29 = vmul.f32 -1.442695, %v11615_v49  ;;  %v11632_v50 = vld [vmem:[#allocation2 + $0xd0] sm:$0xff] }
 0x22a   : > { %1353 = vst.msk [vmem:[%s10173_s15 + $0x38] sm:$0xff] %vm14974_vm12, %v1321_v28  ;;  %vm14978_vm11 = vmmov %vm14977_vm0  ;;  %v7544_v28 = vmul.f32 -1.442695, %v11618_v24 }
 0x22b   : > { %v2434_v33 = vpop.permute.xlu1 %2433  ;;  %v11594_v40 = vld [vmem:[#allocation2 + $0xb8] sm:$0xff]  ;;  %2349 = vst.msk [vmem:[#allocation2 + $0xe0] sm:$0xff] %vm14975_vm2, %v2279_v59  ;;  %vm14979_vm13 = vmmov %vm14973_vm4  ;;  %9482 = vpow2.f32 %v7545_v29  ;;  %v7547_v59 = vmul.f32 -1.442695, %v11624_v10 }
 0x22c   : > { %2507 = vst.msk [vmem:[#allocation2 + $0xc8] sm:$0xff] %vm14976_vm5, %v2434_v33  ;;  %8568 = vmatmul.mubr.msk.f32.gmra.mrb[68].mxu1 %vm14977_vm0, %v11594_v40  ;;  %8625 = vmatmul.mubr.msk.f32.gmra.mrb[38].mxu0 %vm14978_vm11, %v11594_v40  ;;  %vm14980_vm9 = vmmov %vm14977_vm0  ;;  %v2283_v12 = vpop.permute.xlu0 %2282  ;;  %9484 = vpow2.f32 %v7544_v28 }
 0x22d   : > { %1352 = vst.msk [vmem:[%s10173_s15 + $0x30] sm:$0xff] %vm14979_vm13, %v1320_v60  ;;  %8570 = vmatprep.mubr.msk.f32.mxu1 %vm14980_vm9, %v11604_v6  ;;  %vm14981_vm4 = vmmov %vm14977_vm0  ;;  %v1013_v60 = vpop.f32.mrb[11].mxu0  ;;  %9486 = vpow2.f32 %v7547_v59 }
 0x22e   : > { %8627 = vmatprep.mubr.msk.f32.mxu0 %vm14981_vm4, %v11604_v6  ;;  %vm14982_vm12 = vmmov %vm14976_vm5  ;;  %v11641_v33 = vadd.f32 %v11474_v17, %v1013_v60  ;;  %v8453_v48 = vpop.f32.mrb[12].mxu0 }
 0x22f   : > { %v2285_v19 = vpop.permute.xlu1 %2284  ;;  %2510 = vst.msk [vmem:[#allocation2 + $0xe0] sm:$0xff] %vm14982_vm12, %v2440_v41  ;;  %vm14983_vm5 = vmmov %vm14975_vm2  ;;  %v11647_v31 = vadd.f32 %v11474_v17, %v8453_v48 }
 0x230   : > { %2352 = vst.msk [vmem:[#allocation2 + $0xf8] sm:$0xff] %vm14975_vm2, %v2285_v19  ;;  %vm14984_vm0 = vmmov %vm14982_vm12  ;;  %v2444_v41 = vpop.permute.xlu0 %2443  ;;  %v7546_v35 = vmul.f32 -1.442695, %v11641_v33 }
 0x231   : > { %2351 = vst.msk [vmem:[#allocation2 + $0xf0] sm:$0xff] %vm14983_vm5, %v2283_v12  ;;  %vm14985_vm11 = vmmov %vm14981_vm4  ;;  %v1023_v12 = vpop.f32.mrb[13].mxu0  ;;  %v7549_v59 = vmul.f32 -1.442695, %v11647_v31 }
 0x232   : > { %vm14986_vm13 = vmmov %vm14981_vm4  ;;  %9488 = vpow2.f32 %v7546_v35  ;;  %v8456_v29 = vpop.f32.mrb[14].mxu0 }
 0x233   : > { %v2438_v14 = vpop.permute.xlu1 %2437  ;;  %v11620_v51 = vld [vmem:[#allocation2 + $0xc8] sm:$0xff]  ;;  %vm14987_vm9 = vmmov %vm14981_vm4  ;;  %v1033_v48 = vpop.f32.mrb[15].mxu0  ;;  %9490 = vpow2.f32 %v7549_v59 }
 0x234   : > { %2509 = vst.msk [vmem:[#allocation2 + $0xd8] sm:$0xff] %vm14984_vm0, %v2438_v14  ;;  %8571 = vmatmul.mubr.msk.f32.gmra.mrb[70].mxu1 %vm14985_vm11, %v11620_v51  ;;  %8628 = vmatmul.mubr.msk.f32.gmra.mrb[40].mxu0 %vm14986_vm13, %v11620_v51  ;;  %vm14988_vm12 = vmmov %vm14984_vm0  ;;  %v11650_v14 = vadd.f32 %v11474_v17, %v1023_v12  ;;  %v2287_v28 = vpop.permute.xlu0 %2286 }
 0x235   : > { %8573 = vmatprep.mubr.msk.f32.mxu1 %vm14987_vm9, %v11632_v50  ;;  %8630 = vmatprep.mubr.msk.f32.mxu0 %vm14981_vm4, %v11632_v50  ;;  %2512 = vst.msk [vmem:[#allocation2 + $0xf0] sm:$0xff] %vm14988_vm12, %v2444_v41  ;;  %vm14989_vm2 = vmmov %vm14984_vm0  ;;  %v11656_v41 = vadd.f32 %v11474_v17, %v8456_v29  ;;  %v11673_v29 = vadd.f32 %v11474_v17, %v1033_v48 }
 0x236   : > { %2353 = vst.msk [vmem:[#allocation2 + $0x100] sm:$0xff] %vm14983_vm5, %v2287_v28  ;;  %vm14990_vm11 = vmmov %vm14981_vm4  ;;  %v7548_v35 = vmul.f32 -1.442695, %v11650_v14  ;;  %v9483_v28 = vpop.eup %9482 }
 0x237   : > { %v2442_v19 = vpop.permute.xlu1 %2441  ;;  %vm14991_vm13 = vmmov %vm14981_vm4  ;;  %v7551_v12 = vmul.f32 -1.442695, %v11656_v41  ;;  %v7550_v62 = vmul.f32 -1.442695, %v11673_v29  ;;  %v9485_v11 = vpop.eup %9484  ;;  %v1227_v17 = vadd.f32 1.0, %v9483_v28 }
 0x238   : > { %2511 = vst.msk [vmem:[#allocation2 + $0xe8] sm:$0xff] %vm14989_vm2, %v2442_v19  ;;  %v11664_v19 = vld [vmem:[#allocation2 + $0xe0] sm:$0xff]  ;;  %vm14992_vm9 = vmmov %vm14981_vm4  ;;  %9492 = vpow2.f32 %v7548_v35  ;;  %v9487_v59 = vpop.eup %9486  ;;  %v1226_v35 = vadd.f32 1.0, %v9485_v11 }
 0x239   : > { %9494 = vpow2.f32 %v7551_v12  ;;  %vm14993_vm12 = vmmov %vm14984_vm0  ;;  %v1229_v48 = vadd.f32 1.0, %v9487_v59 }
 0x23a   : > { %vm14994_vm2 = vmmov %vm14983_vm5  ;;  %9496 = vpow2.f32 %v7550_v62 }
 0x23b   : > { %v2446_v60 = vpop.permute.xlu1 %2445  ;;  %v11652_v1 = vld [vmem:[#allocation2 + $0xd8] sm:$0xff]  ;;  %vm14995_vm5 = vmmov %vm14981_vm4  ;;  %9498 = vrcp.f32 %v1227_v17 }
 0x23c   : > { %2513 = vst.msk [vmem:[#allocation2 + $0xf8] sm:$0xff] %vm14984_vm0, %v2446_v60  ;;  %8574 = vmatmul.mubr.msk.f32.gmra.mrb[72].mxu1 %vm14990_vm11, %v11652_v1  ;;  %8631 = vmatmul.mubr.msk.f32.gmra.mrb[42].mxu0 %vm14991_vm13, %v11652_v1  ;;  %v2448_v60 = vpop.permute.xlu0 %2447  ;;  %v11677_v27 = vld [vmem:[#allocation2 + $0xf0] sm:$0xff]  ;;  %vm14996_vm0 = vmmov %vm14981_vm4  ;;  %v9489_v12 = vpop.eup %9488  ;;  %9500 = vrcp.f32 %v1226_v35 }
 0x23d   : > { %8576 = vmatprep.mubr.msk.f32.mxu1 %vm14992_vm9, %v11664_v19  ;;  %8633 = vmatprep.mubr.msk.f32.mxu0 %vm14981_vm4, %v11664_v19  ;;  %2514 = vst.msk [vmem:[#allocation2 + $0x100] sm:$0xff] %vm14993_vm12, %v2448_v60  ;;  %vm14997_vm11 = vmmov %vm14996_vm0  ;;  %9502 = vrcp.f32 %v1229_v48  ;;  %v1228_v28 = vadd.f32 1.0, %v9489_v12  ;;  %v9491_v11 = vpop.eup %9490 }
 0x23e   : > { %vm14998_vm13 = vmmov %vm14996_vm0  ;;  %v1231_v59 = vadd.f32 1.0, %v9491_v11 }
 0x23f   : > { %v2289_v4 = vpop.permute.xlu1 %2288  ;;  %v11675_v39 = vld [vmem:[#allocation2 + $0xe8] sm:$0xff]  ;;  %vm14999_vm9 = vmmov %vm14993_vm12  ;;  %9504 = vrcp.f32 %v1228_v28 }
 0x240   : > { %2354 = vst.msk [vmem:[#allocation2 + $0x108] sm:$0xff] %vm14994_vm2, %v2289_v4  ;;  %8577 = vmatmul.mubr.msk.f32.gmra.mrb[74].mxu1 %vm14995_vm5, %v11675_v39  ;;  %8634 = vmatmul.mubr.msk.f32.gmra.mrb[44].mxu0 %vm14996_vm0, %v11675_v39  ;;  %vm15000_vm4 = vmmov %vm14996_vm0  ;;  %9506 = vrcp.f32 %v1231_v59 }
 0x241   : > { %8579 = vmatprep.mubr.msk.f32.mxu1 %vm14997_vm11, %v11677_v27  ;;  %8636 = vmatprep.mubr.msk.f32.mxu0 %vm14998_vm13, %v11677_v27  ;;  %vm15001_vm12 = vmmov %vm14996_vm0 }
 0x242   : > { %vm15002_vm2 = vmmov %vm14996_vm0  ;;  %v9493_v17 = vpop.eup %9492 }
 0x243   : > { %v2450_v4 = vpop.permute.xlu1 %2449  ;;  %v11690_v60 = vld [vmem:[#allocation2 + $0xf8] sm:$0xff]  ;;  %vm15003_vm5 = vmmov %vm14996_vm0  ;;  %v9495_v35 = vpop.eup %9494  ;;  %v1230_v48 = vadd.f32 1.0, %v9493_v17 }
 0x244   : > { %2515 = vst.msk [vmem:[#allocation2 + $0x108] sm:$0xff] %vm14999_vm9, %v2450_v4  ;;  %8580 = vmatmul.mubr.msk.f32.gmra.mrb[76].mxu1 %vm15000_vm4, %v11690_v60  ;;  %8637 = vmatmul.mubr.msk.f32.gmra.mrb[46].mxu0 %vm15001_vm12, %v11690_v60  ;;  %v11699_v62 = vld [vmem:[#allocation2 + $0x100] sm:$0xff]  ;;  %vm15004_vm11 = vmmov %vm14996_vm0  ;;  %v9497_v12 = vpop.eup %9496  ;;  %vm15008_vm12 = vcmask 64512  }
 0x245   : > { %8645 = vmatprep.mubr.msk.f32.mxu0 %vm15002_vm2, %v11385_v25  ;;  %8582 = vmatprep.mubr.msk.f32.mxu1 %vm15003_vm5, %v11699_v62  ;;  %v1233_v25 = vadd.f32 1.0, %v9495_v35  ;;  %9508 = vrcp.f32 %v1230_v48  ;;  %v9499_v28 = vpop.eup %9498  ;;  %vm15005_vm13 = vmmov %vm14996_vm0 }
 0x246   : > { %vm15006_vm9 = vmmov %vm14996_vm0  ;;  %v9501_v11 = vpop.eup %9500 }
 0x247   : > { %9510 = vrcp.f32 %v1233_v25  ;;  %vm15007_vm4 = vmmov %vm14996_vm0  ;;  %v9503_v17 = vpop.eup %9502  ;;  %v1322_v59 = vmul.f32 %v9501_v11, %v11618_v24 }
 0x248   : > { %8646 = vmatmul.mubr.msk.f32.vlgmr.msra.gmra.mrb[16].mxu0 %vm14996_vm0, %v11393_v2  ;;  %v1232_v2 = vadd.f32 1.0, %v9497_v12  ;;  %v1325_v35 = vmul.f32 %v9503_v17, %v11624_v10  ;;  %vm15009_vm2 = vmmov %vm14996_vm0 }
 0x249   : > { %8648 = vmatprep.mubr.msk.f32.mxu0 %vm15004_vm11, %v11401_v44  ;;  %v1323_v44 = vmul.f32 %v9499_v28, %v11615_v49  ;;  %v9505_v48 = vpop.eup %9504  ;;  %vm15010_vm5 = vmmov %vm15008_vm12 }
 0x24a   : > { %9512 = vrcp.f32 %v1232_v2  ;;  %1354 = vst.msk [vmem:[%s10173_s15 + $0x40] sm:$0xff] %vm15010_vm5, %v1322_v59  ;;  %vm15011_vm11 = vmmov %vm15010_vm5  ;;  %v11834_v59 = vld [vmem:[%s14502_s6] ss:$0 sm:$0xff] }
 0x24b   : > { %v2552_v4 = vld [vmem:[#allocation2 + $0x108] sm:$0xff]  ;;  %1355 = vst.msk [vmem:[%s10173_s15 + $0x48] sm:$0xff] %vm15008_vm12, %v1323_v44  ;;  %vm15015_vm12 = vmmov %vm15010_vm5 }
 0x24c   : > { %8583 = vmatmul.mubr.msk.f32.gmra.mrb[78].mxu1 %vm15005_vm13, %v2552_v4  ;;  %8649 = vmatmul.mubr.msk.f32.gmra.mrb[18].mxu0 %vm15006_vm9, %v11409_v56  ;;  %1357 = vst.msk [vmem:[%s10173_s15 + $0x58] sm:$0xff] %vm15011_vm11, %v1325_v35  ;;  %v1324_v56 = vmul.f32 %v9505_v48, %v11641_v33  ;;  %vm15012_vm13 = vmmov %vm15010_vm5 }
 0x24d   : > { %8651 = vmatprep.mubr.msk.f32.mxu0 %vm15007_vm4, %v11417_v53  ;;  %v9507_v53 = vpop.eup %9506  ;;  %vm15013_vm9 = vmmov %vm14996_vm0 }
 0x24e   : > { %1356 = vst.msk [vmem:[%s10173_s15 + $0x50] sm:$0xff] %vm15012_vm13, %v1324_v56  ;;  %vm15014_vm4 = vmmov %vm14996_vm0 }
 0x24f   : > { %v9509_v49 = vpop.eup %9508  ;;  %vm15017_vm11 = vmmov %vm15010_vm5 }
 0x250   : > { %8652 = vmatmul.mubr.msk.f32.gmra.mrb[20].mxu0 %vm15009_vm2, %v11425_v22  ;;  %v1327_v22 = vmul.f32 %v9507_v53, %v11647_v31  ;;  %vm15016_vm2 = vmmov %vm14996_vm0 }
 0x251   : > { %8654 = vmatprep.mubr.msk.f32.mxu0 %vm14996_vm0, %v11433_v52  ;;  %v9511_v24 = vpop.eup %9510  ;;  %v1326_v52 = vmul.f32 %v9509_v49, %v11650_v14  ;;  %vm15018_vm13 = vmmov %vm15010_vm5 }
 0x252   : > { %1359 = vst.msk [vmem:[%s10173_s15 + $0x68] sm:$0xff] %vm15015_vm12, %v1327_v22  ;;  %v1329_v10 = vmul.f32 %v9511_v24, %v11656_v41  ;;  %vm15021_vm12 = vmmov %vm14996_vm0 }
 0x253   : > { %1358 = vst.msk [vmem:[%s10173_s15 + $0x60] sm:$0xff] %vm15010_vm5, %v1326_v52  ;;  %vm15023_vm5 = vmmov %vm14996_vm0 }
 0x254   : > { %8655 = vmatmul.mubr.msk.f32.gmra.mrb[22].mxu0 %vm15013_vm9, %v11441_v54  ;;  %v9513_v33 = vpop.eup %9512  ;;  %1361 = vst.msk [vmem:[%s10173_s15 + $0x78] sm:$0xff] %vm15017_vm11, %v1329_v10  ;;  %vm15019_vm9 = vmmov %vm14996_vm0 }
 0x255   : > { %8657 = vmatprep.mubr.msk.f32.mxu0 %vm15014_vm4, %v11449_v46  ;;  %v1328_v54 = vmul.f32 %v9513_v33, %v11673_v29  ;;  %vm15020_vm4 = vmmov %vm14996_vm0  ;;  %v3139_v46 = vld [vmem:[#allocation2 + $0x110] sm:$0xff] }
 0x256   : > { %vm15024_vm11 = vmmov %vm14996_vm0 }
 0x257   : > { %1360 = vst.msk [vmem:[%s10173_s15 + $0x70] sm:$0xff] %vm15018_vm13, %v1328_v54  ;;  %vm15025_vm13 = vmmov %vm14996_vm0 }
 0x258   : > { %8658 = vmatmul.mubr.msk.f32.gmra.mrb[24].mxu0 %vm15016_vm2, %v11457_v0  ;;  %vm15022_vm2 = vmmov %vm14996_vm0 }
 0x259   : > { %8660 = vmatprep.mubr.msk.f32.mxu0 %vm14996_vm0, %v11465_v9 }
 0x25c   : > { %8661 = vmatmul.mubr.msk.f32.gmra.mrb[26].mxu0 %vm15019_vm9, %v11496_v5  ;;  %vm15026_vm9 = vmmov %vm14996_vm0 }
 0x25d   : > { %8663 = vmatprep.mubr.msk.f32.mxu0 %vm15020_vm4, %v11508_v43  ;;  %vm15027_vm4 = vmmov %vm14996_vm0 }
 0x260   : > { %8664 = vmatmul.mubr.msk.f32.gmra.mrb[28].mxu0 %vm15021_vm12, %v11526_v13  ;;  %vm15028_vm12 = vmmov %vm14996_vm0 }
 0x261   : > { %8666 = vmatprep.mubr.msk.f32.mxu0 %vm15022_vm2, %v11534_v34  ;;  %vm15029_vm2 = vmmov %vm14996_vm0 }
 0x264   : > { %8667 = vmatmul.mubr.msk.f32.gmra.mrb[30].mxu0 %vm15023_vm5, %v11542_v58  ;;  %vm15030_vm5 = vmmov %vm14996_vm0 }
 0x265   : > { %8669 = vmatprep.mubr.msk.f32.mxu0 %vm14996_vm0, %v11550_v42 }
 0x268   : > { %8670 = vmatmul.mubr.msk.f32.gmra.mrb[32].mxu0 %vm15024_vm11, %v11560_v8  ;;  %vm15031_vm11 = vmmov %vm14996_vm0 }
 0x269   : > { %8672 = vmatprep.mubr.msk.f32.mxu0 %vm15025_vm13, %v11571_v37  ;;  %vm15032_vm13 = vmmov %vm14996_vm0 }
 0x26c   : > { %8673 = vmatmul.mubr.msk.f32.gmra.mrb[34].mxu0 %vm15026_vm9, %v11594_v40  ;;  %vm15033_vm9 = vmmov %vm14996_vm0 }
 0x26d   : > { %8675 = vmatprep.mubr.msk.f32.mxu0 %vm15027_vm4, %v11604_v6  ;;  %vm15034_vm4 = vmmov %vm14996_vm0 }
 0x270   : > { %8676 = vmatmul.mubr.msk.f32.gmra.mrb[36].mxu0 %vm15028_vm12, %v11620_v51  ;;  %vm15035_vm12 = vmmov %vm14996_vm0 }
 0x271   : > { %8678 = vmatprep.mubr.msk.f32.mxu0 %vm15029_vm2, %v11632_v50  ;;  %vm15036_vm2 = vmmov %vm14996_vm0 }
 0x274   : > { %8679 = vmatmul.mubr.msk.f32.gmra.mrb[38].mxu0 %vm15030_vm5, %v11652_v1  ;;  %v3140_v1 = vld [vmem:[#allocation2 + $0x118] sm:$0xff]  ;;  %vm15037_vm5 = vmmov %vm14996_vm0 }
 0x275   : > { %8681 = vmatprep.mubr.msk.f32.mxu0 %vm14996_vm0, %v11664_v19  ;;  %vm15038_vm0 = vcmp.lt.s32.totalorder %v10162_v23, 7 }
 0x278   : > { %8682 = vmatmul.mubr.msk.f32.gmra.mrb[40].mxu0 %vm15031_vm11, %v11675_v39  ;;  %vm15039_vm11 = vmmov %vm15038_vm0 }
 0x279   : > { %8684 = vmatprep.mubr.msk.f32.mxu0 %vm15032_vm13, %v11677_v27  ;;  %vm15041_vm13 = vnez %v15040_v63 }
 0x27c   : > { %8685 = vmatmul.mubr.msk.f32.gmra.mrb[42].mxu0 %vm15033_vm9, %v11690_v60  ;;  %vm15043_vm9 = vmmov %vm15038_vm0 }
 0x27d   : > { %8687 = vmatprep.mubr.msk.f32.mxu0 %vm15034_vm4, %v11699_v62  ;;  %vm15045_vm4 = vmmov %vm15038_vm0 }
 0x280   : > { %8688 = vmatmul.mubr.msk.f32.gmra.mrb[44].mxu0 %vm15035_vm12, %v2552_v4 }
 0x281   : > { %8690 = vmatprep.mubr.msk.f32.mxu0 %vm15036_vm2, %v3139_v46  ;;  %vm15048_vm2 = vmmov %vm15038_vm0 }
 0x284   : > { %8691 = vmatmul.mubr.msk.f32.gmra.mrb[46].mxu0 %vm15037_vm5, %v3140_v1  ;;  %vm15049_vm5 = vmmov %vm15038_vm0 }
 0x2a9   : > { %v8539_v0 = vpop.f32.mrb[48].mxu1 }
 0x2aa   : > { %v2719_v9 = vpop.f32.mrb[49].mxu1 }
 0x2b1   : > { %v8542_v39 = vpop.f32.mrb[50].mxu1 }
 0x2b2   : > { %v2729_v5 = vpop.f32.mrb[51].mxu1 }
 0x2b9   : > { %v8545_v43 = vpop.f32.mrb[52].mxu1 }
 0x2ba   : > { %v2739_v27 = vpop.f32.mrb[53].mxu1 }
 0x2c1   : > { %v8548_v13 = vpop.f32.mrb[54].mxu1 }
 0x2c2   : > { %v2749_v34 = vpop.f32.mrb[55].mxu1 }
 0x2c9   : > { %v11787_v58 = vpop.f32.mrb[56].mxu1 }
 0x2ca   : > { %v11789_v42 = vpop.f32.mrb[57].mxu1 }
 0x2d1   : > { %v11791_v8 = vpop.f32.mrb[58].mxu1 }
 0x2d2   : > { %v11793_v37 = vpop.f32.mrb[59].mxu1 }
 0x2d9   : > { %v11795_v40 = vpop.f32.mrb[60].mxu1 }
 0x2da   : > { %v11797_v6 = vpop.f32.mrb[61].mxu1 }
 0x2e3   : > { %v11799_v51 = vpop.f32.mrb[62].mxu1 }
 0x2e4   : > { %v11801_v50 = vpop.f32.mrb[63].mxu1 }
 0x2ef   : > { %v11803_v31 = vpop.f32.mrb[64].mxu1 }
 0x2f0   : > { %v11805_v14 = vpop.f32.mrb[65].mxu1 }
 0x2f7   : > { %v11807_v41 = vpop.f32.mrb[66].mxu1 }
 0x2f8   : > { %v11809_v19 = vpop.f32.mrb[67].mxu1 }
 0x2ff   : > { %v11811_v29 = vpop.f32.mrb[68].mxu1 }
 0x300   : > { %v11813_v60 = vpop.f32.mrb[69].mxu1 }
 0x307   : > { %v11815_v62 = vpop.f32.mrb[70].mxu1 }
 0x308   : > { %v11817_v25 = vpop.f32.mrb[71].mxu1 }
 0x30f   : > { %v11819_v12 = vpop.f32.mrb[72].mxu1 }
 0x310   : > { %v11821_v4 = vpop.f32.mrb[73].mxu1 }
 0x313   : > { %v11823_v28 = vpop.f32.mrb[74].mxu1 }
 0x314   : > { %v11825_v2 = vpop.f32.mrb[75].mxu1 }
 0x317   : > { %v11827_v11 = vpop.f32.mrb[76].mxu1 }
 0x318   : > { %v11829_v44 = vpop.f32.mrb[77].mxu1 }
 0x31b   : > { %v8647_v17 = vpop.f32.mrb[16].mxu0 }
 0x31c   : > { %v9055_v35 = vadd.f32 %v8647_v17, %v8539_v0  ;;  %v3307_v48 = vpop.f32.mrb[17].mxu0 }
 0x31d   : > { %v9056_v56 = vadd.f32 %v3307_v48, %v2719_v9 }
 0x31e   : > { %v11837_v53 = vadd.f32 %v9055_v35, %v11834_v59 }
 0x31f   : > { %v11840_v49 = vadd.f32 %v9056_v56, %v11834_v59  ;;  %v11842_v22 = vpop.f32.mrb[78].mxu1  ;;  %v8650_v24 = vpop.f32.mrb[18].mxu0 }
 0x320   : > { %v7737_v52 = vmul.f32 -1.442695, %v11837_v53  ;;  %v9057_v10 = vadd.f32 %v8650_v24, %v8542_v39  ;;  %v11845_v33 = vpop.f32.mrb[79].mxu1  ;;  %v3317_v54 = vpop.f32.mrb[19].mxu0 }
 0x321   : > { %v7736_v46 = vmul.f32 -1.442695, %v11840_v49  ;;  %v9058_v1 = vadd.f32 %v3317_v54, %v2729_v5 }
 0x322   : > { %9514 = vpow2.f32 %v7737_v52  ;;  %v11849_v0 = vadd.f32 %v9057_v10, %v11834_v59 }
 0x323   : > { %9516 = vpow2.f32 %v7736_v46  ;;  %v11852_v9 = vadd.f32 %v9058_v1, %v11834_v59  ;;  %v8653_v17 = vpop.f32.mrb[20].mxu0 }
 0x324   : > { %v7739_v35 = vmul.f32 -1.442695, %v11849_v0  ;;  %v9059_v48 = vadd.f32 %v8653_v17, %v8545_v43  ;;  %v3327_v56 = vpop.f32.mrb[21].mxu0 }
 0x325   : > { %v7738_v39 = vmul.f32 -1.442695, %v11852_v9  ;;  %v9060_v24 = vadd.f32 %v3327_v56, %v2739_v27 }
 0x326   : > { %9518 = vpow2.f32 %v7739_v35  ;;  %v11857_v38 = vadd.f32 %v9059_v48, %v11834_v59 }
 0x327   : > { %9520 = vpow2.f32 %v7738_v39  ;;  %v11860_v5 = vadd.f32 %v9060_v24, %v11834_v59  ;;  %v8656_v52 = vpop.f32.mrb[22].mxu0 }
 0x328   : > { %v7741_v10 = vmul.f32 -1.442695, %v11857_v38  ;;  %v9061_v54 = vadd.f32 %v8656_v52, %v8548_v13  ;;  %v3337_v46 = vpop.f32.mrb[23].mxu0 }
 0x329   : > { %v7740_v1 = vmul.f32 -1.442695, %v11860_v5  ;;  %v9062_v43 = vadd.f32 %v3337_v46, %v2749_v34 }
 0x32a   : > { %9522 = vpow2.f32 %v7741_v10  ;;  %v11865_v17 = vadd.f32 %v9061_v54, %v11834_v59 }
 0x32b   : > { %9524 = vpow2.f32 %v7740_v1  ;;  %v11868_v27 = vadd.f32 %v9062_v43, %v11834_v59  ;;  %v8659_v35 = vpop.f32.mrb[24].mxu0 }
 0x32c   : > { %v9515_v48 = vpop.eup %9514  ;;  %v7743_v56 = vmul.f32 -1.442695, %v11865_v17  ;;  %v9063_v39 = vadd.f32 %v8659_v35, %v11787_v58  ;;  %v3347_v24 = vpop.f32.mrb[25].mxu0 }
 0x32d   : > { %v9517_v13 = vpop.eup %9516  ;;  %v3634_v52 = vadd.f32 1.0, %v9515_v48  ;;  %v7742_v55 = vmul.f32 -1.442695, %v11868_v27  ;;  %v9064_v34 = vadd.f32 %v3347_v24, %v11789_v42 }
 0x32e   : > { %v3633_v10 = vadd.f32 1.0, %v9517_v13  ;;  %9526 = vpow2.f32 %v7743_v56  ;;  %v11875_v54 = vadd.f32 %v9063_v39, %v11834_v59 }
 0x32f   : > { %9528 = vrcp.f32 %v3634_v52  ;;  %v11878_v46 = vadd.f32 %v9064_v34, %v11834_v59  ;;  %v8662_v1 = vpop.f32.mrb[26].mxu0 }
 0x330   : > { %v9519_v43 = vpop.eup %9518  ;;  %9530 = vrcp.f32 %v3633_v10  ;;  %v7745_v58 = vmul.f32 -1.442695, %v11875_v54  ;;  %v9065_v35 = vadd.f32 %v8662_v1, %v11791_v8  ;;  %v3357_v48 = vpop.f32.mrb[27].mxu0 }
 0x331   : > { %v9521_v61 = vpop.eup %9520  ;;  %v3636_v32 = vadd.f32 1.0, %v9519_v43  ;;  %9532 = vpow2.f32 %v7742_v55  ;;  %v7744_v42 = vmul.f32 -1.442695, %v11878_v46  ;;  %v9066_v56 = vadd.f32 %v3357_v48, %v11793_v37 }
 0x332   : > { %v3635_v39 = vadd.f32 1.0, %v9521_v61  ;;  %9534 = vpow2.f32 %v7745_v58  ;;  %v11885_v24 = vadd.f32 %v9065_v35, %v11834_v59 }
 0x333   : > { %9536 = vrcp.f32 %v3636_v32  ;;  %v11888_v13 = vadd.f32 %v9066_v56, %v11834_v59  ;;  %v8665_v52 = vpop.f32.mrb[28].mxu0 }
 0x334   : > { %v9523_v34 = vpop.eup %9522  ;;  %9538 = vrcp.f32 %v3635_v39  ;;  %v7747_v8 = vmul.f32 -1.442695, %v11885_v24  ;;  %v9067_v55 = vadd.f32 %v8665_v52, %v11795_v40  ;;  %v3367_v10 = vpop.f32.mrb[29].mxu0 }
 0x335   : > { %v9525_v1 = vpop.eup %9524  ;;  %v3638_v43 = vadd.f32 1.0, %v9523_v34  ;;  %9540 = vpow2.f32 %v7744_v42  ;;  %v7746_v61 = vmul.f32 -1.442695, %v11888_v13  ;;  %v9068_v37 = vadd.f32 %v3367_v10, %v11797_v6 }
 0x336   : > { %9542 = vpow2.f32 %v7747_v8  ;;  %v11895_v32 = vadd.f32 %v9067_v55, %v11834_v59  ;;  %v3637_v58 = vadd.f32 1.0, %v9525_v1 }
 0x337   : > { %9544 = vrcp.f32 %v3638_v43  ;;  %v11898_v35 = vadd.f32 %v9068_v37, %v11834_v59  ;;  %v8668_v48 = vpop.f32.mrb[30].mxu0  ;;  %v7772_v43 = vld [vmem:[%s14501_s5 + $0x68] sm:$0xff] }
 0x338   : > { %v9527_v56 = vpop.eup %9526  ;;  %v7749_v40 = vmul.f32 -1.442695, %v11895_v32  ;;  %v9069_v39 = vadd.f32 %v8668_v48, %v11799_v51  ;;  %v3377_v42 = vpop.f32.mrb[31].mxu0  ;;  %9546 = vpow2.f32 %v7746_v61  ;;  %v7771_v51 = vld [vmem:[%s14501_s5 + $0x60] sm:$0xff] }
 0x339   : > { %v9529_v52 = vpop.eup %9528  ;;  %v3640_v34 = vadd.f32 1.0, %v9527_v56  ;;  %v7748_v6 = vmul.f32 -1.442695, %v11898_v35  ;;  %v9070_v8 = vadd.f32 %v3377_v42, %v11801_v50  ;;  %v9029_v56 = vpack.c.bf16 %v7772_v43, %v7771_v51 }
 0x33a   : > { %v9531_v55 = vpop.eup %9530  ;;  %9548 = vpow2.f32 %v7749_v40  ;;  %v11905_v10 = vadd.f32 %v9069_v39, %v11834_v59  ;;  %v11908_v1 = vmul.f32 %v9529_v52, %v11837_v53 }
 0x33b   : > { %v9533_v61 = vpop.eup %9532  ;;  %9550 = vrcp.f32 %v3637_v58  ;;  %v11917_v50 = vadd.f32 %v9070_v8, %v11834_v59  ;;  %v8671_v37 = vpop.f32.mrb[32].mxu0  ;;  %v11920_v48 = vmul.f32 %v9531_v55, %v11840_v49  ;;  %9030 = vmatprep.subr.bf16.mxu1 %v9029_v56 }
 0x33c   : > { %v9535_v53 = vpop.eup %9534  ;;  %v3639_v40 = vadd.f32 1.0, %v9533_v61  ;;  %9552 = vpow2.f32 %v7748_v6  ;;  %v7751_v39 = vmul.f32 -1.442695, %v11905_v10  ;;  %v9071_v42 = vadd.f32 %v8671_v37, %v11803_v31  ;;  %4019 = vrot.lane.b32.xlu1 %v11908_v1, %s9907_s25  ;;  %v3387_v52 = vpop.f32.mrb[33].mxu0  ;;  %9032 = vmatpush3.bf16.msra.mxu1 %v9029_v56 }
 0x33d   : > { %v9537_v58 = vpop.eup %9536  ;;  %9554 = vrcp.f32 %v3640_v34  ;;  %v3642_v8 = vadd.f32 1.0, %v9535_v53  ;;  %v7750_v16 = vmul.f32 -1.442695, %v11917_v50  ;;  %v9072_v49 = vadd.f32 %v3387_v52, %v11805_v14  ;;  %4017 = vrot.lane.b32.xlu0 %v11920_v48, %s9907_s25 }
 0x33e   : > { %v9539_v6 = vpop.eup %9538  ;;  %9556 = vrcp.f32 %v3639_v40  ;;  %v11931_v55 = vadd.f32 %v9071_v42, %v11834_v59  ;;  %v11934_v31 = vmul.f32 %v9537_v58, %v11849_v0  ;;  %v14613_v14 = vrot.slane %v11920_v48, 1 }
 0x33f   : > { %v9541_v51 = vpop.eup %9540  ;;  %9558 = vrcp.f32 %v3642_v8  ;;  %v11937_v34 = vadd.f32 %v9072_v49, %v11834_v59  ;;  %v8674_v43 = vpop.f32.mrb[34].mxu0  ;;  %v3858_v61 = vrot.slane %v11908_v1, 1 }
 0x340   : > { %v9543_v37 = vpop.eup %9542  ;;  %v3641_v53 = vadd.f32 1.0, %v9541_v51  ;;  %9560 = vpow2.f32 %v7751_v39  ;;  %v7753_v40 = vmul.f32 -1.442695, %v11931_v55  ;;  %v9073_v42 = vadd.f32 %v8674_v43, %v11807_v41  ;;  %4023 = vrot.lane.b32.xlu1 %v11934_v31, %s9907_s25  ;;  %v3397_v0 = vpop.f32.mrb[35].mxu0 }
 0x341   : > { %v9545_v56 = vpop.eup %9544  ;;  %v3644_v52 = vadd.f32 1.0, %v9543_v37  ;;  %9562 = vpow2.f32 %v7750_v16  ;;  %v7752_v58 = vmul.f32 -1.442695, %v11937_v34  ;;  %v9074_v49 = vadd.f32 %v3397_v0, %v11809_v19  ;;  %v7773_v19 = vld [vmem:[%s14501_s5 + $0x70] sm:$0xff] }
 0x342   : > { %9564 = vrcp.f32 %v3641_v53  ;;  %v11947_v8 = vadd.f32 %v9073_v42, %v11834_v59  ;;  %v3919_v41 = vsel %vm15038_vm0, %v14613_v14, %v3858_v61  ;;  %v9547_v39 = vpop.eup %9546  ;;  %v11956_v16 = vmul.f32 %v9545_v56, %v11857_v38  ;;  %8697 = vmatprep.subr.mxu1 %v7773_v19 }
 0x343   : > { %9566 = vrcp.f32 %v3644_v52  ;;  %4177 = vrot.lane.b32.xlu0 %v3919_v41, %s9908_s26  ;;  %v8677_v51 = vpop.f32.mrb[36].mxu0  ;;  %v11959_v43 = vmul.f32 %v9539_v6, %v11852_v9  ;;  %v3643_v53 = vadd.f32 1.0, %v9547_v39  ;;  %v11966_v0 = vadd.f32 %v9074_v49, %v11834_v59  ;;  %8698 = vmatpush3.msra.mxu1 %v7773_v19 }
 0x344   : > { %v9549_v37 = vpop.eup %9548  ;;  %9568 = vpow2.f32 %v7753_v40  ;;  %v7755_v42 = vmul.f32 -1.442695, %v11947_v8  ;;  %v3407_v52 = vpop.f32.mrb[37].mxu0  ;;  %v9075_v9 = vadd.f32 %v8677_v51, %v11811_v29  ;;  %4027 = vrot.lane.b32.xlu1 %v11956_v16, %s9907_s25 }
 0x345   : > { %v9551_v41 = vpop.eup %9550  ;;  %v3646_v38 = vadd.f32 1.0, %v9549_v37  ;;  %9570 = vpow2.f32 %v7752_v58  ;;  %v7754_v40 = vmul.f32 -1.442695, %v11966_v0  ;;  %v9076_v56 = vadd.f32 %v3407_v52, %v11813_v60 }
 0x346   : > { %v9553_v6 = vpop.eup %9552  ;;  %9572 = vrcp.f32 %v3643_v53  ;;  %v11975_v37 = vadd.f32 %v9075_v9, %v11834_v59  ;;  %v3859_v58 = vrot.slane %v11959_v43, 1 }
 0x347   : > { %v9555_v39 = vpop.eup %9554  ;;  %9574 = vrcp.f32 %v3646_v38  ;;  %v3645_v14 = vadd.f32 1.0, %v9553_v6  ;;  %4021 = vrot.lane.b32.xlu0 %v11959_v43, %s9907_s25  ;;  %v8680_v29 = vpop.f32.mrb[38].mxu0  ;;  %v11981_v19 = vadd.f32 %v9076_v56, %v11834_v59 }
 0x348   : > { %v9557_v51 = vpop.eup %9556  ;;  %9576 = vpow2.f32 %v7755_v42  ;;  %v9077_v60 = vadd.f32 %v8680_v29, %v11815_v62  ;;  %v3417_v53 = vpop.f32.mrb[39].mxu0  ;;  %v7757_v38 = vmul.f32 -1.442695, %v11975_v37  ;;  %v3918_v9 = vsel %vm15039_vm11, %v3858_v61, %v3859_v58  ;;  %vm15052_vm11 = vmmov %vm15048_vm2 }
 0x349   : > { %v11984_v52 = vpop.eup %9558  ;;  %9578 = vrcp.f32 %v3645_v14  ;;  %v9078_v6 = vadd.f32 %v3417_v53, %v11817_v25  ;;  %v7756_v42 = vmul.f32 -1.442695, %v11981_v19  ;;  %v3922_v62 = vsel %vm15041_vm13, %v3918_v9, 0.0 }
 0x34a   : > { %v9561_v49 = vpop.eup %9560  ;;  %9580 = vpow2.f32 %v7754_v40  ;;  %v11992_v56 = vadd.f32 %v9077_v60, %v11834_v59  ;;  %4179 = vrot.lane.b32.xlu1 %v3922_v62, %s9908_s26  ;;  %v15042_v25 = vrot.slane %v11934_v31, 1  ;;  %v12013_v63 = vmul.f32 %v9555_v39, %v11865_v17 }
 0x34b   : > { %v9563_v29 = vpop.eup %9562  ;;  %v3648_v18 = vadd.f32 1.0, %v9561_v49  ;;  %9582 = vpow2.f32 %v7757_v38  ;;  %v11998_v14 = vadd.f32 %v9078_v6, %v11834_v59  ;;  %v8683_v40 = vpop.f32.mrb[40].mxu0 }
 0x34c   : > { %v3917_v61 = vsel %vm15043_vm9, %v3859_v58, %v15042_v25  ;;  %v12004_v53 = vpop.eup %9564  ;;  %v3647_v60 = vadd.f32 1.0, %v9563_v29  ;;  %9584 = vpow2.f32 %v7756_v42  ;;  %v7759_v9 = vmul.f32 -1.442695, %v11992_v56  ;;  %v3427_v38 = vpop.f32.mrb[41].mxu0  ;;  %vm15053_vm9 = vmmov %vm15048_vm2 }
 0x34d   : > { %4181 = vrot.lane.b32.xlu0 %v3917_v61, %s9908_s26  ;;  %v9079_v49 = vadd.f32 %v8683_v40, %v11819_v12  ;;  %v12009_v62 = vpop.eup %9566  ;;  %9586 = vrcp.f32 %v3648_v18  ;;  %v7758_v6 = vmul.f32 -1.442695, %v11998_v14  ;;  %v9080_v58 = vadd.f32 %v3427_v38, %v11821_v4 }
 0x34e   : > { %v9569_v25 = vpop.eup %9568  ;;  %9588 = vrcp.f32 %v3647_v60  ;;  %v12020_v29 = vmul.f32 %v9551_v41, %v11860_v5  ;;  %4031 = vrot.lane.b32.xlu1 %v12013_v63, %s9907_s25  ;;  %v3862_v41 = vrot.slane %v11956_v16, 1 }
 0x34f   : > { %v12017_v42 = vadd.f32 %v9079_v49, %v11834_v59  ;;  %v9571_v12 = vpop.eup %9570  ;;  %v3650_v61 = vadd.f32 1.0, %v9569_v25  ;;  %9590 = vpow2.f32 %v7759_v9  ;;  %v12025_v18 = vadd.f32 %v9080_v58, %v11834_v59  ;;  %v8686_v17 = vpop.f32.mrb[42].mxu0 }
 0x350   : > { %v12027_v39 = vpop.eup %9572  ;;  %v3649_v4 = vadd.f32 1.0, %v9571_v12  ;;  %9592 = vpow2.f32 %v7758_v6  ;;  %v3437_v5 = vpop.f32.mrb[43].mxu0  ;;  %v9081_v49 = vadd.f32 %v8686_v17, %v11823_v28  ;;  %v3861_v38 = vrot.slane %v12020_v29, 1 }
 0x351   : > { %v7761_v40 = vmul.f32 -1.442695, %v12017_v42  ;;  %4025 = vrot.lane.b32.xlu0 %v12020_v29, %s9907_s25  ;;  %v12033_v60 = vpop.eup %9574  ;;  %9594 = vrcp.f32 %v3650_v61  ;;  %v7760_v9 = vmul.f32 -1.442695, %v12025_v18  ;;  %v9082_v25 = vadd.f32 %v3437_v5, %v11825_v2 }
 0x352   : > { %v9577_v58 = vpop.eup %9576  ;;  %9596 = vrcp.f32 %v3649_v4  ;;  %v12041_v12 = vmul.f32 %v9557_v51, %v11868_v27  ;;  %v12046_v61 = vadd.f32 %v9081_v49, %v11834_v59  ;;  %v15044_v28 = vrot.slane %v11934_v31, 1  ;;  %v15046_v4 = vld [vmem:[#allocation13_spill] sm:$0xff] }
 0x353   : > { %v12043_v21 = vpop.eup %9578  ;;  %v3652_v3 = vadd.f32 1.0, %v9577_v58  ;;  %9598 = vpow2.f32 %v7761_v40  ;;  %v8689_v57 = vpop.f32.mrb[44].mxu0  ;;  %vm15047_vm12 = vnez %v15046_v4  ;;  %v12055_v27 = vadd.f32 %v9082_v25, %v11834_v59 }
 0x354   : > { %v3916_v17 = vsel %vm15045_vm4, %v15044_v28, %v3861_v38  ;;  %v9581_v6 = vpop.eup %9580  ;;  %9600 = vpow2.f32 %v7760_v9  ;;  %v3915_v51 = vsel %vm15048_vm2, %v3861_v38, %v3862_v41  ;;  %v3447_v40 = vpop.f32.mrb[45].mxu0  ;;  %v9083_v58 = vadd.f32 %v8689_v57, %v11827_v11  ;;  %vm15054_vm4 = vmmov %vm15048_vm2 }
 0x355   : > { %v3924_v2 = vsel %vm15047_vm12, %v3916_v17, 0.0  ;;  %v9583_v5 = vpop.eup %9582  ;;  %9602 = vrcp.f32 %v3652_v3  ;;  %v3651_v49 = vadd.f32 1.0, %v9581_v6  ;;  %4185 = vrot.lane.b32.xlu0 %v3915_v51, %s9908_s26  ;;  %v12064_v9 = vmul.f32 %v11984_v52, %v11875_v54 }
 0x356   : > { %4183 = vrot.lane.b32.xlu1 %v3924_v2, %s9908_s26  ;;  %v9585_v28 = vpop.eup %9584  ;;  %v3654_v25 = vadd.f32 1.0, %v9583_v5  ;;  %v7763_v17 = vmul.f32 -1.442695, %v12046_v61  ;;  %v7762_v38 = vmul.f32 -1.442695, %v12055_v27  ;;  %v9084_v4 = vadd.f32 %v3447_v40, %v11829_v44 }
 0x357   : > { %v12069_v3 = vpop.eup %9586  ;;  %9604 = vrcp.f32 %v3651_v49  ;;  %v3653_v6 = vadd.f32 1.0, %v9585_v28  ;;  %v12072_v2 = vadd.f32 %v9083_v58, %v11834_v59  ;;  %v8692_v57 = vpop.f32.mrb[46].mxu0  ;;  %v3863_v11 = vrot.slane %v12041_v12, 1 }
 0x358   : > { %v12075_v54 = vpop.eup %9588  ;;  %9606 = vrcp.f32 %v3654_v25  ;;  %v12078_v52 = vadd.f32 %v9084_v4, %v11834_v59  ;;  %v9085_v51 = vadd.f32 %v8692_v57, %v11842_v22  ;;  %v3457_v5 = vpop.f32.mrb[47].mxu0  ;;  %v3864_v44 = vrot.slane %v12013_v63, 1 }
 0x359   : > { %v9591_v40 = vpop.eup %9590  ;;  %9608 = vrcp.f32 %v3653_v6  ;;  %4029 = vrot.lane.b32.xlu0 %v12041_v12, %s9907_s25  ;;  %v3914_v58 = vsel %vm15049_vm5, %v3862_v41, %v3863_v11  ;;  %v9086_v4 = vadd.f32 %v3457_v5, %v11845_v33  ;;  %v7765_v25 = vmul.f32 -1.442695, %v12072_v2  ;;  %v15055_v33 = vld [vmem:[#allocation19_spill] sm:$0xff]  ;;  %vm15057_vm5 = vmmov %vm15054_vm4 }
 0x35a   : > { %4035 = vrot.lane.b32.xlu1 %v12064_v9, %s9907_s25  ;;  %v9593_v28 = vpop.eup %9592  ;;  %v3656_v22 = vadd.f32 1.0, %v9591_v40  ;;  %9610 = vpow2.f32 %v7763_v17  ;;  %v12092_v57 = vadd.f32 %v9085_v51, %v11834_v59  ;;  %v7764_v15 = vmul.f32 -1.442695, %v12078_v52  ;;  %v15050_v17 = vld [vmem:[#allocation16_spill] sm:$0xff] }
 0x35b   : > { %v12094_v6 = vpop.eup %9594  ;;  %v3655_v49 = vadd.f32 1.0, %v9593_v28  ;;  %9612 = vpow2.f32 %v7762_v38  ;;  %v12098_v26 = vadd.f32 %v9086_v4, %v11834_v59  ;;  %vm15051_vm0 = vnez %v15050_v17 }
 0x35c   : > { %v12100_v41 = vpop.eup %9596  ;;  %9614 = vrcp.f32 %v3656_v22  ;;  %v3926_v5 = vsel %vm15051_vm0, %v3914_v58, 0.0  ;;  %v3913_v51 = vsel %vm15052_vm11, %v3863_v11, %v3864_v44  ;;  %v12111_v59 = vmul.f32 %v12009_v62, %v11885_v24  ;;  %vm15058_vm11 = vmmov %vm15054_vm4 }
 0x35d   : > { %v9599_v40 = vpop.eup %9598  ;;  %9616 = vrcp.f32 %v3655_v49  ;;  %4189 = vrot.lane.b32.xlu0 %v3913_v51, %s9908_s26  ;;  %v12115_v38 = vmul.f32 %v12004_v53, %v11878_v46  ;;  %v3866_v4 = vrot.slane %v12064_v9, 1  ;;  %v7767_v49 = vmul.f32 -1.442695, %v12092_v57 }
 0x35e   : > { %4187 = vrot.lane.b32.xlu1 %v3926_v5, %s9908_s26  ;;  %v9601_v58 = vpop.eup %9600  ;;  %v3658_v11 = vadd.f32 1.0, %v9599_v40  ;;  %9618 = vpow2.f32 %v7765_v25  ;;  %v7766_v24 = vmul.f32 -1.442695, %v12098_v26  ;;  %v12127_v53 = vmul.f32 %v12033_v60, %v11895_v32 }
 0x35f   : > { %v12120_v22 = vpop.eup %9602  ;;  %v3657_v5 = vadd.f32 1.0, %v9601_v58  ;;  %9620 = vpow2.f32 %v7764_v15  ;;  %v3865_v62 = vrot.slane %v12115_v38, 1  ;;  %v12131_v25 = vmul.f32 %v12027_v39, %v11888_v13 }
 0x360   : > { %9622 = vrcp.f32 %v3658_v11  ;;  %v3868_v32 = vrot.slane %v12111_v59, 1  ;;  %vm15056_vm2 = vnez %v15055_v33  ;;  %v12155_v39 = vmul.f32 %v12069_v3, %v11905_v10 }
 0x361   : > { %v9605_v51 = vpop.eup %9604  ;;  %9624 = vrcp.f32 %v3657_v5  ;;  %4033 = vrot.lane.b32.xlu0 %v12115_v38, %s9907_s25  ;;  %v3912_v15 = vsel %vm15053_vm9, %v3864_v44, %v3865_v62  ;;  %v3911_v40 = vsel %vm15054_vm4, %v3865_v62, %v3866_v4  ;;  %v3867_v44 = vrot.slane %v12131_v25, 1  ;;  %vm15059_vm9 = vmmov %vm15054_vm4 }
 0x362   : > { %4039 = vrot.lane.b32.xlu1 %v12111_v59, %s9907_s25  ;;  %v9607_v60 = vpop.eup %9606  ;;  %9626 = vpow2.f32 %v7767_v49  ;;  %v12149_v62 = vmul.f32 %v9605_v51, %v11966_v0  ;;  %v3928_v13 = vsel %vm15056_vm2, %v3912_v15, 0.0  ;;  %v12159_v49 = vmul.f32 %v12043_v21, %v11898_v35  ;;  %vm15069_vm2 = vmmov %vm15054_vm4 }
 0x363   : > { %v9609_v11 = vpop.eup %9608  ;;  %9628 = vpow2.f32 %v7766_v24  ;;  %v3910_v0 = vsel %vm15057_vm5, %v3866_v4, %v3867_v44  ;;  %v3909_v51 = vsel %vm15058_vm11, %v3867_v44, %v3868_v32  ;;  %v3870_v15 = vrot.slane %v12127_v53, 1  ;;  %vm15062_vm11 = vmmov %vm15054_vm4 }
 0x364   : > { %v9611_v46 = vpop.eup %9610  ;;  %v12169_v3 = vmul.f32 %v9607_v60, %v11975_v37  ;;  %v3869_v44 = vrot.slane %v12159_v49, 1  ;;  %v12182_v60 = vmul.f32 %v12075_v54, %v11917_v50  ;;  %v15060_v50 = vld [vmem:[#allocation20_spill] sm:$0xff]  ;;  %v15082_v33 = vrot.slane %v11956_v16, 7 }
 0x365   : > { %v9613_v24 = vpop.eup %9612  ;;  %v3660_v58 = vadd.f32 1.0, %v9611_v46  ;;  %4193 = vrot.lane.b32.xlu0 %v3911_v40, %s9908_s26  ;;  %v12174_v40 = vmul.f32 %v9609_v11, %v11981_v19  ;;  %v3872_v11 = vrot.slane %v12155_v39, 1  ;;  %vm15061_vm5 = vnez %v15060_v50 }
 0x366   : > { %4191 = vrot.lane.b32.xlu1 %v3928_v13, %s9908_s26  ;;  %v9615_v10 = vpop.eup %9614  ;;  %v3659_v21 = vadd.f32 1.0, %v9613_v24  ;;  %v3908_v19 = vsel %vm15059_vm9, %v3868_v32, %v3869_v44  ;;  %v12203_v32 = vmul.f32 %v12094_v6, %v11931_v55  ;;  %vm15063_vm9 = vmmov %vm15054_vm4  ;;  %v15080_v50 = vrot.slane %v11934_v31, 7 }
 0x367   : > { %v9617_v13 = vpop.eup %9616  ;;  %9630 = vrcp.f32 %v3660_v58  ;;  %v3907_v58 = vsel %vm15054_vm4, %v3869_v44, %v3870_v15  ;;  %v12195_v54 = vmul.f32 %v9615_v10, %v11992_v56  ;;  %v3871_v44 = vrot.slane %v12182_v60, 1 }
 0x368   : > { %v9619_v28 = vpop.eup %9618  ;;  %9632 = vrcp.f32 %v3659_v21  ;;  %v3930_v56 = vsel %vm15061_vm5, %v3910_v0, 0.0  ;;  %v12214_v10 = vmul.f32 %v12100_v41, %v11937_v34  ;;  %vm15067_vm5 = vmmov %vm15054_vm4  ;;  %v15083_v17 = vrot.slane %v12020_v29, 7 }
 0x369   : > { %v9621_v24 = vpop.eup %9620  ;;  %v3662_v46 = vadd.f32 1.0, %v9619_v28  ;;  %4037 = vrot.lane.b32.xlu0 %v12131_v25, %s9907_s25  ;;  %v12198_v28 = vmul.f32 %v9617_v13, %v11998_v14  ;;  %v12210_v14 = vmul.f32 %v12120_v22, %v11947_v8  ;;  %v12221_v6 = vsel %vm15062_vm11, %v3870_v15, %v3871_v44  ;;  %vm15064_vm11 = vmmov %vm15054_vm4 }
 0x36a   : > { %4043 = vrot.lane.b32.xlu1 %v12127_v53, %s9907_s25  ;;  %v9623_v21 = vpop.eup %9622  ;;  %v3661_v5 = vadd.f32 1.0, %v9621_v24  ;;  %v12225_v8 = vsel %vm15063_vm9, %v3871_v44, %v3872_v11  ;;  %v3874_v15 = vrot.slane %v12203_v32, 1  ;;  %v3877_v44 = vrot.slane %v12174_v40, 1 }
 0x36b   : > { %v9625_v37 = vpop.eup %9624  ;;  %9634 = vrcp.f32 %v3662_v46  ;;  %v12230_v41 = vmul.f32 %v9623_v21, %v12017_v42  ;;  %v3876_v24 = vrot.slane %v12210_v14, 1  ;;  %v3879_v21 = vrot.slane %v12198_v28, 1 }
 0x36c   : > { %v9627_v35 = vpop.eup %9626  ;;  %9636 = vrcp.f32 %v3661_v5  ;;  %v12233_v0 = vmul.f32 %v9625_v37, %v12025_v18  ;;  %v3878_v37 = vrot.slane %v12169_v3, 1 }
 0x36d   : > { %v9629_v46 = vpop.eup %9628  ;;  %v3664_v13 = vadd.f32 1.0, %v9627_v35  ;;  %4197 = vrot.lane.b32.xlu0 %v3909_v51, %s9908_s26  ;;  %v3873_v51 = vrot.slane %v12214_v10, 1  ;;  %v3875_v35 = vrot.slane %v12149_v62, 1 }
 0x36e   : > { %4195 = vrot.lane.b32.xlu1 %v3930_v56, %s9908_s26  ;;  %v3663_v5 = vadd.f32 1.0, %v9629_v46 }
 0x36f   : > { %9638 = vrcp.f32 %v3664_v13  ;;  %v12246_v42 = vsel %vm15054_vm4, %v3872_v11, %v3873_v51  ;;  %v12250_v18 = vsel %vm15064_vm11, %v3873_v51, %v3874_v15  ;;  %v12261_v22 = vsel %vm15067_vm5, %v3874_v15, %v3875_v35  ;;  %vm15068_vm11 = vmmov %vm15054_vm4 }
 0x370   : > { %9640 = vrcp.f32 %v3663_v5  ;;  %v15065_v5 = vld [vmem:[#allocation22_spill] sm:$0xff]  ;;  %v12265_v11 = vsel %vm15054_vm4, %v3875_v35, %v3876_v24  ;;  %vm15070_vm5 = vmmov %vm15069_vm2  ;;  %v3882_v15 = vrot.slane %v12230_v41, 1 }
 0x371   : > { %v9631_v56 = vpop.eup %9630  ;;  %4041 = vrot.lane.b32.xlu0 %v12159_v49, %s9907_s25  ;;  %vm15066_vm9 = vnez %v15065_v5  ;;  %v12283_v35 = vsel %vm15070_vm5, %v3878_v37, %v3879_v21  ;;  %vm15071_vm4 = vmmov %vm15069_vm2  ;;  %vm15075_vm5 = vcmp.lt.s32.totalorder %v10162_v23, 1  ;;  %v15081_v5 = vrot.slane %v11959_v43, 7  ;;  %v15092_v43 = vld [vmem:[#allocation21_spill] sm:$0xff] }
 0x372   : > { %4047 = vrot.lane.b32.xlu1 %v12155_v39, %s9907_s25  ;;  %v9633_v46 = vpop.eup %9632  ;;  %v12255_v13 = vmul.f32 %v9631_v56, %v12046_v61  ;;  %v3932_v34 = vsel %vm15066_vm9, %v3908_v19, 0.0  ;;  %v12273_v61 = vsel %vm15068_vm11, %v3876_v24, %v3877_v44  ;;  %v12277_v19 = vsel %vm15069_vm2, %v3877_v44, %v3878_v37  ;;  %vm15072_vm11 = vmmov %vm15069_vm2 }
 0x373   : > { %v12268_v51 = vmul.f32 %v9633_v46, %v12055_v27  ;;  %v3880_v27 = vrot.slane %v12195_v54, 1  ;;  %v3934_v24 = vsel %vm10711_vm10, %v12221_v6, 0.0  ;;  %v3881_v44 = vrot.slane %v12233_v0, 1 }
 0x374   : > { %vm15090_vm10 = vcmask 64512   ;;  %vm15093_vm9 = vnez %v15092_v43 }
 0x375   : > { %v9635_v46 = vpop.eup %9634  ;;  %4201 = vrot.lane.b32.xlu0 %v3907_v58, %s9908_s26  ;;  %v12299_v55 = vsel %vm15069_vm2, %v3879_v21, %v3880_v27  ;;  %v3884_v58 = vrot.slane %v12255_v13, 1  ;;  %v12308_v6 = vsel %vm15071_vm4, %v3880_v27, %v3881_v44  ;;  %v12312_v36 = vsel %vm15072_vm11, %v3881_v44, %v3882_v15  ;;  %vm15077_vm4 = vmmov %vm15069_vm2 }
 0x376   : > { %4199 = vrot.lane.b32.xlu1 %v3932_v34, %s9908_s26  ;;  %v9637_v56 = vpop.eup %9636  ;;  %v12295_v37 = vmul.f32 %v9635_v46, %v12072_v2  ;;  %v3883_v34 = vrot.slane %v12268_v51, 1  ;;  %v15073_v2 = vrot.slane %v11908_v1, 7  ;;  %v15074_v21 = vrot.slane %v11920_v48, 7 }
 0x377   : > { %v12304_v4 = vmul.f32 %v9637_v56, %v12078_v52  ;;  %vm15079_vm11 = vcmask 64512   ;;  %v3821_v52 = vsel %vm15075_vm5, %v15081_v5, %v15080_v50 }
 0x378   : > { %v3823_v46 = vsel %vm15075_vm5, %v15074_v21, %v15073_v2  ;;  %v12324_v56 = vsel %vm15069_vm2, %v3882_v15, %v3883_v34  ;;  %v12328_v27 = vsel %vm15077_vm4, %v3883_v34, %v3884_v58  ;;  %v3886_v34 = vrot.slane %v12295_v37, 1  ;;  %vm15084_vm2 = vmmov %vm15075_vm5  ;;  %3956 = vst.msk [vmem:[#allocation2 + $0x28] sm:$0xff] %vm15090_vm10, %v3821_v52 }
 0x379   : > { %15076 = vst [vmem:[#allocation32_spill] sm:$0xff] %v12324_v56  ;;  %15078 = vst [vmem:[#allocation33_spill] sm:$0xff] %v12328_v27  ;;  %v9639_v44 = vpop.eup %9638  ;;  %4045 = vrot.lane.b32.xlu0 %v12182_v60, %s9907_s25  ;;  %v3885_v2 = vrot.slane %v12304_v4, 1  ;;  %v3819_v15 = vsel %vm15084_vm2, %v15083_v17, %v15082_v33  ;;  %v15085_v27 = vmov %v15081_v5  ;;  %v15086_v56 = vrot.slane %v11908_v1, 7 }
 0x37a   : > { %3954 = vst.msk [vmem:[#allocation2 + $0x18] sm:$0xff] %vm15079_vm11, %v3823_v46  ;;  %4051 = vrot.lane.b32.xlu1 %v12203_v32, %s9907_s25  ;;  %v9641_v21 = vpop.eup %9640  ;;  %v12342_v46 = vmul.f32 %v9639_v44, %v12092_v57  ;;  %vm15087_vm4 = vmmov %vm15084_vm2  ;;  %vm15088_vm11 = vcmp.lt.s32.totalorder %v10162_v23, 7  ;;  %v3787_v33 = vrot.slane %v12268_v51, 7 }
 0x37b   : > { %v3822_v57 = vsel %vm15087_vm4, %v15086_v56, %v15085_v27  ;;  %v12363_v44 = vmul.f32 %v9641_v21, %v12098_v26  ;;  %v12367_v50 = vsel %vm15088_vm11, %v3884_v58, %v3885_v2  ;;  %vm15089_vm5 = vmmov %vm15088_vm11  ;;  %v15095_v58 = vrot.slane %v12013_v63, 7 }
 0x37c   : > { %v12371_v5 = vsel %vm15089_vm5, %v3885_v2, %v3886_v34  ;;  %vm15091_vm2 = vmmov %vm15090_vm10  ;;  %v3827_v1 = vsel %vm15093_vm9, %v3822_v57, 0.0  ;;  %v3792_v26 = vrot.slane %v12342_v46, 7  ;;  %v3888_v17 = vrot.slane %v12342_v46, 1 }
 0x37d   : > { %3958 = vst.msk [vmem:[#allocation2 + $0x38] sm:$0xff] %vm15091_vm2, %v3819_v15  ;;  %vm15094_vm4 = vmmov %vm15091_vm2  ;;  %v15096_v56 = vrot.slane %v12041_v12, 7  ;;  %vm15097_vm11 = vcmp.lt.s32.totalorder %v10162_v23, 1  ;;  %v3790_v27 = vrot.slane %v12295_v37, 7  ;;  %4205 = vrot.lane.b32.xlu0 %v12225_v8, %s9908_s26  ;;  %v3887_v15 = vrot.slane %v12363_v44, 1 }
 0x37e   : > { %3955 = vst.msk [vmem:[#allocation2 + $0x20] sm:$0xff] %vm15094_vm4, %v3827_v1  ;;  %4203 = vrot.lane.b32.xlu1 %v3934_v24, %s9908_s26  ;;  %vm15098_vm10 = vmmov %vm15091_vm2  ;;  %v15099_v2 = vrot.slane %v12020_v29, 7  ;;  %v15100_v21 = vrot.slane %v11934_v31, 7  ;;  %v15102_v1 = vrot.slane %v12064_v9, 7  ;;  %v15105_v8 = vrot.slane %v11920_v48, 7 }
 0x37f   : > { %v3817_v52 = vsel %vm15097_vm11, %v15096_v56, %v15095_v58  ;;  %vm15101_vm5 = vmmov %vm15097_vm11  ;;  %v15103_v58 = vrot.slane %v12115_v38, 7  ;;  %v15107_v29 = vrot.slane %v11920_v48, 1  ;;  %vm15108_vm11 = vcmp.lt.s32.totalorder %v10162_v23, 7 }
 0x380   : > { %3960 = vst.msk [vmem:[#allocation2 + $0x48] sm:$0xff] %vm15098_vm10, %v3817_v52  ;;  %v3820_v57 = vsel %vm15101_vm5, %v15100_v21, %v15099_v2  ;;  %vm15104_vm2 = vmmov %vm15101_vm5  ;;  %v15109_v52 = vld [vmem:[#allocation24_spill] sm:$0xff]  ;;  %vm15111_vm5 = vcmask 64512   ;;  %v15112_v21 = vrot.slane %v12041_v12, 7 }
 0x381   : > { %v3815_v24 = vsel %vm15104_vm2, %v15103_v58, %v15102_v1  ;;  %vm15106_vm4 = vmmov %vm15104_vm2  ;;  %v12415_v31 = vsel %vm15108_vm11, %v3888_v17, %v15107_v29  ;;  %vm15110_vm10 = vnez %v15109_v52  ;;  %v15113_v1 = vrot.slane %v11956_v16, 7  ;;  %4049 = vrot.lane.b32.xlu0 %v12214_v10, %s9907_s25 }
 0x382   : > { %v3824_v56 = vsel %vm15106_vm4, %v3792_v26, %v15105_v8  ;;  %v3829_v2 = vsel %vm15110_vm10, %v3820_v57, 0.0  ;;  %3962 = vst.msk [vmem:[#allocation2 + $0x58] sm:$0xff] %vm15111_vm5, %v3815_v24  ;;  %v3789_v8 = vrot.slane %v12304_v4, 7  ;;  %vm15114_vm4 = vnez %v14694_v30  ;;  %vm15115_vm10 = vmmov %vm15108_vm11  ;;  %4055 = vrot.lane.b32.xlu1 %v12210_v14, %s9907_s25 }
 0x383   : > { %v3818_v58 = vsel %vm15104_vm2, %v15113_v1, %v15112_v21  ;;  %v3825_v48 = vsel %vm15114_vm4, %v3824_v56, 0.0  ;;  %v12431_v29 = vsel %vm15108_vm11, %v3886_v34, %v3887_v15  ;;  %v12435_v57 = vsel %vm15115_vm10, %v3887_v15, %v3888_v17  ;;  %3957 = vst.msk [vmem:[#allocation2 + $0x30] sm:$0xff] %vm15111_vm5, %v3829_v2  ;;  %vm15116_vm9 = vmmov %vm15111_vm5 }
 0x384   : > { %v3791_v16 = vrot.slane %v12363_v44, 7  ;;  %3953 = vst.msk [vmem:[#allocation2 + $0x10] sm:$0xff] %vm15116_vm9, %v3825_v48  ;;  %vm15117_vm2 = vnez %v14691_v47  ;;  %v15118_v24 = vrot.slane %v12111_v59, 7  ;;  %v15119_v56 = vrot.slane %v12131_v25, 7  ;;  %vm15124_vm9 = vmmov %vm15111_vm5  ;;  %v7769_v25 = vld [vmem:[%s14501_s5 + $0x50] sm:$0xff] }
 0x385   : > { %v3831_v12 = vsel %vm15117_vm2, %v3818_v58, 0.0  ;;  %vm15120_vm11 = vcmp.lt.s32.totalorder %v10162_v23, 1  ;;  %v15121_v21 = vrot.slane %v12115_v38, 7  ;;  %v15122_v17 = vrot.slane %v12013_v63, 7  ;;  %4209 = vrot.lane.b32.xlu0 %v12250_v18, %s9908_s26 }
 0x386   : > { %v3813_v34 = vsel %vm15120_vm11, %v15119_v56, %v15118_v24  ;;  %vm15123_vm10 = vmmov %vm15120_vm11  ;;  %3959 = vst.msk [vmem:[#allocation2 + $0x40] sm:$0xff] %vm15124_vm9, %v3831_v12  ;;  %v15125_v38 = vrot.slane %v12127_v53, 7  ;;  %v15126_v63 = vrot.slane %v12159_v49, 7  ;;  %v15128_v58 = vmov %v15119_v56 }
 0x387   : > { %v3816_v15 = vsel %vm15123_vm10, %v15122_v17, %v15121_v21  ;;  %3964 = vst.msk [vmem:[#allocation2 + $0x68] sm:$0xff] %vm15111_vm5, %v3813_v34  ;;  %vm15127_vm11 = vmmov %vm15123_vm10  ;;  %v15129_v48 = vrot.slane %v12064_v9, 7  ;;  %v15130_v12 = vrot.slane %v12155_v39, 7  ;;  %v15131_v56 = vrot.slane %v12182_v60, 7  ;;  %v7768_v21 = vld [vmem:[%s14501_s5 + $0x48] sm:$0xff] }
 0x388   : > { %v3833_v2 = vsel %vm10820_vm14, %v3816_v15, 0.0  ;;  %v3811_v1 = vsel %vm15127_vm11, %v15126_v63, %v15125_v38  ;;  %vm15132_vm9 = vmmov %vm15123_vm10  ;;  %v15135_v17 = vmov %v15126_v63  ;;  %v15136_v15 = vrot.slane %v12111_v59, 7 }
 0x389   : > { %v3814_v24 = vsel %vm15123_vm10, %v15129_v48, %v15128_v58  ;;  %v3809_v34 = vsel %vm15132_vm9, %v15131_v56, %v15130_v12  ;;  %3961 = vst.msk [vmem:[#allocation2 + $0x50] sm:$0xff] %vm15111_vm5, %v3833_v2  ;;  %vm15133_vm11 = vmmov %vm15111_vm5  ;;  %v15137_v63 = vrot.slane %v12203_v32, 7  ;;  %v15138_v58 = vrot.slane %v12214_v10, 7  ;;  %4053 = vrot.lane.b32.xlu0 %v12149_v62, %s9907_s25 }
 0x38a   : > { %3966 = vst.msk [vmem:[#allocation2 + $0x78] sm:$0xff] %vm15133_vm11, %v3811_v1  ;;  %v3835_v9 = vsel %vm10840_vm15, %v3814_v24, 0.0  ;;  %vm15134_vm10 = vmmov %vm15111_vm5  ;;  %v3812_v38 = vsel %vm15132_vm9, %v15136_v15, %v15135_v17  ;;  %v15140_v1 = vmov %v15131_v56  ;;  %v15141_v48 = vrot.slane %v12127_v53, 7 }
 0x38b   : > { %3968 = vst.msk [vmem:[#allocation2 + $0x88] sm:$0xff] %vm15134_vm10, %v3809_v34  ;;  %vm15139_vm5 = vmmov %vm15132_vm9  ;;  %v3837_v49 = vsel %vm10862_vm7, %v3812_v38, 0.0  ;;  %v15146_v34 = vrot.slane %v12210_v14, 7  ;;  %v15147_v17 = vrot.slane %v12149_v62, 7  ;;  %v15148_v60 = vmov %v15138_v58  ;;  %v15203_v62 = vld [vmem:[#allocation12_spill] sm:$0xff] }
 0x38c   : > { %v3807_v2 = vsel %vm15139_vm5, %v15138_v58, %v15137_v63  ;;  %vm15142_vm11 = vmmov %vm15139_vm5  ;;  %3963 = vst.msk [vmem:[#allocation2 + $0x60] sm:$0xff] %vm15134_vm10, %v3835_v9  ;;  %v15149_v15 = vrot.slane %v12155_v39, 7  ;;  %v15154_v58 = vrot.slane %v12169_v3, 7 }
 0x38d   : > { %v3810_v24 = vsel %vm15142_vm11, %v15141_v48, %v15140_v1  ;;  %vm15144_vm9 = vmmov %vm15134_vm10  ;;  %v3805_v53 = vsel %vm15139_vm5, %v15147_v17, %v15146_v34  ;;  %v15156_v39 = vmov %v15147_v17  ;;  %v15157_v1 = vrot.slane %v12203_v32, 7  ;;  %4213 = vrot.lane.b32.xlu0 %v12265_v11, %s9908_s26 }
 0x38e   : > { %3970 = vst.msk [vmem:[#allocation2 + $0x98] sm:$0xff] %vm15144_vm9, %v3807_v2  ;;  %v3839_v56 = vsel %vm10868_vm8, %v3810_v24, 0.0  ;;  %vm15150_vm11 = vmmov %vm15139_vm5  ;;  %v15155_v2 = vrot.slane %v12174_v40, 7  ;;  %v12544_v24 = vpack.c.bf16 %v7769_v25, %v7768_v21  ;;  %v15162_v34 = vrot.slane %v12195_v54, 7 }
 0x38f   : > { %v3808_v9 = vsel %vm15150_vm11, %v15149_v15, %v15148_v60  ;;  %vm15151_vm10 = vmmov %vm15144_vm9  ;;  %3967 = vst.msk [vmem:[#allocation2 + $0x80] sm:$0xff] %vm15144_vm9, %v3839_v56  ;;  %v15163_v21 = vrot.slane %v12198_v28, 7  ;;  %v15166_v17 = vrot.slane %v12210_v14, 7  ;;  %v15168_v60 = vrot.slane %v12233_v0, 7 }
 0x390   : > { %3965 = vst.msk [vmem:[#allocation2 + $0x70] sm:$0xff] %vm15151_vm10, %v3837_v49  ;;  %vm15152_vm4 = vmmov %vm15144_vm9  ;;  %v3841_v63 = vsel %vm10897_vm1, %v3808_v9, 0.0  ;;  %v3803_v10 = vsel %vm15139_vm5, %v15155_v2, %v15154_v58  ;;  %v15159_v49 = vsel %vm11000_vm3, %v12246_v42, 0.0  ;;  %v15165_v42 = vmov %v15155_v2  ;;  %9034 = vmatprep.subr.bf16.mxu1 %v12544_v24  ;;  %v15171_v9 = vld [vmem:[#allocation7_spill] sm:$0xff] }
 0x391   : > { %3972 = vst.msk [vmem:[#allocation2 + $0xa8] sm:$0xff] %vm15152_vm4, %v3805_v53  ;;  %vm15158_vm11 = vmmov %vm15139_vm5  ;;  %4207 = vrot.lane.b32.xlu1 %v15159_v49, %s9908_s26  ;;  %v3804_v18 = vsel %vm15139_vm5, %v15166_v17, %v15165_v42  ;;  %v15167_v53 = vrot.slane %v12230_v41, 7  ;;  %v15174_v14 = vmov %v15163_v21  ;;  %4057 = vrot.lane.b32.xlu0 %v12174_v40, %s9907_s25  ;;  %v15207_v40 = vld [vmem:[#allocation25_spill] sm:$0xff] }
 0x392   : > { %v3806_v48 = vsel %vm15158_vm11, %v15157_v1, %v15156_v39  ;;  %3969 = vst.msk [vmem:[#allocation2 + $0x90] sm:$0xff] %vm15152_vm4, %v3841_v63  ;;  %vm15160_vm10 = vmmov %vm15152_vm4  ;;  %v3802_v2 = vsel %vm15139_vm5, %v15154_v58, %v15174_v14  ;;  %v15177_v1 = vmov %v15168_v60  ;;  %v15197_v58 = vld [vmem:[#allocation17_spill] sm:$0xff] }
 0x393   : > { %3974 = vst.msk [vmem:[#allocation2 + $0xb8] sm:$0xff] %vm15160_vm10, %v3803_v10  ;;  %v3843_v32 = vsel %vm10914_vm6, %v3806_v48, 0.0  ;;  %vm15164_vm9 = vmmov %vm15139_vm5  ;;  %v15175_v10 = vrot.slane %v12255_v13, 7  ;;  %v15178_v48 = vmov %v15162_v34  ;;  %v15186_v17 = vmov %v15167_v53 }
 0x394   : > { %v3801_v25 = vsel %vm15164_vm9, %v15163_v21, %v15162_v34  ;;  %vm15169_vm11 = vmmov %vm15139_vm5  ;;  %3971 = vst.msk [vmem:[#allocation2 + $0xa0] sm:$0xff] %vm15152_vm4, %v3843_v32  ;;  %vm15172_vm9 = vnez %v15171_v9  ;;  %v15180_v32 = vld [vmem:[#allocation8_spill] sm:$0xff]  ;;  %v15183_v21 = vld [vmem:[#allocation14_spill] sm:$0xff] }
 0x395   : > { %v3799_v15 = vsel %vm15169_vm11, %v15168_v60, %v15167_v53  ;;  %vm15170_vm10 = vmmov %vm15152_vm4  ;;  %v3845_v63 = vsel %vm15172_vm9, %v3804_v18, 0.0  ;;  %vm15184_vm9 = vnez %v15183_v21  ;;  %v15189_v53 = vld [vmem:[#allocation9_spill] sm:$0xff]  ;;  %4059 = vrot.lane.b32.xlu1 %v12169_v3, %s9907_s25  ;;  %4217 = vrot.lane.b32.xlu0 %v12277_v19, %s9908_s26 }
 0x396   : > { %3976 = vst.msk [vmem:[#allocation2 + $0xc8] sm:$0xff] %vm15170_vm10, %v3801_v25  ;;  %vm15173_vm3 = vmmov %vm15152_vm4  ;;  %vm15181_vm10 = vnez %v15180_v32 }
 0x397   : > { %3978 = vst.msk [vmem:[#allocation2 + $0xd8] sm:$0xff] %vm15173_vm3, %v3799_v15  ;;  %vm15176_vm11 = vmmov %vm15139_vm5  ;;  %v3847_v34 = vsel %vm15181_vm10, %v3802_v2, 0.0 }
 0x398   : > { %v3797_v39 = vsel %vm15176_vm11, %v3787_v33, %v15175_v10  ;;  %vm15179_vm3 = vmmov %vm15139_vm5  ;;  %3973 = vst.msk [vmem:[#allocation2 + $0xb0] sm:$0xff] %vm15152_vm4, %v3845_v63 }
 0x399   : > { %v3800_v49 = vsel %vm15179_vm3, %v15178_v48, %v15177_v1  ;;  %vm15182_vm5 = vmmov %vm15152_vm4  ;;  %v3798_v18 = vsel %vm15179_vm3, %v15186_v17, %v3787_v33  ;;  %3975 = vst.msk [vmem:[#allocation2 + $0xc0] sm:$0xff] %vm15152_vm4, %v3847_v34  ;;  %v15192_v33 = vmov %v15175_v10  ;;  %4061 = vrot.lane.b32.xlu0 %v12198_v28, %s9907_s25  ;;  %v15209_v28 = vld [vmem:[#allocation32_spill] sm:$0xff]  ;;  %v7838_v48 = vld [vmem:[%s14501_s5 + $0x78] sm:$0xff] }
 0x39a   : > { %3980 = vst.msk [vmem:[#allocation2 + $0xe8] sm:$0xff] %vm15182_vm5, %v3797_v39  ;;  %v3849_v25 = vsel %vm15184_vm9, %v3800_v49, 0.0  ;;  %vm15185_vm11 = vmmov %vm15179_vm3  ;;  %vm15190_vm9 = vnez %v15189_v53  ;;  %v3796_v63 = vsel %vm15179_vm3, %v15192_v33, %v3789_v8  ;;  %v7839_v49 = vld [vmem:[%s14501_s5 + $0x80] sm:$0xff] }
 0x39b   : > { %v3795_v42 = vsel %vm15185_vm11, %v3789_v8, %v3790_v27  ;;  %vm15187_vm5 = vmmov %vm15152_vm4  ;;  %v3851_v60 = vsel %vm15190_vm9, %v3798_v18, 0.0  ;;  %v12754_v17 = vpack.c.bf16 %v7839_v49, %v7838_v48 }
 0x39c   : > { %3977 = vst.msk [vmem:[#allocation2 + $0xd0] sm:$0xff] %vm15187_vm5, %v3849_v25  ;;  %vm15188_vm10 = vmmov %vm15152_vm4 }
 0x39d   : > { %3982 = vst.msk [vmem:[#allocation2 + $0xf8] sm:$0xff] %vm15188_vm10, %v3795_v42  ;;  %vm15191_vm11 = vmmov %vm15179_vm3  ;;  %4221 = vrot.lane.b32.xlu0 %v12299_v55, %s9908_s26  ;;  %v15210_v55 = vld [vmem:[#allocation18_spill] sm:$0xff] }
 0x39e   : > { %v3793_v15 = vsel %vm15191_vm11, %v3791_v16, %v3792_v26  ;;  %vm15193_vm10 = vmmov %vm15179_vm3  ;;  %3979 = vst.msk [vmem:[#allocation2 + $0xe0] sm:$0xff] %vm15152_vm4, %v3851_v60  ;;  %v15195_v26 = vld [vmem:[#allocation3_spill] sm:$0xff]  ;;  %vm15198_vm3 = vnez %v15197_v58 }
 0x39f   : > { %v3794_v14 = vsel %vm15193_vm10, %v3790_v27, %v3791_v16  ;;  %vm15194_vm5 = vmmov %vm15152_vm4  ;;  %vm15196_vm11 = vnez %v15195_v26  ;;  %v15201_v27 = vld [vmem:[#allocation10_spill] sm:$0xff] }
 0x3a0   : > { %3984 = vst.msk [vmem:[#allocation2 + $0x108] sm:$0xff] %vm15194_vm5, %v3793_v15  ;;  %v3853_v8 = vsel %vm15196_vm11, %v3796_v63, 0.0  ;;  %v3855_v2 = vsel %vm15198_vm3, %v3794_v14, 0.0  ;;  %vm15199_vm9 = vmmov %vm15152_vm4  ;;  %vm15202_vm10 = vnez %v15201_v27  ;;  %vm15211_vm5 = vnez %v15210_v55 }
 0x3a1   : > { %3981 = vst.msk [vmem:[#allocation2 + $0xf0] sm:$0xff] %vm15199_vm9, %v3853_v8  ;;  %vm15200_vm6 = vmmov %vm15152_vm4  ;;  %v3938_v3 = vsel %vm15202_vm10, %v12261_v22, 0.0  ;;  %vm15204_vm9 = vnez %v15203_v62  ;;  %4065 = vrot.lane.b32.xlu0 %v12233_v0, %s9907_s25  ;;  %vm15208_vm4 = vnez %v15207_v40  ;;  %v15212_v0 = vld [vmem:[#allocation33_spill] sm:$0xff] }
 0x3a2   : > { %3983 = vst.msk [vmem:[#allocation2 + $0x100] sm:$0xff] %vm15200_vm6, %v3855_v2  ;;  %4211 = vrot.lane.b32.xlu1 %v3938_v3, %s9908_s26  ;;  %v3940_v16 = vsel %vm15204_vm9, %v12273_v61, 0.0 }
 0x3a5   : > { %4225 = vrot.lane.b32.xlu0 %v12312_v36, %s9908_s26 }
 0x3a6   : > { %4063 = vrot.lane.b32.xlu1 %v12195_v54, %s9907_s25  ;;  %v15205_v54 = vld [vmem:[#allocation4_spill] sm:$0xff] }
 0x3a7   : > { %vm15206_vm6 = vnez %v15205_v54 }
 0x3a8   : > { %v3942_v22 = vsel %vm15206_vm6, %v12283_v35, 0.0 }
 0x3a9   : > { %4069 = vrot.lane.b32.xlu0 %v12268_v51, %s9907_s25  ;;  %v15216_v51 = vld [vmem:[#allocation29_spill] sm:$0xff] }
 0x3aa   : > { %4215 = vrot.lane.b32.xlu1 %v3940_v16, %s9908_s26 }
 0x3ad   : > { %4229 = vrot.lane.b32.xlu0 %v15212_v0, %s9908_s26 }
 0x3ae   : > { %4067 = vrot.lane.b32.xlu1 %v12230_v41, %s9907_s25  ;;  %v3944_v41 = vsel %vm15208_vm4, %v12308_v6, 0.0  ;;  %v4020_v11 = vpop.permute.xlu1 %4019  ;;  %vm15213_vm4 = vcmask 130112   ;;  %v15219_v6 = vld [vmem:[#allocation30_spill] sm:$0xff] }
 0x3af   : > { %4114 = vst.msk [vmem:[#allocation2 + $0x18] sm:$0xff] %vm15213_vm4, %v4020_v11  ;;  %v4018_v61 = vpop.permute.xlu0 %4017  ;;  %vm15214_vm6 = vmmov %vm15213_vm4 }
 0x3b0   : > { %4113 = vst.msk [vmem:[#allocation2 + $0x10] sm:$0xff] %vm15214_vm6, %v4018_v61  ;;  %vm15215_vm9 = vmmov %vm15213_vm4  ;;  %vm15218_vm6 = vcmask 195712   ;;  %vm15220_vm4 = vnez %v15219_v6 }
 0x3b1   : > { %4073 = vrot.lane.b32.xlu0 %v12304_v4, %s9907_s25  ;;  %v3950_v4 = vsel %vm15220_vm4, %v12431_v29, 0.0  ;;  %vm15221_vm10 = vmmov %vm15215_vm9 }
 0x3b2   : > { %4219 = vrot.lane.b32.xlu1 %v3942_v22, %s9908_s26  ;;  %v4024_v36 = vpop.permute.xlu1 %4023 }
 0x3b3   : > { %4116 = vst.msk [vmem:[#allocation2 + $0x28] sm:$0xff] %vm15215_vm9, %v4024_v36 }
 0x3b5   : > { %4233 = vrot.lane.b32.xlu0 %v12371_v5, %s9908_s26  ;;  %v4178_v35 = vpop.permute.xlu0 %4177 }
 0x3b6   : > { %4071 = vrot.lane.b32.xlu1 %v12255_v13, %s9907_s25  ;;  %v3946_v13 = vsel %vm15211_vm5, %v15209_v28, 0.0  ;;  %vm15217_vm5 = vnez %v15216_v51  ;;  %4273 = vst.msk [vmem:[#allocation2 + $0x10] sm:$0xff] %vm15218_vm6, %v4178_v35 }
 0x3b7   : > { %v3948_v19 = vsel %vm15217_vm5, %v12367_v50, 0.0  ;;  %v15222_v50 = vld [vmem:[#allocation31_spill] sm:$0xff] }
 0x3b8   : > { %vm15223_vm5 = vnez %v15222_v50 }
 0x3b9   : > { %4077 = vrot.lane.b32.xlu0 %v12363_v44, %s9907_s25  ;;  %v3952_v5 = vsel %vm15223_vm5, %v12415_v31, 0.0  ;;  %vm15227_vm5 = vmmov %vm15215_vm9 }
 0x3ba   : > { %4223 = vrot.lane.b32.xlu1 %v3944_v41, %s9908_s26 }
 0x3bd   : > { %4237 = vrot.lane.b32.xlu0 %v12435_v57, %s9908_s26  ;;  %v12726_v10 = vld [vmem:[#allocation2 + $0x10] sm:$0xff]  ;;  %v7770_v57 = vld [vmem:[%s14501_s5 + $0x58] sm:$0xff] }
 0x3be   : > { %4075 = vrot.lane.b32.xlu1 %v12295_v37, %s9907_s25  ;;  %v4028_v37 = vpop.permute.xlu1 %4027 }
 0x3bf   : > { %4118 = vst.msk [vmem:[#allocation2 + $0x38] sm:$0xff] %vm15221_vm10, %v4028_v37  ;;  %vm15224_vm10 = vmmov %vm15218_vm6  ;;  %vm15225_vm6 = vcmask 195584  }
 0x3c0   : > { %8699 = vmatprep.mubr.msk.f32.mxu1 %vm15225_vm6, %v12726_v10  ;;  %vm15226_vm4 = vmmov %vm15224_vm10 }
 0x3c2   : > { %4227 = vrot.lane.b32.xlu1 %v3946_v13, %s9908_s26  ;;  %v4180_v29 = vpop.permute.xlu1 %4179 }
 0x3c3   : > { %4274 = vst.msk [vmem:[#allocation2 + $0x18] sm:$0xff] %vm15224_vm10, %v4180_v29 }
 0x3c6   : > { %4079 = vrot.lane.b32.xlu1 %v12342_v46, %s9907_s25  ;;  %v4022_v46 = vpop.permute.xlu0 %4021  ;;  %v4032_v44 = vpop.permute.xlu1 %4031 }
 0x3c7   : > { %4115 = vst.msk [vmem:[#allocation2 + $0x20] sm:$0xff] %vm15215_vm9, %v4022_v46  ;;  %4120 = vst.msk [vmem:[#allocation2 + $0x48] sm:$0xff] %vm15215_vm9, %v4032_v44 }
 0x3ca   : > { %4231 = vrot.lane.b32.xlu1 %v3948_v19, %s9908_s26  ;;  %v4182_v39 = vpop.permute.xlu0 %4181  ;;  %v12737_v1 = vld [vmem:[#allocation2 + $0x18] sm:$0xff]  ;;  %v4184_v25 = vpop.permute.xlu1 %4183 }
 0x3cb   : > { %4275 = vst.msk [vmem:[#allocation2 + $0x20] sm:$0xff] %vm15226_vm4, %v4182_v39  ;;  %vm15228_vm4 = vmmov %vm15225_vm6 }
 0x3cc   : > { %8700 = vmatmul.mubr.msk.f32.vlgmr.msra.gmra.mrb[80].mxu1 %vm15228_vm4, %v12737_v1  ;;  %4276 = vst.msk [vmem:[#allocation2 + $0x28] sm:$0xff] %vm15224_vm10, %v4184_v25  ;;  %vm15230_vm6 = vmmov %vm15224_vm10 }
 0x3cd   : > { %9036 = vmatpush3.bf16.msra.mxu1 %v12544_v24 }
 0x3ce   : > { %4235 = vrot.lane.b32.xlu1 %v3950_v4, %s9908_s26  ;;  %v4026_v31 = vpop.permute.xlu0 %4025  ;;  %8751 = vmatprep.subr.mxu1 %v7770_v57  ;;  %v4036_v18 = vpop.permute.xlu1 %4035 }
 0x3cf   : > { %4117 = vst.msk [vmem:[#allocation2 + $0x30] sm:$0xff] %vm15227_vm5, %v4026_v31  ;;  %vm15229_vm5 = vmmov %vm15228_vm4 }
 0x3d0   : > { %4122 = vst.msk [vmem:[#allocation2 + $0x58] sm:$0xff] %vm15215_vm9, %v4036_v18  ;;  %vm15231_vm4 = vmmov %vm15215_vm9 }
 0x3d1   : > { %8752 = vmatpush3.msra.mxu1 %v7770_v57  ;;  %vm15236_vm9 = vmmov %vm15231_vm4 }
 0x3d2   : > { %4239 = vrot.lane.b32.xlu1 %v3952_v5, %s9908_s26  ;;  %v12747_v34 = vld [vmem:[#allocation2 + $0x20] sm:$0xff]  ;;  %v4186_v42 = vpop.permute.xlu0 %4185  ;;  %9038 = vmatprep.subr.bf16.mxu1 %v12754_v17  ;;  %v4188_v15 = vpop.permute.xlu1 %4187 }
 0x3d3   : > { %8702 = vmatprep.mubr.msk.f32.mxu1 %vm15229_vm5, %v12747_v34  ;;  %4277 = vst.msk [vmem:[#allocation2 + $0x30] sm:$0xff] %vm15230_vm6, %v4186_v42  ;;  %v12759_v63 = vld [vmem:[#allocation2 + $0x28] sm:$0xff]  ;;  %vm15232_vm5 = vmmov %vm15230_vm6  ;;  %vm15234_vm6 = vcmask 195584  }
 0x3d4   : > { %4278 = vst.msk [vmem:[#allocation2 + $0x38] sm:$0xff] %vm15232_vm5, %v4188_v15  ;;  %vm15233_vm10 = vmmov %vm15232_vm5  ;;  %8703 = vmatmul.mubr.msk.f32.gmra.mrb[82].mxu1 %vm15234_vm6, %v12759_v63 }
 0x3d5   : > { %vm15235_vm3 = vmmov %vm15234_vm6 }
 0x3d6   : > { %v4030_v60 = vpop.permute.xlu0 %4029  ;;  %v4040_v14 = vpop.permute.xlu1 %4039  ;;  %vm15238_vm6 = vmmov %vm15235_vm3 }
 0x3d7   : > { %4119 = vst.msk [vmem:[#allocation2 + $0x40] sm:$0xff] %vm15231_vm4, %v4030_v60  ;;  %vm15282_vm11 = vmmov %vm15235_vm3 }
 0x3d8   : > { %4124 = vst.msk [vmem:[#allocation2 + $0x68] sm:$0xff] %vm15236_vm9, %v4040_v14  ;;  %vm15239_vm9 = vmmov %vm15231_vm4 }
 0x3da   : > { %v4190_v33 = vpop.permute.xlu0 %4189  ;;  %v12761_v24 = vld [vmem:[#allocation2 + $0x30] sm:$0xff]  ;;  %v4192_v2 = vpop.permute.xlu1 %4191 }
 0x3db   : > { %4279 = vst.msk [vmem:[#allocation2 + $0x40] sm:$0xff] %vm15233_vm10, %v4190_v33  ;;  %8705 = vmatprep.mubr.msk.f32.mxu1 %vm15235_vm3, %v12761_v24  ;;  %v12771_v16 = vld [vmem:[#allocation2 + $0x38] sm:$0xff]  ;;  %vm15237_vm10 = vmmov %vm15232_vm5 }
 0x3dc   : > { %4280 = vst.msk [vmem:[#allocation2 + $0x48] sm:$0xff] %vm15232_vm5, %v4192_v2  ;;  %8706 = vmatmul.mubr.msk.f32.gmra.mrb[84].mxu1 %vm15238_vm6, %v12771_v16  ;;  %vm15241_vm6 = vmmov %vm15235_vm3 }
 0x3de   : > { %v4034_v8 = vpop.permute.xlu0 %4033  ;;  %v4044_v41 = vpop.permute.xlu1 %4043 }
 0x3df   : > { %4121 = vst.msk [vmem:[#allocation2 + $0x50] sm:$0xff] %vm15231_vm4, %v4034_v8 }
 0x3e0   : > { %4126 = vst.msk [vmem:[#allocation2 + $0x78] sm:$0xff] %vm15239_vm9, %v4044_v41  ;;  %vm15242_vm9 = vmmov %vm15231_vm4 }
 0x3e2   : > { %v4194_v3 = vpop.permute.xlu0 %4193  ;;  %v12773_v22 = vld [vmem:[#allocation2 + $0x40] sm:$0xff]  ;;  %v4196_v13 = vpop.permute.xlu1 %4195 }
 0x3e3   : > { %4281 = vst.msk [vmem:[#allocation2 + $0x50] sm:$0xff] %vm15237_vm10, %v4194_v3  ;;  %8708 = vmatprep.mubr.msk.f32.mxu1 %vm15235_vm3, %v12773_v22  ;;  %v12783_v11 = vld [vmem:[#allocation2 + $0x48] sm:$0xff]  ;;  %vm15240_vm10 = vmmov %vm15232_vm5 }
 0x3e4   : > { %4282 = vst.msk [vmem:[#allocation2 + $0x58] sm:$0xff] %vm15232_vm5, %v4196_v13  ;;  %8709 = vmatmul.mubr.msk.f32.gmra.mrb[86].mxu1 %vm15241_vm6, %v12783_v11  ;;  %vm15244_vm6 = vmmov %vm15235_vm3 }
 0x3e6   : > { %v4038_v28 = vpop.permute.xlu0 %4037  ;;  %v4048_v36 = vpop.permute.xlu1 %4047 }
 0x3e7   : > { %4123 = vst.msk [vmem:[#allocation2 + $0x60] sm:$0xff] %vm15231_vm4, %v4038_v28 }
 0x3e8   : > { %4128 = vst.msk [vmem:[#allocation2 + $0x88] sm:$0xff] %vm15242_vm9, %v4048_v36  ;;  %vm15245_vm9 = vmmov %vm15231_vm4 }
 0x3ea   : > { %v4198_v0 = vpop.permute.xlu0 %4197  ;;  %v12785_v61 = vld [vmem:[#allocation2 + $0x50] sm:$0xff]  ;;  %v4200_v35 = vpop.permute.xlu1 %4199 }
 0x3eb   : > { %4283 = vst.msk [vmem:[#allocation2 + $0x60] sm:$0xff] %vm15240_vm10, %v4198_v0  ;;  %8711 = vmatprep.mubr.msk.f32.mxu1 %vm15235_vm3, %v12785_v61  ;;  %v12795_v4 = vld [vmem:[#allocation2 + $0x58] sm:$0xff]  ;;  %vm15243_vm10 = vmmov %vm15232_vm5 }
 0x3ec   : > { %4284 = vst.msk [vmem:[#allocation2 + $0x68] sm:$0xff] %vm15232_vm5, %v4200_v35  ;;  %8712 = vmatmul.mubr.msk.f32.gmra.mrb[88].mxu1 %vm15244_vm6, %v12795_v4  ;;  %vm15247_vm6 = vmmov %vm15235_vm3 }
 0x3ee   : > { %v4042_v19 = vpop.permute.xlu0 %4041  ;;  %v4052_v5 = vpop.permute.xlu1 %4051 }
 0x3ef   : > { %4125 = vst.msk [vmem:[#allocation2 + $0x70] sm:$0xff] %vm15231_vm4, %v4042_v19 }
 0x3f0   : > { %4130 = vst.msk [vmem:[#allocation2 + $0x98] sm:$0xff] %vm15245_vm9, %v4052_v5  ;;  %vm15248_vm9 = vmmov %vm15231_vm4 }
 0x3f2   : > { %v4202_v37 = vpop.permute.xlu0 %4201  ;;  %v12797_v46 = vld [vmem:[#allocation2 + $0x60] sm:$0xff]  ;;  %v4204_v39 = vpop.permute.xlu1 %4203 }
 0x3f3   : > { %4285 = vst.msk [vmem:[#allocation2 + $0x70] sm:$0xff] %vm15243_vm10, %v4202_v37  ;;  %8714 = vmatprep.mubr.msk.f32.mxu1 %vm15235_vm3, %v12797_v46  ;;  %v12807_v31 = vld [vmem:[#allocation2 + $0x68] sm:$0xff]  ;;  %vm15246_vm10 = vmmov %vm15232_vm5 }
 0x3f4   : > { %4286 = vst.msk [vmem:[#allocation2 + $0x78] sm:$0xff] %vm15232_vm5, %v4204_v39  ;;  %8715 = vmatmul.mubr.msk.f32.gmra.mrb[90].mxu1 %vm15247_vm6, %v12807_v31  ;;  %vm15250_vm6 = vmmov %vm15235_vm3 }
 0x3f6   : > { %v4046_v29 = vpop.permute.xlu0 %4045  ;;  %v4056_v48 = vpop.permute.xlu1 %4055 }
 0x3f7   : > { %4127 = vst.msk [vmem:[#allocation2 + $0x80] sm:$0xff] %vm15231_vm4, %v4046_v29 }
 0x3f8   : > { %4132 = vst.msk [vmem:[#allocation2 + $0xa8] sm:$0xff] %vm15248_vm9, %v4056_v48  ;;  %vm15251_vm9 = vmmov %vm15231_vm4 }
 0x3fa   : > { %v4206_v44 = vpop.permute.xlu0 %4205  ;;  %v12809_v57 = vld [vmem:[#allocation2 + $0x70] sm:$0xff] }
 0x3fb   : > { %4287 = vst.msk [vmem:[#allocation2 + $0x80] sm:$0xff] %vm15246_vm10, %v4206_v44  ;;  %8717 = vmatprep.mubr.msk.f32.mxu1 %vm15235_vm3, %v12809_v57  ;;  %v12819_v18 = vld [vmem:[#allocation2 + $0x78] sm:$0xff]  ;;  %vm15249_vm10 = vmmov %vm15232_vm5 }
 0x3fc   : > { %8718 = vmatmul.mubr.msk.f32.gmra.mrb[92].mxu1 %vm15250_vm6, %v12819_v18  ;;  %vm15253_vm6 = vmmov %vm15235_vm3 }
 0x3fe   : > { %v4050_v49 = vpop.permute.xlu0 %4049 }
 0x3ff   : > { %4129 = vst.msk [vmem:[#allocation2 + $0x90] sm:$0xff] %vm15231_vm4, %v4050_v49 }
 0x402   : > { %v4210_v42 = vpop.permute.xlu0 %4209  ;;  %v12821_v60 = vld [vmem:[#allocation2 + $0x80] sm:$0xff] }
 0x403   : > { %v4208_v25 = vpop.permute.xlu1 %4207  ;;  %4289 = vst.msk [vmem:[#allocation2 + $0x90] sm:$0xff] %vm15249_vm10, %v4210_v42  ;;  %8720 = vmatprep.mubr.msk.f32.mxu1 %vm15235_vm3, %v12821_v60  ;;  %vm15252_vm10 = vmmov %vm15232_vm5 }
 0x404   : > { %4288 = vst.msk [vmem:[#allocation2 + $0x88] sm:$0xff] %vm15232_vm5, %v4208_v25 }
 0x406   : > { %v4054_v33 = vpop.permute.xlu0 %4053 }
 0x407   : > { %v4060_v15 = vpop.permute.xlu1 %4059  ;;  %4131 = vst.msk [vmem:[#allocation2 + $0xa0] sm:$0xff] %vm15231_vm4, %v4054_v33 }
 0x408   : > { %4134 = vst.msk [vmem:[#allocation2 + $0xb8] sm:$0xff] %vm15251_vm9, %v4060_v15  ;;  %vm15254_vm9 = vmmov %vm15231_vm4 }
 0x40a   : > { %v4214_v8 = vpop.permute.xlu0 %4213  ;;  %v12833_v3 = vld [vmem:[#allocation2 + $0x90] sm:$0xff] }
 0x40b   : > { %v12831_v2 = vld [vmem:[#allocation2 + $0x88] sm:$0xff]  ;;  %4291 = vst.msk [vmem:[#allocation2 + $0xa0] sm:$0xff] %vm15252_vm10, %v4214_v8  ;;  %vm15255_vm10 = vmmov %vm15232_vm5 }
 0x40c   : > { %8721 = vmatmul.mubr.msk.f32.gmra.mrb[94].mxu1 %vm15253_vm6, %v12831_v2  ;;  %vm15256_vm6 = vmmov %vm15235_vm3 }
 0x40d   : > { %8723 = vmatprep.mubr.msk.f32.mxu1 %vm15235_vm3, %v12833_v3 }
 0x40e   : > { %v4058_v28 = vpop.permute.xlu0 %4057 }
 0x40f   : > { %4133 = vst.msk [vmem:[#allocation2 + $0xb0] sm:$0xff] %vm15231_vm4, %v4058_v28 }
 0x412   : > { %v4218_v0 = vpop.permute.xlu0 %4217  ;;  %v12845_v19 = vld [vmem:[#allocation2 + $0xa0] sm:$0xff] }
 0x413   : > { %4293 = vst.msk [vmem:[#allocation2 + $0xb0] sm:$0xff] %vm15255_vm10, %v4218_v0  ;;  %vm15258_vm10 = vmmov %vm15232_vm5 }
 0x414   : > { %v4212_v14 = vpop.permute.xlu1 %4211 }
 0x415   : > { %4290 = vst.msk [vmem:[#allocation2 + $0x98] sm:$0xff] %vm15232_vm5, %v4212_v14 }
 0x416   : > { %v4062_v37 = vpop.permute.xlu0 %4061 }
 0x417   : > { %4135 = vst.msk [vmem:[#allocation2 + $0xc0] sm:$0xff] %vm15231_vm4, %v4062_v37 }
 0x418   : > { %v4064_v41 = vpop.permute.xlu1 %4063 }
 0x419   : > { %4136 = vst.msk [vmem:[#allocation2 + $0xc8] sm:$0xff] %vm15254_vm9, %v4064_v41  ;;  %vm15257_vm9 = vmmov %vm15231_vm4 }
 0x41a   : > { %v4222_v29 = vpop.permute.xlu0 %4221  ;;  %v12857_v44 = vld [vmem:[#allocation2 + $0xb0] sm:$0xff] }
 0x41b   : > { %4295 = vst.msk [vmem:[#allocation2 + $0xc0] sm:$0xff] %vm15258_vm10, %v4222_v29  ;;  %vm15261_vm10 = vmmov %vm15232_vm5 }
 0x41c   : > { %v4216_v13 = vpop.permute.xlu1 %4215  ;;  %v12843_v36 = vld [vmem:[#allocation2 + $0x98] sm:$0xff] }
 0x41d   : > { %4292 = vst.msk [vmem:[#allocation2 + $0xa8] sm:$0xff] %vm15232_vm5, %v4216_v13  ;;  %8724 = vmatmul.mubr.msk.f32.gmra.mrb[96].mxu1 %vm15256_vm6, %v12843_v36  ;;  %vm15259_vm6 = vmmov %vm15235_vm3 }
 0x41e   : > { %8726 = vmatprep.mubr.msk.f32.mxu1 %vm15235_vm3, %v12845_v19  ;;  %v4066_v49 = vpop.permute.xlu0 %4065 }
 0x41f   : > { %4137 = vst.msk [vmem:[#allocation2 + $0xd0] sm:$0xff] %vm15231_vm4, %v4066_v49 }
 0x420   : > { %v4068_v35 = vpop.permute.xlu1 %4067 }
 0x421   : > { %4138 = vst.msk [vmem:[#allocation2 + $0xd8] sm:$0xff] %vm15257_vm9, %v4068_v35  ;;  %vm15260_vm9 = vmmov %vm15231_vm4 }
 0x422   : > { %v4226_v42 = vpop.permute.xlu0 %4225  ;;  %v12869_v33 = vld [vmem:[#allocation2 + $0xc0] sm:$0xff] }
 0x423   : > { %4297 = vst.msk [vmem:[#allocation2 + $0xd0] sm:$0xff] %vm15261_vm10, %v4226_v42  ;;  %vm15264_vm10 = vmmov %vm15232_vm5 }
 0x424   : > { %v4220_v5 = vpop.permute.xlu1 %4219  ;;  %v12855_v39 = vld [vmem:[#allocation2 + $0xa8] sm:$0xff] }
 0x425   : > { %4294 = vst.msk [vmem:[#allocation2 + $0xb8] sm:$0xff] %vm15232_vm5, %v4220_v5  ;;  %8727 = vmatmul.mubr.msk.f32.gmra.mrb[98].mxu1 %vm15259_vm6, %v12855_v39  ;;  %vm15262_vm6 = vmmov %vm15235_vm3 }
 0x426   : > { %8729 = vmatprep.mubr.msk.f32.mxu1 %vm15235_vm3, %v12857_v44  ;;  %v4070_v8 = vpop.permute.xlu0 %4069 }
 0x427   : > { %4139 = vst.msk [vmem:[#allocation2 + $0xe0] sm:$0xff] %vm15231_vm4, %v4070_v8 }
 0x428   : > { %v4072_v48 = vpop.permute.xlu1 %4071 }
 0x429   : > { %4140 = vst.msk [vmem:[#allocation2 + $0xe8] sm:$0xff] %vm15260_vm9, %v4072_v48  ;;  %vm15263_vm9 = vmmov %vm15231_vm4 }
 0x42a   : > { %v4230_v28 = vpop.permute.xlu0 %4229  ;;  %v12881_v0 = vld [vmem:[#allocation2 + $0xd0] sm:$0xff] }
 0x42b   : > { %4299 = vst.msk [vmem:[#allocation2 + $0xe0] sm:$0xff] %vm15264_vm10, %v4230_v28  ;;  %vm15267_vm10 = vmmov %vm15232_vm5 }
 0x42c   : > { %v4224_v25 = vpop.permute.xlu1 %4223  ;;  %v12867_v15 = vld [vmem:[#allocation2 + $0xb8] sm:$0xff] }
 0x42d   : > { %4296 = vst.msk [vmem:[#allocation2 + $0xc8] sm:$0xff] %vm15232_vm5, %v4224_v25  ;;  %8730 = vmatmul.mubr.msk.f32.gmra.mrb[100].mxu1 %vm15262_vm6, %v12867_v15  ;;  %vm15265_vm6 = vmmov %vm15235_vm3 }
 0x42e   : > { %8732 = vmatprep.mubr.msk.f32.mxu1 %vm15235_vm3, %v12869_v33  ;;  %v4074_v37 = vpop.permute.xlu0 %4073 }
 0x42f   : > { %4141 = vst.msk [vmem:[#allocation2 + $0xf0] sm:$0xff] %vm15231_vm4, %v4074_v37 }
 0x430   : > { %v4076_v14 = vpop.permute.xlu1 %4075 }
 0x431   : > { %4142 = vst.msk [vmem:[#allocation2 + $0xf8] sm:$0xff] %vm15263_vm9, %v4076_v14  ;;  %vm15266_vm9 = vmmov %vm15231_vm4 }
 0x432   : > { %v4234_v29 = vpop.permute.xlu0 %4233  ;;  %v12893_v49 = vld [vmem:[#allocation2 + $0xe0] sm:$0xff] }
 0x433   : > { %4301 = vst.msk [vmem:[#allocation2 + $0xf0] sm:$0xff] %vm15267_vm10, %v4234_v29  ;;  %vm15270_vm10 = vmmov %vm15235_vm3 }
 0x434   : > { %v4228_v41 = vpop.permute.xlu1 %4227  ;;  %v12879_v13 = vld [vmem:[#allocation2 + $0xc8] sm:$0xff] }
 0x435   : > { %4298 = vst.msk [vmem:[#allocation2 + $0xd8] sm:$0xff] %vm15232_vm5, %v4228_v41  ;;  %8733 = vmatmul.mubr.msk.f32.gmra.mrb[102].mxu1 %vm15265_vm6, %v12879_v13  ;;  %vm15268_vm6 = vmmov %vm15235_vm3 }
 0x436   : > { %8735 = vmatprep.mubr.msk.f32.mxu1 %vm15235_vm3, %v12881_v0  ;;  %v4078_v42 = vpop.permute.xlu0 %4077 }
 0x437   : > { %4143 = vst.msk [vmem:[#allocation2 + $0x100] sm:$0xff] %vm15231_vm4, %v4078_v42  ;;  %vm15273_vm4 = vmmov %vm15235_vm3  ;;  %v7840_v42 = vld [vmem:[%s14501_s5 + $0x88] sm:$0xff] }
 0x438   : > { %v4080_v35 = vpop.permute.xlu1 %4079 }
 0x439   : > { %4144 = vst.msk [vmem:[#allocation2 + $0x108] sm:$0xff] %vm15266_vm9, %v4080_v35  ;;  %vm15269_vm9 = vmmov %vm15232_vm5 }
 0x43a   : > { %v4238_v41 = vpop.permute.xlu0 %4237  ;;  %v12905_v28 = vld [vmem:[#allocation2 + $0xf0] sm:$0xff] }
 0x43c   : > { %v4232_v5 = vpop.permute.xlu1 %4231  ;;  %v12891_v48 = vld [vmem:[#allocation2 + $0xd8] sm:$0xff] }
 0x43d   : > { %4300 = vst.msk [vmem:[#allocation2 + $0xe8] sm:$0xff] %vm15232_vm5, %v4232_v5  ;;  %8736 = vmatmul.mubr.msk.f32.gmra.mrb[104].mxu1 %vm15268_vm6, %v12891_v48  ;;  %vm15271_vm6 = vmmov %vm15232_vm5  ;;  %v4305_v5 = vld [vmem:[#allocation2] sm:$0xff] }
 0x43e   : > { %8738 = vmatprep.mubr.msk.f32.mxu1 %vm15235_vm3, %v12893_v49  ;;  %4303 = vst.msk [vmem:[#allocation2 + $0x100] sm:$0xff] %vm15271_vm6, %v4238_v41  ;;  %vm15276_vm6 = vmmov %vm15235_vm3 }
 0x440   : > { %v4236_v25 = vpop.permute.xlu1 %4235 }
 0x441   : > { %4302 = vst.msk [vmem:[#allocation2 + $0xf8] sm:$0xff] %vm15269_vm9, %v4236_v25  ;;  %vm15272_vm9 = vmmov %vm15235_vm3  ;;  %v4306_v25 = vld [vmem:[#allocation2 + $0x8] sm:$0xff] }
 0x444   : > { %v4240_v14 = vpop.permute.xlu1 %4239  ;;  %v12903_v8 = vld [vmem:[#allocation2 + $0xe8] sm:$0xff] }
 0x445   : > { %4304 = vst.msk [vmem:[#allocation2 + $0x108] sm:$0xff] %vm15232_vm5, %v4240_v14  ;;  %8739 = vmatmul.mubr.msk.f32.gmra.mrb[106].mxu1 %vm15270_vm10, %v12903_v8  ;;  %v12917_v37 = vld [vmem:[#allocation2 + $0x100] sm:$0xff]  ;;  %vm15274_vm5 = vmmov %vm15235_vm3 }
 0x446   : > { %8741 = vmatprep.mubr.msk.f32.mxu1 %vm15235_vm3, %v12905_v28  ;;  %vm15275_vm10 = vmmov %vm15235_vm3 }
 0x448   : > { %v12913_v35 = vld [vmem:[#allocation2 + $0xf8] sm:$0xff] }
 0x449   : > { %8742 = vmatmul.mubr.msk.f32.gmra.mrb[108].mxu1 %vm15272_vm9, %v12913_v35  ;;  %vm15277_vm9 = vmmov %vm15235_vm3 }
 0x44a   : > { %8744 = vmatprep.mubr.msk.f32.mxu1 %vm15273_vm4, %v12917_v37  ;;  %vm15278_vm4 = vmmov %vm15235_vm3 }
 0x44c   : > { %v12921_v29 = vld [vmem:[#allocation2 + $0x108] sm:$0xff] }
 0x44d   : > { %8745 = vmatmul.mubr.msk.f32.gmra.mrb[110].mxu1 %vm15274_vm5, %v12921_v29  ;;  %vm15279_vm5 = vmmov %vm15235_vm3 }
 0x44e   : > { %8753 = vmatprep.mubr.msk.f32.mxu1 %vm15275_vm10, %v4305_v5  ;;  %vm15280_vm10 = vmmov %vm15235_vm3 }
 0x451   : > { %8754 = vmatmul.mubr.msk.f32.vlgmr.msra.gmra.mrb[80].mxu1 %vm15276_vm6, %v4306_v25  ;;  %vm15281_vm6 = vmmov %vm15235_vm3 }
 0x452   : > { %9040 = vmatpush3.bf16.msra.mxu1 %v12754_v17  ;;  %8756 = vmatprep.mubr.msk.f32.mxu1 %vm15235_vm3, %v12726_v10  ;;  %v4929_v10 = vld [vmem:[#allocation2 + $0x110] sm:$0xff] }
 0x453   : > { %8805 = vmatprep.subr.mxu1 %v7840_v42 }
 0x455   : > { %8757 = vmatmul.mubr.msk.f32.gmra.mrb[82].mxu1 %vm15277_vm9, %v12737_v1  ;;  %vm15283_vm9 = vmmov %vm15235_vm3  ;;  %v4930_v1 = vld [vmem:[#allocation2 + $0x118] sm:$0xff] }
 0x456   : > { %8759 = vmatprep.mubr.msk.f32.mxu1 %vm15278_vm4, %v12747_v34  ;;  %8806 = vmatpush3.msra.mxu1 %v7840_v42  ;;  %vm15284_vm4 = vmmov %vm15235_vm3 }
 0x459   : > { %8760 = vmatmul.mubr.msk.f32.gmra.mrb[84].mxu1 %vm15279_vm5, %v12759_v63  ;;  %vm15285_vm5 = vmmov %vm15235_vm3 }
 0x45a   : > { %8762 = vmatprep.mubr.msk.f32.mxu1 %vm15280_vm10, %v12761_v24  ;;  %vm15286_vm10 = vmmov %vm15235_vm3 }
 0x45d   : > { %8763 = vmatmul.mubr.msk.f32.gmra.mrb[86].mxu1 %vm15281_vm6, %v12771_v16  ;;  %vm15287_vm6 = vmmov %vm15235_vm3 }
 0x45e   : > { %8765 = vmatprep.mubr.msk.f32.mxu1 %vm15282_vm11, %v12773_v22  ;;  %vm15288_vm11 = vmmov %vm15235_vm3 }
 0x461   : > { %8766 = vmatmul.mubr.msk.f32.gmra.mrb[88].mxu1 %vm15235_vm3, %v12783_v11 }
 0x462   : > { %8768 = vmatprep.mubr.msk.f32.mxu1 %vm15283_vm9, %v12785_v61  ;;  %vm15289_vm9 = vmmov %vm15235_vm3 }
 0x465   : > { %8769 = vmatmul.mubr.msk.f32.gmra.mrb[90].mxu1 %vm15284_vm4, %v12795_v4  ;;  %vm15290_vm4 = vmmov %vm15235_vm3 }
 0x466   : > { %8771 = vmatprep.mubr.msk.f32.mxu1 %vm15285_vm5, %v12797_v46  ;;  %vm15291_vm5 = vmmov %vm15235_vm3 }
 0x469   : > { %8772 = vmatmul.mubr.msk.f32.gmra.mrb[92].mxu1 %vm15286_vm10, %v12807_v31  ;;  %vm15292_vm10 = vmmov %vm15235_vm3 }
 0x46a   : > { %8774 = vmatprep.mubr.msk.f32.mxu1 %vm15287_vm6, %v12809_v57  ;;  %vm15293_vm6 = vmmov %vm15235_vm3 }
 0x46d   : > { %8775 = vmatmul.mubr.msk.f32.gmra.mrb[94].mxu1 %vm15288_vm11, %v12819_v18  ;;  %vm15294_vm11 = vmmov %vm15235_vm3 }
 0x46e   : > { %8777 = vmatprep.mubr.msk.f32.mxu1 %vm15235_vm3, %v12821_v60 }
 0x471   : > { %8778 = vmatmul.mubr.msk.f32.gmra.mrb[96].mxu1 %vm15289_vm9, %v12831_v2  ;;  %vm15295_vm9 = vmmov %vm15235_vm3 }
 0x472   : > { %8780 = vmatprep.mubr.msk.f32.mxu1 %vm15290_vm4, %v12833_v3  ;;  %vm15296_vm4 = vmmov %vm15235_vm3 }
 0x475   : > { %8781 = vmatmul.mubr.msk.f32.gmra.mrb[98].mxu1 %vm15291_vm5, %v12843_v36  ;;  %vm15297_vm5 = vmmov %vm15235_vm3 }
 0x476   : > { %8783 = vmatprep.mubr.msk.f32.mxu1 %vm15292_vm10, %v12845_v19  ;;  %vm15298_vm10 = vmmov %vm15235_vm3 }
 0x479   : > { %8784 = vmatmul.mubr.msk.f32.gmra.mrb[100].mxu1 %vm15293_vm6, %v12855_v39  ;;  %vm15299_vm6 = vmmov %vm15235_vm3 }
 0x47a   : > { %8786 = vmatprep.mubr.msk.f32.mxu1 %vm15294_vm11, %v12857_v44  ;;  %vm15300_vm11 = vmmov %vm15235_vm3 }
 0x47d   : > { %8787 = vmatmul.mubr.msk.f32.gmra.mrb[102].mxu1 %vm15235_vm3, %v12867_v15 }
 0x47e   : > { %8789 = vmatprep.mubr.msk.f32.mxu1 %vm15295_vm9, %v12869_v33  ;;  %vm15301_vm9 = vmmov %vm15235_vm3 }
 0x481   : > { %8790 = vmatmul.mubr.msk.f32.gmra.mrb[104].mxu1 %vm15296_vm4, %v12879_v13  ;;  %vm15302_vm4 = vmmov %vm15235_vm3 }
 0x482   : > { %8792 = vmatprep.mubr.msk.f32.mxu1 %vm15297_vm5, %v12881_v0  ;;  %vm15303_vm5 = vmmov %vm15235_vm3 }
 0x485   : > { %8793 = vmatmul.mubr.msk.f32.gmra.mrb[106].mxu1 %vm15298_vm10, %v12891_v48  ;;  %vm15304_vm10 = vmmov %vm15235_vm3 }
 0x486   : > { %8795 = vmatprep.mubr.msk.f32.mxu1 %vm15299_vm6, %v12893_v49  ;;  %vm15305_vm6 = vmmov %vm15235_vm3 }
 0x489   : > { %8796 = vmatmul.mubr.msk.f32.gmra.mrb[108].mxu1 %vm15300_vm11, %v12903_v8  ;;  %vm15306_vm11 = vmmov %vm15235_vm3 }
 0x48a   : > { %8798 = vmatprep.mubr.msk.f32.mxu1 %vm15235_vm3, %v12905_v28 }
 0x48d   : > { %8799 = vmatmul.mubr.msk.f32.gmra.mrb[110].mxu1 %vm15301_vm9, %v12913_v35  ;;  %vm15307_vm9 = vmmov %vm15235_vm3 }
 0x48e   : > { %8807 = vmatprep.mubr.msk.f32.mxu1 %vm15302_vm4, %v12747_v34  ;;  %vm15308_vm4 = vmmov %vm15235_vm3  ;;  %v13056_v34 = vld [vmem:[%s14502_s6 + $0x1] ss:$0 sm:$0xff] }
 0x491   : > { %8808 = vmatmul.mubr.msk.f32.vlgmr.msra.gmra.mrb[80].mxu1 %vm15303_vm5, %v12759_v63  ;;  %vm15309_vm5 = vmmov %vm15235_vm3 }
 0x492   : > { %8810 = vmatprep.mubr.msk.f32.mxu1 %vm15304_vm10, %v12761_v24  ;;  %vm15310_vm10 = vmmov %vm15235_vm3 }
 0x495   : > { %8811 = vmatmul.mubr.msk.f32.gmra.mrb[82].mxu1 %vm15305_vm6, %v12771_v16  ;;  %vm15311_vm6 = vmmov %vm15235_vm3 }
 0x496   : > { %8813 = vmatprep.mubr.msk.f32.mxu1 %vm15306_vm11, %v12773_v22  ;;  %vm15312_vm11 = vmmov %vm15235_vm3 }
 0x499   : > { %8814 = vmatmul.mubr.msk.f32.gmra.mrb[84].mxu1 %vm15235_vm3, %v12783_v11 }
 0x49a   : > { %8816 = vmatprep.mubr.msk.f32.mxu1 %vm15307_vm9, %v12785_v61  ;;  %vm15313_vm9 = vmmov %vm15235_vm3 }
 0x49d   : > { %8817 = vmatmul.mubr.msk.f32.gmra.mrb[86].mxu1 %vm15308_vm4, %v12795_v4  ;;  %vm15314_vm4 = vmmov %vm15235_vm3 }
 0x49e   : > { %8819 = vmatprep.mubr.msk.f32.mxu1 %vm15309_vm5, %v12797_v46  ;;  %vm15315_vm5 = vmmov %vm15235_vm3 }
 0x4a1   : > { %8820 = vmatmul.mubr.msk.f32.gmra.mrb[88].mxu1 %vm15310_vm10, %v12807_v31  ;;  %vm15316_vm10 = vmmov %vm15235_vm3 }
 0x4a2   : > { %8822 = vmatprep.mubr.msk.f32.mxu1 %vm15311_vm6, %v12809_v57  ;;  %vm15317_vm6 = vmmov %vm15235_vm3 }
 0x4a5   : > { %8823 = vmatmul.mubr.msk.f32.gmra.mrb[90].mxu1 %vm15312_vm11, %v12819_v18  ;;  %vm15318_vm11 = vmmov %vm15235_vm3 }
 0x4a6   : > { %8825 = vmatprep.mubr.msk.f32.mxu1 %vm15235_vm3, %v12821_v60 }
 0x4a9   : > { %8826 = vmatmul.mubr.msk.f32.gmra.mrb[92].mxu1 %vm15313_vm9, %v12831_v2  ;;  %vm15319_vm9 = vmmov %vm15235_vm3 }
 0x4aa   : > { %8828 = vmatprep.mubr.msk.f32.mxu1 %vm15314_vm4, %v12833_v3  ;;  %vm15320_vm4 = vmmov %vm15235_vm3 }
 0x4ad   : > { %8829 = vmatmul.mubr.msk.f32.gmra.mrb[94].mxu1 %vm15315_vm5, %v12843_v36  ;;  %vm15321_vm5 = vmmov %vm15235_vm3 }
 0x4ae   : > { %8831 = vmatprep.mubr.msk.f32.mxu1 %vm15316_vm10, %v12845_v19  ;;  %vm15322_vm10 = vmmov %vm15235_vm3 }
 0x4b1   : > { %8832 = vmatmul.mubr.msk.f32.gmra.mrb[96].mxu1 %vm15317_vm6, %v12855_v39  ;;  %vm15323_vm6 = vmmov %vm15235_vm3 }
 0x4b2   : > { %8834 = vmatprep.mubr.msk.f32.mxu1 %vm15318_vm11, %v12857_v44  ;;  %vm15324_vm11 = vmmov %vm15235_vm3 }
 0x4b5   : > { %8835 = vmatmul.mubr.msk.f32.gmra.mrb[98].mxu1 %vm15235_vm3, %v12867_v15 }
 0x4b6   : > { %8837 = vmatprep.mubr.msk.f32.mxu1 %vm15319_vm9, %v12869_v33  ;;  %vm15325_vm9 = vmmov %vm15235_vm3 }
 0x4b9   : > { %8838 = vmatmul.mubr.msk.f32.gmra.mrb[100].mxu1 %vm15320_vm4, %v12879_v13  ;;  %vm15326_vm4 = vmmov %vm15235_vm3 }
 0x4ba   : > { %8840 = vmatprep.mubr.msk.f32.mxu1 %vm15321_vm5, %v12881_v0  ;;  %vm15327_vm5 = vmmov %vm15235_vm3 }
 0x4bd   : > { %8841 = vmatmul.mubr.msk.f32.gmra.mrb[102].mxu1 %vm15322_vm10, %v12891_v48  ;;  %vm15328_vm10 = vmmov %vm15235_vm3 }
 0x4be   : > { %8843 = vmatprep.mubr.msk.f32.mxu1 %vm15323_vm6, %v12893_v49  ;;  %vm15329_vm6 = vmmov %vm15235_vm3 }
 0x4c1   : > { %8844 = vmatmul.mubr.msk.f32.gmra.mrb[104].mxu1 %vm15324_vm11, %v12903_v8  ;;  %vm15330_vm11 = vcmp.lt.s32.totalorder %v10162_v23, 7 }
 0x4c2   : > { %8846 = vmatprep.mubr.msk.f32.mxu1 %vm15235_vm3, %v12905_v28  ;;  %vm15332_vm3 = vmmov %vm15330_vm11 }
 0x4c5   : > { %8847 = vmatmul.mubr.msk.f32.gmra.mrb[106].mxu1 %vm15325_vm9, %v12913_v35  ;;  %vm15334_vm9 = vmmov %vm15332_vm3 }
 0x4c6   : > { %8849 = vmatprep.mubr.msk.f32.mxu1 %vm15326_vm4, %v12917_v37  ;;  %vm15338_vm4 = vmmov %vm15332_vm3 }
 0x4c9   : > { %8850 = vmatmul.mubr.msk.f32.gmra.mrb[108].mxu1 %vm15327_vm5, %v12921_v29  ;;  %vm15345_vm5 = vmmov %vm15332_vm3 }
 0x4ca   : > { %8852 = vmatprep.mubr.msk.f32.mxu1 %vm15328_vm10, %v4929_v10 }
 0x4cd   : > { %8853 = vmatmul.mubr.msk.f32.gmra.mrb[110].mxu1 %vm15329_vm6, %v4930_v1 }
 0x564   : > { %v8809_v17 = vpop.f32.mrb[80].mxu1 }
 0x565   : > { %v13059_v63 = vadd.f32 %v8809_v17, %v13056_v34  ;;  %v5097_v24 = vpop.f32.mrb[81].mxu1 }
 0x566   : > { %v13062_v16 = vadd.f32 %v13056_v34, %v5097_v24 }
 0x567   : > { %v7876_v22 = vmul.f32 -1.442695, %v13059_v63 }
 0x568   : > { %v7875_v11 = vmul.f32 -1.442695, %v13062_v16  ;;  %v8812_v61 = vpop.f32.mrb[82].mxu1 }
 0x569   : > { %9642 = vpow2.f32 %v7876_v22  ;;  %v13067_v4 = vadd.f32 %v8812_v61, %v13056_v34  ;;  %v5107_v46 = vpop.f32.mrb[83].mxu1 }
 0x56a   : > { %9644 = vpow2.f32 %v7875_v11  ;;  %v13070_v31 = vadd.f32 %v13056_v34, %v5107_v46 }
 0x56b   : > { %v7878_v57 = vmul.f32 -1.442695, %v13067_v4 }
 0x56c   : > { %v7877_v18 = vmul.f32 -1.442695, %v13070_v31  ;;  %v8815_v60 = vpop.f32.mrb[84].mxu1 }
 0x56d   : > { %9646 = vpow2.f32 %v7878_v57  ;;  %v13075_v2 = vadd.f32 %v8815_v60, %v13056_v34  ;;  %v5117_v3 = vpop.f32.mrb[85].mxu1 }
 0x56e   : > { %9648 = vpow2.f32 %v7877_v18  ;;  %v13078_v36 = vadd.f32 %v13056_v34, %v5117_v3 }
 0x56f   : > { %v7880_v19 = vmul.f32 -1.442695, %v13075_v2 }
 0x570   : > { %v7879_v39 = vmul.f32 -1.442695, %v13078_v36  ;;  %v8818_v44 = vpop.f32.mrb[86].mxu1 }
 0x571   : > { %9650 = vpow2.f32 %v7880_v19  ;;  %v13083_v15 = vadd.f32 %v8818_v44, %v13056_v34  ;;  %v5127_v33 = vpop.f32.mrb[87].mxu1 }
 0x572   : > { %9652 = vpow2.f32 %v7879_v39  ;;  %v13086_v13 = vadd.f32 %v13056_v34, %v5127_v33 }
 0x573   : > { %v9643_v0 = vpop.eup %9642  ;;  %v7882_v48 = vmul.f32 -1.442695, %v13083_v15 }
 0x574   : > { %v9645_v49 = vpop.eup %9644  ;;  %v5425_v14 = vadd.f32 1.0, %v9643_v0  ;;  %v7881_v8 = vmul.f32 -1.442695, %v13086_v13  ;;  %v8821_v41 = vpop.f32.mrb[88].mxu1 }
 0x575   : > { %v5424_v28 = vadd.f32 1.0, %v9645_v49  ;;  %9654 = vpow2.f32 %v7882_v48  ;;  %v13091_v35 = vadd.f32 %v8821_v41, %v13056_v34  ;;  %v5137_v37 = vpop.f32.mrb[89].mxu1 }
 0x576   : > { %9656 = vrcp.f32 %v5425_v14  ;;  %v13094_v5 = vadd.f32 %v13056_v34, %v5137_v37  ;;  %v7910_v37 = vld [vmem:[%s14501_s5 + $0xa8] sm:$0xff] }
 0x577   : > { %v9647_v29 = vpop.eup %9646  ;;  %9658 = vrcp.f32 %v5424_v28  ;;  %v7884_v25 = vmul.f32 -1.442695, %v13091_v35 }
 0x578   : > { %v9649_v42 = vpop.eup %9648  ;;  %v5427_v10 = vadd.f32 1.0, %v9647_v29  ;;  %9660 = vpow2.f32 %v7881_v8  ;;  %v7883_v1 = vmul.f32 -1.442695, %v13094_v5  ;;  %v8824_v17 = vpop.f32.mrb[90].mxu1  ;;  %v7911_v29 = vld [vmem:[%s14501_s5 + $0xb0] sm:$0xff] }
 0x579   : > { %v5426_v24 = vadd.f32 1.0, %v9649_v42  ;;  %9662 = vpow2.f32 %v7884_v25  ;;  %v13099_v22 = vadd.f32 %v8824_v17, %v13056_v34  ;;  %v5147_v11 = vpop.f32.mrb[91].mxu1  ;;  %v9041_v17 = vpack.c.bf16 %v7911_v29, %v7910_v37 }
 0x57a   : > { %9664 = vrcp.f32 %v5427_v10  ;;  %v13102_v61 = vadd.f32 %v13056_v34, %v5147_v11 }
 0x57b   : > { %v9651_v46 = vpop.eup %9650  ;;  %9666 = vrcp.f32 %v5426_v24  ;;  %v7886_v57 = vmul.f32 -1.442695, %v13099_v22  ;;  %9042 = vmatprep.subr.bf16.mxu0 %v9041_v17 }
 0x57c   : > { %v9653_v18 = vpop.eup %9652  ;;  %v5429_v60 = vadd.f32 1.0, %v9651_v46  ;;  %9668 = vpow2.f32 %v7883_v1  ;;  %v7885_v3 = vmul.f32 -1.442695, %v13102_v61  ;;  %v8827_v19 = vpop.f32.mrb[92].mxu1  ;;  %9044 = vmatpush3.bf16.msra.mxu0 %v9041_v17 }
 0x57d   : > { %v5428_v39 = vadd.f32 1.0, %v9653_v18  ;;  %9670 = vpow2.f32 %v7886_v57  ;;  %v13107_v44 = vadd.f32 %v8827_v19, %v13056_v34  ;;  %v5157_v33 = vpop.f32.mrb[93].mxu1 }
 0x57e   : > { %9672 = vrcp.f32 %v5429_v60  ;;  %v13110_v0 = vadd.f32 %v13056_v34, %v5157_v33 }
 0x57f   : > { %v9655_v48 = vpop.eup %9654  ;;  %9674 = vrcp.f32 %v5428_v39  ;;  %v7888_v49 = vmul.f32 -1.442695, %v13107_v44 }
 0x580   : > { %v9657_v14 = vpop.eup %9656  ;;  %v5431_v8 = vadd.f32 1.0, %v9655_v48  ;;  %9676 = vpow2.f32 %v7885_v3  ;;  %v7887_v41 = vmul.f32 -1.442695, %v13110_v0  ;;  %v8830_v28 = vpop.f32.mrb[94].mxu1 }
 0x581   : > { %v9659_v25 = vpop.eup %9658  ;;  %v13121_v42 = vmul.f32 %v9657_v14, %v13059_v63  ;;  %9678 = vpow2.f32 %v7888_v49  ;;  %v13124_v10 = vadd.f32 %v8830_v28, %v13056_v34  ;;  %v5167_v1 = vpop.f32.mrb[95].mxu1 }
 0x582   : > { %v9661_v24 = vpop.eup %9660  ;;  %v13127_v11 = vmul.f32 %v9659_v25, %v13062_v16  ;;  %9680 = vrcp.f32 %v5431_v8  ;;  %v13130_v46 = vadd.f32 %v13056_v34, %v5167_v1 }
 0x583   : > { %v9663_v57 = vpop.eup %9662  ;;  %v14633_v18 = vrot.slane %v13121_v42, 1  ;;  %v5430_v60 = vadd.f32 1.0, %v9661_v24  ;;  %9682 = vpow2.f32 %v7887_v41  ;;  %5810 = vrot.lane.b32.xlu1 %v13121_v42, %s9907_s25  ;;  %v7890_v16 = vmul.f32 -1.442695, %v13124_v10 }
 0x584   : > { %v9665_v63 = vpop.eup %9664  ;;  %v14632_v3 = vrot.slane %v13127_v11, 1  ;;  %v5433_v19 = vadd.f32 1.0, %v9663_v57  ;;  %5808 = vrot.lane.b32.xlu0 %v13127_v11, %s9907_s25  ;;  %v8833_v39 = vpop.f32.mrb[96].mxu1  ;;  %v7889_v49 = vmul.f32 -1.442695, %v13130_v46 }
 0x585   : > { %v9667_v33 = vpop.eup %9666  ;;  %v13140_v48 = vmul.f32 %v9665_v63, %v13067_v4  ;;  %9684 = vrcp.f32 %v5430_v60  ;;  %v13144_v14 = vadd.f32 %v8833_v39, %v13056_v34  ;;  %v5177_v8 = vpop.f32.mrb[97].mxu1 }
 0x586   : > { %v9669_v41 = vpop.eup %9668  ;;  %9686 = vrcp.f32 %v5433_v19  ;;  %v13147_v28 = vadd.f32 %v13056_v34, %v5177_v8  ;;  %v5710_v4 = vsel %vm15330_vm11, %v14632_v3, %v14633_v18  ;;  %v13156_v29 = vmul.f32 %v9667_v33, %v13070_v31 }
 0x587   : > { %v9671_v37 = vpop.eup %9670  ;;  %v5432_v25 = vadd.f32 1.0, %v9669_v41  ;;  %9688 = vpow2.f32 %v7890_v16  ;;  %5814 = vrot.lane.b32.xlu1 %v13140_v48, %s9907_s25  ;;  %v7892_v63 = vmul.f32 -1.442695, %v13144_v14  ;;  %v7912_v16 = vld [vmem:[%s14501_s5 + $0xb8] sm:$0xff] }
 0x588   : > { %v9673_v1 = vpop.eup %9672  ;;  %v5435_v17 = vadd.f32 1.0, %v9671_v37  ;;  %9690 = vpow2.f32 %v7889_v49  ;;  %5968 = vrot.lane.b32.xlu0 %v5710_v4, %s9908_s26  ;;  %v8836_v24 = vpop.f32.mrb[98].mxu1  ;;  %v7891_v31 = vmul.f32 -1.442695, %v13147_v28  ;;  %8859 = vmatprep.subr.mxu0 %v7912_v16  ;;  %v5650_v8 = vrot.slane %v13156_v29, 1 }
 0x589   : > { %v9675_v57 = vpop.eup %9674  ;;  %v13162_v60 = vmul.f32 %v9673_v1, %v13075_v2  ;;  %9692 = vrcp.f32 %v5432_v25  ;;  %v5187_v19 = vpop.f32.mrb[99].mxu1  ;;  %v13170_v33 = vadd.f32 %v8836_v24, %v13056_v34  ;;  %8860 = vmatpush3.msra.mxu0 %v7912_v16  ;;  %v5651_v25 = vrot.slane %v13140_v48, 1 }
 0x58a   : > { %v9677_v39 = vpop.eup %9676  ;;  %9694 = vrcp.f32 %v5435_v17  ;;  %v13173_v49 = vadd.f32 %v13056_v34, %v5187_v19  ;;  %v13183_v19 = vmul.f32 %v9675_v57, %v13078_v36  ;;  %v15331_v57 = vrot.slane %v13121_v42, 1 }
 0x58b   : > { %v9679_v2 = vpop.eup %9678  ;;  %v5434_v41 = vadd.f32 1.0, %v9677_v39  ;;  %9696 = vpow2.f32 %v7892_v63  ;;  %5818 = vrot.lane.b32.xlu1 %v13162_v60, %s9907_s25  ;;  %v7894_v63 = vmul.f32 -1.442695, %v13170_v33 }
 0x58c   : > { %v9681_v4 = vpop.eup %9680  ;;  %v5437_v1 = vadd.f32 1.0, %v9679_v2  ;;  %9698 = vpow2.f32 %v7891_v31  ;;  %5812 = vrot.lane.b32.xlu0 %v13156_v29, %s9907_s25  ;;  %v8839_v17 = vpop.f32.mrb[100].mxu1  ;;  %v7893_v16 = vmul.f32 -1.442695, %v13173_v49  ;;  %v5652_v18 = vrot.slane %v13183_v19, 1 }
 0x58d   : > { %v9683_v24 = vpop.eup %9682  ;;  %9700 = vrcp.f32 %v5434_v41  ;;  %v5197_v39 = vpop.f32.mrb[101].mxu1  ;;  %v13188_v37 = vadd.f32 %v8839_v17, %v13056_v34  ;;  %v5709_v41 = vsel %vm15332_vm3, %v15331_v57, %v5650_v8  ;;  %v5708_v57 = vsel %vm15334_vm9, %v5650_v8, %v5651_v25 }
 0x58e   : > { %9702 = vrcp.f32 %v5437_v1  ;;  %v5436_v3 = vadd.f32 1.0, %v9683_v24  ;;  %v13191_v31 = vadd.f32 %v13056_v34, %v5197_v39  ;;  %v13200_v1 = vmul.f32 %v9681_v4, %v13083_v15 }
 0x58f   : > { %v9685_v2 = vpop.eup %9684  ;;  %9704 = vpow2.f32 %v7894_v63  ;;  %v7896_v17 = vmul.f32 -1.442695, %v13188_v37  ;;  %v5713_v36 = vsel %vm15041_vm13, %v5709_v41, 0.0  ;;  %vm15335_vm13 = vmmov %vm15332_vm3 }
 0x590   : > { %v9687_v50 = vpop.eup %9686  ;;  %9706 = vrcp.f32 %v5436_v3  ;;  %v7895_v24 = vmul.f32 -1.442695, %v13191_v31  ;;  %v8842_v39 = vpop.f32.mrb[102].mxu1  ;;  %5970 = vrot.lane.b32.xlu1 %v5713_v36, %s9908_s26  ;;  %5972 = vrot.lane.b32.xlu0 %v5708_v57, %s9908_s26  ;;  %v13217_v15 = vmul.f32 %v9685_v2, %v13086_v13  ;;  %v5707_v54 = vsel %vm15335_vm13, %v5651_v25, %v5652_v18 }
 0x591   : > { %v9689_v6 = vpop.eup %9688  ;;  %9708 = vpow2.f32 %v7893_v16  ;;  %v5207_v51 = vpop.f32.mrb[103].mxu1  ;;  %v13232_v2 = vmul.f32 %v9687_v50, %v13091_v35 }
 0x592   : > { %v9691_v55 = vpop.eup %9690  ;;  %v5439_v4 = vadd.f32 1.0, %v9689_v6  ;;  %9710 = vpow2.f32 %v7896_v17  ;;  %v13220_v6 = vadd.f32 %v8842_v39, %v13056_v34  ;;  %v13223_v36 = vadd.f32 %v13056_v34, %v5207_v51 }
 0x593   : > { %v9693_v40 = vpop.eup %9692  ;;  %v5438_v63 = vadd.f32 1.0, %v9691_v55  ;;  %9712 = vpow2.f32 %v7895_v24  ;;  %v15344_v21 = vrot.slane %v13217_v15, 1 }
 0x594   : > { %v9695_v8 = vpop.eup %9694  ;;  %v8845_v17 = vpop.f32.mrb[104].mxu1  ;;  %9714 = vrcp.f32 %v5439_v4  ;;  %v13235_v39 = vmul.f32 %v9693_v40, %v13094_v5  ;;  %v7898_v41 = vmul.f32 -1.442695, %v13220_v6  ;;  %5822 = vrot.lane.b32.xlu1 %v13200_v1, %s9907_s25  ;;  %5816 = vrot.lane.b32.xlu0 %v13183_v19, %s9907_s25  ;;  %v7897_v50 = vmul.f32 -1.442695, %v13223_v36 }
 0x595   : > { %v9697_v57 = vpop.eup %9696  ;;  %v13227_v55 = vadd.f32 %v8845_v17, %v13056_v34  ;;  %v5217_v24 = vpop.f32.mrb[105].mxu1  ;;  %v13243_v17 = vmul.f32 %v9695_v8, %v13099_v22  ;;  %9716 = vrcp.f32 %v5438_v63  ;;  %v5715_v63 = vsel %vm15047_vm12, %v5707_v54, 0.0  ;;  %vm15341_vm12 = vmmov %vm15332_vm3 }
 0x596   : > { %v9699_v13 = vpop.eup %9698  ;;  %v5441_v51 = vadd.f32 1.0, %v9697_v57  ;;  %v13249_v57 = vadd.f32 %v13056_v34, %v5217_v24  ;;  %v15337_v8 = vrot.slane %v13162_v60, 1 }
 0x597   : > { %v9701_v4 = vpop.eup %9700  ;;  %v5440_v25 = vadd.f32 1.0, %v9699_v13  ;;  %v7900_v62 = vmul.f32 -1.442695, %v13227_v55 }
 0x598   : > { %v9703_v35 = vpop.eup %9702  ;;  %9718 = vrcp.f32 %v5441_v51  ;;  %v8848_v3 = vpop.f32.mrb[106].mxu1  ;;  %v5706_v13 = vsel %vm15338_vm4, %v5652_v18, %v15337_v8  ;;  %5974 = vrot.lane.b32.xlu1 %v5715_v63, %s9908_s26  ;;  %v13266_v8 = vmul.f32 %v9701_v4, %v13102_v61  ;;  %v7899_v24 = vmul.f32 -1.442695, %v13249_v57 }
 0x599   : > { %v9705_v16 = vpop.eup %9704  ;;  %9720 = vrcp.f32 %v5440_v25  ;;  %v5227_v40 = vpop.f32.mrb[107].mxu1  ;;  %5976 = vrot.lane.b32.xlu0 %v5706_v13, %s9908_s26  ;;  %v13272_v13 = vmul.f32 %v9703_v35, %v13107_v44 }
 0x59a   : > { %v9707_v27 = vpop.eup %9706  ;;  %v5443_v5 = vadd.f32 1.0, %v9705_v16  ;;  %9722 = vpow2.f32 %v7898_v41  ;;  %v13269_v16 = vadd.f32 %v8848_v3, %v13056_v34  ;;  %v13277_v4 = vadd.f32 %v13056_v34, %v5227_v40 }
 0x59b   : > { %v9709_v25 = vpop.eup %9708  ;;  %9724 = vpow2.f32 %v7897_v50 }
 0x59c   : > { %v9711_v18 = vpop.eup %9710  ;;  %9726 = vrcp.f32 %v5443_v5  ;;  %v5442_v51 = vadd.f32 1.0, %v9709_v25  ;;  %v8851_v41 = vpop.f32.mrb[108].mxu1  ;;  %v7902_v61 = vmul.f32 -1.442695, %v13269_v16  ;;  %5826 = vrot.lane.b32.xlu1 %v13232_v2, %s9907_s25  ;;  %v13291_v5 = vmul.f32 %v9707_v27, %v13110_v0 }
 0x59d   : > { %v9713_v63 = vpop.eup %9712  ;;  %v5445_v54 = vadd.f32 1.0, %v9711_v18  ;;  %9728 = vpow2.f32 %v7900_v62  ;;  %v5237_v58 = vpop.f32.mrb[109].mxu1  ;;  %5820 = vrot.lane.b32.xlu0 %v13217_v15, %s9907_s25  ;;  %v13285_v62 = vadd.f32 %v8851_v41, %v13056_v34  ;;  %v7901_v40 = vmul.f32 -1.442695, %v13277_v4 }
 0x59e   : > { %9730 = vrcp.f32 %v5442_v51  ;;  %v5444_v50 = vadd.f32 1.0, %v9713_v63  ;;  %v9715_v44 = vpop.eup %9714  ;;  %v13288_v35 = vadd.f32 %v13056_v34, %v5237_v58  ;;  %v15339_v51 = vrot.slane %v13217_v15, 1 }
 0x59f   : > { %9732 = vrcp.f32 %v5445_v54  ;;  %v15340_v25 = vrot.slane %v13162_v60, 1  ;;  %v9717_v63 = vpop.eup %9716  ;;  %v5658_v58 = vrot.slane %v13266_v8, 1  ;;  %v7904_v27 = vmul.f32 -1.442695, %v13285_v62 }
 0x5a0   : > { %9734 = vrcp.f32 %v5444_v50  ;;  %v8854_v54 = vpop.f32.mrb[110].mxu1  ;;  %v13305_v22 = vmul.f32 %v9715_v44, %v13124_v10  ;;  %v7903_v26 = vmul.f32 -1.442695, %v13288_v35  ;;  %v13328_v41 = vmul.f32 %v9717_v63, %v13130_v46 }
 0x5a1   : > { %v5705_v18 = vsel %vm15341_vm12, %v15340_v25, %v15339_v51  ;;  %9736 = vpow2.f32 %v7899_v24  ;;  %v5247_v0 = vpop.f32.mrb[111].mxu1  ;;  %v15343_v24 = vrot.slane %v13200_v1, 1  ;;  %v15346_v46 = vrot.slane %v13235_v39, 1 }
 0x5a2   : > { %v9719_v50 = vpop.eup %9718  ;;  %9738 = vpow2.f32 %v7902_v61  ;;  %v5717_v53 = vsel %vm15051_vm0, %v5705_v18, 0.0  ;;  %v13321_v61 = vadd.f32 %v8854_v54, %v13056_v34  ;;  %v13324_v44 = vadd.f32 %v13056_v34, %v5247_v0  ;;  %vm15348_vm0 = vmmov %vm15332_vm3 }
 0x5a3   : > { %v9721_v51 = vpop.eup %9720  ;;  %9740 = vpow2.f32 %v7901_v40  ;;  %v5704_v3 = vsel %vm15345_vm5, %v15344_v21, %v15343_v24  ;;  %5978 = vrot.lane.b32.xlu1 %v5717_v53, %s9908_s26  ;;  %v5660_v18 = vrot.slane %v13291_v5, 1  ;;  %v13332_v53 = vmul.f32 %v9719_v50, %v13144_v14  ;;  %vm15351_vm10 = vmmov %vm15348_vm0 }
 0x5a4   : > { %v9723_v32 = vpop.eup %9722  ;;  %9742 = vpow2.f32 %v7904_v27  ;;  %5980 = vrot.lane.b32.xlu0 %v5704_v3, %s9908_s26  ;;  %v7906_v54 = vmul.f32 -1.442695, %v13321_v61  ;;  %v13336_v34 = vmul.f32 %v9721_v51, %v13147_v28  ;;  %v7905_v0 = vmul.f32 -1.442695, %v13324_v44  ;;  %vm15353_vm6 = vmmov %vm15348_vm0 }
 0x5a5   : > { %v9725_v40 = vpop.eup %9724  ;;  %v5447_v21 = vadd.f32 1.0, %v9723_v32  ;;  %9744 = vpow2.f32 %v7903_v26  ;;  %v15347_v32 = vrot.slane %v13200_v1, 1  ;;  %v15349_v28 = vrot.slane %v13232_v2, 1  ;;  %vm15355_vm11 = vmmov %vm15348_vm0 }
 0x5a6   : > { %v9727_v24 = vpop.eup %9726  ;;  %v5446_v3 = vadd.f32 1.0, %v9725_v40  ;;  %v15350_v51 = vmov %v15346_v46  ;;  %vm15359_vm9 = vmmov %vm15348_vm0 }
 0x5a7   : > { %v9729_v10 = vpop.eup %9728  ;;  %9746 = vrcp.f32 %v5447_v21  ;;  %v5703_v26 = vsel %vm15348_vm0, %v15347_v32, %v15346_v46  ;;  %v13346_v14 = vmul.f32 %v9727_v24, %v13170_v33  ;;  %5830 = vrot.lane.b32.xlu1 %v13243_v17, %s9907_s25  ;;  %v5702_v40 = vsel %vm15351_vm10, %v15350_v51, %v15349_v28  ;;  %vm15361_vm13 = vmmov %vm15348_vm0 }
 0x5a8   : > { %v9731_v63 = vpop.eup %9730  ;;  %9748 = vrcp.f32 %v5446_v3  ;;  %v5449_v50 = vadd.f32 1.0, %v9729_v10  ;;  %5824 = vrot.lane.b32.xlu0 %v13235_v39, %s9907_s25  ;;  %v5663_v46 = vrot.slane %v13305_v22, 1  ;;  %v15352_v32 = vmov %v15349_v28  ;;  %vm15363_vm4 = vmmov %vm15348_vm0 }
 0x5a9   : > { %v9733_v21 = vpop.eup %9732  ;;  %v13361_v10 = vmul.f32 %v9731_v63, %v13173_v49  ;;  %9750 = vpow2.f32 %v7906_v54  ;;  %v5701_v27 = vsel %vm15353_vm6, %v15352_v32, %v5658_v58  ;;  %v15354_v28 = vrot.slane %v13243_v17, 1  ;;  %vm15364_vm12 = vmmov %vm15348_vm0 }
 0x5aa   : > { %v9735_v24 = vpop.eup %9734  ;;  %v13364_v3 = vmul.f32 %v9733_v21, %v13188_v37  ;;  %9752 = vrcp.f32 %v5449_v50  ;;  %v5662_v49 = vrot.slane %v13328_v41, 1  ;;  %v15356_v37 = vld [vmem:[#allocation19_spill] sm:$0xff]  ;;  %v5665_v21 = vrot.slane %v13332_v53, 1  ;;  %vm15365_vm5 = vmmov %vm15348_vm0 }
 0x5ab   : > { %v5700_v51 = vsel %vm15355_vm11, %v5658_v58, %v15354_v28  ;;  %v9737_v33 = vpop.eup %9736  ;;  %v13376_v54 = vmul.f32 %v9735_v24, %v13191_v31  ;;  %9754 = vpow2.f32 %v7905_v0  ;;  %vm15357_vm3 = vnez %v15356_v37  ;;  %vm15366_vm10 = vmmov %vm15348_vm0 }
 0x5ac   : > { %v5719_v63 = vsel %vm15357_vm3, %v5703_v26, 0.0  ;;  %v9739_v50 = vpop.eup %9738  ;;  %v5664_v32 = vrot.slane %v13336_v34, 1  ;;  %v5667_v25 = vrot.slane %v13346_v14, 1  ;;  %v5448_v9 = vadd.f32 1.0, %v9737_v33  ;;  %5984 = vrot.lane.b32.xlu0 %v5702_v40, %s9908_s26  ;;  %vm15369_vm11 = vmmov %vm15348_vm0 }
 0x5ad   : > { %5982 = vrot.lane.b32.xlu1 %v5719_v63, %s9908_s26  ;;  %v9741_v58 = vpop.eup %9740  ;;  %v5666_v31 = vrot.slane %v13361_v10, 1  ;;  %v5669_v0 = vrot.slane %v13364_v3, 1  ;;  %v5451_v24 = vadd.f32 1.0, %v9739_v50  ;;  %v15358_v26 = vmov %v15354_v28  ;;  %vm15370_vm3 = vmmov %vm15348_vm0 }
 0x5ae   : > { %v13391_v28 = vsel %vm15359_vm9, %v15358_v26, %v5660_v18  ;;  %v9743_v37 = vpop.eup %9742  ;;  %v5668_v45 = vrot.slane %v13376_v54, 1  ;;  %9756 = vrcp.f32 %v5448_v9  ;;  %v5450_v33 = vadd.f32 1.0, %v9741_v58  ;;  %vm15371_vm9 = vmmov %vm15348_vm0 }
 0x5af   : > { %v15360_v63 = vrot.slane %v13272_v13, 1  ;;  %v9745_v56 = vpop.eup %9744  ;;  %9758 = vrcp.f32 %v5451_v24  ;;  %v5453_v50 = vadd.f32 1.0, %v9743_v37  ;;  %v13408_v30 = vsel %vm15364_vm12, %v5662_v49, %v5663_v46 }
 0x5b0   : > { %9760 = vrcp.f32 %v5450_v33  ;;  %v5452_v58 = vadd.f32 1.0, %v9745_v56  ;;  %5828 = vrot.lane.b32.xlu0 %v13266_v8, %s9907_s25  ;;  %v13426_v56 = vsel %vm15366_vm10, %v5665_v21, %v5666_v31  ;;  %v13435_v24 = vsel %vm15369_vm11, %v5666_v31, %v5667_v25  ;;  %vm15389_vm11 = vmmov %vm15370_vm3 }
 0x5b1   : > { %v13398_v40 = vsel %vm15361_vm13, %v5660_v18, %v15360_v63  ;;  %v15362_v38 = vmov %v15360_v63  ;;  %5834 = vrot.lane.b32.xlu1 %v13272_v13, %s9907_s25  ;;  %v13417_v18 = vsel %vm15365_vm5, %v5663_v46, %v5664_v32  ;;  %9762 = vrcp.f32 %v5453_v50  ;;  %v15367_v63 = vld [vmem:[#allocation20_spill] sm:$0xff] }
 0x5b2   : > { %v13404_v26 = vsel %vm15363_vm4, %v15362_v38, %v5662_v49  ;;  %v9747_v38 = vpop.eup %9746  ;;  %v13422_v49 = vsel %vm15348_vm0, %v5664_v32, %v5665_v21  ;;  %9764 = vrcp.f32 %v5452_v58  ;;  %vm15368_vm6 = vnez %v15367_v63 }
 0x5b3   : > { %v9749_v37 = vpop.eup %9748  ;;  %v13429_v33 = vmul.f32 %v9747_v38, %v13220_v6  ;;  %v5721_v46 = vsel %vm15368_vm6, %v5701_v27, 0.0  ;;  %v13442_v21 = vsel %vm15370_vm3, %v5667_v25, %v5668_v45  ;;  %v13446_v6 = vsel %vm15371_vm9, %v5668_v45, %v5669_v0 }
 0x5b4   : > { %v9751_v50 = vpop.eup %9750  ;;  %v13438_v32 = vmul.f32 %v9749_v37, %v13223_v36  ;;  %15372 = vst [vmem:[#allocation21_spill] sm:$0xff] %v13446_v6  ;;  %v15373_v58 = vrot.slane %v13121_v42, 7  ;;  %v15374_v27 = vrot.slane %v13127_v11, 7  ;;  %vm15375_vm13 = vcmp.lt.s32.totalorder %v10162_v23, 1  ;;  %5988 = vrot.lane.b32.xlu0 %v5700_v51, %s9908_s26 }
 0x5b5   : > { %v9753_v38 = vpop.eup %9752  ;;  %v5671_v37 = vrot.slane %v13429_v33, 1  ;;  %v5455_v25 = vadd.f32 1.0, %v9751_v50  ;;  %5986 = vrot.lane.b32.xlu1 %v5721_v46, %s9908_s26  ;;  %vm15376_vm4 = vcmask 64512   ;;  %v15378_v36 = vrot.slane %v13156_v29, 7  ;;  %vm15379_vm12 = vmmov %vm15375_vm13 }
 0x5b6   : > { %v5614_v31 = vsel %vm15375_vm13, %v15374_v27, %v15373_v58  ;;  %v9755_v45 = vpop.eup %9754  ;;  %v5670_v6 = vrot.slane %v13438_v32, 1  ;;  %v13463_v58 = vmul.f32 %v9753_v38, %v13227_v55  ;;  %v15377_v27 = vrot.slane %v13140_v48, 7  ;;  %vm15380_vm5 = vmmov %vm15376_vm4 }
 0x5b7   : > { %5745 = vst.msk [vmem:[#allocation2 + $0x18] sm:$0xff] %vm15376_vm4, %v5614_v31  ;;  %9766 = vrcp.f32 %v5455_v25  ;;  %v5454_v46 = vadd.f32 1.0, %v9755_v45  ;;  %v15381_v51 = vrot.slane %v13162_v60, 7  ;;  %v15382_v31 = vrot.slane %v13183_v19, 7  ;;  %vm15383_vm0 = vmmov %vm15379_vm12  ;;  %v15387_v25 = vld [vmem:[#allocation22_spill] sm:$0xff] }
 0x5b8   : > { %v5612_v50 = vsel %vm15379_vm12, %v15378_v36, %v15377_v27  ;;  %v15384_v55 = vmov %v15378_v36  ;;  %v15385_v38 = vrot.slane %v13121_v42, 7  ;;  %vm15386_vm10 = vmmov %vm15383_vm0  ;;  %v5572_v36 = vrot.slane %v13376_v54, 7  ;;  %v9757_v42 = vpop.eup %9756  ;;  %5832 = vrot.lane.b32.xlu0 %v13291_v5, %s9907_s25 }
 0x5b9   : > { %5747 = vst.msk [vmem:[#allocation2 + $0x28] sm:$0xff] %vm15380_vm5, %v5612_v50  ;;  %v5610_v9 = vsel %vm15383_vm0, %v15382_v31, %v15381_v51  ;;  %vm15388_vm6 = vnez %v15387_v25  ;;  %v13490_v27 = vsel %vm15389_vm11, %v5669_v0, %v5670_v6  ;;  %v13494_v50 = vsel %vm15370_vm3, %v5670_v6, %v5671_v37  ;;  %vm15390_vm9 = vmmov %vm15376_vm4  ;;  %5838 = vrot.lane.b32.xlu1 %v13305_v22, %s9907_s25  ;;  %v9759_v51 = vpop.eup %9758 }
 0x5ba   : > { %v5613_v63 = vsel %vm15386_vm10, %v15385_v38, %v15384_v55  ;;  %v5723_v45 = vsel %vm15388_vm6, %v13391_v28, 0.0  ;;  %5749 = vst.msk [vmem:[#allocation2 + $0x38] sm:$0xff] %vm15390_vm9, %v5610_v9  ;;  %v5673_v29 = vrot.slane %v13463_v58, 1  ;;  %9768 = vrcp.f32 %v5454_v46  ;;  %vm15394_vm4 = vmmov %vm15383_vm0 }
 0x5bb   : > { %vm15391_vm13 = vnez %v15092_v43  ;;  %v15392_v28 = vrot.slane %v13200_v1, 7  ;;  %v15393_v6 = vrot.slane %v13217_v15, 7  ;;  %v13511_v31 = vmul.f32 %v9757_v42, %v13249_v57  ;;  %vm15395_vm12 = vmmov %vm15380_vm5 }
 0x5bc   : > { %v5618_v0 = vsel %vm15391_vm13, %v5613_v63, 0.0  ;;  %v15396_v46 = vrot.slane %v13183_v19, 7  ;;  %v15397_v43 = vrot.slane %v13140_v48, 7  ;;  %v15398_v55 = vrot.slane %v13232_v2, 7  ;;  %vm15400_vm10 = vmmov %vm15383_vm0  ;;  %v9761_v19 = vpop.eup %9760  ;;  %5992 = vrot.lane.b32.xlu0 %v13398_v40, %s9908_s26 }
 0x5bd   : > { %v5608_v9 = vsel %vm15394_vm4, %v15393_v6, %v15392_v28  ;;  %5746 = vst.msk [vmem:[#allocation2 + $0x20] sm:$0xff] %vm15395_vm12, %v5618_v0  ;;  %v15399_v38 = vrot.slane %v13235_v39, 7  ;;  %v15401_v57 = vmov %v15393_v6  ;;  %v15402_v42 = vrot.slane %v13162_v60, 7  ;;  %vm15403_vm6 = vmmov %vm15383_vm0  ;;  %5990 = vrot.lane.b32.xlu1 %v5723_v45, %s9908_s26 }
 0x5be   : > { %5751 = vst.msk [vmem:[#allocation2 + $0x48] sm:$0xff] %vm15380_vm5, %v5608_v9  ;;  %v5611_v63 = vsel %vm15383_vm0, %v15397_v43, %v15396_v46  ;;  %v13534_v48 = vmul.f32 %v9759_v51, %v13269_v16  ;;  %vm15404_vm11 = vnez %v15109_v52  ;;  %vm15405_vm3 = vmmov %vm15380_vm5  ;;  %v15406_v9 = vrot.slane %v13243_v17, 7  ;;  %v9763_v46 = vpop.eup %9762  ;;  %v15409_v52 = vld [vmem:[#allocation23_spill] sm:$0xff] }
 0x5bf   : > { %v5606_v25 = vsel %vm15400_vm10, %v15399_v38, %v15398_v55  ;;  %v5609_v0 = vsel %vm15403_vm6, %v15402_v42, %v15401_v57  ;;  %v5620_v28 = vsel %vm15404_vm11, %v5611_v63, 0.0  ;;  %v15407_v15 = vrot.slane %v13266_v8, 7  ;;  %vm15408_vm9 = vmmov %vm15383_vm0 }
 0x5c0   : > { %5753 = vst.msk [vmem:[#allocation2 + $0x58] sm:$0xff] %vm15405_vm3, %v5606_v25  ;;  %v5622_v6 = vsel %vm15117_vm2, %v5609_v0, 0.0  ;;  %v5672_v43 = vrot.slane %v13511_v31, 1  ;;  %v13549_v16 = vmul.f32 %v9761_v19, %v13277_v4  ;;  %vm15410_vm13 = vnez %v15409_v52  ;;  %vm15411_vm4 = vmmov %vm15405_vm3  ;;  %5836 = vrot.lane.b32.xlu0 %v13328_v41, %s9907_s25 }
 0x5c1   : > { %v5604_v60 = vsel %vm15408_vm9, %v15407_v15, %v15406_v9  ;;  %v5725_v51 = vsel %vm15410_vm13, %v13404_v26, 0.0  ;;  %5748 = vst.msk [vmem:[#allocation2 + $0x30] sm:$0xff] %vm15411_vm4, %v5620_v28  ;;  %vm15412_vm2 = vmmov %vm15405_vm3  ;;  %v15414_v47 = vmov %v15399_v38  ;;  %v15415_v63 = vrot.slane %v13200_v1, 7  ;;  %v9765_v38 = vpop.eup %9764  ;;  %5842 = vrot.lane.b32.xlu1 %v13332_v53, %s9907_s25 }
 0x5c2   : > { %5750 = vst.msk [vmem:[#allocation2 + $0x40] sm:$0xff] %vm15412_vm2, %v5622_v6  ;;  %vm15413_vm12 = vmmov %vm15412_vm2  ;;  %v5575_v4 = vrot.slane %v13429_v33, 7  ;;  %v5675_v25 = vrot.slane %v13534_v48, 1  ;;  %v13566_v26 = vmul.f32 %v9763_v46, %v13285_v62  ;;  %v5574_v1 = vrot.slane %v13438_v32, 7  ;;  %v9767_v6 = vpop.eup %9766 }
 0x5c3   : > { %5755 = vst.msk [vmem:[#allocation2 + $0x68] sm:$0xff] %vm15413_vm12, %v5604_v60  ;;  %vm15416_vm5 = vmmov %vm15383_vm0  ;;  %v5674_v57 = vrot.slane %v13549_v16, 1  ;;  %v13576_v42 = vmul.f32 %v9765_v38, %v13288_v35  ;;  %vm15417_vm0 = vcmp.lt.s32.totalorder %v10162_v23, 7  ;;  %v5577_v62 = vrot.slane %v13463_v58, 7  ;;  %v15510_v23 = vld [vmem:[#allocation10_spill] sm:$0xff] }
 0x5c4   : > { %v5607_v55 = vsel %vm15416_vm5, %v15415_v63, %v15414_v47  ;;  %v13580_v0 = vsel %vm15417_vm0, %v5671_v37, %v5672_v43  ;;  %vm15418_vm10 = vmmov %vm15412_vm2  ;;  %v5576_v40 = vrot.slane %v13511_v31, 7  ;;  %v5677_v20 = vrot.slane %v13566_v26, 1  ;;  %5996 = vrot.lane.b32.xlu0 %v13408_v30, %s9908_s26 }
 0x5c5   : > { %v5624_v39 = vsel %vm10820_vm14, %v5607_v55, 0.0  ;;  %vm15419_vm14 = vmmov %vm15417_vm0  ;;  %v5579_v19 = vrot.slane %v13534_v48, 7  ;;  %v5676_v35 = vrot.slane %v13576_v42, 1  ;;  %v5578_v9 = vrot.slane %v13549_v16, 7  ;;  %5994 = vrot.lane.b32.xlu1 %v5725_v51, %s9908_s26 }
 0x5c6   : > { %5752 = vst.msk [vmem:[#allocation2 + $0x50] sm:$0xff] %vm15418_vm10, %v5624_v39  ;;  %v13588_v45 = vsel %vm15419_vm14, %v5672_v43, %v5673_v29  ;;  %vm15420_vm6 = vmmov %vm15417_vm0  ;;  %v15422_v15 = vrot.slane %v13272_v13, 7  ;;  %v15423_v60 = vrot.slane %v13291_v5, 7  ;;  %v15425_v46 = vrot.slane %v13266_v8, 7 }
 0x5c7   : > { %v13594_v37 = vsel %vm15420_vm6, %v5673_v29, %v5674_v57  ;;  %vm15421_vm11 = vmmov %vm15417_vm0  ;;  %v15426_v43 = vrot.slane %v13232_v2, 7  ;;  %v15428_v47 = vrot.slane %v13305_v22, 7  ;;  %v15429_v63 = vrot.slane %v13328_v41, 7 }
 0x5c8   : > { %v13598_v28 = vsel %vm15421_vm11, %v5674_v57, %v5675_v25  ;;  %vm15424_vm3 = vmmov %vm15416_vm5  ;;  %v13624_v38 = vmul.f32 %v9767_v6, %v13321_v61  ;;  %v9769_v57 = vpop.eup %9768  ;;  %v15436_v61 = vmov %v15423_v60  ;;  %v15439_v6 = vrot.slane %v13332_v53, 7  ;;  %5840 = vrot.lane.b32.xlu0 %v13336_v34, %s9907_s25 }
 0x5c9   : > { %v5602_v29 = vsel %vm15424_vm3, %v15423_v60, %v15422_v15  ;;  %vm15427_vm9 = vmmov %vm15424_vm3  ;;  %v5581_v15 = vrot.slane %v13566_v26, 7  ;;  %v15440_v60 = vrot.slane %v13336_v34, 7  ;;  %v15447_v41 = vrot.slane %v13346_v14, 7  ;;  %5846 = vrot.lane.b32.xlu1 %v13346_v14, %s9907_s25 }
 0x5ca   : > { %v5605_v52 = vsel %vm15427_vm9, %v15426_v43, %v15425_v46  ;;  %vm15430_vm13 = vmmov %vm15424_vm3  ;;  %v15443_v46 = vrot.slane %v13272_v13, 7  ;;  %v5583_v5 = vrot.slane %v13624_v38, 7  ;;  %v15452_v30 = vrot.slane %v13364_v3, 7 }
 0x5cb   : > { %v5600_v55 = vsel %vm15430_vm13, %v15429_v63, %v15428_v47  ;;  %vm15431_vm4 = vmmov %vm15417_vm0  ;;  %v5626_v8 = vsel %vm10840_vm15, %v5605_v52, 0.0  ;;  %v13661_v52 = vmul.f32 %v9769_v57, %v13324_v44  ;;  %v15448_v44 = vrot.slane %v13361_v10, 7  ;;  %v7908_v57 = vld [vmem:[%s14501_s5 + $0x98] sm:$0xff] }
 0x5cc   : > { %v13628_v39 = vsel %vm15431_vm4, %v5675_v25, %v5676_v35  ;;  %vm15432_vm2 = vmmov %vm15417_vm0  ;;  %v15437_v25 = vrot.slane %v13243_v17, 7  ;;  %v5679_v17 = vrot.slane %v13624_v38, 1  ;;  %6000 = vrot.lane.b32.xlu0 %v13422_v49, %s9908_s26 }
 0x5cd   : > { %v13632_v2 = vsel %vm15432_vm2, %v5676_v35, %v5677_v20  ;;  %vm15433_vm12 = vmmov %vm15418_vm10  ;;  %v5596_v59 = vsel %vm15424_vm3, %v15448_v44, %v15447_v41  ;;  %v15465_v41 = vrot.slane %v13332_v53, 7  ;;  %v15473_v53 = vld [vmem:[#allocation15_spill] sm:$0xff] }
 0x5ce   : > { %5757 = vst.msk [vmem:[#allocation2 + $0x78] sm:$0xff] %vm15433_vm12, %v5602_v29  ;;  %vm15434_vm5 = vmmov %vm15418_vm10  ;;  %v15442_v29 = vmov %v15429_v63  ;;  %v15449_v63 = vmov %v15440_v60 }
 0x5cf   : > { %5759 = vst.msk [vmem:[#allocation2 + $0x88] sm:$0xff] %vm15434_vm5, %v5600_v55  ;;  %vm15435_vm0 = vmmov %vm15434_vm5  ;;  %v15450_v55 = vrot.slane %v13305_v22, 7  ;;  %v5580_v22 = vrot.slane %v13576_v42, 7 }
 0x5d0   : > { %5754 = vst.msk [vmem:[#allocation2 + $0x60] sm:$0xff] %vm15435_vm0, %v5626_v8  ;;  %vm15438_vm10 = vmmov %vm15424_vm3  ;;  %v7907_v8 = vld [vmem:[%s14501_s5 + $0x90] sm:$0xff]  ;;  %5844 = vrot.lane.b32.xlu0 %v13361_v10, %s9907_s25 }
 0x5d1   : > { %v5603_v35 = vsel %vm15438_vm10, %v15437_v25, %v15436_v61  ;;  %vm15441_vm15 = vmmov %vm15424_vm3  ;;  %v5678_v61 = vrot.slane %v13661_v52, 1  ;;  %v15454_v25 = vrot.slane %v13127_v11, 7  ;;  %v15514_v10 = vld [vmem:[#allocation21_spill] sm:$0xff] }
 0x5d2   : > { %v5598_v7 = vsel %vm15441_vm15, %v15440_v60, %v15439_v6  ;;  %vm15444_vm14 = vmmov %vm15424_vm3  ;;  %v5628_v47 = vsel %vm10862_vm7, %v5603_v35, 0.0  ;;  %v15456_v6 = vrot.slane %v13127_v11, 1  ;;  %v15464_v11 = vmov %v15448_v44 }
 0x5d3   : > { %v5601_v43 = vsel %vm15444_vm14, %v15443_v46, %v15442_v29  ;;  %vm15445_vm6 = vmmov %vm15435_vm0  ;;  %v15461_v29 = vld [vmem:[#allocation26_spill] sm:$0xff] }
 0x5d4   : > { %5761 = vst.msk [vmem:[#allocation2 + $0x98] sm:$0xff] %vm15445_vm6, %v5598_v7  ;;  %vm15446_vm11 = vmmov %vm15435_vm0  ;;  %v5630_v13 = vsel %vm10868_vm8, %v5601_v43, 0.0  ;;  %v5582_v7 = vrot.slane %v13661_v52, 7  ;;  %vm15462_vm5 = vnez %v15461_v29  ;;  %6004 = vrot.lane.b32.xlu0 %v13435_v24, %s9908_s26  ;;  %v15515_v24 = vld [vmem:[#allocation4_spill] sm:$0xff] }
 0x5d5   : > { %5756 = vst.msk [vmem:[#allocation2 + $0x70] sm:$0xff] %vm15446_vm11, %v5628_v47  ;;  %vm15451_vm7 = vmmov %vm15424_vm3  ;;  %vm15474_vm11 = vnez %v15473_v53 }
 0x5d6   : > { %v5599_v51 = vsel %vm15451_vm7, %v15450_v55, %v15449_v63  ;;  %vm15453_vm8 = vmmov %vm15424_vm3  ;;  %v15471_v63 = vld [vmem:[#allocation6_spill] sm:$0xff] }
 0x5d7   : > { %v5594_v12 = vsel %vm15453_vm8, %v5572_v36, %v15452_v30  ;;  %vm15455_vm9 = vmmov %vm15424_vm3  ;;  %v5632_v47 = vsel %vm10897_vm1, %v5599_v51, 0.0  ;;  %vm15472_vm1 = vnez %v15471_v63  ;;  %v13734_v51 = vpack.c.bf16 %v7908_v57, %v7907_v8  ;;  %v7978_v63 = vld [vmem:[%s14501_s5 + $0xc8] sm:$0xff] }
 0x5d8   : > { %v5615_v35 = vsel %vm15455_vm9, %v5583_v5, %v15454_v25  ;;  %vm15457_vm13 = vmmov %vm15432_vm2  ;;  %v15477_v30 = vrot.slane %v13346_v14, 7  ;;  %v15483_v14 = vrot.slane %v13364_v3, 7  ;;  %v15487_v25 = vld [vmem:[#allocation8_spill] sm:$0xff]  ;;  %5848 = vrot.lane.b32.xlu0 %v13376_v54, %s9907_s25  ;;  %v15517_v54 = vld [vmem:[#allocation25_spill] sm:$0xff] }
 0x5d9   : > { %v13706_v60 = vsel %vm15457_vm13, %v5679_v17, %v15456_v6  ;;  %vm15458_vm4 = vmmov %vm15435_vm0  ;;  %v5616_v46 = vsel %vm15462_vm5, %v5615_v35, 0.0  ;;  %9046 = vmatprep.subr.bf16.mxu0 %v13734_v51 }
 0x5da   : > { %5758 = vst.msk [vmem:[#allocation2 + $0x80] sm:$0xff] %vm15458_vm4, %v5630_v13  ;;  %vm15459_vm2 = vmmov %vm15435_vm0 }
 0x5db   : > { %5763 = vst.msk [vmem:[#allocation2 + $0xa8] sm:$0xff] %vm15459_vm2, %v5596_v59  ;;  %vm15460_vm12 = vmmov %vm15435_vm0 }
 0x5dc   : > { %5765 = vst.msk [vmem:[#allocation2 + $0xb8] sm:$0xff] %vm15460_vm12, %v5594_v12  ;;  %vm15466_vm0 = vmmov %vm15424_vm3  ;;  %v15481_v12 = vld [vmem:[#allocation7_spill] sm:$0xff]  ;;  %6008 = vrot.lane.b32.xlu0 %v15514_v10, %s9908_s26 }
 0x5dd   : > { %v5597_v44 = vsel %vm15466_vm0, %v15465_v41, %v15464_v11  ;;  %vm15467_vm10 = vmmov %vm15459_vm2  ;;  %vm15482_vm4 = vnez %v15481_v12  ;;  %v15506_v11 = vld [vmem:[#allocation17_spill] sm:$0xff] }
 0x5de   : > { %5744 = vst.msk [vmem:[#allocation2 + $0x10] sm:$0xff] %vm15467_vm10, %v5616_v46  ;;  %vm15468_vm15 = vmmov %vm15457_vm13  ;;  %v5634_v55 = vsel %vm15472_vm1, %v5597_v44, 0.0 }
 0x5df   : > { %v13725_v13 = vsel %vm15468_vm15, %v5677_v20, %v5678_v61  ;;  %vm15469_vm14 = vmmov %vm15457_vm13  ;;  %v5727_v20 = vsel %vm15474_vm11, %v13417_v18, 0.0  ;;  %vm15488_vm15 = vnez %v15487_v25 }
 0x5e0   : > { %v13729_v59 = vsel %vm15469_vm14, %v5678_v61, %v5679_v17  ;;  %vm15470_vm6 = vmmov %vm15459_vm2  ;;  %v5591_v61 = vsel %vm15466_vm0, %v5575_v4, %v5576_v40  ;;  %5998 = vrot.lane.b32.xlu1 %v5727_v20, %s9908_s26  ;;  %5852 = vrot.lane.b32.xlu0 %v13438_v32, %s9907_s25  ;;  %v15519_v32 = vld [vmem:[#allocation18_spill] sm:$0xff] }
 0x5e1   : > { %5760 = vst.msk [vmem:[#allocation2 + $0x90] sm:$0xff] %vm15470_vm6, %v5632_v47  ;;  %vm15475_vm3 = vmmov %vm15459_vm2 }
 0x5e2   : > { %5762 = vst.msk [vmem:[#allocation2 + $0xa0] sm:$0xff] %vm15475_vm3, %v5634_v55  ;;  %vm15476_vm7 = vmmov %vm15466_vm0 }
 0x5e3   : > { %v5592_v17 = vsel %vm15476_vm7, %v5574_v1, %v5575_v4  ;;  %vm15478_vm8 = vmmov %vm15466_vm0 }
 0x5e4   : > { %v5595_v34 = vsel %vm15478_vm8, %v15477_v30, %v5572_v36  ;;  %vm15479_vm9 = vmmov %vm15466_vm0  ;;  %5850 = vrot.lane.b32.xlu1 %v13364_v3, %s9907_s25  ;;  %v15512_v3 = vld [vmem:[#allocation12_spill] sm:$0xff]  ;;  %6012 = vrot.lane.b32.xlu0 %v13494_v50, %s9908_s26 }
 0x5e5   : > { %v5590_v18 = vsel %vm15479_vm9, %v5576_v40, %v5577_v62  ;;  %vm15480_vm13 = vmmov %vm15459_vm2  ;;  %v5636_v8 = vsel %vm15482_vm4, %v5595_v34, 0.0  ;;  %v15497_v40 = vld [vmem:[#allocation9_spill] sm:$0xff] }
 0x5e6   : > { %5767 = vst.msk [vmem:[#allocation2 + $0xc8] sm:$0xff] %vm15480_vm13, %v5592_v17  ;;  %vm15484_vm12 = vmmov %vm15466_vm0  ;;  %vm15498_vm9 = vnez %v15497_v40 }
 0x5e7   : > { %5769 = vst.msk [vmem:[#allocation2 + $0xd8] sm:$0xff] %vm15459_vm2, %v5590_v18  ;;  %v5593_v36 = vsel %vm15484_vm12, %v15483_v14, %v5574_v1  ;;  %vm15485_vm5 = vmmov %vm15466_vm0  ;;  %v15490_v1 = vld [vmem:[#allocation14_spill] sm:$0xff] }
 0x5e8   : > { %v5588_v57 = vsel %vm15485_vm5, %v5578_v9, %v5579_v19  ;;  %vm15486_vm10 = vmmov %vm15459_vm2  ;;  %v5638_v35 = vsel %vm15488_vm15, %v5593_v36, 0.0  ;;  %vm15491_vm6 = vnez %v15490_v1  ;;  %5856 = vrot.lane.b32.xlu0 %v13511_v31, %s9907_s25 }
 0x5e9   : > { %5764 = vst.msk [vmem:[#allocation2 + $0xb0] sm:$0xff] %vm15486_vm10, %v5636_v8  ;;  %vm15489_vm14 = vmmov %vm15459_vm2  ;;  %v5640_v6 = vsel %vm15491_vm6, %v5591_v61, 0.0  ;;  %vm15507_vm10 = vnez %v15506_v11  ;;  %vm15511_vm6 = vnez %v15510_v23 }
 0x5ea   : > { %5771 = vst.msk [vmem:[#allocation2 + $0xe8] sm:$0xff] %vm15489_vm14, %v5588_v57  ;;  %vm15492_vm1 = vmmov %vm15466_vm0  ;;  %v5729_v49 = vsel %vm15511_vm6, %v13426_v56, 0.0 }
 0x5eb   : > { %v5586_v29 = vsel %vm15492_vm1, %v5580_v22, %v5581_v15  ;;  %vm15493_vm11 = vmmov %vm15466_vm0  ;;  %6002 = vrot.lane.b32.xlu1 %v5729_v49, %s9908_s26  ;;  %vm15513_vm1 = vnez %v15512_v3 }
 0x5ec   : > { %v5589_v4 = vsel %vm15493_vm11, %v5577_v62, %v5578_v9  ;;  %vm15494_vm3 = vmmov %vm15459_vm2  ;;  %v15504_v9 = vld [vmem:[#allocation3_spill] sm:$0xff]  ;;  %vm15516_vm11 = vnez %v15515_v24  ;;  %6016 = vrot.lane.b32.xlu0 %v13588_v45, %s9908_s26 }
 0x5ed   : > { %5766 = vst.msk [vmem:[#allocation2 + $0xc0] sm:$0xff] %vm15494_vm3, %v5638_v35  ;;  %vm15495_vm7 = vmmov %vm15459_vm2  ;;  %v5642_v46 = vsel %vm15498_vm9, %v5589_v4, 0.0  ;;  %v5733_v56 = vsel %vm15516_vm11, %v13490_v27, 0.0 }
 0x5ee   : > { %5768 = vst.msk [vmem:[#allocation2 + $0xd0] sm:$0xff] %vm15495_vm7, %v5640_v6  ;;  %vm15496_vm8 = vmmov %vm15459_vm2  ;;  %vm15520_vm7 = vnez %v15519_v32 }
 0x5ef   : > { %5773 = vst.msk [vmem:[#allocation2 + $0xf8] sm:$0xff] %vm15496_vm8, %v5586_v29  ;;  %vm15499_vm13 = vmmov %vm15466_vm0  ;;  %5854 = vrot.lane.b32.xlu1 %v13429_v33, %s9907_s25  ;;  %vm15521_vm8 = vcmask 130112  }
 0x5f0   : > { %v5584_v43 = vsel %vm15499_vm13, %v5582_v7, %v5583_v5  ;;  %vm15500_vm4 = vmmov %vm15466_vm0  ;;  %5860 = vrot.lane.b32.xlu0 %v13549_v16, %s9907_s25 }
 0x5f1   : > { %v5587_v47 = vsel %vm15500_vm4, %v5579_v19, %v5580_v22  ;;  %vm15501_vm2 = vmmov %vm15466_vm0  ;;  %vm15505_vm0 = vnez %v15504_v9 }
 0x5f2   : > { %v5585_v62 = vsel %vm15501_vm2, %v5581_v15, %v5582_v7  ;;  %vm15502_vm12 = vmmov %vm15494_vm3  ;;  %v5644_v5 = vsel %vm15505_vm0, %v5587_v47, 0.0  ;;  %v5731_v15 = vsel %vm15513_vm1, %v13442_v21, 0.0  ;;  %v5737_v21 = vsel %vm15520_vm7, %v13594_v37, 0.0  ;;  %v7977_v7 = vld [vmem:[%s14501_s5 + $0xc0] sm:$0xff] }
 0x5f3   : > { %5770 = vst.msk [vmem:[#allocation2 + $0xe0] sm:$0xff] %vm15502_vm12, %v5642_v46  ;;  %vm15503_vm5 = vmmov %vm15494_vm3  ;;  %v5646_v19 = vsel %vm15507_vm10, %v5585_v62, 0.0  ;;  %6006 = vrot.lane.b32.xlu1 %v5731_v15, %s9908_s26  ;;  %vm15526_vm2 = vcmask 195712   ;;  %v13933_v55 = vpack.c.bf16 %v7978_v63, %v7977_v7 }
 0x5f4   : > { %5775 = vst.msk [vmem:[#allocation2 + $0x108] sm:$0xff] %vm15503_vm5, %v5584_v43  ;;  %vm15508_vm15 = vmmov %vm15494_vm3  ;;  %6020 = vrot.lane.b32.xlu0 %v13598_v28, %s9908_s26  ;;  %v15531_v28 = vld [vmem:[#allocation31_spill] sm:$0xff] }
 0x5f5   : > { %5772 = vst.msk [vmem:[#allocation2 + $0xf0] sm:$0xff] %vm15508_vm15, %v5644_v5  ;;  %vm15509_vm14 = vmmov %vm15494_vm3  ;;  %vm15518_vm3 = vnez %v15517_v54  ;;  %vm15532_vm10 = vnez %v15531_v28  ;;  %vm15533_vm15 = vcmask 195584  }
 0x5f6   : > { %5774 = vst.msk [vmem:[#allocation2 + $0x100] sm:$0xff] %vm15509_vm14, %v5646_v19  ;;  %v5735_v33 = vsel %vm15518_vm3, %v13580_v0, 0.0  ;;  %v5809_v27 = vpop.permute.xlu0 %5808  ;;  %vm15522_vm9 = vmmov %vm15521_vm8 }
 0x5f7   : > { %5858 = vrot.lane.b32.xlu1 %v13463_v58, %s9907_s25  ;;  %v5811_v58 = vpop.permute.xlu1 %5810  ;;  %5904 = vst.msk [vmem:[#allocation2 + $0x10] sm:$0xff] %vm15522_vm9, %v5809_v27  ;;  %vm15523_vm13 = vmmov %vm15521_vm8 }
 0x5f8   : > { %5905 = vst.msk [vmem:[#allocation2 + $0x18] sm:$0xff] %vm15521_vm8, %v5811_v58  ;;  %5864 = vrot.lane.b32.xlu0 %v13576_v42, %s9907_s25  ;;  %vm15527_vm12 = vmmov %vm15521_vm8  ;;  %v15528_v42 = vld [vmem:[#allocation30_spill] sm:$0xff] }
 0x5f9   : > { %vm15529_vm5 = vnez %v15528_v42  ;;  %vm15530_vm0 = vmmov %vm15521_vm8 }
 0x5fa   : > { %v5969_v31 = vpop.permute.xlu0 %5968  ;;  %v5741_v45 = vsel %vm15529_vm5, %v13725_v13, 0.0  ;;  %vm15534_vm14 = vmmov %vm15526_vm2 }
 0x5fb   : > { %6010 = vrot.lane.b32.xlu1 %v5733_v56, %s9908_s26  ;;  %v5815_v50 = vpop.permute.xlu1 %5814  ;;  %6064 = vst.msk [vmem:[#allocation2 + $0x10] sm:$0xff] %vm15526_vm2, %v5969_v31  ;;  %vm15535_vm6 = vmmov %vm15526_vm2 }
 0x5fc   : > { %5907 = vst.msk [vmem:[#allocation2 + $0x28] sm:$0xff] %vm15523_vm13, %v5815_v50  ;;  %6024 = vrot.lane.b32.xlu0 %v13632_v2, %s9908_s26  ;;  %vm15536_vm1 = vmmov %vm15530_vm0 }
 0x5fd   : > { %vm15537_vm11 = vmmov %vm15530_vm0 }
 0x5fe   : > { %v5813_v0 = vpop.permute.xlu0 %5812  ;;  %vm15538_vm3 = vmmov %vm15526_vm2 }
 0x5ff   : > { %5862 = vrot.lane.b32.xlu1 %v13534_v48, %s9907_s25  ;;  %v15524_v48 = vld [vmem:[#allocation29_spill] sm:$0xff]  ;;  %5906 = vst.msk [vmem:[#allocation2 + $0x20] sm:$0xff] %vm15530_vm0, %v5813_v0  ;;  %vm15539_vm7 = vmmov %vm15526_vm2 }
 0x600   : > { %vm15525_vm4 = vnez %v15524_v48  ;;  %5868 = vrot.lane.b32.xlu0 %v13661_v52, %s9907_s25  ;;  %vm15540_vm8 = vmmov %vm15533_vm15 }
 0x601   : > { %v5739_v16 = vsel %vm15525_vm4, %v13628_v39, 0.0  ;;  %vm15541_vm9 = vmmov %vm15540_vm8 }
 0x602   : > { %v13899_v37 = vld [vmem:[#allocation2 + $0x10] sm:$0xff]  ;;  %v5973_v2 = vpop.permute.xlu0 %5972  ;;  %vm15542_vm13 = vmmov %vm15530_vm0 }
 0x603   : > { %6014 = vrot.lane.b32.xlu1 %v5735_v33, %s9908_s26  ;;  %8861 = vmatprep.mubr.msk.f32.mxu0 %vm15533_vm15, %v13899_v37  ;;  %6066 = vst.msk [vmem:[#allocation2 + $0x20] sm:$0xff] %vm15535_vm6, %v5973_v2  ;;  %vm15543_vm4 = vmmov %vm15530_vm0 }
 0x604   : > { %6028 = vrot.lane.b32.xlu0 %v13729_v59, %s9908_s26  ;;  %vm15544_vm2 = vmmov %vm15540_vm8 }
 0x605   : > { %vm15546_vm5 = vmmov %vm15538_vm3 }
 0x606   : > { %v5817_v22 = vpop.permute.xlu0 %5816  ;;  %vm15547_vm0 = vmmov %vm15538_vm3 }
 0x607   : > { %5866 = vrot.lane.b32.xlu1 %v13566_v26, %s9907_s25  ;;  %v5819_v26 = vpop.permute.xlu1 %5818  ;;  %5908 = vst.msk [vmem:[#allocation2 + $0x30] sm:$0xff] %vm15537_vm11, %v5817_v22  ;;  %vm15549_vm15 = vmmov %vm15536_vm1 }
 0x608   : > { %5909 = vst.msk [vmem:[#allocation2 + $0x38] sm:$0xff] %vm15527_vm12, %v5819_v26  ;;  %vm15545_vm12 = vmmov %vm15544_vm2 }
 0x609   : > { %vm15551_vm6 = vmmov %vm15547_vm0 }
 0x60a   : > { %v13921_v59 = vld [vmem:[#allocation2 + $0x20] sm:$0xff] }
 0x60b   : > { %6018 = vrot.lane.b32.xlu1 %v5737_v21, %s9908_s26  ;;  %v5971_v39 = vpop.permute.xlu1 %5970  ;;  %v5977_v44 = vpop.permute.xlu0 %5976 }
 0x60c   : > { %6065 = vst.msk [vmem:[#allocation2 + $0x18] sm:$0xff] %vm15534_vm14, %v5971_v39  ;;  %vm15550_vm14 = vmmov %vm15547_vm0 }
 0x60d   : > { %6068 = vst.msk [vmem:[#allocation2 + $0x30] sm:$0xff] %vm15539_vm7, %v5977_v44 }
 0x60f   : > { %5870 = vrot.lane.b32.xlu1 %v13624_v38, %s9907_s25  ;;  %v5743_v38 = vsel %vm15532_vm10, %v13706_v60, 0.0  ;;  %v5823_v52 = vpop.permute.xlu1 %5822  ;;  %v7909_v60 = vld [vmem:[%s14501_s5 + $0xa0] sm:$0xff]  ;;  %v5821_v20 = vpop.permute.xlu0 %5820  ;;  %vm15548_vm10 = vmmov %vm15536_vm1 }
 0x610   : > { %5911 = vst.msk [vmem:[#allocation2 + $0x48] sm:$0xff] %vm15536_vm1, %v5823_v52  ;;  %vm15552_vm1 = vmmov %vm15544_vm2 }
 0x611   : > { %5910 = vst.msk [vmem:[#allocation2 + $0x40] sm:$0xff] %vm15543_vm4, %v5821_v20  ;;  %vm15553_vm11 = vmmov %vm15552_vm1 }
 0x613   : > { %6022 = vrot.lane.b32.xlu1 %v5739_v16, %s9908_s26  ;;  %v5975_v41 = vpop.permute.xlu1 %5974  ;;  %v13919_v13 = vld [vmem:[#allocation2 + $0x18] sm:$0xff] }
 0x614   : > { %6067 = vst.msk [vmem:[#allocation2 + $0x28] sm:$0xff] %vm15538_vm3, %v5975_v41  ;;  %8862 = vmatmul.mubr.msk.f32.vlgmr.msra.gmra.mrb[48].mxu0 %vm15540_vm8, %v13919_v13  ;;  %v13940_v30 = vld [vmem:[#allocation2 + $0x30] sm:$0xff]  ;;  %vm15554_vm3 = vmmov %vm15543_vm4 }
 0x615   : > { %8864 = vmatprep.mubr.msk.f32.mxu0 %vm15541_vm9, %v13921_v59  ;;  %9048 = vmatpush3.bf16.msra.mxu0 %v13734_v51  ;;  %vm15555_vm7 = vmmov %vm15554_vm3 }
 0x616   : > { %8913 = vmatprep.subr.mxu0 %v7909_v60  ;;  %v5981_v34 = vpop.permute.xlu0 %5980  ;;  %vm15556_vm8 = vmmov %vm15547_vm0 }
 0x617   : > { %6026 = vrot.lane.b32.xlu1 %v5741_v45, %s9908_s26  ;;  %v5827_v53 = vpop.permute.xlu1 %5826  ;;  %6070 = vst.msk [vmem:[#allocation2 + $0x40] sm:$0xff] %vm15547_vm0, %v5981_v34  ;;  %vm15557_vm9 = vmmov %vm15547_vm0 }
 0x618   : > { %5913 = vst.msk [vmem:[#allocation2 + $0x58] sm:$0xff] %vm15542_vm13, %v5827_v53  ;;  %vm15558_vm13 = vmmov %vm15552_vm1 }
 0x619   : > { %8914 = vmatpush3.msra.mxu0 %v7909_v60  ;;  %vm15559_vm4 = vmmov %vm15552_vm1 }
 0x61a   : > { %9050 = vmatprep.subr.bf16.mxu0 %v13933_v55  ;;  %v5825_v12 = vpop.permute.xlu0 %5824 }
 0x61b   : > { %6030 = vrot.lane.b32.xlu1 %v5743_v38, %s9908_s26  ;;  %v13938_v17 = vld [vmem:[#allocation2 + $0x28] sm:$0xff]  ;;  %v5979_v51 = vpop.permute.xlu1 %5978  ;;  %5912 = vst.msk [vmem:[#allocation2 + $0x50] sm:$0xff] %vm15549_vm15, %v5825_v12  ;;  %vm15564_vm15 = vmmov %vm15552_vm1 }
 0x61c   : > { %8865 = vmatmul.mubr.msk.f32.gmra.mrb[50].mxu0 %vm15544_vm2, %v13938_v17  ;;  %6069 = vst.msk [vmem:[#allocation2 + $0x38] sm:$0xff] %vm15546_vm5, %v5979_v51  ;;  %vm15560_vm2 = vmmov %vm15554_vm3 }
 0x61d   : > { %8867 = vmatprep.mubr.msk.f32.mxu0 %vm15545_vm12, %v13940_v30  ;;  %vm15561_vm12 = vmmov %vm15560_vm2 }
 0x61e   : > { %v5985_v14 = vpop.permute.xlu0 %5984  ;;  %v13952_v57 = vld [vmem:[#allocation2 + $0x40] sm:$0xff]  ;;  %vm15562_vm5 = vmmov %vm15547_vm0 }
 0x61f   : > { %v5831_v18 = vpop.permute.xlu1 %5830  ;;  %6072 = vst.msk [vmem:[#allocation2 + $0x50] sm:$0xff] %vm15551_vm6, %v5985_v14  ;;  %vm15566_vm6 = vmmov %vm15560_vm2 }
 0x620   : > { %5915 = vst.msk [vmem:[#allocation2 + $0x68] sm:$0xff] %vm15548_vm10, %v5831_v18  ;;  %vm15563_vm10 = vmmov %vm15552_vm1 }
 0x622   : > { %v5829_v25 = vpop.permute.xlu0 %5828 }
 0x623   : > { %v5983_v8 = vpop.permute.xlu1 %5982  ;;  %v13950_v36 = vld [vmem:[#allocation2 + $0x38] sm:$0xff]  ;;  %5914 = vst.msk [vmem:[#allocation2 + $0x60] sm:$0xff] %vm15555_vm7, %v5829_v25 }
 0x624   : > { %6071 = vst.msk [vmem:[#allocation2 + $0x48] sm:$0xff] %vm15550_vm14, %v5983_v8  ;;  %8868 = vmatmul.mubr.msk.f32.gmra.mrb[52].mxu0 %vm15552_vm1, %v13950_v36  ;;  %vm15565_vm14 = vmmov %vm15560_vm2 }
 0x625   : > { %8870 = vmatprep.mubr.msk.f32.mxu0 %vm15553_vm11, %v13952_v57  ;;  %vm15567_vm1 = vmmov %vm15547_vm0 }
 0x626   : > { %v5989_v1 = vpop.permute.xlu0 %5988  ;;  %v13964_v29 = vld [vmem:[#allocation2 + $0x50] sm:$0xff]  ;;  %vm15568_vm11 = vmmov %vm15547_vm0 }
 0x627   : > { %v5835_v61 = vpop.permute.xlu1 %5834  ;;  %6074 = vst.msk [vmem:[#allocation2 + $0x60] sm:$0xff] %vm15557_vm9, %v5989_v1  ;;  %vm15572_vm9 = vmmov %vm15560_vm2 }
 0x628   : > { %5917 = vst.msk [vmem:[#allocation2 + $0x78] sm:$0xff] %vm15554_vm3, %v5835_v61  ;;  %vm15569_vm3 = vmmov %vm15559_vm4 }
 0x629   : > { %vm15570_vm7 = vmmov %vm15569_vm3 }
 0x62a   : > { %v5833_v40 = vpop.permute.xlu0 %5832 }
 0x62b   : > { %v5987_v35 = vpop.permute.xlu1 %5986  ;;  %v13962_v6 = vld [vmem:[#allocation2 + $0x48] sm:$0xff]  ;;  %5916 = vst.msk [vmem:[#allocation2 + $0x70] sm:$0xff] %vm15561_vm12, %v5833_v40 }
 0x62c   : > { %6073 = vst.msk [vmem:[#allocation2 + $0x58] sm:$0xff] %vm15556_vm8, %v5987_v35  ;;  %8871 = vmatmul.mubr.msk.f32.gmra.mrb[54].mxu0 %vm15558_vm13, %v13962_v6  ;;  %vm15571_vm8 = vmmov %vm15560_vm2 }
 0x62d   : > { %8873 = vmatprep.mubr.msk.f32.mxu0 %vm15559_vm4, %v13964_v29  ;;  %vm15573_vm13 = vmmov %vm15547_vm0 }
 0x62e   : > { %v5993_v43 = vpop.permute.xlu0 %5992  ;;  %v13976_v62 = vld [vmem:[#allocation2 + $0x60] sm:$0xff]  ;;  %vm15574_vm4 = vmmov %vm15547_vm0 }
 0x62f   : > { %v5839_v4 = vpop.permute.xlu1 %5838  ;;  %6076 = vst.msk [vmem:[#allocation2 + $0x70] sm:$0xff] %vm15547_vm0, %v5993_v43 }
 0x630   : > { %5919 = vst.msk [vmem:[#allocation2 + $0x88] sm:$0xff] %vm15560_vm2, %v5839_v4  ;;  %vm15575_vm2 = vmmov %vm15569_vm3 }
 0x631   : > { %vm15576_vm12 = vmmov %vm15575_vm2 }
 0x632   : > { %v5837_v5 = vpop.permute.xlu0 %5836 }
 0x633   : > { %v5991_v46 = vpop.permute.xlu1 %5990  ;;  %v13974_v47 = vld [vmem:[#allocation2 + $0x58] sm:$0xff]  ;;  %5918 = vst.msk [vmem:[#allocation2 + $0x80] sm:$0xff] %vm15566_vm6, %v5837_v5 }
 0x634   : > { %6075 = vst.msk [vmem:[#allocation2 + $0x68] sm:$0xff] %vm15562_vm5, %v5991_v46  ;;  %8874 = vmatmul.mubr.msk.f32.gmra.mrb[56].mxu0 %vm15563_vm10, %v13974_v47  ;;  %vm15577_vm5 = vmmov %vm15566_vm6 }
 0x635   : > { %8876 = vmatprep.mubr.msk.f32.mxu0 %vm15564_vm15, %v13976_v62  ;;  %vm15578_vm0 = vmmov %vm15577_vm5 }
 0x636   : > { %v5997_v19 = vpop.permute.xlu0 %5996  ;;  %v13988_v49 = vld [vmem:[#allocation2 + $0x70] sm:$0xff]  ;;  %vm15579_vm10 = vmmov %vm15567_vm1 }
 0x637   : > { %v5843_v9 = vpop.permute.xlu1 %5842  ;;  %6078 = vst.msk [vmem:[#allocation2 + $0x80] sm:$0xff] %vm15568_vm11, %v5997_v19  ;;  %vm15580_vm15 = vmmov %vm15567_vm1 }
 0x638   : > { %5921 = vst.msk [vmem:[#allocation2 + $0x98] sm:$0xff] %vm15565_vm14, %v5843_v9  ;;  %vm15581_vm14 = vmmov %vm15575_vm2 }
 0x639   : > { %vm15582_vm6 = vmmov %vm15575_vm2 }
 0x63a   : > { %v5841_v15 = vpop.permute.xlu0 %5840  ;;  %vm15584_vm11 = vmmov %vm15578_vm0 }
 0x63b   : > { %v5995_v11 = vpop.permute.xlu1 %5994  ;;  %v13986_v23 = vld [vmem:[#allocation2 + $0x68] sm:$0xff]  ;;  %5920 = vst.msk [vmem:[#allocation2 + $0x90] sm:$0xff] %vm15572_vm9, %v5841_v15  ;;  %vm15588_vm9 = vmmov %vm15575_vm2 }
 0x63c   : > { %6077 = vst.msk [vmem:[#allocation2 + $0x78] sm:$0xff] %vm15567_vm1, %v5995_v11  ;;  %8877 = vmatmul.mubr.msk.f32.gmra.mrb[58].mxu0 %vm15569_vm3, %v13986_v23  ;;  %vm15583_vm1 = vmmov %vm15578_vm0 }
 0x63d   : > { %8879 = vmatprep.mubr.msk.f32.mxu0 %vm15570_vm7, %v13988_v49  ;;  %vm15585_vm3 = vmmov %vm15574_vm4 }
 0x63e   : > { %v6001_v24 = vpop.permute.xlu0 %6000  ;;  %v14000_v54 = vld [vmem:[#allocation2 + $0x80] sm:$0xff]  ;;  %vm15586_vm7 = vmmov %vm15585_vm3 }
 0x63f   : > { %v5847_v3 = vpop.permute.xlu1 %5846  ;;  %6080 = vst.msk [vmem:[#allocation2 + $0x90] sm:$0xff] %vm15574_vm4, %v6001_v24  ;;  %vm15590_vm4 = vmmov %vm15578_vm0  ;;  %v7979_v24 = vld [vmem:[%s14501_s5 + $0xd0] sm:$0xff] }
 0x640   : > { %5923 = vst.msk [vmem:[#allocation2 + $0xa8] sm:$0xff] %vm15571_vm8, %v5847_v3  ;;  %vm15587_vm8 = vmmov %vm15575_vm2  ;;  %v6096_v3 = vld [vmem:[#allocation2] sm:$0xff] }
 0x642   : > { %v5845_v32 = vpop.permute.xlu0 %5844 }
 0x643   : > { %v13998_v56 = vld [vmem:[#allocation2 + $0x78] sm:$0xff]  ;;  %5922 = vst.msk [vmem:[#allocation2 + $0xa0] sm:$0xff] %vm15578_vm0, %v5845_v32 }
 0x644   : > { %8880 = vmatmul.mubr.msk.f32.gmra.mrb[60].mxu0 %vm15575_vm2, %v13998_v56  ;;  %vm15591_vm2 = vmmov %vm15585_vm3 }
 0x645   : > { %8882 = vmatprep.mubr.msk.f32.mxu0 %vm15576_vm12, %v14000_v54  ;;  %vm15592_vm12 = vmmov %vm15591_vm2 }
 0x646   : > { %v6005_v58 = vpop.permute.xlu0 %6004  ;;  %v14012_v50 = vld [vmem:[#allocation2 + $0x90] sm:$0xff] }
 0x647   : > { %6082 = vst.msk [vmem:[#allocation2 + $0xa0] sm:$0xff] %vm15580_vm15, %v6005_v58  ;;  %vm15596_vm15 = vmmov %vm15583_vm1 }
 0x64a   : > { %v5849_v48 = vpop.permute.xlu0 %5848 }
 0x64b   : > { %5924 = vst.msk [vmem:[#allocation2 + $0xb0] sm:$0xff] %vm15584_vm11, %v5849_v48 }
 0x64e   : > { %v6009_v26 = vpop.permute.xlu0 %6008  ;;  %v14024_v42 = vld [vmem:[#allocation2 + $0xa0] sm:$0xff] }
 0x64f   : > { %6084 = vst.msk [vmem:[#allocation2 + $0xb0] sm:$0xff] %vm15586_vm7, %v6009_v26 }
 0x652   : > { %v5999_v10 = vpop.permute.xlu1 %5998  ;;  %v5853_v28 = vpop.permute.xlu0 %5852 }
 0x653   : > { %6079 = vst.msk [vmem:[#allocation2 + $0x88] sm:$0xff] %vm15573_vm13, %v5999_v10  ;;  %vm15589_vm13 = vmmov %vm15578_vm0  ;;  %v6097_v10 = vld [vmem:[#allocation2 + $0x8] sm:$0xff] }
 0x654   : > { %5926 = vst.msk [vmem:[#allocation2 + $0xc0] sm:$0xff] %vm15590_vm4, %v5853_v28 }
 0x656   : > { %v5851_v33 = vpop.permute.xlu1 %5850  ;;  %v6013_v39 = vpop.permute.xlu0 %6012  ;;  %v14036_v52 = vld [vmem:[#allocation2 + $0xb0] sm:$0xff] }
 0x657   : > { %5925 = vst.msk [vmem:[#allocation2 + $0xb8] sm:$0xff] %vm15577_vm5, %v5851_v33  ;;  %vm15593_vm5 = vmmov %vm15582_vm6 }
 0x658   : > { %6086 = vst.msk [vmem:[#allocation2 + $0xc0] sm:$0xff] %vm15592_vm12, %v6013_v39  ;;  %vm15594_vm0 = vmmov %vm15593_vm5 }
 0x659   : > { %vm15600_vm11 = vmmov %vm15594_vm0 }
 0x65a   : > { %v14010_v27 = vld [vmem:[#allocation2 + $0x88] sm:$0xff]  ;;  %v5857_v60 = vpop.permute.xlu0 %5856 }
 0x65b   : > { %8883 = vmatmul.mubr.msk.f32.gmra.mrb[62].mxu0 %vm15581_vm14, %v14010_v27  ;;  %5928 = vst.msk [vmem:[#allocation2 + $0xd0] sm:$0xff] %vm15596_vm15, %v5857_v60  ;;  %vm15597_vm14 = vmmov %vm15591_vm2 }
 0x65c   : > { %8885 = vmatprep.mubr.msk.f32.mxu0 %vm15582_vm6, %v14012_v50  ;;  %vm15598_vm6 = vmmov %vm15591_vm2 }
 0x65d   : > { %v6003_v21 = vpop.permute.xlu1 %6002 }
 0x65e   : > { %6081 = vst.msk [vmem:[#allocation2 + $0x98] sm:$0xff] %vm15579_vm10, %v6003_v21  ;;  %vm15595_vm10 = vmmov %vm15583_vm1  ;;  %v6017_v41 = vpop.permute.xlu0 %6016 }
 0x65f   : > { %v14048_v63 = vld [vmem:[#allocation2 + $0xc0] sm:$0xff]  ;;  %6088 = vst.msk [vmem:[#allocation2 + $0xd0] sm:$0xff] %vm15598_vm6, %v6017_v41 }
 0x661   : > { %v5855_v31 = vpop.permute.xlu1 %5854 }
 0x662   : > { %5927 = vst.msk [vmem:[#allocation2 + $0xc8] sm:$0xff] %vm15583_vm1, %v5855_v31  ;;  %vm15599_vm1 = vmmov %vm15594_vm0  ;;  %v5861_v20 = vpop.permute.xlu0 %5860 }
 0x663   : > { %vm15612_vm15 = vmmov %vm15599_vm1 }
 0x665   : > { %v6007_v16 = vpop.permute.xlu1 %6006  ;;  %v14022_v0 = vld [vmem:[#allocation2 + $0x98] sm:$0xff] }
 0x666   : > { %6083 = vst.msk [vmem:[#allocation2 + $0xa8] sm:$0xff] %vm15585_vm3, %v6007_v16  ;;  %8886 = vmatmul.mubr.msk.f32.gmra.mrb[64].mxu0 %vm15587_vm8, %v14022_v0  ;;  %vm15601_vm3 = vmmov %vm15590_vm4  ;;  %v6021_v34 = vpop.permute.xlu0 %6020  ;;  %v14060_v12 = vld [vmem:[#allocation2 + $0xd0] sm:$0xff] }
 0x667   : > { %8888 = vmatprep.mubr.msk.f32.mxu0 %vm15588_vm9, %v14024_v42  ;;  %vm15602_vm7 = vmmov %vm15601_vm3 }
 0x668   : > { %5930 = vst.msk [vmem:[#allocation2 + $0xe0] sm:$0xff] %vm15602_vm7, %v5861_v20  ;;  %vm15603_vm8 = vmmov %vm15591_vm2 }
 0x669   : > { %v5859_v45 = vpop.permute.xlu1 %5858  ;;  %vm15604_vm9 = vmmov %vm15591_vm2 }
 0x66a   : > { %5929 = vst.msk [vmem:[#allocation2 + $0xd8] sm:$0xff] %vm15589_vm13, %v5859_v45  ;;  %vm15605_vm13 = vmmov %vm15594_vm0  ;;  %v5865_v14 = vpop.permute.xlu0 %5864 }
 0x66b   : > { %6090 = vst.msk [vmem:[#allocation2 + $0xe0] sm:$0xff] %vm15604_vm9, %v6021_v34  ;;  %vm15606_vm4 = vmmov %vm15594_vm0 }
 0x66c   : > { %vm15618_vm7 = vmmov %vm15606_vm4 }
 0x66d   : > { %v6011_v38 = vpop.permute.xlu1 %6010  ;;  %v14034_v2 = vld [vmem:[#allocation2 + $0xa8] sm:$0xff]  ;;  %vm15620_vm9 = vmmov %vm15606_vm4 }
 0x66e   : > { %6085 = vst.msk [vmem:[#allocation2 + $0xb8] sm:$0xff] %vm15591_vm2, %v6011_v38  ;;  %8889 = vmatmul.mubr.msk.f32.gmra.mrb[66].mxu0 %vm15593_vm5, %v14034_v2  ;;  %vm15607_vm2 = vmmov %vm15601_vm3  ;;  %v6025_v25 = vpop.permute.xlu0 %6024 }
 0x66f   : > { %8891 = vmatprep.mubr.msk.f32.mxu0 %vm15594_vm0, %v14036_v52  ;;  %vm15608_vm12 = vmmov %vm15607_vm2 }
 0x670   : > { %5932 = vst.msk [vmem:[#allocation2 + $0xf0] sm:$0xff] %vm15608_vm12, %v5865_v14  ;;  %vm15609_vm5 = vmmov %vm15598_vm6 }
 0x671   : > { %v5863_v22 = vpop.permute.xlu1 %5862  ;;  %vm15610_vm0 = vmmov %vm15609_vm5 }
 0x672   : > { %5931 = vst.msk [vmem:[#allocation2 + $0xe8] sm:$0xff] %vm15595_vm10, %v5863_v22  ;;  %v14072_v1 = vld [vmem:[#allocation2 + $0xe0] sm:$0xff]  ;;  %vm15611_vm10 = vmmov %vm15599_vm1  ;;  %v5869_v40 = vpop.permute.xlu0 %5868 }
 0x673   : > { %6092 = vst.msk [vmem:[#allocation2 + $0xf0] sm:$0xff] %vm15610_vm0, %v6025_v25  ;;  %vm15614_vm6 = vmmov %vm15607_vm2 }
 0x674   : > { %5934 = vst.msk [vmem:[#allocation2 + $0x100] sm:$0xff] %vm15614_vm6, %v5869_v40 }
 0x675   : > { %v6015_v7 = vpop.permute.xlu1 %6014  ;;  %v14046_v44 = vld [vmem:[#allocation2 + $0xb8] sm:$0xff] }
 0x676   : > { %6087 = vst.msk [vmem:[#allocation2 + $0xc8] sm:$0xff] %vm15597_vm14, %v6015_v7  ;;  %8892 = vmatmul.mubr.msk.f32.gmra.mrb[68].mxu0 %vm15599_vm1, %v14046_v44  ;;  %vm15613_vm14 = vmmov %vm15610_vm0  ;;  %v6029_v9 = vpop.permute.xlu0 %6028 }
 0x677   : > { %8894 = vmatprep.mubr.msk.f32.mxu0 %vm15600_vm11, %v14048_v63  ;;  %vm15615_vm1 = vmmov %vm15610_vm0 }
 0x678   : > { %vm15616_vm11 = vmmov %vm15606_vm4 }
 0x679   : > { %v5867_v53 = vpop.permute.xlu1 %5866 }
 0x67a   : > { %5933 = vst.msk [vmem:[#allocation2 + $0xf8] sm:$0xff] %vm15601_vm3, %v5867_v53  ;;  %v14084_v5 = vld [vmem:[#allocation2 + $0xf0] sm:$0xff]  ;;  %vm15617_vm3 = vmmov %vm15610_vm0 }
 0x67b   : > { %6094 = vst.msk [vmem:[#allocation2 + $0x100] sm:$0xff] %vm15617_vm3, %v6029_v9 }
 0x67d   : > { %v6019_v51 = vpop.permute.xlu1 %6018  ;;  %v14058_v18 = vld [vmem:[#allocation2 + $0xc8] sm:$0xff] }
 0x67e   : > { %6089 = vst.msk [vmem:[#allocation2 + $0xd8] sm:$0xff] %vm15603_vm8, %v6019_v51  ;;  %8895 = vmatmul.mubr.msk.f32.gmra.mrb[70].mxu0 %vm15605_vm13, %v14058_v18  ;;  %vm15619_vm8 = vmmov %vm15606_vm4 }
 0x67f   : > { %8897 = vmatprep.mubr.msk.f32.mxu0 %vm15606_vm4, %v14060_v12  ;;  %vm15621_vm13 = vmmov %vm15606_vm4 }
 0x681   : > { %v5871_v8 = vpop.permute.xlu1 %5870 }
 0x682   : > { %5935 = vst.msk [vmem:[#allocation2 + $0x108] sm:$0xff] %vm15607_vm2, %v5871_v8  ;;  %v14096_v19 = vld [vmem:[#allocation2 + $0x100] sm:$0xff]  ;;  %vm15622_vm2 = vmmov %vm15606_vm4 }
 0x683   : > { %vm15623_vm12 = vmmov %vm15622_vm2 }
 0x684   : > { %vm15625_vm0 = vmmov %vm15622_vm2 }
 0x685   : > { %v6023_v61 = vpop.permute.xlu1 %6022  ;;  %v14070_v35 = vld [vmem:[#allocation2 + $0xd8] sm:$0xff]  ;;  %vm15629_vm6 = vmmov %vm15625_vm0 }
 0x686   : > { %6091 = vst.msk [vmem:[#allocation2 + $0xe8] sm:$0xff] %vm15609_vm5, %v6023_v61  ;;  %8898 = vmatmul.mubr.msk.f32.gmra.mrb[72].mxu0 %vm15611_vm10, %v14070_v35  ;;  %vm15624_vm5 = vmmov %vm15622_vm2 }
 0x687   : > { %8900 = vmatprep.mubr.msk.f32.mxu0 %vm15612_vm15, %v14072_v1  ;;  %vm15626_vm10 = vmmov %vm15625_vm0 }
 0x688   : > { %vm15627_vm15 = vmmov %vm15625_vm0 }
 0x689   : > { %v6027_v4 = vpop.permute.xlu1 %6026  ;;  %vm15632_vm3 = vmmov %vm15625_vm0 }
 0x68a   : > { %6093 = vst.msk [vmem:[#allocation2 + $0xf8] sm:$0xff] %vm15613_vm14, %v6027_v4  ;;  %vm15628_vm14 = vmmov %vm15625_vm0 }
 0x68d   : > { %v6031_v46 = vpop.permute.xlu1 %6030  ;;  %v14082_v43 = vld [vmem:[#allocation2 + $0xe8] sm:$0xff] }
 0x68e   : > { %6095 = vst.msk [vmem:[#allocation2 + $0x108] sm:$0xff] %vm15615_vm1, %v6031_v46  ;;  %8901 = vmatmul.mubr.msk.f32.gmra.mrb[74].mxu0 %vm15616_vm11, %v14082_v43  ;;  %vm15630_vm1 = vmmov %vm15625_vm0 }
 0x68f   : > { %8903 = vmatprep.mubr.msk.f32.mxu0 %vm15618_vm7, %v14084_v5  ;;  %vm15631_vm11 = vmmov %vm15625_vm0 }
 0x690   : > { %vm15633_vm7 = vmmov %vm15625_vm0 }
 0x691   : > { %v14092_v11 = vld [vmem:[#allocation2 + $0xf8] sm:$0xff] }
 0x692   : > { %8904 = vmatmul.mubr.msk.f32.gmra.mrb[76].mxu0 %vm15619_vm8, %v14092_v11  ;;  %vm15634_vm8 = vmmov %vm15625_vm0 }
 0x693   : > { %8906 = vmatprep.mubr.msk.f32.mxu0 %vm15620_vm9, %v14096_v19  ;;  %vm15635_vm9 = vmmov %vm15625_vm0 }
 0x695   : > { %v14100_v15 = vld [vmem:[#allocation2 + $0x108] sm:$0xff] }
 0x696   : > { %8907 = vmatmul.mubr.msk.f32.gmra.mrb[78].mxu0 %vm15621_vm13, %v14100_v15  ;;  %vm15636_vm13 = vmmov %vm15625_vm0 }
 0x697   : > { %8915 = vmatprep.mubr.msk.f32.mxu0 %vm15606_vm4, %v6096_v3  ;;  %vm15637_vm4 = vmmov %vm15625_vm0 }
 0x69a   : > { %8916 = vmatmul.mubr.msk.f32.vlgmr.msra.gmra.mrb[48].mxu0 %vm15622_vm2, %v6097_v10  ;;  %vm15638_vm2 = vmmov %vm15625_vm0 }
 0x69b   : > { %9052 = vmatpush3.bf16.msra.mxu0 %v13933_v55  ;;  %8918 = vmatprep.mubr.msk.f32.mxu0 %vm15623_vm12, %v13899_v37  ;;  %vm15639_vm12 = vmmov %vm15625_vm0  ;;  %v6720_v37 = vld [vmem:[#allocation2 + $0x110] sm:$0xff] }
 0x69c   : > { %8967 = vmatprep.subr.mxu0 %v7979_v24 }
 0x69e   : > { %8919 = vmatmul.mubr.msk.f32.gmra.mrb[50].mxu0 %vm15624_vm5, %v13919_v13  ;;  %vm15640_vm5 = vmmov %vm15625_vm0  ;;  %v6721_v13 = vld [vmem:[#allocation2 + $0x118] sm:$0xff] }
 0x69f   : > { %8921 = vmatprep.mubr.msk.f32.mxu0 %vm15625_vm0, %v13921_v59  ;;  %8968 = vmatpush3.msra.mxu0 %v7979_v24 }
 0x6a2   : > { %8922 = vmatmul.mubr.msk.f32.gmra.mrb[52].mxu0 %vm15626_vm10, %v13938_v17  ;;  %vm15641_vm10 = vmmov %vm15625_vm0 }
 0x6a3   : > { %8924 = vmatprep.mubr.msk.f32.mxu0 %vm15627_vm15, %v13940_v30  ;;  %vm15642_vm15 = vmmov %vm15625_vm0 }
 0x6a6   : > { %8925 = vmatmul.mubr.msk.f32.gmra.mrb[54].mxu0 %vm15628_vm14, %v13950_v36  ;;  %vm15643_vm14 = vmmov %vm15625_vm0 }
 0x6a7   : > { %8927 = vmatprep.mubr.msk.f32.mxu0 %vm15629_vm6, %v13952_v57  ;;  %vm15644_vm6 = vmmov %vm15625_vm0 }
 0x6aa   : > { %8928 = vmatmul.mubr.msk.f32.gmra.mrb[56].mxu0 %vm15630_vm1, %v13962_v6  ;;  %vm15645_vm1 = vmmov %vm15625_vm0 }
 0x6ab   : > { %8930 = vmatprep.mubr.msk.f32.mxu0 %vm15631_vm11, %v13964_v29  ;;  %vm15646_vm11 = vmmov %vm15625_vm0 }
 0x6ae   : > { %8931 = vmatmul.mubr.msk.f32.gmra.mrb[58].mxu0 %vm15632_vm3, %v13974_v47  ;;  %vm15647_vm3 = vmmov %vm15625_vm0 }
 0x6af   : > { %8933 = vmatprep.mubr.msk.f32.mxu0 %vm15633_vm7, %v13976_v62  ;;  %vm15648_vm7 = vmmov %vm15625_vm0 }
 0x6b2   : > { %8934 = vmatmul.mubr.msk.f32.gmra.mrb[60].mxu0 %vm15634_vm8, %v13986_v23  ;;  %vm15649_vm8 = vmmov %vm15625_vm0 }
 0x6b3   : > { %8936 = vmatprep.mubr.msk.f32.mxu0 %vm15635_vm9, %v13988_v49  ;;  %vm15650_vm9 = vmmov %vm15625_vm0 }
 0x6b6   : > { %8937 = vmatmul.mubr.msk.f32.gmra.mrb[62].mxu0 %vm15636_vm13, %v13998_v56  ;;  %vm15651_vm13 = vmmov %vm15625_vm0 }
 0x6b7   : > { %8939 = vmatprep.mubr.msk.f32.mxu0 %vm15637_vm4, %v14000_v54  ;;  %vm15652_vm4 = vmmov %vm15625_vm0 }
 0x6ba   : > { %8940 = vmatmul.mubr.msk.f32.gmra.mrb[64].mxu0 %vm15638_vm2, %v14010_v27  ;;  %vm15653_vm2 = vmmov %vm15625_vm0 }
 0x6bb   : > { %8942 = vmatprep.mubr.msk.f32.mxu0 %vm15639_vm12, %v14012_v50  ;;  %vm15654_vm12 = vmmov %vm15625_vm0 }
 0x6be   : > { %8943 = vmatmul.mubr.msk.f32.gmra.mrb[66].mxu0 %vm15640_vm5, %v14022_v0  ;;  %vm15655_vm5 = vmmov %vm15625_vm0 }
 0x6bf   : > { %8945 = vmatprep.mubr.msk.f32.mxu0 %vm15625_vm0, %v14024_v42 }
 0x6c2   : > { %8946 = vmatmul.mubr.msk.f32.gmra.mrb[68].mxu0 %vm15641_vm10, %v14034_v2  ;;  %vm15656_vm10 = vmmov %vm15625_vm0 }
 0x6c3   : > { %8948 = vmatprep.mubr.msk.f32.mxu0 %vm15642_vm15, %v14036_v52  ;;  %vm15657_vm15 = vmmov %vm15625_vm0 }
 0x6c6   : > { %8949 = vmatmul.mubr.msk.f32.gmra.mrb[70].mxu0 %vm15643_vm14, %v14046_v44  ;;  %vm15658_vm14 = vmmov %vm15625_vm0 }
 0x6c7   : > { %8951 = vmatprep.mubr.msk.f32.mxu0 %vm15644_vm6, %v14048_v63  ;;  %vm15659_vm6 = vmmov %vm15625_vm0 }
 0x6ca   : > { %8952 = vmatmul.mubr.msk.f32.gmra.mrb[72].mxu0 %vm15645_vm1, %v14058_v18  ;;  %vm15660_vm1 = vmmov %vm15625_vm0 }
 0x6cb   : > { %8954 = vmatprep.mubr.msk.f32.mxu0 %vm15646_vm11, %v14060_v12  ;;  %vm15661_vm11 = vmmov %vm15625_vm0 }
 0x6ce   : > { %8955 = vmatmul.mubr.msk.f32.gmra.mrb[74].mxu0 %vm15647_vm3, %v14070_v35  ;;  %vm15662_vm3 = vmmov %vm15625_vm0 }
 0x6cf   : > { %8957 = vmatprep.mubr.msk.f32.mxu0 %vm15648_vm7, %v14072_v1  ;;  %vm15663_vm7 = vmmov %vm15625_vm0 }
 0x6d2   : > { %8958 = vmatmul.mubr.msk.f32.gmra.mrb[76].mxu0 %vm15649_vm8, %v14082_v43  ;;  %vm15664_vm8 = vmmov %vm15625_vm0 }
 0x6d3   : > { %8960 = vmatprep.mubr.msk.f32.mxu0 %vm15650_vm9, %v14084_v5  ;;  %vm15665_vm9 = vmmov %vm15625_vm0 }
 0x6d6   : > { %8961 = vmatmul.mubr.msk.f32.gmra.mrb[78].mxu0 %vm15651_vm13, %v14092_v11  ;;  %vm15666_vm13 = vmmov %vm15625_vm0 }
 0x6d7   : > { %8969 = vmatprep.mubr.msk.f32.mxu0 %vm15652_vm4, %v13921_v59  ;;  %vm15667_vm4 = vmmov %vm15625_vm0  ;;  %v14235_v59 = vld [vmem:[%s14502_s6 + $0x2] ss:$0 sm:$0xff] }
 0x6da   : > { %8970 = vmatmul.mubr.msk.f32.vlgmr.msra.gmra.mrb[48].mxu0 %vm15653_vm2, %v13938_v17  ;;  %vm15668_vm2 = vmmov %vm15625_vm0 }
 0x6db   : > { %8972 = vmatprep.mubr.msk.f32.mxu0 %vm15654_vm12, %v13940_v30  ;;  %vm15669_vm12 = vmmov %vm15625_vm0 }
 0x6de   : > { %8973 = vmatmul.mubr.msk.f32.gmra.mrb[50].mxu0 %vm15655_vm5, %v13950_v36  ;;  %vm15670_vm5 = vmmov %vm15625_vm0 }
 0x6df   : > { %8975 = vmatprep.mubr.msk.f32.mxu0 %vm15625_vm0, %v13952_v57 }
 0x6e2   : > { %8976 = vmatmul.mubr.msk.f32.gmra.mrb[52].mxu0 %vm15656_vm10, %v13962_v6  ;;  %vm15671_vm10 = vmmov %vm15625_vm0 }
 0x6e3   : > { %8978 = vmatprep.mubr.msk.f32.mxu0 %vm15657_vm15, %v13964_v29  ;;  %vm15672_vm15 = vmmov %vm15625_vm0 }
 0x6e6   : > { %8979 = vmatmul.mubr.msk.f32.gmra.mrb[54].mxu0 %vm15658_vm14, %v13974_v47  ;;  %vm15673_vm14 = vmmov %vm15625_vm0 }
 0x6e7   : > { %8981 = vmatprep.mubr.msk.f32.mxu0 %vm15659_vm6, %v13976_v62  ;;  %vm15674_vm6 = vmmov %vm15625_vm0 }
 0x6ea   : > { %8982 = vmatmul.mubr.msk.f32.gmra.mrb[56].mxu0 %vm15660_vm1, %v13986_v23  ;;  %vm15675_vm1 = vmmov %vm15625_vm0 }
 0x6eb   : > { %8984 = vmatprep.mubr.msk.f32.mxu0 %vm15661_vm11, %v13988_v49  ;;  %vm15676_vm11 = vmmov %vm15625_vm0 }
 0x6ee   : > { %8985 = vmatmul.mubr.msk.f32.gmra.mrb[58].mxu0 %vm15662_vm3, %v13998_v56  ;;  %vm15677_vm3 = vmmov %vm15625_vm0 }
 0x6ef   : > { %8987 = vmatprep.mubr.msk.f32.mxu0 %vm15663_vm7, %v14000_v54  ;;  %vm15678_vm7 = vmmov %vm15625_vm0 }
 0x6f2   : > { %8988 = vmatmul.mubr.msk.f32.gmra.mrb[60].mxu0 %vm15664_vm8, %v14010_v27  ;;  %vm15679_vm8 = vmmov %vm15625_vm0 }
 0x6f3   : > { %8990 = vmatprep.mubr.msk.f32.mxu0 %vm15665_vm9, %v14012_v50  ;;  %vm15680_vm9 = vmmov %vm15625_vm0 }
 0x6f6   : > { %8991 = vmatmul.mubr.msk.f32.gmra.mrb[62].mxu0 %vm15666_vm13, %v14022_v0  ;;  %vm15681_vm13 = vmmov %vm15625_vm0 }
 0x6f7   : > { %8993 = vmatprep.mubr.msk.f32.mxu0 %vm15667_vm4, %v14024_v42  ;;  %vm15682_vm4 = vcmask 64512  }
 0x6fa   : > { %8994 = vmatmul.mubr.msk.f32.gmra.mrb[64].mxu0 %vm15668_vm2, %v14034_v2  ;;  %vm15683_vm2 = vmmov %vm15682_vm4 }
 0x6fb   : > { %8996 = vmatprep.mubr.msk.f32.mxu0 %vm15669_vm12, %v14036_v52  ;;  %vm15684_vm12 = vmmov %vm15683_vm2 }
 0x6fe   : > { %8997 = vmatmul.mubr.msk.f32.gmra.mrb[66].mxu0 %vm15670_vm5, %v14046_v44  ;;  %vm15685_vm5 = vmmov %vm15683_vm2 }
 0x6ff   : > { %8999 = vmatprep.mubr.msk.f32.mxu0 %vm15625_vm0, %v14048_v63  ;;  %vm15686_vm0 = vmmov %vm15683_vm2 }
 0x702   : > { %9000 = vmatmul.mubr.msk.f32.gmra.mrb[68].mxu0 %vm15671_vm10, %v14058_v18  ;;  %vm15687_vm10 = vmmov %vm15686_vm0 }
 0x703   : > { %9002 = vmatprep.mubr.msk.f32.mxu0 %vm15672_vm15, %v14060_v12  ;;  %vm15688_vm15 = vmmov %vm15686_vm0 }
 0x706   : > { %9003 = vmatmul.mubr.msk.f32.gmra.mrb[70].mxu0 %vm15673_vm14, %v14070_v35  ;;  %vm15689_vm14 = vmmov %vm15686_vm0 }
 0x707   : > { %9005 = vmatprep.mubr.msk.f32.mxu0 %vm15674_vm6, %v14072_v1  ;;  %vm15690_vm6 = vmmov %vm15686_vm0 }
 0x70a   : > { %9006 = vmatmul.mubr.msk.f32.gmra.mrb[72].mxu0 %vm15675_vm1, %v14082_v43  ;;  %vm15691_vm1 = vmmov %vm15686_vm0 }
 0x70b   : > { %9008 = vmatprep.mubr.msk.f32.mxu0 %vm15676_vm11, %v14084_v5  ;;  %vm15692_vm11 = vmmov %vm15686_vm0 }
 0x70e   : > { %9009 = vmatmul.mubr.msk.f32.gmra.mrb[74].mxu0 %vm15677_vm3, %v14092_v11  ;;  %vm15693_vm3 = vmmov %vm15686_vm0 }
 0x70f   : > { %9011 = vmatprep.mubr.msk.f32.mxu0 %vm15678_vm7, %v14096_v19  ;;  %vm15694_vm7 = vmmov %vm15686_vm0 }
 0x712   : > { %9012 = vmatmul.mubr.msk.f32.gmra.mrb[76].mxu0 %vm15679_vm8, %v14100_v15  ;;  %vm15695_vm8 = vmmov %vm15686_vm0 }
 0x713   : > { %9014 = vmatprep.mubr.msk.f32.mxu0 %vm15680_vm9, %v6720_v37  ;;  %vm15696_vm9 = vmmov %vm15686_vm0 }
 0x716   : > { %9015 = vmatmul.mubr.msk.f32.gmra.mrb[78].mxu0 %vm15681_vm13, %v6721_v13  ;;  %vm15697_vm13 = vmmov %vm15686_vm0 }
 0x7ad   : > { %v8971_v55 = vpop.f32.mrb[48].mxu0 }
 0x7ae   : > { %v14238_v17 = vadd.f32 %v8971_v55, %v14235_v59  ;;  %v6888_v30 = vpop.f32.mrb[49].mxu0  ;;  %v7344_v55 = vld [vmem:[%s10173_s15 + $0x8] sm:$0xff] }
 0x7af   : > { %v14241_v36 = vadd.f32 %v14235_v59, %v6888_v30 }
 0x7b0   : > { %v8015_v57 = vmul.f32 -1.442695, %v14238_v17 }
 0x7b1   : > { %v8014_v6 = vmul.f32 -1.442695, %v14241_v36  ;;  %v8974_v29 = vpop.f32.mrb[50].mxu0 }
 0x7b2   : > { %9770 = vpow2.f32 %v8015_v57  ;;  %v14246_v47 = vadd.f32 %v8974_v29, %v14235_v59  ;;  %v6898_v62 = vpop.f32.mrb[51].mxu0 }
 0x7b3   : > { %9772 = vpow2.f32 %v8014_v6  ;;  %v14249_v23 = vadd.f32 %v14235_v59, %v6898_v62  ;;  %v7343_v62 = vld [vmem:[%s10173_s15] sm:$0xff] }
 0x7b4   : > { %v8017_v49 = vmul.f32 -1.442695, %v14246_v47 }
 0x7b5   : > { %v8016_v56 = vmul.f32 -1.442695, %v14249_v23  ;;  %v8977_v54 = vpop.f32.mrb[52].mxu0 }
 0x7b6   : > { %9774 = vpow2.f32 %v8017_v49  ;;  %v14254_v33 = vadd.f32 %v8977_v54, %v14235_v59  ;;  %v6908_v32 = vpop.f32.mrb[53].mxu0 }
 0x7b7   : > { %9776 = vpow2.f32 %v8016_v56  ;;  %v14257_v21 = vadd.f32 %v14235_v59, %v6908_v32 }
 0x7b8   : > { %v8019_v58 = vmul.f32 -1.442695, %v14254_v33 }
 0x7b9   : > { %v8018_v27 = vmul.f32 -1.442695, %v14257_v21  ;;  %v8980_v50 = vpop.f32.mrb[54].mxu0 }
 0x7ba   : > { %9778 = vpow2.f32 %v8019_v58  ;;  %v14262_v31 = vadd.f32 %v8980_v50, %v14235_v59  ;;  %v6918_v48 = vpop.f32.mrb[55].mxu0 }
 0x7bb   : > { %9780 = vpow2.f32 %v8018_v27  ;;  %v14265_v16 = vadd.f32 %v14235_v59, %v6918_v48 }
 0x7bc   : > { %v9771_v26 = vpop.eup %9770  ;;  %v8021_v0 = vmul.f32 -1.442695, %v14262_v31 }
 0x7bd   : > { %v9773_v42 = vpop.eup %9772  ;;  %v7216_v45 = vadd.f32 1.0, %v9771_v26  ;;  %v8020_v28 = vmul.f32 -1.442695, %v14265_v16  ;;  %v8983_v38 = vpop.f32.mrb[56].mxu0 }
 0x7be   : > { %v7215_v39 = vadd.f32 1.0, %v9773_v42  ;;  %9782 = vpow2.f32 %v8021_v0  ;;  %v14270_v2 = vadd.f32 %v8983_v38, %v14235_v59  ;;  %v6928_v52 = vpop.f32.mrb[57].mxu0  ;;  %v7346_v42 = vld [vmem:[%s10173_s15 + $0x18] sm:$0xff] }
 0x7bf   : > { %9784 = vrcp.f32 %v7216_v45  ;;  %v14273_v22 = vadd.f32 %v14235_v59, %v6928_v52  ;;  %v7345_v52 = vld [vmem:[%s10173_s15 + $0x10] sm:$0xff] }
 0x7c0   : > { %v9775_v60 = vpop.eup %9774  ;;  %9786 = vrcp.f32 %v7215_v39  ;;  %v8023_v7 = vmul.f32 -1.442695, %v14270_v2 }
 0x7c1   : > { %v9777_v41 = vpop.eup %9776  ;;  %v7218_v44 = vadd.f32 1.0, %v9775_v60  ;;  %9788 = vpow2.f32 %v8020_v28  ;;  %v8022_v63 = vmul.f32 -1.442695, %v14273_v22  ;;  %v8986_v53 = vpop.f32.mrb[58].mxu0 }
 0x7c2   : > { %v7217_v20 = vadd.f32 1.0, %v9777_v41  ;;  %9790 = vpow2.f32 %v8023_v7  ;;  %v14278_v51 = vadd.f32 %v8986_v53, %v14235_v59  ;;  %v6938_v34 = vpop.f32.mrb[59].mxu0 }
 0x7c3   : > { %9792 = vrcp.f32 %v7218_v44  ;;  %v14281_v18 = vadd.f32 %v14235_v59, %v6938_v34 }
 0x7c4   : > { %v9779_v12 = vpop.eup %9778  ;;  %9794 = vrcp.f32 %v7217_v20  ;;  %v8025_v8 = vmul.f32 -1.442695, %v14278_v51 }
 0x7c5   : > { %v9781_v14 = vpop.eup %9780  ;;  %v7220_v61 = vadd.f32 1.0, %v9779_v12  ;;  %9796 = vpow2.f32 %v8022_v63  ;;  %v8024_v25 = vmul.f32 -1.442695, %v14281_v18  ;;  %v8989_v35 = vpop.f32.mrb[60].mxu0 }
 0x7c6   : > { %v7219_v1 = vadd.f32 1.0, %v9781_v14  ;;  %9798 = vpow2.f32 %v8025_v8  ;;  %v14286_v4 = vadd.f32 %v8989_v35, %v14235_v59  ;;  %v6948_v40 = vpop.f32.mrb[61].mxu0  ;;  %v7348_v14 = vld [vmem:[%s10173_s15 + $0x28] sm:$0xff] }
 0x7c7   : > { %9800 = vrcp.f32 %v7220_v61  ;;  %v14289_v46 = vadd.f32 %v14235_v59, %v6948_v40  ;;  %v7347_v40 = vld [vmem:[%s10173_s15 + $0x20] sm:$0xff] }
 0x7c8   : > { %v9783_v43 = vpop.eup %9782  ;;  %9802 = vrcp.f32 %v7219_v1  ;;  %v8027_v9 = vmul.f32 -1.442695, %v14286_v4 }
 0x7c9   : > { %v9785_v5 = vpop.eup %9784  ;;  %v7222_v11 = vadd.f32 1.0, %v9783_v43  ;;  %9804 = vpow2.f32 %v8024_v25  ;;  %v8026_v19 = vmul.f32 -1.442695, %v14289_v46  ;;  %v8992_v3 = vpop.f32.mrb[62].mxu0 }
 0x7ca   : > { %v9787_v15 = vpop.eup %9786  ;;  %v7312_v10 = vmul.f32 %v9785_v5, %v14238_v17  ;;  %9806 = vpow2.f32 %v8027_v9  ;;  %v14295_v24 = vadd.f32 %v8992_v3, %v14235_v59  ;;  %v6958_v37 = vpop.f32.mrb[63].mxu0 }
 0x7cb   : > { %v9789_v13 = vpop.eup %9788  ;;  %v7311_v30 = vmul.f32 %v9787_v15, %v14241_v36  ;;  %9808 = vrcp.f32 %v7222_v11  ;;  %v14300_v57 = vadd.f32 %v14235_v59, %v6958_v37 }
 0x7cc   : > { %v9791_v6 = vpop.eup %9790  ;;  %v7376_v29 = vadd.f32 %v7344_v55, %v7312_v10  ;;  %v7221_v49 = vadd.f32 1.0, %v9789_v13  ;;  %9810 = vpow2.f32 %v8026_v19  ;;  %v8029_v17 = vmul.f32 -1.442695, %v14295_v24  ;;  %v7350_v13 = vld [vmem:[%s10173_s15 + $0x38] sm:$0xff] }
 0x7cd   : > { %v9793_v56 = vpop.eup %9792  ;;  %v7375_v54 = vadd.f32 %v7343_v62, %v7311_v30  ;;  %v7224_v32 = vadd.f32 1.0, %v9791_v6  ;;  %v8028_v58 = vmul.f32 -1.442695, %v14300_v57  ;;  %v8995_v36 = vpop.f32.mrb[64].mxu0 }
 0x7ce   : > { %v9795_v27 = vpop.eup %9794  ;;  %7408 = vst.msk [vmem:[%s10173_s15 + $0x8] sm:$0xff] %vm15682_vm4, %v7376_v29  ;;  %v7314_v50 = vmul.f32 %v9793_v56, %v14246_v47  ;;  %9812 = vrcp.f32 %v7221_v49  ;;  %v14309_v48 = vadd.f32 %v8995_v36, %v14235_v59  ;;  %v6968_v26 = vpop.f32.mrb[65].mxu0  ;;  %vm15698_vm4 = vmmov %vm15686_vm0 }
 0x7cf   : > { %v9797_v0 = vpop.eup %9796  ;;  %7407 = vst.msk [vmem:[%s10173_s15] sm:$0xff] %vm15683_vm2, %v7375_v54  ;;  %v7313_v45 = vmul.f32 %v9795_v27, %v14249_v23  ;;  %9814 = vrcp.f32 %v7224_v32  ;;  %v14316_v28 = vadd.f32 %v14235_v59, %v6968_v26  ;;  %v7349_v32 = vld [vmem:[%s10173_s15 + $0x30] sm:$0xff]  ;;  %vm15699_vm2 = vmmov %vm15686_vm0 }
 0x7d0   : > { %v9799_v38 = vpop.eup %9798  ;;  %v7378_v39 = vadd.f32 %v7346_v42, %v7314_v50  ;;  %v7223_v47 = vadd.f32 1.0, %v9797_v0  ;;  %9816 = vpow2.f32 %v8029_v17  ;;  %v8031_v60 = vmul.f32 -1.442695, %v14309_v48  ;;  %v7352_v0 = vld [vmem:[%s10173_s15 + $0x48] sm:$0xff] }
 0x7d1   : > { %v9801_v7 = vpop.eup %9800  ;;  %v7377_v41 = vadd.f32 %v7345_v52, %v7313_v45  ;;  %v7226_v44 = vadd.f32 1.0, %v9799_v38  ;;  %9818 = vpow2.f32 %v8028_v58  ;;  %v8030_v23 = vmul.f32 -1.442695, %v14316_v28  ;;  %v8998_v63 = vpop.f32.mrb[66].mxu0 }
 0x7d2   : > { %v9803_v53 = vpop.eup %9802  ;;  %7410 = vst.msk [vmem:[%s10173_s15 + $0x18] sm:$0xff] %vm15684_vm12, %v7378_v39  ;;  %v7316_v20 = vmul.f32 %v9801_v7, %v14254_v33  ;;  %9820 = vrcp.f32 %v7223_v47  ;;  %v14325_v34 = vadd.f32 %v8998_v63, %v14235_v59  ;;  %v6978_v12 = vpop.f32.mrb[67].mxu0  ;;  %vm15700_vm12 = vmmov %vm15686_vm0 }
 0x7d3   : > { %v9805_v8 = vpop.eup %9804  ;;  %7409 = vst.msk [vmem:[%s10173_s15 + $0x10] sm:$0xff] %vm15685_vm5, %v7377_v41  ;;  %v7315_v61 = vmul.f32 %v9803_v53, %v14257_v21  ;;  %9822 = vrcp.f32 %v7226_v44  ;;  %v14332_v25 = vadd.f32 %v14235_v59, %v6978_v12  ;;  %v7351_v44 = vld [vmem:[%s10173_s15 + $0x40] sm:$0xff]  ;;  %vm15701_vm5 = vmmov %vm15686_vm0 }
 0x7d4   : > { %v9807_v35 = vpop.eup %9806  ;;  %v7380_v1 = vadd.f32 %v7348_v14, %v7316_v20  ;;  %v7225_v33 = vadd.f32 1.0, %v9805_v8  ;;  %9824 = vpow2.f32 %v8031_v60  ;;  %v8033_v43 = vmul.f32 -1.442695, %v14325_v34  ;;  %v7354_v8 = vld [vmem:[%s10173_s15 + $0x58] sm:$0xff] }
 0x7d5   : > { %v9809_v9 = vpop.eup %9808  ;;  %v7379_v5 = vadd.f32 %v7347_v40, %v7315_v61  ;;  %v7228_v11 = vadd.f32 1.0, %v9807_v35  ;;  %9826 = vpow2.f32 %v8030_v23  ;;  %v9001_v19 = vpop.f32.mrb[68].mxu0  ;;  %v8032_v15 = vmul.f32 -1.442695, %v14332_v25 }
 0x7d6   : > { %v9811_v3 = vpop.eup %9810  ;;  %7412 = vst.msk [vmem:[%s10173_s15 + $0x28] sm:$0xff] %vm15686_vm0, %v7380_v1  ;;  %v7318_v21 = vmul.f32 %v9809_v9, %v14262_v31  ;;  %9828 = vrcp.f32 %v7225_v33  ;;  %v14341_v10 = vadd.f32 %v9001_v19, %v14235_v59  ;;  %v6988_v37 = vpop.f32.mrb[69].mxu0 }
 0x7d7   : > { %7411 = vst.msk [vmem:[%s10173_s15 + $0x20] sm:$0xff] %vm15687_vm10, %v7379_v5  ;;  %9830 = vrcp.f32 %v7228_v11  ;;  %v7227_v55 = vadd.f32 1.0, %v9811_v3  ;;  %v14347_v30 = vadd.f32 %v14235_v59, %v6988_v37  ;;  %v7353_v11 = vld [vmem:[%s10173_s15 + $0x50] sm:$0xff]  ;;  %vm15702_vm10 = vmmov %vm15686_vm0 }
 0x7d8   : > { %v9813_v6 = vpop.eup %9812  ;;  %v7382_v29 = vadd.f32 %v7350_v13, %v7318_v21  ;;  %9832 = vpow2.f32 %v8033_v43  ;;  %v8035_v31 = vmul.f32 -1.442695, %v14341_v10 }
 0x7d9   : > { %v9815_v62 = vpop.eup %9814  ;;  %v7317_v49 = vmul.f32 %v9813_v6, %v14265_v16  ;;  %9834 = vrcp.f32 %v7227_v55  ;;  %v8034_v17 = vmul.f32 -1.442695, %v14347_v30  ;;  %v9004_v56 = vpop.f32.mrb[70].mxu0 }
 0x7da   : > { %v9817_v54 = vpop.eup %9816  ;;  %7414 = vst.msk [vmem:[%s10173_s15 + $0x38] sm:$0xff] %vm15688_vm15, %v7382_v29  ;;  %v7320_v58 = vmul.f32 %v9815_v62, %v14270_v2  ;;  %9836 = vpow2.f32 %v8032_v15  ;;  %v14357_v36 = vadd.f32 %v9004_v56, %v14235_v59  ;;  %v6998_v27 = vpop.f32.mrb[71].mxu0  ;;  %vm15703_vm15 = vmmov %vm15686_vm0 }
 0x7db   : > { %v9819_v50 = vpop.eup %9818  ;;  %v7381_v26 = vadd.f32 %v7349_v32, %v7317_v49  ;;  %v7230_v16 = vadd.f32 1.0, %v9817_v54  ;;  %9838 = vpow2.f32 %v8035_v31  ;;  %v14361_v42 = vadd.f32 %v14235_v59, %v6998_v27  ;;  %v7355_v49 = vld [vmem:[%s10173_s15 + $0x60] sm:$0xff] }
 0x7dc   : > { %v9821_v45 = vpop.eup %9820  ;;  %v7384_v38 = vadd.f32 %v7352_v0, %v7320_v58  ;;  %v7229_v39 = vadd.f32 1.0, %v9819_v50  ;;  %9840 = vpow2.f32 %v8034_v17  ;;  %v8037_v2 = vmul.f32 -1.442695, %v14357_v36 }
 0x7dd   : > { %v9823_v52 = vpop.eup %9822  ;;  %7413 = vst.msk [vmem:[%s10173_s15 + $0x30] sm:$0xff] %vm15689_vm14, %v7381_v26  ;;  %v7319_v47 = vmul.f32 %v9821_v45, %v14273_v22  ;;  %9842 = vrcp.f32 %v7230_v16  ;;  %v8036_v60 = vmul.f32 -1.442695, %v14361_v42  ;;  %v9007_v7 = vpop.f32.mrb[72].mxu0  ;;  %vm15704_vm14 = vmmov %vm15686_vm0 }
 0x7de   : > { %v9825_v41 = vpop.eup %9824  ;;  %7416 = vst.msk [vmem:[%s10173_s15 + $0x48] sm:$0xff] %vm15690_vm6, %v7384_v38  ;;  %v7322_v23 = vmul.f32 %v9823_v52, %v14278_v51  ;;  %9844 = vrcp.f32 %v7229_v39  ;;  %v14373_v63 = vadd.f32 %v9007_v7, %v14235_v59  ;;  %v7008_v53 = vpop.f32.mrb[73].mxu0  ;;  %v7358_v52 = vld [vmem:[%s10173_s15 + $0x78] sm:$0xff]  ;;  %vm15705_vm6 = vmmov %vm15686_vm0 }
 0x7df   : > { %v9827_v20 = vpop.eup %9826  ;;  %v7383_v12 = vadd.f32 %v7351_v44, %v7319_v47  ;;  %v7232_v22 = vadd.f32 1.0, %v9825_v41  ;;  %9846 = vpow2.f32 %v8037_v2  ;;  %v14377_v14 = vadd.f32 %v14235_v59, %v7008_v53 }
 0x7e0   : > { %v9829_v61 = vpop.eup %9828  ;;  %v7386_v35 = vadd.f32 %v7354_v8, %v7322_v23  ;;  %v7231_v1 = vadd.f32 1.0, %v9827_v20  ;;  %9848 = vpow2.f32 %v8036_v60  ;;  %v8039_v51 = vmul.f32 -1.442695, %v14373_v63  ;;  %v7357_v23 = vld [vmem:[%s10173_s15 + $0x70] sm:$0xff] }
 0x7e1   : > { %v9831_v40 = vpop.eup %9830  ;;  %7415 = vst.msk [vmem:[%s10173_s15 + $0x40] sm:$0xff] %vm15691_vm1, %v7383_v12  ;;  %v7321_v33 = vmul.f32 %v9829_v61, %v14281_v18  ;;  %9850 = vrcp.f32 %v7232_v22  ;;  %v8038_v43 = vmul.f32 -1.442695, %v14377_v14  ;;  %v9010_v9 = vpop.f32.mrb[74].mxu0  ;;  %v7356_v18 = vld [vmem:[%s10173_s15 + $0x68] sm:$0xff]  ;;  %vm15706_vm1 = vmmov %vm15686_vm0 }
 0x7e2   : > { %v9833_v5 = vpop.eup %9832  ;;  %7418 = vst.msk [vmem:[%s10173_s15 + $0x58] sm:$0xff] %vm15692_vm11, %v7386_v35  ;;  %v7324_v19 = vmul.f32 %v9831_v40, %v14286_v4  ;;  %9852 = vrcp.f32 %v7231_v1  ;;  %v14389_v3 = vadd.f32 %v9010_v9, %v14235_v59  ;;  %v7018_v21 = vpop.f32.mrb[75].mxu0  ;;  %v7360_v40 = vld [vmem:[%s10173_s15 + $0x88] sm:$0xff]  ;;  %v7359_v9 = vld [vmem:[%s10173_s15 + $0x80] sm:$0xff]  ;;  %vm15707_vm11 = vmmov %vm15686_vm0 }
 0x7e3   : > { %v9835_v15 = vpop.eup %9834  ;;  %v7385_v37 = vadd.f32 %v7353_v11, %v7321_v33  ;;  %v7234_v13 = vadd.f32 1.0, %v9833_v5  ;;  %9854 = vpow2.f32 %v8039_v51  ;;  %v14393_v55 = vadd.f32 %v14235_v59, %v7018_v21 }
 0x7e4   : > { %v9837_v6 = vpop.eup %9836  ;;  %v7388_v29 = vadd.f32 %v7356_v18, %v7324_v19  ;;  %v7323_v4 = vmul.f32 %v9835_v15, %v14289_v46  ;;  %9856 = vpow2.f32 %v8038_v43  ;;  %v8041_v31 = vmul.f32 -1.442695, %v14389_v3  ;;  %v7362_v18 = vld [vmem:[%s10173_s15 + $0x98] sm:$0xff] }
 0x7e5   : > { %v9839_v62 = vpop.eup %9838  ;;  %7417 = vst.msk [vmem:[%s10173_s15 + $0x50] sm:$0xff] %vm15693_vm3, %v7385_v37  ;;  %9858 = vrcp.f32 %v7234_v13  ;;  %v7233_v17 = vadd.f32 1.0, %v9837_v6  ;;  %v8040_v56 = vmul.f32 -1.442695, %v14393_v55  ;;  %v9013_v54 = vpop.f32.mrb[76].mxu0  ;;  %vm15708_vm3 = vmmov %vm15686_vm0 }
 0x7e6   : > { %v9841_v32 = vpop.eup %9840  ;;  %7420 = vst.msk [vmem:[%s10173_s15 + $0x68] sm:$0xff] %vm15694_vm7, %v7388_v29  ;;  %v7387_v58 = vadd.f32 %v7355_v49, %v7323_v4  ;;  %v7236_v27 = vadd.f32 1.0, %v9839_v62  ;;  %9860 = vpow2.f32 %v8041_v31  ;;  %v14404_v46 = vadd.f32 %v9013_v54, %v14235_v59  ;;  %v7028_v50 = vpop.f32.mrb[77].mxu0  ;;  %v7361_v62 = vld [vmem:[%s10173_s15 + $0x90] sm:$0xff]  ;;  %vm15709_vm7 = vmmov %vm15686_vm0 }
 0x7e7   : > { %v9843_v26 = vpop.eup %9842  ;;  %9862 = vrcp.f32 %v7233_v17  ;;  %v7235_v0 = vadd.f32 1.0, %v9841_v32  ;;  %v14407_v16 = vadd.f32 %v14235_v59, %v7028_v50 }
 0x7e8   : > { %v9845_v45 = vpop.eup %9844  ;;  %7419 = vst.msk [vmem:[%s10173_s15 + $0x60] sm:$0xff] %vm15695_vm8, %v7387_v58  ;;  %v7326_v38 = vmul.f32 %v9843_v26, %v14295_v24  ;;  %9864 = vrcp.f32 %v7236_v27  ;;  %v8043_v39 = vmul.f32 -1.442695, %v14404_v46  ;;  %vm15710_vm8 = vmmov %vm15686_vm0 }
 0x7e9   : > { %v9847_v2 = vpop.eup %9846  ;;  %v7325_v47 = vmul.f32 %v9845_v45, %v14300_v57  ;;  %9866 = vrcp.f32 %v7235_v0  ;;  %v8042_v60 = vmul.f32 -1.442695, %v14407_v16  ;;  %v9016_v7 = vpop.f32.mrb[78].mxu0 }
 0x7ea   : > { %v9849_v41 = vpop.eup %9848  ;;  %v7390_v44 = vadd.f32 %v7358_v52, %v7326_v38  ;;  %v7238_v53 = vadd.f32 1.0, %v9847_v2  ;;  %9868 = vpow2.f32 %v8040_v56  ;;  %v14418_v24 = vadd.f32 %v9016_v7, %v14235_v59  ;;  %v7038_v20 = vpop.f32.mrb[79].mxu0  ;;  %v7364_v56 = vld [vmem:[%s10173_s15 + $0xa8] sm:$0xff] }
 0x7eb   : > { %v9851_v12 = vpop.eup %9850  ;;  %v7389_v8 = vadd.f32 %v7357_v23, %v7325_v47  ;;  %v7237_v57 = vadd.f32 1.0, %v9849_v41  ;;  %9870 = vpow2.f32 %v8043_v39  ;;  %v14421_v22 = vadd.f32 %v14235_v59, %v7038_v20  ;;  %v7365_v47 = vld [vmem:[%s10173_s15 + $0xb0] sm:$0xff] }
 0x7ec   : > { %v9853_v61 = vpop.eup %9852  ;;  %7422 = vst.msk [vmem:[%s10173_s15 + $0x78] sm:$0xff] %vm15696_vm9, %v7390_v44  ;;  %v7328_v35 = vmul.f32 %v9851_v12, %v14309_v48  ;;  %9872 = vrcp.f32 %v7238_v53  ;;  %v8045_v1 = vmul.f32 -1.442695, %v14418_v24  ;;  %vm15711_vm9 = vmmov %vm15686_vm0 }
 0x7ed   : > { %v9855_v51 = vpop.eup %9854  ;;  %7421 = vst.msk [vmem:[%s10173_s15 + $0x70] sm:$0xff] %vm15697_vm13, %v7389_v8  ;;  %v7327_v33 = vmul.f32 %v9853_v61, %v14316_v28  ;;  %9874 = vrcp.f32 %v7237_v57  ;;  %v8044_v48 = vmul.f32 -1.442695, %v14421_v22  ;;  %v7367_v57 = vld [vmem:[%s10173_s15 + $0xc0] sm:$0xff]  ;;  %vm15712_vm13 = vmmov %vm15686_vm0 }
 0x7ee   : > { %v9857_v43 = vpop.eup %9856  ;;  %v7392_v59 = vadd.f32 %v7360_v40, %v7328_v35  ;;  %v7240_v5 = vadd.f32 1.0, %v9855_v51  ;;  %9876 = vpow2.f32 %v8042_v60 }
 0x7ef   : > { %v9859_v11 = vpop.eup %9858  ;;  %v7391_v19 = vadd.f32 %v7359_v9, %v7327_v33  ;;  %v7239_v21 = vadd.f32 1.0, %v9857_v43  ;;  %9878 = vpow2.f32 %v8045_v1  ;;  %v7369_v43 = vld [vmem:[%s10173_s15 + $0xd0] sm:$0xff]  ;;  %v7372_v9 = vld [vmem:[%s10173_s15 + $0xe8] sm:$0xff] }
 0x7f0   : > { %v9861_v15 = vpop.eup %9860  ;;  %7424 = vst.msk [vmem:[%s10173_s15 + $0x88] sm:$0xff] %vm15698_vm4, %v7392_v59  ;;  %v7330_v28 = vmul.f32 %v9859_v11, %v14325_v34  ;;  %9880 = vrcp.f32 %v7240_v5 }
 0x7f1   : > { %v9863_v37 = vpop.eup %9862  ;;  %7423 = vst.msk [vmem:[%s10173_s15 + $0x80] sm:$0xff] %vm15699_vm2, %v7391_v19  ;;  %9882 = vrcp.f32 %v7239_v21  ;;  %v7242_v13 = vadd.f32 1.0, %v9861_v15  ;;  %v7371_v21 = vld [vmem:[%s10173_s15 + $0xe0] sm:$0xff] }
 0x7f2   : > { %v9865_v6 = vpop.eup %9864  ;;  %v7394_v29 = vadd.f32 %v7362_v18, %v7330_v28  ;;  %v7329_v4 = vmul.f32 %v9863_v37, %v14332_v25  ;;  %9884 = vpow2.f32 %v8044_v48  ;;  %v7363_v25 = vld [vmem:[%s10173_s15 + $0xa0] sm:$0xff]  ;;  %v7374_v28 = vld [vmem:[%s10173_s15 + $0xf8] sm:$0xff] }
 0x7f3   : > { %v9867_v31 = vpop.eup %9866  ;;  %v7332_v34 = vmul.f32 %v9865_v6, %v14341_v10  ;;  %9886 = vrcp.f32 %v7242_v13  ;;  %v7373_v13 = vld [vmem:[%s10173_s15 + $0xf0] sm:$0xff] }
 0x7f4   : > { %v9869_v49 = vpop.eup %9868  ;;  %7426 = vst.msk [vmem:[%s10173_s15 + $0x98] sm:$0xff] %vm15700_vm12, %v7394_v29  ;;  %v7393_v17 = vadd.f32 %v7361_v62, %v7329_v4  ;;  %v7331_v54 = vmul.f32 %v9867_v31, %v14347_v30  ;;  %v7366_v30 = vld [vmem:[%s10173_s15 + $0xb8] sm:$0xff] }
 0x7f5   : > { %v9871_v32 = vpop.eup %9870  ;;  %v7396_v58 = vadd.f32 %v7364_v56, %v7332_v34  ;;  %v7241_v27 = vadd.f32 1.0, %v9869_v49 }
 0x7f6   : > { %v9873_v50 = vpop.eup %9872  ;;  %7425 = vst.msk [vmem:[%s10173_s15 + $0x90] sm:$0xff] %vm15701_vm5, %v7393_v17  ;;  %v7395_v10 = vadd.f32 %v7363_v25, %v7331_v54  ;;  %v7244_v26 = vadd.f32 1.0, %v9871_v32 }
 0x7f7   : > { %v9875_v0 = vpop.eup %9874  ;;  %7428 = vst.msk [vmem:[%s10173_s15 + $0xa8] sm:$0xff] %vm15686_vm0, %v7396_v58  ;;  %v7334_v45 = vmul.f32 %v9873_v50, %v14357_v36  ;;  %9888 = vrcp.f32 %v7241_v27 }
 0x7f8   : > { %v9877_v38 = vpop.eup %9876  ;;  %7427 = vst.msk [vmem:[%s10173_s15 + $0xa0] sm:$0xff] %vm15702_vm10, %v7395_v10  ;;  %v7333_v39 = vmul.f32 %v9875_v0, %v14361_v42  ;;  %9890 = vrcp.f32 %v7244_v26  ;;  %v7368_v42 = vld [vmem:[%s10173_s15 + $0xc8] sm:$0xff] }
 0x7f9   : > { %v9879_v2 = vpop.eup %9878  ;;  %v7398_v52 = vadd.f32 %v7366_v30, %v7334_v45  ;;  %v7243_v60 = vadd.f32 1.0, %v9877_v38 }
 0x7fa   : > { %v9881_v7 = vpop.eup %9880  ;;  %v7397_v41 = vadd.f32 %v7365_v47, %v7333_v39  ;;  %v7246_v44 = vadd.f32 1.0, %v9879_v2 }
 0x7fb   : > { %v9883_v36 = vpop.eup %9882  ;;  %7430 = vst.msk [vmem:[%s10173_s15 + $0xb8] sm:$0xff] %vm15703_vm15, %v7398_v52  ;;  %v7336_v23 = vmul.f32 %v9881_v7, %v14373_v63  ;;  %9892 = vrcp.f32 %v7243_v60  ;;  %v7370_v63 = vld [vmem:[%s10173_s15 + $0xd8] sm:$0xff] }
 0x7fc   : > { %v9885_v53 = vpop.eup %9884  ;;  %7429 = vst.msk [vmem:[%s10173_s15 + $0xb0] sm:$0xff] %vm15704_vm14, %v7397_v41  ;;  %v7335_v20 = vmul.f32 %v9883_v36, %v14377_v14  ;;  %9894 = vrcp.f32 %v7246_v44 }
 0x7fd   : > { %v9887_v12 = vpop.eup %9886  ;;  %v7400_v8 = vadd.f32 %v7368_v42, %v7336_v23  ;;  %v7245_v61 = vadd.f32 1.0, %v9885_v53 }
 0x7fe   : > { %v7399_v35 = vadd.f32 %v7367_v57, %v7335_v20  ;;  %v7338_v1 = vmul.f32 %v9887_v12, %v14389_v3 }
 0x7ff   : > { %7432 = vst.msk [vmem:[%s10173_s15 + $0xc8] sm:$0xff] %vm15705_vm6, %v7400_v8  ;;  %9896 = vrcp.f32 %v7245_v61 }
 0x800   : > { %7431 = vst.msk [vmem:[%s10173_s15 + $0xc0] sm:$0xff] %vm15706_vm1, %v7399_v35  ;;  %v7402_v14 = vadd.f32 %v7370_v63, %v7338_v1 }
 0x801   : > { %v9889_v51 = vpop.eup %9888 }
 0x802   : > { %v9891_v40 = vpop.eup %9890  ;;  %7434 = vst.msk [vmem:[%s10173_s15 + $0xd8] sm:$0xff] %vm15707_vm11, %v7402_v14  ;;  %v7337_v33 = vmul.f32 %v9889_v51, %v14393_v55 }
 0x803   : > { %v7340_v3 = vmul.f32 %v9891_v40, %v14404_v46 }
 0x804   : > { %v7401_v59 = vadd.f32 %v7369_v43, %v7337_v33 }
 0x805   : > { %v9893_v5 = vpop.eup %9892  ;;  %v7404_v48 = vadd.f32 %v7372_v9, %v7340_v3 }
 0x806   : > { %v9895_v11 = vpop.eup %9894  ;;  %7433 = vst.msk [vmem:[%s10173_s15 + $0xd0] sm:$0xff] %vm15708_vm3, %v7401_v59  ;;  %v7339_v19 = vmul.f32 %v9893_v5, %v14407_v16 }
 0x807   : > { %7436 = vst.msk [vmem:[%s10173_s15 + $0xe8] sm:$0xff] %vm15709_vm7, %v7404_v48  ;;  %v7342_v55 = vmul.f32 %v9895_v11, %v14418_v24 }
 0x808   : > { %v7403_v15 = vadd.f32 %v7371_v21, %v7339_v19 }
 0x809   : > { %v9897_v46 = vpop.eup %9896  ;;  %v7406_v37 = vadd.f32 %v7374_v28, %v7342_v55 }
 0x80a   : > { %7435 = vst.msk [vmem:[%s10173_s15 + $0xe0] sm:$0xff] %vm15710_vm8, %v7403_v15  ;;  %v7341_v18 = vmul.f32 %v9897_v46, %v14421_v22 }
 0x80b   : > { %7438 = vst.msk [vmem:[%s10173_s15 + $0xf8] sm:$0xff] %vm15711_vm9, %v7406_v37 }
 0x80c   : > { %v7405_v6 = vadd.f32 %v7373_v13, %v7341_v18 }
 0x80e   : > { %7437 = vst.msk [vmem:[%s10173_s15 + $0xf0] sm:$0xff] %vm15712_vm13, %v7405_v6 }
 0x80f PF: > { %s17_s24 = sadd.s32 1, %s9905_s24  }
 0x810   : > { %p14_p4 = scmp.ge.s32.totalorder %s17_s24, 4  }
 0x812   :  { %16 = sbr.rel (!%p14_p4) target bundleno = 1 (0x1), region = 88 }

</bundles_post_ra>
